<compile_context>
chip_gen: v7x
topology: tpu7x:2x2x1
jax: 0.10.0
libtpu: 0.0.40
codegen_flags: <defaults>
</compile_context>

<pallas_src>
import jax
import jax.numpy as jnp
from jax.experimental import pallas as pl
from jax.experimental.pallas import tpu as pltpu

# Problem dimensions (fixed by the module definition)
C_SE = 96        # squeeze-excite bottleneck channels
C_MID = 2304     # expanded channels
C_OUT = 384      # projected channels
H = W = 7
HW = H * W       # 49 spatial positions
BN_EPS = 1e-3

# Advisory cost for XLA scheduling (memory-bound custom call).
_FLOPS = 2 * C_OUT * C_MID * HW + 2 * C_MID * (C_SE + 1) + 2 * C_MID * HW
_TRANSCENDENTALS = C_MID + C_OUT
_BYTES = ((C_SE + 1) * 2                 # xse (bf16)
          + C_MID * (C_SE + 1) * 2       # w1 + folded bias (bf16)
          + C_MID * HW * 4               # x (f32)
          + C_OUT * C_MID * 2            # w2 (bf16)
          + 2 * C_OUT * 4                # gamma, beta
          + C_OUT * HW * 4)              # output (f32)


def _num_output_tiles():
    """2-way output-channel split only on megacore chips (the 'parallel' grid
    axis shards across TensorCores there); single grid step elsewhere."""
    try:
        kind = jax.devices()[0].device_kind.lower()
    except Exception:  # pragma: no cover - defensive fallback
        return 1
    return 2 if any(tag in kind for tag in ("v7", "7x", "v4")) else 1


def _kernel(xse_ref, w1_ref, x_ref, w2_ref, gamma_ref, beta_ref, out_ref):
    # --- SE gate on the MXU: sigmoid(w1 @ xse), bias folded into w1's last
    #     column (xse has a trailing 1.0).  bf16 x bf16 -> f32 accumulate. ----
    y = jnp.dot(w1_ref[...], xse_ref[...],
                preferred_element_type=jnp.float32)                  # [C_MID, 1]
    gate = jax.nn.sigmoid(y)                                         # [C_MID, 1] f32

    # --- gate the expanded feature map (lane broadcast of per-channel gate) --
    xg = (x_ref[...] * gate).astype(jnp.bfloat16)                    # [C_MID, HW]

    # --- projection 1x1 conv: [TILE, C_MID] @ [C_MID, HW], f32 accumulate ----
    z = jnp.dot(w2_ref[...], xg, preferred_element_type=jnp.float32) # [TILE, HW]

    # --- BatchNorm2d (training mode): batch stats over N*H*W = 49 ------------
    n = jnp.float32(HW)
    mean = jnp.sum(z, axis=1, keepdims=True) / n                     # [TILE, 1]
    zc = z - mean
    var = jnp.sum(zc * zc, axis=1, keepdims=True) / n                # two-pass var
    scale = jax.lax.rsqrt(var + BN_EPS) * gamma_ref[...]             # fold gamma
    out_ref[...] = zc * scale + beta_ref[...]


def prepare_params(w1, b1, w2, gamma, beta):
    """One-time weight prep (run OUTSIDE the per-step jit): native [Cout, Cin]
    layout, conv1 bias folded into an extra w1 column, matmul weights bf16."""
    w1_aug = jnp.concatenate(
        [w1.reshape(C_MID, C_SE), b1.reshape(C_MID, 1)], axis=1
    ).astype(jnp.bfloat16)                                            # [2304, 97]
    w2m = w2.reshape(C_OUT, C_MID).astype(jnp.bfloat16)               # [384, 2304]
    gamma_c = gamma.reshape(C_OUT, 1).astype(jnp.float32)             # [384, 1]
    beta_c = beta.reshape(C_OUT, 1).astype(jnp.float32)               # [384, 1]
    return w1_aug, w2m, gamma_c, beta_c


def se_conv_bn(x760, x757, w1_aug, w2m, gamma_c, beta_c):
    """x760: [1,96,1,1], x757: [1,2304,7,7]; prepared params -> [1,384,7,7]."""
    n_tiles = _num_output_tiles()          # static at trace time
    tile_co = C_OUT // n_tiles

    # SE input as a [97,1] column (trailing 1.0 applies the folded bias); bf16
    # so the gate matvec is a native MXU bf16 x bf16 matmul.
    xse = jnp.concatenate(
        [x760.reshape(C_SE, 1), jnp.ones((1, 1), x760.dtype)], axis=0
    ).astype(jnp.bfloat16)                                            # [97, 1]
    # NCHW with N=1 and 1x1 kernels: channels-first matrix is a free reshape.
    x_cf = x757.reshape(C_MID, HW).astype(jnp.float32)                # [2304, 49]

    out = pl.pallas_call(
        _kernel,
        out_shape=jax.ShapeDtypeStruct((C_OUT, HW), jnp.float32),
        grid=(n_tiles,),
        in_specs=[
            pl.BlockSpec((C_SE + 1, 1), lambda i: (0, 0)),        # xse   (constant)
            pl.BlockSpec((C_MID, C_SE + 1), lambda i: (0, 0)),    # w1+b1 (constant)
            pl.BlockSpec((C_MID, HW), lambda i: (0, 0)),          # x     (constant)
            pl.BlockSpec((tile_co, C_MID), lambda i: (i, 0)),     # w2 tile
            pl.BlockSpec((tile_co, 1), lambda i: (i, 0)),         # gamma tile
            pl.BlockSpec((tile_co, 1), lambda i: (i, 0)),         # beta tile
        ],
        out_specs=pl.BlockSpec((tile_co, HW), lambda i: (i, 0)),
        compiler_params=pltpu.CompilerParams(
            dimension_semantics=("parallel",),
            vmem_limit_bytes=32 * 1024 * 1024),
        cost_estimate=pl.CostEstimate(
            flops=_FLOPS, transcendentals=_TRANSCENDENTALS,
            bytes_accessed=_BYTES),
    )(xse, w1_aug, x_cf, w2m, gamma_c, beta_c)

    # [384, 49] -> NCHW [1, 384, 7, 7]: pure reshape, no transpose.
    return out.reshape(1, C_OUT, H, W)


def _reference(x760, x757, w1, b1, w2, gamma, beta):
    """Pure-JAX f32 reference replicating the PyTorch forward (training-mode BN)."""
    y = x760.reshape(1, C_SE) @ jnp.transpose(w1.reshape(C_MID, C_SE)) + b1
    gate = jax.nn.sigmoid(y).reshape(1, C_MID, 1, 1)
    gated = gate * x757
    z = jnp.einsum('nchw,oc->nohw', gated, w2.reshape(C_OUT, C_MID),
                   precision=jax.lax.Precision.HIGHEST)
    mean = z.mean(axis=(0, 2, 3), keepdims=True)
    var = ((z - mean) ** 2).mean(axis=(0, 2, 3), keepdims=True)
    return ((z - mean) * jax.lax.rsqrt(var + BN_EPS)
            * gamma.reshape(1, C_OUT, 1, 1) + beta.reshape(1, C_OUT, 1, 1))


if __name__ == "__main__":
    key = jax.random.PRNGKey(0)
    k = jax.random.split(key, 7)

    # Inputs (shapes implied by the module's forward)
    x757 = jax.random.normal(k[0], (1, C_MID, H, W), dtype=jnp.float32)
    x760 = jax.random.normal(k[1], (1, C_SE, 1, 1), dtype=jnp.float32)

    # Deterministic synthetic parameters (shapes from __init__)
    w1 = jax.random.normal(k[2], (C_MID, C_SE, 1, 1), dtype=jnp.float32) * 0.05
    b1 = jax.random.normal(k[3], (C_MID,), dtype=jnp.float32) * 0.05
    w2 = jax.random.normal(k[4], (C_OUT, C_MID, 1, 1), dtype=jnp.float32) * 0.02
    gamma = 1.0 + 0.1 * jax.random.normal(k[5], (C_OUT,), dtype=jnp.float32)
    beta = 0.1 * jax.random.normal(k[6], (C_OUT,), dtype=jnp.float32)

    # One-time weight prep outside the jitted per-step function.
    params = prepare_params(w1, b1, w2, gamma, beta)
    run = jax.jit(se_conv_bn)

    out = jax.block_until_ready(run(x760, x757, *params))
    assert out.shape == (1, C_OUT, H, W), out.shape

    ref = _reference(x760, x757, w1, b1, w2, gamma, beta)
    # Tolerance reflects bf16 matmul weights/activations vs. an f32 HIGHEST
    # reference on a unit-variance (BN-normalized) output; the f32-weight
    # variant of this kernel matches to ~1e-5.
    err = float(jnp.max(jnp.abs(out - ref)))
    assert jnp.allclose(out, ref, atol=5e-2, rtol=5e-2), err

    print("KERNEL_OK")
</pallas_src>

<mosaic_0001>
module attributes {stable_mosaic.version = 11 : i64} {
  func.func @_kernel(%arg0: i32, %arg1: memref<97x1xbf16, #tpu.memory_space<vmem>>, %arg2: memref<2304x97xbf16, #tpu.memory_space<vmem>>, %arg3: memref<2304x49xf32, #tpu.memory_space<vmem>>, %arg4: memref<384x2304xbf16, #tpu.memory_space<vmem>>, %arg5: memref<384x1xf32, #tpu.memory_space<vmem>>, %arg6: memref<384x1xf32, #tpu.memory_space<vmem>>, %arg7: memref<384x49xf32, #tpu.memory_space<vmem>>) attributes {dimension_semantics = [#tpu.dimension_semantics<parallel>], iteration_bounds = array<i64: 1>, scalar_prefetch = 0 : i64, scratch_operands = 0 : i64, tpu.core_type = #tpu.core_type<tc>, window_params = [{pipeline_mode = #tpu.pipeline_mode<synchronous>, transform_indices = @transform_0, window_bounds = array<i64: 97, 1>}, {pipeline_mode = #tpu.pipeline_mode<synchronous>, transform_indices = @transform_1, window_bounds = array<i64: 2304, 97>}, {pipeline_mode = #tpu.pipeline_mode<synchronous>, transform_indices = @transform_2, window_bounds = array<i64: 2304, 49>}, {transform_indices = @transform_3, window_bounds = array<i64: 384, 2304>}, {transform_indices = @transform_4, window_bounds = array<i64: 384, 1>}, {transform_indices = @transform_5, window_bounds = array<i64: 384, 1>}, {transform_indices = @transform_6, window_bounds = array<i64: 384, 49>}]} {
    %c0 = arith.constant 0 : index
    %c0_0 = arith.constant 0 : index
    %0 = vector.load %arg2[%c0, %c0_0] : memref<2304x97xbf16, #tpu.memory_space<vmem>>, vector<2304x97xbf16>
    %c0_1 = arith.constant 0 : index
    %c0_2 = arith.constant 0 : index
    %1 = vector.load %arg1[%c0_1, %c0_2] : memref<97x1xbf16, #tpu.memory_space<vmem>>, vector<97x1xbf16>
    %cst = arith.constant dense<0.000000e+00> : vector<2304x1xf32>
    %2 = tpu.matmul %0, %1, %cst {dimension_numbers = #tpu.dot_dimension_numbers<[1], [0], [0], [1], [0, 0, 1, 1], [], []>} : vector<2304x97xbf16>, vector<97x1xbf16>, vector<2304x1xf32> -> vector<2304x1xf32>
    %3 = arith.negf %2 : vector<2304x1xf32>
    %4 = math.exp %3 : vector<2304x1xf32>
    %cst_3 = arith.constant 1.000000e+00 : f32
    %5 = vector.broadcast %cst_3 : f32 to vector<2304x1xf32>
    %6 = arith.addf %5, %4 : vector<2304x1xf32>
    %7 = arith.divf %5, %6 : vector<2304x1xf32>
    %c0_4 = arith.constant 0 : index
    %c0_5 = arith.constant 0 : index
    %8 = vector.load %arg3[%c0_4, %c0_5] : memref<2304x49xf32, #tpu.memory_space<vmem>>, vector<2304x49xf32>
    %9 = vector.broadcast %7 : vector<2304x1xf32> to vector<2304x49xf32>
    %10 = arith.mulf %8, %9 : vector<2304x49xf32>
    %11 = arith.truncf %10 : vector<2304x49xf32> to vector<2304x49xbf16>
    %c0_6 = arith.constant 0 : index
    %c0_7 = arith.constant 0 : index
    %12 = vector.load %arg4[%c0_6, %c0_7] : memref<384x2304xbf16, #tpu.memory_space<vmem>>, vector<384x2304xbf16>
    %cst_8 = arith.constant dense<0.000000e+00> : vector<384x49xf32>
    %13 = tpu.matmul %12, %11, %cst_8 {dimension_numbers = #tpu.dot_dimension_numbers<[1], [0], [0], [1], [0, 0, 1, 1], [], []>} : vector<384x2304xbf16>, vector<2304x49xbf16>, vector<384x49xf32> -> vector<384x49xf32>
    %cst_9 = arith.constant dense<0.000000e+00> : vector<384xf32>
    %14 = vector.multi_reduction <add>, %13, %cst_9 [1] : vector<384x49xf32> to vector<384xf32>
    %15 = vector.shape_cast %14 : vector<384xf32> to vector<384x1xf32>
    %cst_10 = arith.constant 4.900000e+01 : f32
    %16 = vector.broadcast %cst_10 : f32 to vector<384x1xf32>
    %17 = arith.divf %15, %16 : vector<384x1xf32>
    %18 = vector.broadcast %17 : vector<384x1xf32> to vector<384x49xf32>
    %19 = arith.subf %13, %18 : vector<384x49xf32>
    %20 = arith.mulf %19, %19 : vector<384x49xf32>
    %cst_11 = arith.constant dense<0.000000e+00> : vector<384xf32>
    %21 = vector.multi_reduction <add>, %20, %cst_11 [1] : vector<384x49xf32> to vector<384xf32>
    %22 = vector.shape_cast %21 : vector<384xf32> to vector<384x1xf32>
    %cst_12 = arith.constant 4.900000e+01 : f32
    %23 = vector.broadcast %cst_12 : f32 to vector<384x1xf32>
    %24 = arith.divf %22, %23 : vector<384x1xf32>
    %cst_13 = arith.constant 1.000000e-03 : f32
    %25 = vector.broadcast %cst_13 : f32 to vector<384x1xf32>
    %26 = arith.addf %24, %25 : vector<384x1xf32>
    %27 = math.rsqrt %26 : vector<384x1xf32>
    %c0_14 = arith.constant 0 : index
    %c0_15 = arith.constant 0 : index
    %28 = vector.load %arg5[%c0_14, %c0_15] : memref<384x1xf32, #tpu.memory_space<vmem>>, vector<384x1xf32>
    %29 = arith.mulf %27, %28 : vector<384x1xf32>
    %30 = vector.broadcast %29 : vector<384x1xf32> to vector<384x49xf32>
    %31 = arith.mulf %19, %30 : vector<384x49xf32>
    %c0_16 = arith.constant 0 : index
    %c0_17 = arith.constant 0 : index
    %32 = vector.load %arg6[%c0_16, %c0_17] : memref<384x1xf32, #tpu.memory_space<vmem>>, vector<384x1xf32>
    %33 = vector.broadcast %32 : vector<384x1xf32> to vector<384x49xf32>
    %34 = arith.addf %31, %33 : vector<384x49xf32>
    %c0_18 = arith.constant 0 : index
    %c0_19 = arith.constant 0 : index
    %35 = vector.load %arg7[%c0_18, %c0_19] : memref<384x49xf32, #tpu.memory_space<vmem>>, vector<384x49xf32>
    tpu.vector_store %arg7[%c0_18, %c0_19], %34 {strides = array<i32>} : memref<384x49xf32, #tpu.memory_space<vmem>>, vector<384x49xf32>,
    return
  }
  func.func @transform_0(%arg0: i32) -> (i32, i32) {
    %c0_i32 = arith.constant 0 : i32
    %c0_i32_0 = arith.constant 0 : i32
    %c0_i32_1 = arith.constant 0 : i32
    return %c0_i32, %c0_i32_0 : i32, i32
  }
  func.func @transform_1(%arg0: i32) -> (i32, i32) {
    %c0_i32 = arith.constant 0 : i32
    %c0_i32_0 = arith.constant 0 : i32
    %c0_i32_1 = arith.constant 0 : i32
    return %c0_i32, %c0_i32_0 : i32, i32
  }
  func.func @transform_2(%arg0: i32) -> (i32, i32) {
    %c0_i32 = arith.constant 0 : i32
    %c0_i32_0 = arith.constant 0 : i32
    %c0_i32_1 = arith.constant 0 : i32
    return %c0_i32, %c0_i32_0 : i32, i32
  }
  func.func @transform_3(%arg0: i32) -> (i32, i32) {
    %c0_i32 = arith.constant 0 : i32
    %c0_i32_0 = arith.constant 0 : i32
    return %arg0, %c0_i32 : i32, i32
  }
  func.func @transform_4(%arg0: i32) -> (i32, i32) {
    %c0_i32 = arith.constant 0 : i32
    %c0_i32_0 = arith.constant 0 : i32
    return %arg0, %c0_i32 : i32, i32
  }
  func.func @transform_5(%arg0: i32) -> (i32, i32) {
    %c0_i32 = arith.constant 0 : i32
    %c0_i32_0 = arith.constant 0 : i32
    return %arg0, %c0_i32 : i32, i32
  }
  func.func @transform_6(%arg0: i32) -> (i32, i32) {
    %c0_i32 = arith.constant 0 : i32
    %c0_i32_0 = arith.constant 0 : i32
    return %arg0, %c0_i32 : i32, i32
  }
}

</mosaic_0001>

<bundles_post_ra>
// kernel: se_conv_bn.1
= control target key start
LH: loop header
LB: loop body
LE: loop exit
PB: predicated region body
PF: predicated region fallthrough
CT: control target
= control target key end

     0   :  { %v22554_v1 = vmov 0   ;;  %vm1084_vm0 = vcmask 793600   ;;  %vm1517_vm1 = vcmask 1040384   ;;  %vm11213_vm2 = vcmask 400384   ;;  %s22547_s0 = inlined_call_operand.vmem [shape: bf16[97,1], index: 0, kind: input, shape index: {}]   ;;  %s22548_s1 = inlined_call_operand.vmem [shape: bf16[2304,97], index: 1, kind: input, shape index: {}]   ;;  %s22549_s2 = inlined_call_operand.vmem [shape: f32[2304,49], index: 2, kind: input, shape index: {}]   ;;  %s22550_s3 = inlined_call_operand.vmem [shape: bf16[384,2304], index: 3, kind: input, shape index: {}]   ;;  %s22551_s5 = inlined_call_operand.vmem [shape: f32[384,1], index: 5, kind: input, shape index: {}]   ;;  %s22552_s4 = inlined_call_operand.vmem [shape: f32[384,1], index: 4, kind: input, shape index: {}]   ;;  %s22553_s6 = inlined_call_operand.vmem [shape: f32[384,49], index: 6, kind: output, shape index: {}]  }
   0x1   :  { %v14786_v0 = vld [vmem:[%s22547_s0] sm:$0xff]   ;;  %14784 = vset.pattern.permute.xlu1 %v22554_v1  ;;  %14785 = vset.pattern.permute.xlu0 %v22554_v1  ;;  %v14787_v2 = vld [vmem:[%s22547_s0 + $0x8] sm:$0xff]   ;;  %v14788_v3 = vld [vmem:[%s22547_s0 + $0x10] sm:$0xff]   ;;  %v1519_v9 = vsel %vm1517_vm1, 65535, %v22554_v1 }
   0x2   :  { %14031 = vmatprep.subr.bf16.mxu1 %v22554_v1  ;;  %13729 = vmatprep.subr.bf16.mxu0 %v14786_v0  ;;  %v14793_v4 = vld [vmem:[%s22548_s1] sm:$0xff]   ;;  %v14789_v5 = vld [vmem:[%s22547_s0 + $0x18] sm:$0xff]   ;;  %v14792_v7 = vld [vmem:[%s22547_s0 + $0x30] ss:$0 sps:$4 sm:$0x11]  }
   0x3   :  { %13730 = vmatpush3.bf16.msra.mxu0 %v14786_v0  ;;  %13743 = vmatprep.mubr.msk.bf16.mxu0 %vm1084_vm0, %v14793_v4  ;;  %v14790_v6 = vld [vmem:[%s22547_s0 + $0x20] sm:$0xff]   ;;  %v14791_v8 = vld [vmem:[%s22547_s0 + $0x28] sm:$0xff]   ;;  %v1521_v10 = vand.u32 %v14792_v7, %v1519_v9  ;;  %v14795_v12 = vld [vmem:[%s22548_s1 + $0x10] sm:$0xff]  }
   0x4   :  { %13731 = vmatprep.subr.bf16.mxu0 %v14787_v2  ;;  %v14794_v11 = vld [vmem:[%s22548_s1 + $0x8] sm:$0xff]   ;;  %v14796_v13 = vld [vmem:[%s22548_s1 + $0x18] sm:$0xff]   ;;  %v14797_v14 = vld [vmem:[%s22548_s1 + $0x20] sm:$0xff]  }
   0x5   :  { %v14798_v15 = vld [vmem:[%s22548_s1 + $0x28] sm:$0xff]   ;;  %v14799_v16 = vld [vmem:[%s22548_s1 + $0x30] sm:$0xff]   ;;  %v14800_v17 = vld [vmem:[%s22548_s1 + $0x38] sm:$0xff]  }
   0x6   :  { %v14801_v18 = vld [vmem:[%s22548_s1 + $0x40] sm:$0xff]   ;;  %v14802_v19 = vld [vmem:[%s22548_s1 + $0x48] sm:$0xff]   ;;  %v14803_v20 = vld [vmem:[%s22548_s1 + $0x50] sm:$0xff]  }
   0x7   :  { %13732 = vmatpush3.bf16.msra.mxu0 %v14787_v2  ;;  %v14804_v21 = vld [vmem:[%s22548_s1 + $0x58] sm:$0xff]   ;;  %v14805_v22 = vld [vmem:[%s22548_s1 + $0x60] sm:$0xff]   ;;  %v14806_v23 = vld [vmem:[%s22548_s1 + $0x68] sm:$0xff]  }
   0x8   :  { %13733 = vmatprep.subr.bf16.mxu0 %v14788_v3  ;;  %v14807_v24 = vld [vmem:[%s22548_s1 + $0x70] sm:$0xff]   ;;  %v14808_v25 = vld [vmem:[%s22548_s1 + $0x78] sm:$0xff]   ;;  %v14809_v26 = vld [vmem:[%s22548_s1 + $0x80] sm:$0xff]  }
   0x9   :  { %v14810_v27 = vld [vmem:[%s22548_s1 + $0x88] sm:$0xff]   ;;  %v14811_v28 = vld [vmem:[%s22548_s1 + $0x90] sm:$0xff]   ;;  %v14812_v29 = vld [vmem:[%s22548_s1 + $0x98] sm:$0xff]  }
   0xa   :  { %v14813_v30 = vld [vmem:[%s22548_s1 + $0xa0] sm:$0xff]   ;;  %v14814_v31 = vld [vmem:[%s22548_s1 + $0xa8] sm:$0xff]   ;;  %v14815_v32 = vld [vmem:[%s22548_s1 + $0xb0] sm:$0xff]  }
   0xb   :  { %13734 = vmatpush3.bf16.msra.mxu0 %v14788_v3  ;;  %v14816_v33 = vld [vmem:[%s22548_s1 + $0xb8] sm:$0xff]   ;;  %v14817_v34 = vld [vmem:[%s22548_s1 + $0xc0] sm:$0xff]   ;;  %v14818_v35 = vld [vmem:[%s22548_s1 + $0xc8] sm:$0xff]  }
   0xc   :  { %13735 = vmatprep.subr.bf16.mxu0 %v14789_v5  ;;  %v14819_v36 = vld [vmem:[%s22548_s1 + $0xd0] sm:$0xff]   ;;  %v14820_v37 = vld [vmem:[%s22548_s1 + $0xd8] sm:$0xff]   ;;  %v14821_v38 = vld [vmem:[%s22548_s1 + $0xe0] sm:$0xff]  }
   0xd   :  { %v14822_v39 = vld [vmem:[%s22548_s1 + $0xe8] sm:$0xff]   ;;  %v14823_v40 = vld [vmem:[%s22548_s1 + $0xf0] sm:$0xff]   ;;  %v14824_v41 = vld [vmem:[%s22548_s1 + $0xf8] sm:$0xff]  }
   0xe   :  { %v14825_v42 = vld [vmem:[%s22548_s1 + $0x100] sm:$0xff]   ;;  %v14826_v43 = vld [vmem:[%s22548_s1 + $0x108] sm:$0xff]   ;;  %v14827_v44 = vld [vmem:[%s22548_s1 + $0x110] sm:$0xff]  }
   0xf   :  { %13736 = vmatpush3.bf16.msra.mxu0 %v14789_v5  ;;  %v14828_v45 = vld [vmem:[%s22548_s1 + $0x118] sm:$0xff]   ;;  %v14829_v46 = vld [vmem:[%s22548_s1 + $0x120] sm:$0xff]   ;;  %v14830_v47 = vld [vmem:[%s22548_s1 + $0x128] sm:$0xff]  }
  0x10   :  { %13737 = vmatprep.subr.bf16.mxu0 %v14790_v6  ;;  %v14831_v48 = vld [vmem:[%s22548_s1 + $0x130] sm:$0xff]   ;;  %v14832_v49 = vld [vmem:[%s22548_s1 + $0x138] sm:$0xff]   ;;  %v14833_v50 = vld [vmem:[%s22548_s1 + $0x140] sm:$0xff]  }
  0x11   :  { %v14834_v51 = vld [vmem:[%s22548_s1 + $0x148] sm:$0xff]   ;;  %v14835_v52 = vld [vmem:[%s22548_s1 + $0x150] sm:$0xff]   ;;  %v14836_v53 = vld [vmem:[%s22548_s1 + $0x158] sm:$0xff]  }
  0x12   :  { %v14837_v54 = vld [vmem:[%s22548_s1 + $0x160] sm:$0xff]   ;;  %v14838_v55 = vld [vmem:[%s22548_s1 + $0x168] sm:$0xff]   ;;  %v14839_v56 = vld [vmem:[%s22548_s1 + $0x170] sm:$0xff]  }
  0x13   :  { %13738 = vmatpush3.bf16.msra.mxu0 %v14790_v6  ;;  %v14840_v57 = vld [vmem:[%s22548_s1 + $0x178] sm:$0xff]   ;;  %v14841_v58 = vld [vmem:[%s22548_s1 + $0x180] sm:$0xff]   ;;  %v14842_v59 = vld [vmem:[%s22548_s1 + $0x188] sm:$0xff]  }
  0x14   :  { %13739 = vmatprep.subr.bf16.mxu0 %v14791_v8  ;;  %v14843_v60 = vld [vmem:[%s22548_s1 + $0x190] sm:$0xff]   ;;  %v14844_v61 = vld [vmem:[%s22548_s1 + $0x198] sm:$0xff]   ;;  %v14845_v62 = vld [vmem:[%s22548_s1 + $0x1a0] sm:$0xff]  }
  0x15   :  { %v14846_v63 = vld [vmem:[%s22548_s1 + $0x1a8] sm:$0xff]   ;;  %v14847_v0 = vld [vmem:[%s22548_s1 + $0x1b0] sm:$0xff]   ;;  %v14848_v5 = vld [vmem:[%s22548_s1 + $0x1b8] sm:$0xff]  }
  0x17   :  { %13740 = vmatpush3.bf16.msra.mxu0 %v14791_v8  ;;  %v14849_v8 = vld [vmem:[%s22548_s1 + $0x1c0] sm:$0xff]  }
  0x18   :  { %13741 = vmatprep.subr.bf16.mxu0 %v1521_v10 }
  0x1b   :  { %13742 = vmatpush3.bf16.msra.mxu0 %v1521_v10 }
  0x1c   :  { %9188 = vmatprep.subr.bf16.mxu0 %v22554_v1 }
  0x1e   :  { %13744 = vmatmul.mubr.msk.bf16.vlgmr.msra.gmra.mrb[0].mxu0 %vm1084_vm0, %v14794_v11 }
  0x1f   :  { %13747 = vmatprep.mubr.msk.bf16.mxu0 %vm1084_vm0, %v14795_v12 }
  0x26   :  { %13748 = vmatmul.mubr.msk.bf16.gmra.mrb[4].mxu0 %vm1084_vm0, %v14796_v13 }
  0x27   :  { %13751 = vmatprep.mubr.msk.bf16.mxu0 %vm1084_vm0, %v14797_v14 }
  0x2e   :  { %13752 = vmatmul.mubr.msk.bf16.gmra.mrb[8].mxu0 %vm1084_vm0, %v14798_v15  ;;  %v14850_v15 = vld [vmem:[%s22548_s1 + $0x1c8] sm:$0xff]  }
  0x2f   :  { %13755 = vmatprep.mubr.msk.bf16.mxu0 %vm1084_vm0, %v14799_v16 }
  0x36   :  { %13756 = vmatmul.mubr.msk.bf16.gmra.mrb[12].mxu0 %vm1084_vm0, %v14800_v17 }
  0x37   :  { %13759 = vmatprep.mubr.msk.bf16.mxu0 %vm1084_vm0, %v14801_v18  ;;  %v14851_v18 = vld [vmem:[%s22548_s1 + $0x1d0] sm:$0xff]  }
  0x3e   :  { %13760 = vmatmul.mubr.msk.bf16.gmra.mrb[16].mxu0 %vm1084_vm0, %v14802_v19 }
  0x3f   :  { %13763 = vmatprep.mubr.msk.bf16.mxu0 %vm1084_vm0, %v14803_v20 }
  0x46   :  { %13764 = vmatmul.mubr.msk.bf16.gmra.mrb[20].mxu0 %vm1084_vm0, %v14804_v21 }
  0x47   :  { %13767 = vmatprep.mubr.msk.bf16.mxu0 %vm1084_vm0, %v14805_v22 }
  0x4e   :  { %13768 = vmatmul.mubr.msk.bf16.gmra.mrb[24].mxu0 %vm1084_vm0, %v14806_v23 }
  0x4f   :  { %13771 = vmatprep.mubr.msk.bf16.mxu0 %vm1084_vm0, %v14807_v24 }
  0x56   :  { %13772 = vmatmul.mubr.msk.bf16.gmra.mrb[28].mxu0 %vm1084_vm0, %v14808_v25 }
  0x57   :  { %13775 = vmatprep.mubr.msk.bf16.mxu0 %vm1084_vm0, %v14809_v26 }
  0x5e   :  { %13776 = vmatmul.mubr.msk.bf16.gmra.mrb[32].mxu0 %vm1084_vm0, %v14810_v27 }
  0x5f   :  { %13779 = vmatprep.mubr.msk.bf16.mxu0 %vm1084_vm0, %v14811_v28 }
  0x66   :  { %13780 = vmatmul.mubr.msk.bf16.gmra.mrb[36].mxu0 %vm1084_vm0, %v14812_v29 }
  0x67   :  { %13783 = vmatprep.mubr.msk.bf16.mxu0 %vm1084_vm0, %v14813_v30 }
  0x6e   :  { %13784 = vmatmul.mubr.msk.bf16.gmra.mrb[40].mxu0 %vm1084_vm0, %v14814_v31 }
  0x6f   :  { %13787 = vmatprep.mubr.msk.bf16.mxu0 %vm1084_vm0, %v14815_v32 }
  0x76   :  { %13788 = vmatmul.mubr.msk.bf16.gmra.mrb[44].mxu0 %vm1084_vm0, %v14816_v33  ;;  %v14852_v33 = vld [vmem:[%s22548_s1 + $0x1d8] sm:$0xff]  }
  0x77   :  { %13791 = vmatprep.mubr.msk.bf16.mxu0 %vm1084_vm0, %v14817_v34 }
  0x7e   :  { %13792 = vmatmul.mubr.msk.bf16.gmra.mrb[48].mxu0 %vm1084_vm0, %v14818_v35 }
  0x7f   :  { %13795 = vmatprep.mubr.msk.bf16.mxu0 %vm1084_vm0, %v14819_v36  ;;  %v14853_v36 = vld [vmem:[%s22548_s1 + $0x1e0] sm:$0xff]  }
  0x86   :  { %13796 = vmatmul.mubr.msk.bf16.gmra.mrb[52].mxu0 %vm1084_vm0, %v14820_v37 }
  0x87   :  { %13799 = vmatprep.mubr.msk.bf16.mxu0 %vm1084_vm0, %v14821_v38 }
  0x8e   :  { %13800 = vmatmul.mubr.msk.bf16.gmra.mrb[56].mxu0 %vm1084_vm0, %v14822_v39 }
  0x8f   :  { %13803 = vmatprep.mubr.msk.bf16.mxu0 %vm1084_vm0, %v14823_v40 }
  0x96   :  { %13804 = vmatmul.mubr.msk.bf16.gmra.mrb[60].mxu0 %vm1084_vm0, %v14824_v41 }
  0x97   :  { %13807 = vmatprep.mubr.msk.bf16.mxu0 %vm1084_vm0, %v14825_v42 }
  0x9e   :  { %13808 = vmatmul.mubr.msk.bf16.gmra.mrb[64].mxu0 %vm1084_vm0, %v14826_v43 }
  0x9f   :  { %13811 = vmatprep.mubr.msk.bf16.mxu0 %vm1084_vm0, %v14827_v44 }
  0xa6   :  { %13812 = vmatmul.mubr.msk.bf16.gmra.mrb[68].mxu0 %vm1084_vm0, %v14828_v45 }
  0xa7   :  { %13815 = vmatprep.mubr.msk.bf16.mxu0 %vm1084_vm0, %v14829_v46 }
  0xae   :  { %13816 = vmatmul.mubr.msk.bf16.gmra.mrb[72].mxu0 %vm1084_vm0, %v14830_v47 }
  0xaf   :  { %13819 = vmatprep.mubr.msk.bf16.mxu0 %vm1084_vm0, %v14831_v48 }
  0xb6   :  { %13820 = vmatmul.mubr.msk.bf16.gmra.mrb[76].mxu0 %vm1084_vm0, %v14832_v49  ;;  %v14854_v49 = vld [vmem:[%s22548_s1 + $0x1e8] sm:$0xff]  }
  0xb7   :  { %13823 = vmatprep.mubr.msk.bf16.mxu0 %vm1084_vm0, %v14833_v50 }
  0xbe   :  { %13824 = vmatmul.mubr.msk.bf16.gmra.mrb[80].mxu0 %vm1084_vm0, %v14834_v51 }
  0xbf   :  { %13827 = vmatprep.mubr.msk.bf16.mxu0 %vm1084_vm0, %v14835_v52 }
  0xc6   :  { %13828 = vmatmul.mubr.msk.bf16.gmra.mrb[84].mxu0 %vm1084_vm0, %v14836_v53  ;;  %v14855_v53 = vld [vmem:[%s22548_s1 + $0x1f0] sm:$0xff]  }
  0xc7   :  { %13831 = vmatprep.mubr.msk.bf16.mxu0 %vm1084_vm0, %v14837_v54 }
  0xce   :  { %13832 = vmatmul.mubr.msk.bf16.gmra.mrb[88].mxu0 %vm1084_vm0, %v14838_v55 }
  0xcf   :  { %13835 = vmatprep.mubr.msk.bf16.mxu0 %vm1084_vm0, %v14839_v56 }
  0xd6   :  { %13836 = vmatmul.mubr.msk.bf16.gmra.mrb[92].mxu0 %vm1084_vm0, %v14840_v57 }
  0xd7   :  { %13839 = vmatprep.mubr.msk.bf16.mxu0 %vm1084_vm0, %v14841_v58 }
  0xde   :  { %13840 = vmatmul.mubr.msk.bf16.gmra.mrb[96].mxu0 %vm1084_vm0, %v14842_v59 }
  0xdf   :  { %13843 = vmatprep.mubr.msk.bf16.mxu0 %vm1084_vm0, %v14843_v60 }
  0xe6   :  { %13844 = vmatmul.mubr.msk.bf16.gmra.mrb[100].mxu0 %vm1084_vm0, %v14844_v61 }
  0xe7   :  { %13847 = vmatprep.mubr.msk.bf16.mxu0 %vm1084_vm0, %v14845_v62 }
  0xee   :  { %13848 = vmatmul.mubr.msk.bf16.gmra.mrb[104].mxu0 %vm1084_vm0, %v14846_v63 }
  0xef   :  { %13851 = vmatprep.mubr.msk.bf16.mxu0 %vm1084_vm0, %v14847_v0 }
  0xf1   :  { %v13745_v2 = vpop.f32.mrb[0].mxu0 }
  0xf2   :  { %v12860_v3 = vmul.f32 -1.442695, %v13745_v2  ;;  %v1557_v4 = vpop.f32.mrb[1].mxu0 }
  0xf3   :  { %v12858_v6 = vmul.f32 -1.442695, %v1557_v4  ;;  %v13746_v7 = vpop.f32.mrb[2].mxu0  ;;  %v14856_v4 = vld [vmem:[%s22548_s1 + $0x1f8] sm:$0xff]  }
  0xf4   :  { %15585 = vpow2.f32 %v12860_v3  ;;  %v12861_v9 = vmul.f32 -1.442695, %v13746_v7  ;;  %v1560_v10 = vpop.f32.mrb[3].mxu0  ;;  %v14857_v7 = vld [vmem:[%s22548_s1 + $0x200] sm:$0xff]  }
  0xf5   :  { %15587 = vpow2.f32 %v12858_v6  ;;  %v12859_v11 = vmul.f32 -1.442695, %v1560_v10 }
  0xf6   :  { %15589 = vpow2.f32 %v12861_v9  ;;  %13852 = vmatmul.mubr.msk.bf16.gmra.mrb[108].mxu0 %vm1084_vm0, %v14848_v5 }
  0xf7   :  { %15591 = vpow2.f32 %v12859_v11  ;;  %13855 = vmatprep.mubr.msk.bf16.mxu0 %vm1084_vm0, %v14849_v8 }
  0xf9   :  { %v13749_v12 = vpop.f32.mrb[4].mxu0 }
  0xfa   :  { %v12864_v13 = vmul.f32 -1.442695, %v13749_v12  ;;  %v1573_v14 = vpop.f32.mrb[5].mxu0 }
  0xfb   :  { %v12862_v16 = vmul.f32 -1.442695, %v1573_v14  ;;  %v13750_v17 = vpop.f32.mrb[6].mxu0 }
  0xfc   :  { %15593 = vpow2.f32 %v12864_v13  ;;  %v12865_v19 = vmul.f32 -1.442695, %v13750_v17  ;;  %v1576_v20 = vpop.f32.mrb[7].mxu0  ;;  %v14859_v17 = vld [vmem:[%s22548_s1 + $0x210] sm:$0xff]  }
  0xfd   :  { %15595 = vpow2.f32 %v12862_v16  ;;  %v12863_v21 = vmul.f32 -1.442695, %v1576_v20 }
  0xfe   :  { %v15586_v22 = vpop.eup %15585  ;;  %15597 = vpow2.f32 %v12865_v19  ;;  %13856 = vmatmul.mubr.msk.bf16.gmra.mrb[112].mxu0 %vm1084_vm0, %v14850_v15  ;;  %v14858_v15 = vld [vmem:[%s22548_s1 + $0x208] sm:$0xff]  }
  0xff   :  { %v15588_v23 = vpop.eup %15587  ;;  %v3574_v24 = vadd.f32 1.0, %v15586_v22  ;;  %15599 = vpow2.f32 %v12863_v21  ;;  %13859 = vmatprep.mubr.msk.bf16.mxu0 %vm1084_vm0, %v14851_v18 }
 0x100   :  { %v15590_v25 = vpop.eup %15589  ;;  %v3572_v26 = vadd.f32 1.0, %v15588_v23 }
 0x101   :  { %v15592_v27 = vpop.eup %15591  ;;  %15601 = vrcp.f32 %v3574_v24  ;;  %v3575_v28 = vadd.f32 1.0, %v15590_v25  ;;  %v13753_v29 = vpop.f32.mrb[8].mxu0  ;;  %v14860_v25 = vld [vmem:[%s22548_s1 + $0x218] sm:$0xff]  }
 0x102   :  { %15603 = vrcp.f32 %v3572_v26  ;;  %v3573_v30 = vadd.f32 1.0, %v15592_v27  ;;  %v12868_v31 = vmul.f32 -1.442695, %v13753_v29  ;;  %v1589_v32 = vpop.f32.mrb[9].mxu0  ;;  %v14861_v27 = vld [vmem:[%s22548_s1 + $0x220] sm:$0xff]  }
 0x103   :  { %15605 = vrcp.f32 %v3575_v28  ;;  %v12866_v34 = vmul.f32 -1.442695, %v1589_v32  ;;  %v13754_v35 = vpop.f32.mrb[10].mxu0 }
 0x104   :  { %15607 = vrcp.f32 %v3573_v30  ;;  %v12869_v37 = vmul.f32 -1.442695, %v13754_v35  ;;  %v1592_v38 = vpop.f32.mrb[11].mxu0 }
 0x105   :  { %15609 = vpow2.f32 %v12868_v31  ;;  %v12867_v39 = vmul.f32 -1.442695, %v1592_v38  ;;  %v14862_v31 = vld [vmem:[%s22548_s1 + $0x228] sm:$0xff]  }
 0x106   :  { %v15594_v40 = vpop.eup %15593  ;;  %15611 = vpow2.f32 %v12866_v34  ;;  %13860 = vmatmul.mubr.msk.bf16.gmra.mrb[116].mxu0 %vm1084_vm0, %v14852_v33  ;;  %v14863_v33 = vld [vmem:[%s22548_s1 + $0x230] sm:$0xff]  }
 0x107   :  { %v15596_v41 = vpop.eup %15595  ;;  %v3578_v42 = vadd.f32 1.0, %v15594_v40  ;;  %15613 = vpow2.f32 %v12869_v37  ;;  %13863 = vmatprep.mubr.msk.bf16.mxu0 %vm1084_vm0, %v14853_v36  ;;  %v14864_v37 = vld [vmem:[%s22548_s1 + $0x238] sm:$0xff]  }
 0x108   :  { %v15598_v43 = vpop.eup %15597  ;;  %15615 = vpow2.f32 %v12867_v39  ;;  %v3576_v47 = vadd.f32 1.0, %v15596_v41  ;;  %v14865_v39 = vld [vmem:[%s22548_s1 + $0x240] sm:$0xff]  }
 0x109   :  { %v15600_v44 = vpop.eup %15599  ;;  %15617 = vrcp.f32 %v3578_v42  ;;  %v3579_v45 = vadd.f32 1.0, %v15598_v43  ;;  %v17139_v46 = vpop.f32.mrb[12].mxu0  ;;  %v14866_v43 = vld [vmem:[%s22548_s1 + $0x248] sm:$0xff]  }
 0x10a   :  { %v17141_v48 = vpop.f32.mrb[13].mxu0  ;;  %v3577_v51 = vadd.f32 1.0, %v15600_v44 }
 0x10b   :  { %v15602_v50 = vpop.eup %15601  ;;  %15619 = vrcp.f32 %v3579_v45  ;;  %v17146_v52 = vpop.f32.mrb[14].mxu0  ;;  %v14867_v45 = vld [vmem:[%s22548_s1 + $0x250] sm:$0xff]  }
 0x10c   :  { %v15604_v54 = vpop.eup %15603  ;;  %4736 = vperm.xlu1 %14784, %v15602_v50   ;;  %v17151_v55 = vpop.f32.mrb[15].mxu0  ;;  %15621 = vrcp.f32 %v3576_v47 }
 0x10d   :  { %v15606_v56 = vpop.eup %15605  ;;  %4726 = vperm.xlu0 %14785, %v15604_v54   ;;  %15623 = vrcp.f32 %v3577_v51  ;;  %v14868_v51 = vld [vmem:[%s22548_s1 + $0x258] sm:$0xff]   ;;  %v14869_v54 = vld [vmem:[%s22548_s1 + $0x260] sm:$0xff]  }
 0x10e   :  { %v15608_v57 = vpop.eup %15607  ;;  %13864 = vmatmul.mubr.msk.bf16.gmra.mrb[120].mxu0 %vm1084_vm0, %v14854_v49 }
 0x10f   :  { %v15610_v58 = vpop.eup %15609  ;;  %13867 = vmatprep.mubr.msk.bf16.mxu0 %vm1084_vm0, %v14855_v53 }
 0x110   :  { %v15612_v59 = vpop.eup %15611  ;;  %v3582_v60 = vadd.f32 1.0, %v15610_v58  ;;  %4741 = vperm.xlu1 %14784, %v15606_v56  }
 0x111   :  { %v15614_v61 = vpop.eup %15613  ;;  %4731 = vperm.xlu0 %14785, %v15608_v57   ;;  %v17155_v62 = vpop.f32.mrb[16].mxu0  ;;  %v3580_v0 = vadd.f32 1.0, %v15612_v59  ;;  %v14870_v59 = vld [vmem:[%s22548_s1 + $0x268] sm:$0xff]  }
 0x112   :  { %v15616_v63 = vpop.eup %15615  ;;  %15625 = vrcp.f32 %v3582_v60  ;;  %v3583_v2 = vadd.f32 1.0, %v15614_v61  ;;  %v17157_v3 = vpop.f32.mrb[17].mxu0  ;;  %v14871_v61 = vld [vmem:[%s22548_s1 + $0x270] sm:$0xff]  }
 0x113   :  { %v15618_v5 = vpop.eup %15617  ;;  %v17162_v6 = vpop.f32.mrb[18].mxu0  ;;  %v3581_v8 = vadd.f32 1.0, %v15616_v63 }
 0x114   :  { %15627 = vrcp.f32 %v3583_v2  ;;  %v17167_v9 = vpop.f32.mrb[19].mxu0 }
 0x115   :  { %v15620_v10 = vpop.eup %15619  ;;  %4756 = vperm.xlu0 %14785, %v15618_v5   ;;  %15629 = vrcp.f32 %v3580_v0 }
 0x116   :  { %13868 = vmatmul.mubr.msk.bf16.gmra.mrb[124].mxu0 %vm1084_vm0, %v14856_v4  ;;  %4761 = vperm.xlu1 %14784, %v15620_v10   ;;  %v15622_v11 = vpop.eup %15621  ;;  %15631 = vrcp.f32 %v3581_v8  ;;  %v14872_v4 = vld [vmem:[%s22548_s1 + $0x278] sm:$0xff]  }
 0x117   :  { %13871 = vmatprep.mubr.msk.bf16.mxu0 %vm1084_vm0, %v14857_v7  ;;  %v15624_v12 = vpop.eup %15623  ;;  %v14873_v7 = vld [vmem:[%s22548_s1 + $0x280] sm:$0xff]  }
 0x119   :  { %4746 = vperm.xlu0 %14785, %v15622_v11   ;;  %v17171_v13 = vpop.f32.mrb[20].mxu0 }
 0x11a   :  { %4751 = vperm.xlu1 %14784, %v15624_v12   ;;  %v17173_v14 = vpop.f32.mrb[21].mxu0  ;;  %v14874_v12 = vld [vmem:[%s22548_s1 + $0x288] sm:$0xff]  }
 0x11b   :  { %v17178_v16 = vpop.f32.mrb[22].mxu0 }
 0x11c   :  { %v15626_v18 = vpop.eup %15625  ;;  %v17183_v19 = vpop.f32.mrb[23].mxu0 }
 0x11d   :  { %4776 = vperm.xlu0 %14785, %v15626_v18  }
 0x11e   :  { %v15628_v20 = vpop.eup %15627  ;;  %13872 = vmatmul.mubr.msk.bf16.gmra.mrb[128].mxu0 %vm1084_vm0, %v14858_v15 }
 0x11f   :  { %4781 = vperm.xlu1 %14784, %v15628_v20   ;;  %13875 = vmatprep.mubr.msk.bf16.mxu0 %vm1084_vm0, %v14859_v17  ;;  %v15630_v21 = vpop.eup %15629  ;;  %v14875_v17 = vld [vmem:[%s22548_s1 + $0x290] sm:$0xff]  }
 0x120   :  { %v15632_v23 = vpop.eup %15631 }
 0x121   :  { %4766 = vperm.xlu0 %14785, %v15630_v21   ;;  %v17187_v22 = vpop.f32.mrb[24].mxu0 }
 0x122   :  { %v17189_v24 = vpop.f32.mrb[25].mxu0 }
 0x123   :  { %4771 = vperm.xlu1 %14784, %v15632_v23   ;;  %v17194_v26 = vpop.f32.mrb[26].mxu0  ;;  %v14876_v23 = vld [vmem:[%s22548_s1 + $0x298] sm:$0xff]  }
 0x124   :  { %v17199_v28 = vpop.f32.mrb[27].mxu0 }
 0x126   :  { %13876 = vmatmul.mubr.msk.bf16.gmra.mrb[132].mxu0 %vm1084_vm0, %v14860_v25 }
 0x127   :  { %13879 = vmatprep.mubr.msk.bf16.mxu0 %vm1084_vm0, %v14861_v27  ;;  %v14877_v27 = vld [vmem:[%s22548_s1 + $0x2a0] sm:$0xff]  }
 0x129   :  { %v17203_v29 = vpop.f32.mrb[28].mxu0 }
 0x12a   :  { %v17205_v30 = vpop.f32.mrb[29].mxu0 }
 0x12b   :  { %v17210_v32 = vpop.f32.mrb[30].mxu0 }
 0x12c   :  { %v17215_v34 = vpop.f32.mrb[31].mxu0 }
 0x12e   :  { %13880 = vmatmul.mubr.msk.bf16.gmra.mrb[136].mxu0 %vm1084_vm0, %v14862_v31 }
 0x12f   :  { %13883 = vmatprep.mubr.msk.bf16.mxu0 %vm1084_vm0, %v14863_v33 }
 0x131   :  { %v17219_v35 = vpop.f32.mrb[32].mxu0 }
 0x132   :  { %v17221_v36 = vpop.f32.mrb[33].mxu0 }
 0x133   :  { %v17226_v38 = vpop.f32.mrb[34].mxu0 }
 0x134   :  { %v17231_v40 = vpop.f32.mrb[35].mxu0 }
 0x136   :  { %13884 = vmatmul.mubr.msk.bf16.gmra.mrb[140].mxu0 %vm1084_vm0, %v14864_v37 }
 0x137   :  { %13887 = vmatprep.mubr.msk.bf16.mxu0 %vm1084_vm0, %v14865_v39  ;;  %v14878_v39 = vld [vmem:[%s22548_s1 + $0x2a8] sm:$0xff]  }
 0x139   :  { %v17235_v41 = vpop.f32.mrb[36].mxu0 }
 0x13a   :  { %v17237_v42 = vpop.f32.mrb[37].mxu0 }
 0x13b   :  { %v17242_v44 = vpop.f32.mrb[38].mxu0 }
 0x13c   :  { %v17247_v47 = vpop.f32.mrb[39].mxu0 }
 0x13e   :  { %13888 = vmatmul.mubr.msk.bf16.gmra.mrb[144].mxu0 %vm1084_vm0, %v14866_v43 }
 0x13f   :  { %13891 = vmatprep.mubr.msk.bf16.mxu0 %vm1084_vm0, %v14867_v45  ;;  %v14879_v45 = vld [vmem:[%s22548_s1 + $0x2b0] sm:$0xff]  }
 0x141   :  { %v17251_v49 = vpop.f32.mrb[40].mxu0 }
 0x142   :  { %v17253_v50 = vpop.f32.mrb[41].mxu0 }
 0x143   :  { %v17258_v53 = vpop.f32.mrb[42].mxu0 }
 0x144   :  { %v17263_v56 = vpop.f32.mrb[43].mxu0 }
 0x146   :  { %13892 = vmatmul.mubr.msk.bf16.gmra.mrb[148].mxu0 %vm1084_vm0, %v14868_v51 }
 0x147   :  { %13895 = vmatprep.mubr.msk.bf16.mxu0 %vm1084_vm0, %v14869_v54 }
 0x149   :  { %v17267_v57 = vpop.f32.mrb[44].mxu0 }
 0x14a   :  { %v17269_v58 = vpop.f32.mrb[45].mxu0 }
 0x14b   :  { %v17274_v60 = vpop.f32.mrb[46].mxu0 }
 0x14c   :  { %v17279_v63 = vpop.f32.mrb[47].mxu0 }
 0x14e   :  { %13896 = vmatmul.mubr.msk.bf16.gmra.mrb[152].mxu0 %vm1084_vm0, %v14870_v59 }
 0x14f   :  { %13899 = vmatprep.mubr.msk.bf16.mxu0 %vm1084_vm0, %v14871_v61  ;;  %v14880_v61 = vld [vmem:[%s22548_s1 + $0x2b8] sm:$0xff]  }
 0x151   :  { %v17283_v0 = vpop.f32.mrb[48].mxu0 }
 0x152   :  { %v17285_v2 = vpop.f32.mrb[49].mxu0 }
 0x153   :  { %v17290_v5 = vpop.f32.mrb[50].mxu0 }
 0x154   :  { %v17295_v8 = vpop.f32.mrb[51].mxu0 }
 0x155   :  { %22604 = vst [vmem:[#allocation2_spill] sm:$0xff] %v17295_v8  ;;  %v12891_v8 = vmul.f32 -1.442695, %v17231_v40  ;;  %v14954_v40 = vld [vmem:[%s22548_s1 + $0x438] sm:$0xff]  }
 0x156   :  { %13900 = vmatmul.mubr.msk.bf16.gmra.mrb[156].mxu0 %vm1084_vm0, %v14872_v4 }
 0x157   :  { %13903 = vmatprep.mubr.msk.bf16.mxu0 %vm1084_vm0, %v14873_v7  ;;  %v14881_v7 = vld [vmem:[%s22548_s1 + $0x2c0] sm:$0xff]  }
 0x159   :  { %v17299_v10 = vpop.f32.mrb[52].mxu0 }
 0x15a   :  { %22605 = vst [vmem:[#allocation3_spill] sm:$0xff] %v17299_v10  ;;  %v17301_v11 = vpop.f32.mrb[53].mxu0 }
 0x15b   :  { %22606 = vst [vmem:[#allocation4_spill] sm:$0xff] %v17301_v11  ;;  %v17306_v15 = vpop.f32.mrb[54].mxu0 }
 0x15c   :  { %22607 = vst [vmem:[#allocation5_spill] sm:$0xff] %v17306_v15  ;;  %v17311_v18 = vpop.f32.mrb[55].mxu0 }
 0x15d   :  { %22608 = vst [vmem:[#allocation6_spill] sm:$0xff] %v17311_v18 }
 0x15e   :  { %13904 = vmatmul.mubr.msk.bf16.gmra.mrb[160].mxu0 %vm1084_vm0, %v14874_v12 }
 0x15f   :  { %13907 = vmatprep.mubr.msk.bf16.mxu0 %vm1084_vm0, %v14875_v17 }
 0x161   :  { %v17315_v20 = vpop.f32.mrb[56].mxu0 }
 0x162   :  { %22609 = vst [vmem:[#allocation7_spill] sm:$0xff] %v17315_v20  ;;  %v17317_v21 = vpop.f32.mrb[57].mxu0 }
 0x163   :  { %22610 = vst [vmem:[#allocation8_spill] sm:$0xff] %v17317_v21  ;;  %v17322_v25 = vpop.f32.mrb[58].mxu0 }
 0x164   :  { %22611 = vst [vmem:[#allocation9_spill] sm:$0xff] %v17322_v25  ;;  %v17327_v31 = vpop.f32.mrb[59].mxu0 }
 0x165   :  { %22612 = vst [vmem:[#allocation10_spill] sm:$0xff] %v17327_v31  ;;  %v22637_v31 = vmov 0  }
 0x166   :  { %13908 = vmatmul.mubr.msk.bf16.gmra.mrb[164].mxu0 %vm1084_vm0, %v14876_v23 }
 0x167   :  { %13911 = vmatprep.mubr.msk.bf16.mxu0 %vm1084_vm0, %v14877_v27  ;;  %v14882_v27 = vld [vmem:[%s22548_s1 + $0x2c8] sm:$0xff]  }
 0x169   :  { %v17331_v33 = vpop.f32.mrb[60].mxu0 }
 0x16a   :  { %22613 = vst [vmem:[#allocation11_spill] sm:$0xff] %v17331_v33  ;;  %v17333_v37 = vpop.f32.mrb[61].mxu0 }
 0x16b   :  { %22614 = vst [vmem:[#allocation12_spill] sm:$0xff] %v17333_v37  ;;  %v17338_v43 = vpop.f32.mrb[62].mxu0 }
 0x16c   :  { %22615 = vst [vmem:[#allocation13_spill] sm:$0xff] %v17338_v43  ;;  %v17343_v51 = vpop.f32.mrb[63].mxu0 }
 0x16d   :  { %22616 = vst [vmem:[#allocation14_spill] sm:$0xff] %v17343_v51  ;;  %v4438_v51 = vld [vmem:[%s22549_s2 + $0x10] sm:$0xff] }
 0x16e   :  { %13912 = vmatmul.mubr.msk.bf16.gmra.mrb[168].mxu0 %vm1084_vm0, %v14878_v39 }
 0x16f   :  { %13915 = vmatprep.mubr.msk.bf16.mxu0 %vm1084_vm0, %v14879_v45  ;;  %v14883_v45 = vld [vmem:[%s22548_s1 + $0x2d0] sm:$0xff]  }
 0x171   :  { %v17347_v54 = vpop.f32.mrb[64].mxu0 }
 0x172   :  { %22617 = vst [vmem:[#allocation15_spill] sm:$0xff] %v17347_v54  ;;  %v17349_v59 = vpop.f32.mrb[65].mxu0 }
 0x173   :  { %22618 = vst [vmem:[#allocation16_spill] sm:$0xff] %v17349_v59  ;;  %v17354_v4 = vpop.f32.mrb[66].mxu0 }
 0x174   :  { %22619 = vst [vmem:[#allocation17_spill] sm:$0xff] %v17354_v4  ;;  %v17359_v12 = vpop.f32.mrb[67].mxu0 }
 0x175   :  { %22620 = vst [vmem:[#allocation18_spill] sm:$0xff] %v17359_v12 }
 0x176   :  { %13916 = vmatmul.mubr.msk.bf16.gmra.mrb[172].mxu0 %vm1084_vm0, %v14880_v61 }
 0x177   :  { %13919 = vmatprep.mubr.msk.bf16.mxu0 %vm1084_vm0, %v14881_v7 }
 0x179   :  { %v17363_v17 = vpop.f32.mrb[68].mxu0 }
 0x17a   :  { %22621 = vst [vmem:[#allocation19_spill] sm:$0xff] %v17363_v17  ;;  %v17365_v23 = vpop.f32.mrb[69].mxu0 }
 0x17b   :  { %22622 = vst [vmem:[#allocation20_spill] sm:$0xff] %v17365_v23  ;;  %v17370_v39 = vpop.f32.mrb[70].mxu0  ;;  %v14884_v23 = vld [vmem:[%s22548_s1 + $0x2d8] sm:$0xff]  }
 0x17c   :  { %22623 = vst [vmem:[#allocation21_spill] sm:$0xff] %v17370_v39  ;;  %v17375_v1 = vpop.f32.mrb[71].mxu0  ;;  %v14885_v39 = vld [vmem:[%s22548_s1 + $0x2e0] sm:$0xff]  }
 0x17d   :  { %22624 = vst [vmem:[#allocation22_spill] sm:$0xff] %v17375_v1  ;;  %v14887_v1 = vld [vmem:[%s22548_s1 + $0x2f0] sm:$0xff]  }
 0x17e   :  { %13920 = vmatmul.mubr.msk.bf16.gmra.mrb[176].mxu0 %vm1084_vm0, %v14882_v27 }
 0x17f   :  { %13923 = vmatprep.mubr.msk.bf16.mxu0 %vm1084_vm0, %v14883_v45 }
 0x181   :  { %v17379_v61 = vpop.f32.mrb[72].mxu0 }
 0x182   :  { %22625 = vst [vmem:[#allocation23_spill] sm:$0xff] %v17379_v61  ;;  %v17381_v7 = vpop.f32.mrb[73].mxu0 }
 0x183   :  { %22626 = vst [vmem:[#allocation24_spill] sm:$0xff] %v17381_v7  ;;  %v17386_v17 = vpop.f32.mrb[74].mxu0  ;;  %v14886_v7 = vld [vmem:[%s22548_s1 + $0x2e8] sm:$0xff]  }
 0x184   :  { %22627 = vst [vmem:[#allocation25_spill] sm:$0xff] %v17386_v17  ;;  %v17391_v12 = vpop.f32.mrb[75].mxu0 }
 0x185   :  { %22628 = vst [vmem:[#allocation26_spill] sm:$0xff] %v17391_v12 }
 0x186   :  { %13924 = vmatmul.mubr.msk.bf16.gmra.mrb[180].mxu0 %vm1084_vm0, %v14884_v23  ;;  %v4436_v23 = vld [vmem:[%s22549_s2] sm:$0xff] }
 0x187   :  { %13927 = vmatprep.mubr.msk.bf16.mxu0 %vm1084_vm0, %v14885_v39  ;;  %v4437_v39 = vld [vmem:[%s22549_s2 + $0x8] sm:$0xff] }
 0x189   :  { %v17395_v27 = vpop.f32.mrb[76].mxu0 }
 0x18a   :  { %22629 = vst [vmem:[#allocation27_spill] sm:$0xff] %v17395_v27  ;;  %v17397_v45 = vpop.f32.mrb[77].mxu0 }
 0x18b   :  { %22630 = vst [vmem:[#allocation28_spill] sm:$0xff] %v17397_v45  ;;  %v4737_v61 = vpop.permute.xlu1 %4736  ;;  %v17402_v17 = vpop.f32.mrb[78].mxu0 }
 0x18c   :  { %22631 = vst [vmem:[#allocation29_spill] sm:$0xff] %v17402_v17  ;;  %v4727_v12 = vpop.permute.xlu0 %4726  ;;  %v17407_v4 = vpop.f32.mrb[79].mxu0  ;;  %v4439_v17 = vld [vmem:[%s22549_s2 + $0x18] sm:$0xff] }
 0x18d   :  { %22632 = vst [vmem:[#allocation30_spill] sm:$0xff] %v17407_v4  ;;  %v6164_v59 = vmul.f32 %v4727_v12, %v4436_v23  ;;  %v14889_v12 = vld [vmem:[%s22548_s1 + $0x300] sm:$0xff]  }
 0x18e   :  { %13928 = vmatmul.mubr.msk.bf16.gmra.mrb[184].mxu0 %vm1084_vm0, %v14886_v7 }
 0x18f   :  { %13931 = vmatprep.mubr.msk.bf16.mxu0 %vm1084_vm0, %v14887_v1  ;;  %v4742_v45 = vpop.permute.xlu1 %4741  ;;  %v14888_v1 = vld [vmem:[%s22548_s1 + $0x2f8] sm:$0xff]  }
 0x190   :  { %v4732_v27 = vpop.permute.xlu0 %4731  ;;  %v6167_v7 = vmul.f32 %v4742_v45, %v4439_v17 }
 0x191   :  { %v6165_v4 = vmul.f32 %v4732_v27, %v4437_v39  ;;  %v17420_v54 = vpop.f32.mrb[80].mxu0  ;;  %v6166_v39 = vmul.f32 %v4737_v61, %v4438_v51  ;;  %v4443_v51 = vld [vmem:[%s22549_s2 + $0x38] sm:$0xff] }
 0x192   :  { %22633 = vst [vmem:[#allocation31_spill] sm:$0xff] %v17420_v54  ;;  %v17425_v43 = vpop.f32.mrb[81].mxu0 }
 0x193   :  { %22634 = vst [vmem:[#allocation32_spill] sm:$0xff] %v17425_v43  ;;  %v6452_v37 = vpack.c.bf16 %v6165_v4, %v6164_v59  ;;  %v17430_v33 = vpop.f32.mrb[82].mxu0  ;;  %v4440_v43 = vld [vmem:[%s22549_s2 + $0x20] sm:$0xff]  ;;  %v6453_v59 = vpack.c.bf16 %v6167_v7, %v6166_v39  ;;  %v4441_v4 = vld [vmem:[%s22549_s2 + $0x28] sm:$0xff] }
 0x194   :  { %22635 = vst [vmem:[#allocation33_spill] sm:$0xff] %v17430_v33  ;;  %v4757_v27 = vpop.permute.xlu0 %4756  ;;  %v17435_v23 = vpop.f32.mrb[83].mxu0 }
 0x195   :  { %22636 = vst [vmem:[#allocation34_spill] sm:$0xff] %v17435_v23  ;;  %9189 = vmatpush1.bf16.msra.mxu0 %v6452_v37  ;;  %v4762_v54 = vpop.permute.xlu1 %4761  ;;  %v4442_v37 = vld [vmem:[%s22549_s2 + $0x30] sm:$0xff]  ;;  %v14890_v23 = vld [vmem:[%s22548_s1 + $0x308] sm:$0xff]  }
 0x196   :  { %9190 = vmatprep.subr.bf16.mxu0 %v22637_v31  ;;  %13932 = vmatmul.mubr.msk.bf16.gmra.mrb[188].mxu0 %vm1084_vm0, %v14888_v1  ;;  %v6170_v33 = vmul.f32 %v4757_v27, %v4442_v37  ;;  %v6171_v25 = vmul.f32 %v4762_v54, %v4443_v51  ;;  %v4445_v37 = vld [vmem:[%s22549_s2 + $0x48] sm:$0xff] }
 0x197   :  { %13935 = vmatprep.mubr.msk.bf16.mxu0 %vm1084_vm0, %v14889_v12 }
 0x198   :  { %v4747_v17 = vpop.permute.xlu0 %4746  ;;  %v6455_v27 = vpack.c.bf16 %v6171_v25, %v6170_v33 }
 0x199   :  { %v6168_v61 = vmul.f32 %v4747_v17, %v4440_v43  ;;  %9191 = vmatpush1.bf16.msra.mxu0 %v6453_v59  ;;  %v4752_v45 = vpop.permute.xlu1 %4751  ;;  %v17452_v1 = vpop.f32.mrb[84].mxu0  ;;  %v14891_v59 = vld [vmem:[%s22548_s1 + $0x310] sm:$0xff]   ;;  %v4444_v17 = vld [vmem:[%s22549_s2 + $0x40] sm:$0xff] }
 0x19a   :  { %22638 = vst [vmem:[#allocation35_spill] sm:$0xff] %v17452_v1  ;;  %v6169_v7 = vmul.f32 %v4752_v45, %v4441_v4  ;;  %v17454_v39 = vpop.f32.mrb[85].mxu0  ;;  %9192 = vmatprep.subr.bf16.mxu0 %v22637_v31  ;;  %v4447_v45 = vld [vmem:[%s22549_s2 + $0x58] sm:$0xff] }
 0x19b   :  { %22639 = vst [vmem:[#allocation36_spill] sm:$0xff] %v17454_v39  ;;  %v17457_v12 = vpop.f32.mrb[86].mxu0 }
 0x19c   :  { %22640 = vst [vmem:[#allocation37_spill] sm:$0xff] %v17457_v12  ;;  %v6454_v21 = vpack.c.bf16 %v6169_v7, %v6168_v61  ;;  %v4777_v20 = vpop.permute.xlu0 %4776  ;;  %v17462_v43 = vpop.f32.mrb[87].mxu0 }
 0x19d   :  { %22641 = vst [vmem:[#allocation38_spill] sm:$0xff] %v17462_v43  ;;  %v14893_v43 = vld [vmem:[%s22548_s1 + $0x320] sm:$0xff]  }
 0x19e   :  { %v4782_v4 = vpop.permute.xlu1 %4781  ;;  %9193 = vmatpush1.bf16.msra.mxu0 %v6454_v21  ;;  %v4446_v21 = vld [vmem:[%s22549_s2 + $0x50] sm:$0xff] }
 0x19f   :  { %9194 = vmatprep.subr.bf16.mxu0 %v22637_v31  ;;  %13936 = vmatmul.mubr.msk.bf16.gmra.mrb[192].mxu0 %vm1084_vm0, %v14890_v23 }
 0x1a0   :  { %v4767_v54 = vpop.permute.xlu0 %4766  ;;  %13939 = vmatprep.mubr.msk.bf16.mxu0 %vm1084_vm0, %v14891_v59 }
 0x1a1   :  { %v6172_v51 = vmul.f32 %v4767_v54, %v4444_v17  ;;  %v17476_v61 = vpop.f32.mrb[88].mxu0  ;;  %v14892_v17 = vld [vmem:[%s22548_s1 + $0x318] sm:$0xff]   ;;  %v6174_v54 = vmul.f32 %v4777_v20, %v4446_v21 }
 0x1a2   :  { %22642 = vst [vmem:[#allocation39_spill] sm:$0xff] %v17476_v61  ;;  %v4772_v23 = vpop.permute.xlu1 %4771  ;;  %v17484_v25 = vpop.f32.mrb[89].mxu0  ;;  %9195 = vmatpush1.bf16.msra.mxu0 %v6455_v27  ;;  %v6175_v61 = vmul.f32 %v4782_v4, %v4447_v45 }
 0x1a3   :  { %22643 = vst [vmem:[#allocation40_spill] sm:$0xff] %v17484_v25  ;;  %v6173_v33 = vmul.f32 %v4772_v23, %v4445_v37  ;;  %v17486_v7 = vpop.f32.mrb[90].mxu0  ;;  %9196 = vmatprep.subr.bf16.mxu0 %v22637_v31 }
 0x1a4   :  { %22644 = vst [vmem:[#allocation41_spill] sm:$0xff] %v17486_v7  ;;  %v17489_v59 = vpop.f32.mrb[91].mxu0  ;;  %v6457_v27 = vpack.c.bf16 %v6175_v61, %v6174_v54  ;;  %v14896_v54 = vld [vmem:[%s22548_s1 + $0x338] sm:$0xff]  }
 0x1a5   :  { %22645 = vst [vmem:[#allocation42_spill] sm:$0xff] %v17489_v59  ;;  %v6456_v12 = vpack.c.bf16 %v6173_v33, %v6172_v51  ;;  %v14895_v51 = vld [vmem:[%s22548_s1 + $0x330] sm:$0xff]   ;;  %v12872_v33 = vmul.f32 -1.442695, %v17139_v46 }
 0x1a7   :  { %9197 = vmatpush1.bf16.msra.mxu0 %v6456_v12  ;;  %v14894_v12 = vld [vmem:[%s22548_s1 + $0x328] sm:$0xff]  }
 0x1a8   :  { %9198 = vmatprep.subr.bf16.mxu0 %v22637_v31  ;;  %13940 = vmatmul.mubr.msk.bf16.gmra.mrb[196].mxu0 %vm1084_vm0, %v14892_v17 }
 0x1a9   :  { %v17499_v37 = vpop.f32.mrb[92].mxu0  ;;  %13943 = vmatprep.mubr.msk.bf16.mxu0 %vm1084_vm0, %v14893_v43 }
 0x1aa   :  { %22646 = vst [vmem:[#allocation43_spill] sm:$0xff] %v17499_v37  ;;  %v17502_v23 = vpop.f32.mrb[93].mxu0  ;;  %v12871_v37 = vmul.f32 -1.442695, %v17151_v55 }
 0x1ab   :  { %22647 = vst [vmem:[#allocation44_spill] sm:$0xff] %v17502_v23  ;;  %9199 = vmatpush1.bf16.msra.mxu0 %v6457_v27  ;;  %v17504_v20 = vpop.f32.mrb[94].mxu0  ;;  %v12870_v27 = vmul.f32 -1.442695, %v17141_v48 }
 0x1ac   :  { %22648 = vst [vmem:[#allocation45_spill] sm:$0xff] %v17504_v20  ;;  %v17506_v4 = vpop.f32.mrb[95].mxu0  ;;  %9200 = vmatprep.subr.bf16.mxu0 %v22637_v31  ;;  %v14897_v20 = vld [vmem:[%s22548_s1 + $0x340] sm:$0xff]  }
 0x1ad   :  { %22649 = vst [vmem:[#allocation46_spill] sm:$0xff] %v17506_v4 }
 0x1b0   :  { %13944 = vmatmul.mubr.msk.bf16.gmra.mrb[200].mxu0 %vm1084_vm0, %v14894_v12 }
 0x1b1   :  { %v13841_v43 = vpop.f32.mrb[96].mxu0  ;;  %13947 = vmatprep.mubr.msk.bf16.mxu0 %vm1084_vm0, %v14895_v51 }
 0x1b2   :  { %v1941_v61 = vpop.f32.mrb[97].mxu0  ;;  %v12956_v21 = vmul.f32 -1.442695, %v13841_v43  ;;  %v12873_v43 = vmul.f32 -1.442695, %v17146_v52  ;;  %v14899_v52 = vld [vmem:[%s22548_s1 + $0x350] sm:$0xff]  }
 0x1b3   :  { %v13842_v45 = vpop.f32.mrb[98].mxu0  ;;  %v12954_v12 = vmul.f32 -1.442695, %v1941_v61  ;;  %v12876_v61 = vmul.f32 -1.442695, %v17155_v62 }
 0x1b4   :  { %v1944_v17 = vpop.f32.mrb[99].mxu0  ;;  %15633 = vpow2.f32 %v12956_v21  ;;  %v12957_v4 = vmul.f32 -1.442695, %v13842_v45  ;;  %v14898_v45 = vld [vmem:[%s22548_s1 + $0x348] sm:$0xff]  }
 0x1b5   :  { %15635 = vpow2.f32 %v12872_v33  ;;  %v12955_v51 = vmul.f32 -1.442695, %v1944_v17  ;;  %v12874_v33 = vmul.f32 -1.442695, %v17157_v3 }
 0x1b6   :  { %15637 = vpow2.f32 %v12870_v27 }
 0x1b7   :  { %15639 = vpow2.f32 %v12954_v12 }
 0x1b8   :  { %13948 = vmatmul.mubr.msk.bf16.gmra.mrb[204].mxu0 %vm1084_vm0, %v14896_v54  ;;  %15641 = vpow2.f32 %v12957_v4 }
 0x1b9   :  { %v13845_v46 = vpop.f32.mrb[100].mxu0  ;;  %13951 = vmatprep.mubr.msk.bf16.mxu0 %vm1084_vm0, %v14897_v20  ;;  %15643 = vpow2.f32 %v12955_v51 }
 0x1ba   :  { %v12960_v23 = vmul.f32 -1.442695, %v13845_v46  ;;  %v1957_v48 = vpop.f32.mrb[101].mxu0 }
 0x1bb   :  { %v13846_v7 = vpop.f32.mrb[102].mxu0  ;;  %v12958_v20 = vmul.f32 -1.442695, %v1957_v48 }
 0x1bc   :  { %v1960_v21 = vpop.f32.mrb[103].mxu0  ;;  %15645 = vpow2.f32 %v12960_v23  ;;  %v12961_v55 = vmul.f32 -1.442695, %v13846_v7 }
 0x1bd   :  { %15647 = vpow2.f32 %v12873_v43  ;;  %v12959_v4 = vmul.f32 -1.442695, %v1960_v21  ;;  %v14900_v43 = vld [vmem:[%s22548_s1 + $0x358] sm:$0xff]   ;;  %v14901_v21 = vld [vmem:[%s22548_s1 + $0x360] sm:$0xff]  }
 0x1be   :  { %15649 = vpow2.f32 %v12871_v37  ;;  %v15634_v62 = vpop.eup %15633 }
 0x1bf   :  { %15651 = vpow2.f32 %v12876_v61  ;;  %v17539_v54 = vpop.eup %15635  ;;  %v3670_v51 = vadd.f32 1.0, %v15634_v62 }
 0x1c0   :  { %13952 = vmatmul.mubr.msk.bf16.gmra.mrb[208].mxu0 %vm1084_vm0, %v14898_v45  ;;  %15653 = vpow2.f32 %v12874_v33  ;;  %v17541_v27 = vpop.eup %15637 }
 0x1c1   :  { %v13849_v17 = vpop.f32.mrb[104].mxu0  ;;  %13955 = vmatprep.mubr.msk.bf16.mxu0 %vm1084_vm0, %v14899_v52  ;;  %15655 = vpow2.f32 %v12958_v20  ;;  %v15640_v7 = vpop.eup %15639 }
 0x1c2   :  { %v12964_v3 = vmul.f32 -1.442695, %v13849_v17  ;;  %v1973_v23 = vpop.f32.mrb[105].mxu0  ;;  %15657 = vpow2.f32 %v12961_v55  ;;  %v15642_v48 = vpop.eup %15641  ;;  %v3668_v61 = vadd.f32 1.0, %v15640_v7 }
 0x1c3   :  { %v12962_v12 = vmul.f32 -1.442695, %v1973_v23  ;;  %v13850_v37 = vpop.f32.mrb[106].mxu0  ;;  %15659 = vpow2.f32 %v12959_v4  ;;  %v15644_v45 = vpop.eup %15643  ;;  %v3671_v33 = vadd.f32 1.0, %v15642_v48 }
 0x1c4   :  { %v1976_v46 = vpop.f32.mrb[107].mxu0  ;;  %15661 = vpow2.f32 %v12964_v3  ;;  %v3669_v20 = vadd.f32 1.0, %v15644_v45  ;;  %v12965_v55 = vmul.f32 -1.442695, %v13850_v37  ;;  %v14902_v45 = vld [vmem:[%s22548_s1 + $0x368] sm:$0xff]  }
 0x1c5   :  { %15663 = vpow2.f32 %v12962_v12  ;;  %v12963_v62 = vmul.f32 -1.442695, %v1976_v46 }
 0x1c6   :  { %v15646_v52 = vpop.eup %15645  ;;  %15665 = vrcp.f32 %v3668_v61 }
 0x1c7   :  { %v17549_v4 = vpop.eup %15647  ;;  %15667 = vrcp.f32 %v3670_v51  ;;  %v3674_v3 = vadd.f32 1.0, %v15646_v52 }
 0x1c8   :  { %13956 = vmatmul.mubr.msk.bf16.gmra.mrb[212].mxu0 %vm1084_vm0, %v14900_v43  ;;  %v17552_v17 = vpop.eup %15649  ;;  %15669 = vrcp.f32 %v3669_v20 }
 0x1c9   :  { %v13853_v23 = vpop.f32.mrb[108].mxu0  ;;  %13959 = vmatprep.mubr.msk.bf16.mxu0 %vm1084_vm0, %v14901_v21  ;;  %v17555_v7 = vpop.eup %15651  ;;  %15671 = vrcp.f32 %v3671_v33  ;;  %v14903_v33 = vld [vmem:[%s22548_s1 + $0x370] sm:$0xff]  }
 0x1ca   :  { %v1989_v12 = vpop.f32.mrb[109].mxu0  ;;  %v17557_v48 = vpop.eup %15653  ;;  %15673 = vpow2.f32 %v12965_v55  ;;  %v12968_v46 = vmul.f32 -1.442695, %v13853_v23 }
 0x1cb   :  { %v12966_v37 = vmul.f32 -1.442695, %v1989_v12  ;;  %v13854_v61 = vpop.f32.mrb[110].mxu0  ;;  %v15656_v51 = vpop.eup %15655  ;;  %15675 = vpow2.f32 %v12963_v62 }
 0x1cc   :  { %v1992_v43 = vpop.f32.mrb[111].mxu0  ;;  %v15658_v52 = vpop.eup %15657  ;;  %15677 = vrcp.f32 %v3674_v3  ;;  %v3672_v21 = vadd.f32 1.0, %v15656_v51  ;;  %v12969_v23 = vmul.f32 -1.442695, %v13854_v61 }
 0x1cd   :  { %v15660_v20 = vpop.eup %15659  ;;  %v3675_v59 = vadd.f32 1.0, %v15658_v52  ;;  %15679 = vpow2.f32 %v12966_v37  ;;  %v12967_v3 = vmul.f32 -1.442695, %v1992_v43  ;;  %v14904_v43 = vld [vmem:[%s22548_s1 + $0x378] sm:$0xff]  }
 0x1ce   :  { %v15662_v55 = vpop.eup %15661  ;;  %15681 = vrcp.f32 %v3672_v21  ;;  %v3673_v12 = vadd.f32 1.0, %v15660_v20 }
 0x1cf   :  { %v15664_v62 = vpop.eup %15663  ;;  %15683 = vpow2.f32 %v12968_v46  ;;  %v3678_v61 = vadd.f32 1.0, %v15662_v55 }
 0x1d0   :  { %13960 = vmatmul.mubr.msk.bf16.gmra.mrb[216].mxu0 %vm1084_vm0, %v14902_v45  ;;  %v15666_v25 = vpop.eup %15665  ;;  %15685 = vrcp.f32 %v3673_v12  ;;  %v3676_v39 = vadd.f32 1.0, %v15664_v62 }
 0x1d1   :  { %v13857_v51 = vpop.f32.mrb[112].mxu0  ;;  %13963 = vmatprep.mubr.msk.bf16.mxu0 %vm1084_vm0, %v14903_v33  ;;  %v15668_v1 = vpop.eup %15667  ;;  %15687 = vrcp.f32 %v3675_v59  ;;  %5206 = vperm.xlu0 %14785, %v15666_v25  }
 0x1d2   :  { %v12972_v52 = vmul.f32 -1.442695, %v13857_v51  ;;  %v2005_v37 = vpop.f32.mrb[113].mxu0  ;;  %v15670_v18 = vpop.eup %15669  ;;  %15689 = vrcp.f32 %v3676_v39 }
 0x1d3   :  { %v12970_v21 = vmul.f32 -1.442695, %v2005_v37  ;;  %v13858_v20 = vpop.f32.mrb[114].mxu0  ;;  %v15672_v46 = vpop.eup %15671  ;;  %15691 = vpow2.f32 %v12969_v23  ;;  %5211 = vperm.xlu1 %14784, %v15670_v18  }
 0x1d4   :  { %v2008_v45 = vpop.f32.mrb[115].mxu0  ;;  %v15674_v12 = vpop.eup %15673  ;;  %15693 = vpow2.f32 %v12967_v3  ;;  %v12973_v55 = vmul.f32 -1.442695, %v13858_v20 }
 0x1d5   :  { %v15676_v33 = vpop.eup %15675  ;;  %v3679_v59 = vadd.f32 1.0, %v15674_v12  ;;  %5216 = vperm.xlu0 %14785, %v15668_v1   ;;  %15695 = vpow2.f32 %v12972_v52  ;;  %v12971_v51 = vmul.f32 -1.442695, %v2008_v45  ;;  %v14905_v52 = vld [vmem:[%s22548_s1 + $0x380] sm:$0xff]   ;;  %v14906_v12 = vld [vmem:[%s22548_s1 + $0x388] sm:$0xff]  }
 0x1d6   :  { %v15678_v25 = vpop.eup %15677  ;;  %v3677_v62 = vadd.f32 1.0, %v15676_v33  ;;  %15697 = vpow2.f32 %v12970_v21 }
 0x1d7   :  { %v15680_v39 = vpop.eup %15679  ;;  %15699 = vrcp.f32 %v3678_v61  ;;  %5221 = vperm.xlu1 %14784, %v15672_v46  }
 0x1d8   :  { %13964 = vmatmul.mubr.msk.bf16.gmra.mrb[220].mxu0 %vm1084_vm0, %v14904_v43  ;;  %v15682_v18 = vpop.eup %15681  ;;  %15701 = vrcp.f32 %v3677_v62  ;;  %v3680_v23 = vadd.f32 1.0, %v15680_v39  ;;  %v12877_v43 = vmul.f32 -1.442695, %v17162_v6 }
 0x1d9   :  { %v13861_v37 = vpop.f32.mrb[116].mxu0  ;;  %v15684_v15 = vpop.eup %15683  ;;  %15703 = vrcp.f32 %v3679_v59  ;;  %5226 = vperm.xlu0 %14785, %v15682_v18   ;;  %13967 = vmatprep.mubr.msk.bf16.mxu0 %vm1084_vm0, %v14905_v52 }
 0x1da   :  { %v12976_v3 = vmul.f32 -1.442695, %v13861_v37  ;;  %v2021_v1 = vpop.f32.mrb[117].mxu0  ;;  %v15686_v21 = vpop.eup %15685  ;;  %15705 = vrcp.f32 %v3680_v23  ;;  %v3682_v18 = vadd.f32 1.0, %v15684_v15  ;;  %v14907_v15 = vld [vmem:[%s22548_s1 + $0x390] sm:$0xff]  }
 0x1db   :  { %v12974_v46 = vmul.f32 -1.442695, %v2021_v1  ;;  %v13862_v20 = vpop.f32.mrb[118].mxu0  ;;  %v15688_v61 = vpop.eup %15687  ;;  %15707 = vpow2.f32 %v12973_v55  ;;  %5231 = vperm.xlu1 %14784, %v15686_v21  }
 0x1dc   :  { %v2024_v45 = vpop.f32.mrb[119].mxu0  ;;  %v15690_v33 = vpop.eup %15689  ;;  %15709 = vpow2.f32 %v12971_v51  ;;  %v12977_v59 = vmul.f32 -1.442695, %v13862_v20 }
 0x1dd   :  { %v15692_v62 = vpop.eup %15691  ;;  %5236 = vperm.xlu0 %14785, %v15678_v25   ;;  %15711 = vpow2.f32 %v12976_v3  ;;  %v12975_v37 = vmul.f32 -1.442695, %v2024_v45 }
 0x1de   :  { %v15694_v39 = vpop.eup %15693  ;;  %15713 = vpow2.f32 %v12974_v46  ;;  %v3683_v21 = vadd.f32 1.0, %v15692_v62 }
 0x1df   :  { %v15696_v23 = vpop.eup %15695  ;;  %15715 = vpow2.f32 %v12877_v43  ;;  %v3681_v6 = vadd.f32 1.0, %v15694_v39  ;;  %5241 = vperm.xlu1 %14784, %v15688_v61  }
 0x1e0   :  { %13968 = vmatmul.mubr.msk.bf16.gmra.mrb[224].mxu0 %vm1084_vm0, %v14906_v12  ;;  %v15698_v55 = vpop.eup %15697  ;;  %15717 = vpow2.f32 %v12977_v59  ;;  %v3686_v43 = vadd.f32 1.0, %v15696_v23  ;;  %v14908_v12 = vld [vmem:[%s22548_s1 + $0x398] sm:$0xff]  }
 0x1e1   :  { %v13865_v1 = vpop.f32.mrb[120].mxu0  ;;  %v15700_v52 = vpop.eup %15699  ;;  %15719 = vrcp.f32 %v3681_v6  ;;  %v3684_v51 = vadd.f32 1.0, %v15698_v55  ;;  %5246 = vperm.xlu0 %14785, %v15690_v33   ;;  %13971 = vmatprep.mubr.msk.bf16.mxu0 %vm1084_vm0, %v14907_v15 }
 0x1e2   :  { %v2037_v25 = vpop.f32.mrb[121].mxu0  ;;  %v15702_v3 = vpop.eup %15701  ;;  %15721 = vrcp.f32 %v3682_v18  ;;  %v12980_v59 = vmul.f32 -1.442695, %v13865_v1 }
 0x1e3   :  { %v12978_v46 = vmul.f32 -1.442695, %v2037_v25  ;;  %v13866_v20 = vpop.f32.mrb[122].mxu0  ;;  %v15704_v61 = vpop.eup %15703  ;;  %15723 = vrcp.f32 %v3684_v51  ;;  %5251 = vperm.xlu1 %14784, %v15702_v3  }
 0x1e4   :  { %v2040_v45 = vpop.f32.mrb[123].mxu0  ;;  %v15706_v33 = vpop.eup %15705  ;;  %15725 = vpow2.f32 %v12975_v37  ;;  %v12981_v18 = vmul.f32 -1.442695, %v13866_v20 }
 0x1e5   :  { %v15708_v62 = vpop.eup %15707  ;;  %15727 = vrcp.f32 %v3683_v21  ;;  %5256 = vperm.xlu0 %14785, %v15700_v52   ;;  %v12979_v1 = vmul.f32 -1.442695, %v2040_v45  ;;  %v14909_v21 = vld [vmem:[%s22548_s1 + $0x3a0] sm:$0xff]   ;;  %v14910_v45 = vld [vmem:[%s22548_s1 + $0x3a8] sm:$0xff]  }
 0x1e6   :  { %v15710_v39 = vpop.eup %15709  ;;  %15729 = vpow2.f32 %v12978_v46  ;;  %v3687_v23 = vadd.f32 1.0, %v15708_v62 }
 0x1e7   :  { %v15712_v6 = vpop.eup %15711  ;;  %15731 = vrcp.f32 %v3686_v43  ;;  %v3685_v55 = vadd.f32 1.0, %v15710_v39  ;;  %5261 = vperm.xlu1 %14784, %v15704_v61  }
 0x1e8   :  { %13972 = vmatmul.mubr.msk.bf16.gmra.mrb[228].mxu0 %vm1084_vm0, %v14908_v12  ;;  %v15714_v51 = vpop.eup %15713  ;;  %15733 = vpow2.f32 %v12980_v59  ;;  %v3690_v46 = vadd.f32 1.0, %v15712_v6 }
 0x1e9   :  { %v13869_v25 = vpop.f32.mrb[124].mxu0  ;;  %v17588_v15 = vpop.eup %15715  ;;  %15735 = vrcp.f32 %v3685_v55  ;;  %v3688_v37 = vadd.f32 1.0, %v15714_v51  ;;  %5266 = vperm.xlu0 %14785, %v15706_v33   ;;  %13975 = vmatprep.mubr.msk.bf16.mxu0 %vm1084_vm0, %v14909_v21 }
 0x1ea   :  { %v2053_v52 = vpop.f32.mrb[125].mxu0  ;;  %v15718_v3 = vpop.eup %15717  ;;  %15737 = vpow2.f32 %v12981_v18  ;;  %v12984_v59 = vmul.f32 -1.442695, %v13869_v25 }
 0x1eb   :  { %v13870_v20 = vpop.f32.mrb[126].mxu0  ;;  %v15720_v61 = vpop.eup %15719  ;;  %15739 = vrcp.f32 %v3687_v23  ;;  %v12982_v43 = vmul.f32 -1.442695, %v2053_v52  ;;  %v3691_v18 = vadd.f32 1.0, %v15718_v3  ;;  %v14911_v3 = vld [vmem:[%s22548_s1 + $0x3b0] sm:$0xff]  }
 0x1ec   :  { %v2056_v12 = vpop.f32.mrb[127].mxu0  ;;  %v15722_v33 = vpop.eup %15721  ;;  %15741 = vrcp.f32 %v3688_v37  ;;  %5271 = vperm.xlu1 %14784, %v15720_v61   ;;  %v12985_v55 = vmul.f32 -1.442695, %v13870_v20  ;;  %v12875_v20 = vmul.f32 -1.442695, %v17167_v9 }
 0x1ed   :  { %v15724_v62 = vpop.eup %15723  ;;  %15743 = vpow2.f32 %v12979_v1  ;;  %5276 = vperm.xlu0 %14785, %v15722_v33   ;;  %v12983_v21 = vmul.f32 -1.442695, %v2056_v12  ;;  %v14912_v12 = vld [vmem:[%s22548_s1 + $0x3b8] sm:$0xff]  }
 0x1ee   :  { %v15726_v39 = vpop.eup %15725  ;;  %15745 = vrcp.f32 %v3690_v46 }
 0x1ef   :  { %v15728_v6 = vpop.eup %15727  ;;  %v3689_v23 = vadd.f32 1.0, %v15726_v39  ;;  %15747 = vpow2.f32 %v12982_v43 }
 0x1f0   :  { %13976 = vmatmul.mubr.msk.bf16.gmra.mrb[232].mxu0 %vm1084_vm0, %v14910_v45  ;;  %v15730_v51 = vpop.eup %15729  ;;  %15749 = vpow2.f32 %v12984_v59  ;;  %5281 = vperm.xlu1 %14784, %v15728_v6   ;;  %v3586_v45 = vadd.f32 1.0, %v17539_v54  ;;  %v3587_v6 = vadd.f32 1.0, %v17549_v4 }
 0x1f1   :  { %v17598_v52 = vpop.f32.mrb[128].mxu0  ;;  %v15732_v37 = vpop.eup %15731  ;;  %15751 = vrcp.f32 %v3689_v23  ;;  %v3692_v25 = vadd.f32 1.0, %v15730_v51  ;;  %5286 = vperm.xlu0 %14785, %v15724_v62   ;;  %13979 = vmatprep.mubr.msk.bf16.mxu0 %vm1084_vm0, %v14911_v3  ;;  %v3584_v62 = vadd.f32 1.0, %v17541_v27 }
 0x1f2   :  { %v17600_v1 = vpop.f32.mrb[129].mxu0  ;;  %v15734_v46 = vpop.eup %15733  ;;  %15753 = vrcp.f32 %v3691_v18 }
 0x1f3   :  { %v17606_v61 = vpop.f32.mrb[130].mxu0  ;;  %v15736_v43 = vpop.eup %15735  ;;  %15755 = vpow2.f32 %v12985_v55  ;;  %v3694_v39 = vadd.f32 1.0, %v15734_v46 }
 0x1f4   :  { %v17609_v33 = vpop.f32.mrb[131].mxu0  ;;  %v15738_v59 = vpop.eup %15737  ;;  %15757 = vrcp.f32 %v3692_v25  ;;  %5291 = vperm.xlu1 %14784, %v15736_v43   ;;  %v3585_v25 = vadd.f32 1.0, %v17552_v17  ;;  %v14914_v17 = vld [vmem:[%s22548_s1 + $0x3c8] sm:$0xff]  }
 0x1f5   :  { %v15740_v9 = vpop.eup %15739  ;;  %15759 = vpow2.f32 %v12983_v21  ;;  %5296 = vperm.xlu0 %14785, %v15732_v37   ;;  %v14913_v21 = vld [vmem:[%s22548_s1 + $0x3c0] sm:$0xff]   ;;  %v3695_v3 = vadd.f32 1.0, %v15738_v59 }
 0x1f6   :  { %v15742_v18 = vpop.eup %15741  ;;  %15761 = vpow2.f32 %v12875_v20 }
 0x1f7   :  { %v15744_v54 = vpop.eup %15743  ;;  %15763 = vrcp.f32 %v3586_v45  ;;  %v12880_v45 = vmul.f32 -1.442695, %v17171_v13 }
 0x1f8   :  { %13980 = vmatmul.mubr.msk.bf16.gmra.mrb[236].mxu0 %vm1084_vm0, %v14912_v12  ;;  %v15746_v23 = vpop.eup %15745  ;;  %15765 = vrcp.f32 %v3584_v62  ;;  %v3693_v55 = vadd.f32 1.0, %v15744_v54  ;;  %5301 = vperm.xlu1 %14784, %v15740_v9   ;;  %v12878_v9 = vmul.f32 -1.442695, %v17173_v14  ;;  %v12881_v54 = vmul.f32 -1.442695, %v17178_v16  ;;  %v14915_v16 = vld [vmem:[%s22548_s1 + $0x3d0] sm:$0xff]  }
 0x1f9   :  { %v17618_v51 = vpop.f32.mrb[132].mxu0  ;;  %v15748_v27 = vpop.eup %15747  ;;  %15767 = vrcp.f32 %v3694_v39  ;;  %5306 = vperm.xlu0 %14785, %v15742_v18   ;;  %13983 = vmatprep.mubr.msk.bf16.mxu0 %vm1084_vm0, %v14913_v21 }
 0x1fa   :  { %v17621_v37 = vpop.f32.mrb[133].mxu0  ;;  %v15750_v4 = vpop.eup %15749  ;;  %15769 = vrcp.f32 %v3693_v55  ;;  %v3696_v46 = vadd.f32 1.0, %v15748_v27  ;;  %v12879_v55 = vmul.f32 -1.442695, %v17183_v19 }
 0x1fb   :  { %v17626_v20 = vpop.f32.mrb[134].mxu0  ;;  %v15752_v43 = vpop.eup %15751  ;;  %15771 = vrcp.f32 %v3587_v6  ;;  %v3698_v39 = vadd.f32 1.0, %v15750_v4 }
 0x1fc   :  { %v17629_v12 = vpop.f32.mrb[135].mxu0  ;;  %v15754_v62 = vpop.eup %15753  ;;  %15773 = vrcp.f32 %v3696_v46  ;;  %5311 = vperm.xlu1 %14784, %v15752_v43   ;;  %v3588_v43 = vadd.f32 1.0, %v17557_v48  ;;  %v12986_v48 = vmul.f32 -1.442695, %v17600_v1  ;;  %v12988_v1 = vmul.f32 -1.442695, %v17598_v52 }
 0x1fd   :  { %v15756_v59 = vpop.eup %15755  ;;  %15775 = vrcp.f32 %v3585_v25  ;;  %5316 = vperm.xlu0 %14785, %v15746_v23   ;;  %v3590_v23 = vadd.f32 1.0, %v17555_v7  ;;  %v14916_v7 = vld [vmem:[%s22548_s1 + $0x3d8] sm:$0xff]   ;;  %v14918_v52 = vld [vmem:[%s22548_s1 + $0x3e8] sm:$0xff]  }
 0x1fe   :  { %v15758_v18 = vpop.eup %15757  ;;  %15777 = vrcp.f32 %v3695_v3  ;;  %v3699_v3 = vadd.f32 1.0, %v15756_v59 }
 0x1ff   :  { %v15760_v13 = vpop.eup %15759  ;;  %15779 = vpow2.f32 %v12880_v45 }
 0x200   :  { %13984 = vmatmul.mubr.msk.bf16.gmra.mrb[240].mxu0 %vm1084_vm0, %v14914_v17  ;;  %v15762_v6 = vpop.eup %15761  ;;  %15781 = vpow2.f32 %v12878_v9  ;;  %v3697_v27 = vadd.f32 1.0, %v15760_v13  ;;  %5321 = vperm.xlu1 %14784, %v15754_v62   ;;  %v3591_v62 = vadd.f32 1.0, %v17588_v15  ;;  %v12884_v13 = vmul.f32 -1.442695, %v17187_v22  ;;  %v14917_v22 = vld [vmem:[%s22548_s1 + $0x3e0] sm:$0xff]  }
 0x201   :  { %v17639_v14 = vpop.f32.mrb[136].mxu0  ;;  %v17641_v21 = vpop.eup %15763  ;;  %15783 = vrcp.f32 %v3698_v39  ;;  %5326 = vperm.xlu0 %14785, %v15758_v18   ;;  %13987 = vmatprep.mubr.msk.bf16.mxu0 %vm1084_vm0, %v14915_v16  ;;  %v3589_v39 = vadd.f32 1.0, %v15762_v6  ;;  %v12882_v15 = vmul.f32 -1.442695, %v17189_v24  ;;  %v12987_v16 = vmul.f32 -1.442695, %v17609_v33 }
 0x202   :  { %v17644_v25 = vpop.f32.mrb[137].mxu0  ;;  %v17649_v4 = vpop.eup %15765  ;;  %15785 = vrcp.f32 %v3697_v27  ;;  %v12992_v33 = vmul.f32 -1.442695, %v17618_v51 }
 0x203   :  { %v17651_v19 = vpop.f32.mrb[138].mxu0  ;;  %v15768_v46 = vpop.eup %15767  ;;  %15787 = vpow2.f32 %v12881_v54 }
 0x204   :  { %v17654_v45 = vpop.f32.mrb[139].mxu0  ;;  %v15770_v17 = vpop.eup %15769  ;;  %15789 = vpow2.f32 %v12879_v55 }
 0x205   :  { %v17661_v9 = vpop.eup %15771  ;;  %15791 = vrcp.f32 %v3590_v23  ;;  %5331 = vperm.xlu1 %14784, %v15770_v17   ;;  %5336 = vperm.xlu0 %14785, %v15768_v46   ;;  %v12885_v46 = vmul.f32 -1.442695, %v17194_v26  ;;  %v12989_v17 = vmul.f32 -1.442695, %v17606_v61  ;;  %v12883_v26 = vmul.f32 -1.442695, %v17199_v28 }
 0x206   :  { %v15774_v59 = vpop.eup %15773  ;;  %15793 = vrcp.f32 %v3699_v3  ;;  %v12993_v28 = vmul.f32 -1.442695, %v17626_v20  ;;  %v14920_v20 = vld [vmem:[%s22548_s1 + $0x3f8] sm:$0xff]  }
 0x207   :  { %v17664_v18 = vpop.eup %15775  ;;  %15795 = vrcp.f32 %v3588_v43 }
 0x208   :  { %13988 = vmatmul.mubr.msk.bf16.gmra.mrb[244].mxu0 %vm1084_vm0, %v14916_v7  ;;  %v15778_v54 = vpop.eup %15777  ;;  %15797 = vrcp.f32 %v3591_v62 }
 0x209   :  { %v17669_v55 = vpop.f32.mrb[140].mxu0  ;;  %v15780_v27 = vpop.eup %15779  ;;  %5341 = vperm.xlu1 %14784, %v15778_v54   ;;  %5346 = vperm.xlu0 %14785, %v15774_v59   ;;  %15799 = vpow2.f32 %v12986_v48 }
 0x20a   :  { %v17672_v6 = vpop.f32.mrb[141].mxu0  ;;  %v15782_v23 = vpop.eup %15781  ;;  %15801 = vrcp.f32 %v3589_v39  ;;  %13991 = vmatprep.mubr.msk.bf16.mxu0 %vm1084_vm0, %v14917_v22  ;;  %v12990_v39 = vmul.f32 -1.442695, %v17621_v37  ;;  %v3594_v54 = vadd.f32 1.0, %v15780_v27  ;;  %v14919_v37 = vld [vmem:[%s22548_s1 + $0x3f0] sm:$0xff]  }
 0x20b   :  { %v17678_v3 = vpop.f32.mrb[142].mxu0  ;;  %v15784_v24 = vpop.eup %15783  ;;  %15803 = vpow2.f32 %v12884_v13  ;;  %v3592_v22 = vadd.f32 1.0, %v15782_v23 }
 0x20c   :  { %v17681_v43 = vpop.f32.mrb[143].mxu0  ;;  %v15786_v7 = vpop.eup %15785  ;;  %15805 = vpow2.f32 %v12882_v15 }
 0x20d   :  { %v15788_v62 = vpop.eup %15787  ;;  %15807 = vpow2.f32 %v12988_v1  ;;  %5351 = vperm.xlu1 %14784, %v15786_v7   ;;  %5356 = vperm.xlu0 %14785, %v15784_v24   ;;  %v12991_v24 = vmul.f32 -1.442695, %v17629_v12  ;;  %v14923_v12 = vld [vmem:[%s22550_s3 + $0x13c] ss:$72 sps:$4 sm:$0xff]  }
 0x20e   :  { %v15790_v48 = vpop.eup %15789  ;;  %15809 = vpow2.f32 %v12987_v16  ;;  %9911 = vmatprep.mubr.bf16.mxu1 %v14923_v12  ;;  %v12998_v12 = vmul.f32 -1.442695, %v17672_v6 }
 0x20f   :  { %v17690_v59 = vpop.eup %15791  ;;  %15811 = vpow2.f32 %v12885_v46  ;;  %v3593_v23 = vadd.f32 1.0, %v15790_v48 }
 0x210   :  { %13992 = vmatmul.mubr.msk.bf16.gmra.mrb[248].mxu0 %vm1084_vm0, %v14918_v52  ;;  %v15794_v13 = vpop.eup %15793  ;;  %15813 = vpow2.f32 %v12989_v17  ;;  %v3595_v52 = vadd.f32 1.0, %v15788_v62  ;;  %v12994_v62 = vmul.f32 -1.442695, %v17644_v25 }
 0x211   :  { %v17694_v61 = vpop.f32.mrb[144].mxu0  ;;  %v15796_v15 = vpop.eup %15795  ;;  %5361 = vperm.xlu1 %14784, %v15794_v13   ;;  %4786 = vperm.xlu0 %14785, %v17649_v4   ;;  %15815 = vpow2.f32 %v12992_v33  ;;  %v12995_v13 = vmul.f32 -1.442695, %v17654_v45 }
 0x212   :  { %v17698_v51 = vpop.f32.mrb[145].mxu0  ;;  %v17703_v1 = vpop.eup %15797  ;;  %15817 = vpow2.f32 %v12883_v26  ;;  %13995 = vmatprep.mubr.msk.bf16.mxu0 %vm1084_vm0, %v14919_v37 }
 0x213   :  { %v17705_v27 = vpop.f32.mrb[146].mxu0  ;;  %v15800_v16 = vpop.eup %15799  ;;  %15819 = vpow2.f32 %v12990_v39 }
 0x214   :  { %v17708_v4 = vpop.f32.mrb[147].mxu0  ;;  %v15802_v46 = vpop.eup %15801  ;;  %15821 = vrcp.f32 %v3594_v54  ;;  %v3700_v33 = vadd.f32 1.0, %v15800_v16 }
 0x215   :  { %v17714_v7 = vpop.eup %15803  ;;  %4791 = vperm.xlu1 %14784, %v17664_v18   ;;  %4796 = vperm.xlu0 %14785, %v17641_v21   ;;  %15823 = vpow2.f32 %v12993_v28  ;;  %v12996_v21 = vmul.f32 -1.442695, %v17639_v14 }
 0x216   :  { %v17721_v17 = vpop.eup %15805  ;;  %15825 = vrcp.f32 %v3592_v22 }
 0x217   :  { %v15808_v26 = vpop.eup %15807  ;;  %15827 = vpow2.f32 %v12991_v24 }
 0x218   :  { %13996 = vmatmul.mubr.msk.bf16.gmra.mrb[252].mxu0 %vm1084_vm0, %v14920_v20  ;;  %v15810_v48 = vpop.eup %15809  ;;  %15829 = vrcp.f32 %v3595_v52  ;;  %v3702_v28 = vadd.f32 1.0, %v15808_v26 }
 0x219   :  { %v17726_v18 = vpop.f32.mrb[148].mxu0  ;;  %v17728_v39 = vpop.eup %15811  ;;  %15831 = vrcp.f32 %v3593_v23  ;;  %4801 = vperm.xlu1 %14784, %v17661_v9   ;;  %4806 = vperm.xlu0 %14785, %v15796_v15   ;;  %v3701_v16 = vadd.f32 1.0, %v15810_v48  ;;  %v12997_v9 = vmul.f32 -1.442695, %v17651_v19  ;;  %v13000_v19 = vmul.f32 -1.442695, %v17669_v55 }
 0x21a   :  { %v17732_v54 = vpop.f32.mrb[149].mxu0  ;;  %v15814_v25 = vpop.eup %15813  ;;  %15833 = vrcp.f32 %v3700_v33  ;;  %v13001_v55 = vmul.f32 -1.442695, %v17678_v3 }
 0x21b   :  { %v17734_v37 = vpop.f32.mrb[150].mxu0  ;;  %v15816_v22 = vpop.eup %15815  ;;  %15835 = vpow2.f32 %v12994_v62  ;;  %v3703_v20 = vadd.f32 1.0, %v15814_v25  ;;  %v12999_v25 = vmul.f32 -1.442695, %v17681_v43 }
 0x21c   :  { %v17736_v14 = vpop.f32.mrb[151].mxu0  ;;  %v17738_v24 = vpop.eup %15817  ;;  %15837 = vpow2.f32 %v12996_v21  ;;  %v3706_v52 = vadd.f32 1.0, %v15816_v22 }
 0x21d   :  { %v15820_v15 = vpop.eup %15819  ;;  %4811 = vperm.xlu1 %14784, %v15802_v46   ;;  %4816 = vperm.xlu0 %14785, %v17690_v59   ;;  %15839 = vpow2.f32 %v12995_v13 }
 0x21e   :  { %v15822_v45 = vpop.eup %15821  ;;  %15841 = vrcp.f32 %v3702_v28  ;;  %v3704_v26 = vadd.f32 1.0, %v15820_v15  ;;  %v13004_v15 = vmul.f32 -1.442695, %v17694_v61 }
 0x21f   :  { %v15824_v23 = vpop.eup %15823  ;;  %15843 = vrcp.f32 %v3701_v16 }
 0x220   :  { %v15826_v33 = vpop.eup %15825  ;;  %15845 = vpow2.f32 %v12997_v9  ;;  %v3707_v21 = vadd.f32 1.0, %v15824_v23 }
 0x221   :  { %v17743_v62 = vpop.f32.mrb[152].mxu0  ;;  %v15828_v48 = vpop.eup %15827  ;;  %15847 = vrcp.f32 %v3703_v20  ;;  %4821 = vperm.xlu1 %14784, %v17703_v1   ;;  %4826 = vperm.xlu0 %14785, %v15826_v33  }
 0x222   :  { %v17747_v59 = vpop.f32.mrb[153].mxu0  ;;  %v15830_v46 = vpop.eup %15829  ;;  %15849 = vrcp.f32 %v3706_v52  ;;  %v3705_v16 = vadd.f32 1.0, %v15828_v48  ;;  %v13002_v52 = vmul.f32 -1.442695, %v17698_v51  ;;  %v13003_v51 = vmul.f32 -1.442695, %v17708_v4 }
 0x223   :  { %v17749_v13 = vpop.f32.mrb[154].mxu0  ;;  %v15832_v6 = vpop.eup %15831  ;;  %15851 = vpow2.f32 %v12998_v12 }
 0x224   :  { %v17752_v28 = vpop.f32.mrb[155].mxu0  ;;  %v15834_v22 = vpop.eup %15833  ;;  %15853 = vrcp.f32 %v3704_v26 }
 0x225   :  { %v15836_v1 = vpop.eup %15835  ;;  %4831 = vperm.xlu1 %14784, %v15832_v6   ;;  %4836 = vperm.xlu0 %14785, %v15822_v45   ;;  %15855 = vpow2.f32 %v13000_v19 }
 0x226   :  { %v15838_v9 = vpop.eup %15837  ;;  %15857 = vrcp.f32 %v3707_v21  ;;  %v3708_v23 = vadd.f32 1.0, %v15836_v1  ;;  %v13008_v1 = vmul.f32 -1.442695, %v17726_v18 }
 0x227   :  { %v15840_v20 = vpop.eup %15839  ;;  %15859 = vpow2.f32 %v12999_v25  ;;  %v3710_v26 = vadd.f32 1.0, %v15838_v9  ;;  %v13005_v25 = vmul.f32 -1.442695, %v17705_v27  ;;  %v13006_v9 = vmul.f32 -1.442695, %v17732_v54 }
 0x228   :  { %v15842_v43 = vpop.eup %15841  ;;  %15861 = vrcp.f32 %v3705_v16  ;;  %v3709_v48 = vadd.f32 1.0, %v15840_v20  ;;  %v12888_v27 = vmul.f32 -1.442695, %v17203_v29  ;;  %v13007_v54 = vmul.f32 -1.442695, %v17736_v14 }
 0x229   :  { %v17757_v12 = vpop.f32.mrb[156].mxu0  ;;  %v15844_v33 = vpop.eup %15843  ;;  %4841 = vperm.xlu1 %14784, %v15830_v46   ;;  %15863 = vpow2.f32 %v13001_v55  ;;  %5366 = vperm.xlu0 %14785, %v15834_v22  }
 0x22a   :  { %v17759_v45 = vpop.f32.mrb[157].mxu0  ;;  %v15846_v3 = vpop.eup %15845  ;;  %15865 = vpow2.f32 %v13004_v15 }
 0x22b   :  { %v17761_v61 = vpop.f32.mrb[158].mxu0  ;;  %v15848_v19 = vpop.eup %15847  ;;  %15867 = vpow2.f32 %v13002_v52  ;;  %v3711_v22 = vadd.f32 1.0, %v15846_v3 }
 0x22c   :  { %v17764_v21 = vpop.f32.mrb[159].mxu0  ;;  %v15850_v6 = vpop.eup %15849  ;;  %15869 = vrcp.f32 %v3708_v23 }
 0x22d   :  { %v15852_v46 = vpop.eup %15851  ;;  %15871 = vrcp.f32 %v3710_v26  ;;  %5371 = vperm.xlu1 %14784, %v15844_v33   ;;  %5376 = vperm.xlu0 %14785, %v15842_v43  }
 0x22e   :  { %v15854_v16 = vpop.eup %15853  ;;  %15873 = vrcp.f32 %v3709_v48  ;;  %v3712_v15 = vadd.f32 1.0, %v15852_v46 }
 0x22f   :  { %v15856_v55 = vpop.eup %15855  ;;  %15875 = vpow2.f32 %v13003_v51 }
 0x230   :  { %v15858_v4 = vpop.eup %15857  ;;  %15877 = vpow2.f32 %v13005_v25  ;;  %v3714_v33 = vadd.f32 1.0, %v15856_v55 }
 0x231   :  { %v17769_v20 = vpop.f32.mrb[160].mxu0  ;;  %v15860_v52 = vpop.eup %15859  ;;  %15879 = vrcp.f32 %v3711_v22  ;;  %5381 = vperm.xlu1 %14784, %v15848_v19   ;;  %5386 = vperm.xlu0 %14785, %v15854_v16   ;;  %v13009_v19 = vmul.f32 -1.442695, %v17734_v37  ;;  %v13010_v16 = vmul.f32 -1.442695, %v17747_v59 }
 0x232   :  { %v17772_v43 = vpop.f32.mrb[161].mxu0  ;;  %v15862_v23 = vpop.eup %15861  ;;  %15881 = vpow2.f32 %v13008_v1  ;;  %v3713_v51 = vadd.f32 1.0, %v15860_v52  ;;  %v13012_v52 = vmul.f32 -1.442695, %v17743_v62  ;;  %v13011_v59 = vmul.f32 -1.442695, %v17752_v28 }
 0x233   :  { %v17774_v18 = vpop.f32.mrb[162].mxu0  ;;  %v15864_v26 = vpop.eup %15863  ;;  %15883 = vpow2.f32 %v13006_v9  ;;  %v14936_v62 = vld [vmem:[%s22548_s1 + $0x400] sm:$0xff]   ;;  %v14939_v28 = vld [vmem:[%s22548_s1 + $0x408] sm:$0xff]  }
 0x234   :  { %v17777_v3 = vpop.f32.mrb[163].mxu0  ;;  %v15866_v48 = vpop.eup %15865  ;;  %15885 = vrcp.f32 %v3712_v15  ;;  %v3715_v46 = vadd.f32 1.0, %v15864_v26  ;;  %13999 = vmatprep.mubr.msk.bf16.mxu0 %vm1084_vm0, %v14936_v62 }
 0x235   :  { %v15868_v29 = vpop.eup %15867  ;;  %15887 = vpow2.f32 %v12888_v27  ;;  %5391 = vperm.xlu1 %14784, %v15862_v23   ;;  %5396 = vperm.xlu0 %14785, %v15850_v6   ;;  %v3718_v15 = vadd.f32 1.0, %v15866_v48 }
 0x236   :  { %v15870_v25 = vpop.eup %15869  ;;  %15889 = vrcp.f32 %v3714_v33  ;;  %v3716_v14 = vadd.f32 1.0, %v15868_v29  ;;  %v13013_v29 = vmul.f32 -1.442695, %v17749_v13  ;;  %14000 = vmatmul.mubr.msk.bf16.gmra.mrb[0].mxu0 %vm1084_vm0, %v14939_v28 }
 0x237   :  { %v15872_v22 = vpop.eup %15871  ;;  %15891 = vpow2.f32 %v13007_v54 }
 0x238   :  { %v15874_v1 = vpop.eup %15873  ;;  %15893 = vrcp.f32 %v3713_v51 }
 0x239   :  { %v17781_v55 = vpop.f32.mrb[164].mxu0  ;;  %v15876_v9 = vpop.eup %15875  ;;  %5401 = vperm.xlu1 %14784, %v15858_v4   ;;  %15895 = vpow2.f32 %v13009_v19  ;;  %5406 = vperm.xlu0 %14785, %v15870_v25   ;;  %v13014_v25 = vmul.f32 -1.442695, %v17759_v45  ;;  %v13016_v45 = vmul.f32 -1.442695, %v17757_v12  ;;  %v14941_v12 = vld [vmem:[%s22548_s1 + $0x410] sm:$0xff]  }
 0x23a   :  { %v17783_v6 = vpop.f32.mrb[165].mxu0  ;;  %v15878_v37 = vpop.eup %15877  ;;  %15897 = vrcp.f32 %v3715_v46  ;;  %v3717_v54 = vadd.f32 1.0, %v15876_v9  ;;  %14003 = vmatprep.mubr.msk.bf16.mxu0 %vm1084_vm0, %v14941_v12  ;;  %v12892_v12 = vmul.f32 -1.442695, %v17219_v35  ;;  %v4533_v35 = vld [vmem:[%s22549_s2 + $0x308] sm:$0xff] }
 0x23b   :  { %v17786_v27 = vpop.f32.mrb[166].mxu0  ;;  %v15880_v23 = vpop.eup %15879  ;;  %15899 = vpow2.f32 %v13010_v16  ;;  %v3719_v48 = vadd.f32 1.0, %v15878_v37 }
 0x23c   :  { %v17789_v33 = vpop.f32.mrb[167].mxu0  ;;  %v15882_v26 = vpop.eup %15881  ;;  %15901 = vrcp.f32 %v3716_v14 }
 0x23d   :  { %v15884_v4 = vpop.eup %15883  ;;  %15903 = vrcp.f32 %v3718_v15  ;;  %5411 = vperm.xlu1 %14784, %v15874_v1   ;;  %5416 = vperm.xlu0 %14785, %v15872_v22   ;;  %v3722_v13 = vadd.f32 1.0, %v15882_v26 }
 0x23e   :  { %v15886_v51 = vpop.eup %15885  ;;  %15905 = vpow2.f32 %v13012_v52  ;;  %v3720_v22 = vadd.f32 1.0, %v15884_v4  ;;  %v13015_v52 = vmul.f32 -1.442695, %v17764_v21  ;;  %v14944_v21 = vld [vmem:[%s22548_s1 + $0x418] sm:$0xff]  }
 0x23f   :  { %v17798_v19 = vpop.eup %15887  ;;  %15907 = vpow2.f32 %v13011_v59  ;;  %14004 = vmatmul.mubr.msk.bf16.gmra.mrb[4].mxu0 %vm1084_vm0, %v14944_v21 }
 0x240   :  { %v15890_v46 = vpop.eup %15889  ;;  %15909 = vrcp.f32 %v3717_v54 }
 0x241   :  { %v17802_v16 = vpop.f32.mrb[168].mxu0  ;;  %v15892_v1 = vpop.eup %15891  ;;  %15911 = vrcp.f32 %v3719_v48  ;;  %5421 = vperm.xlu1 %14784, %v15880_v23   ;;  %5426 = vperm.xlu0 %14785, %v15886_v51   ;;  %v12886_v23 = vmul.f32 -1.442695, %v17205_v30 }
 0x242   :  { %v17805_v14 = vpop.f32.mrb[169].mxu0  ;;  %v15894_v9 = vpop.eup %15893  ;;  %15913 = vpow2.f32 %v13013_v29  ;;  %v3721_v4 = vadd.f32 1.0, %v15892_v1  ;;  %v13017_v29 = vmul.f32 -1.442695, %v17761_v61  ;;  %v12887_v61 = vmul.f32 -1.442695, %v17215_v34 }
 0x243   :  { %v17808_v15 = vpop.f32.mrb[170].mxu0  ;;  %v15896_v37 = vpop.eup %15895  ;;  %15915 = vpow2.f32 %v13014_v25  ;;  %v14946_v34 = vld [vmem:[%s22548_s1 + $0x420] sm:$0xff]  }
 0x244   :  { %v17811_v59 = vpop.f32.mrb[171].mxu0  ;;  %v15898_v54 = vpop.eup %15897  ;;  %15917 = vrcp.f32 %v3720_v22  ;;  %v3723_v62 = vadd.f32 1.0, %v15896_v37  ;;  %v12889_v22 = vmul.f32 -1.442695, %v17210_v32  ;;  %v3598_v32 = vadd.f32 1.0, %v17714_v7  ;;  %14007 = vmatprep.mubr.msk.bf16.mxu0 %vm1084_vm0, %v14946_v34 }
 0x245   :  { %v15900_v26 = vpop.eup %15899  ;;  %15919 = vrcp.f32 %v3722_v13  ;;  %5431 = vperm.xlu1 %14784, %v15894_v9   ;;  %5436 = vperm.xlu0 %14785, %v15890_v46  }
 0x246   :  { %v15902_v48 = vpop.eup %15901  ;;  %15921 = vpow2.f32 %v13016_v45  ;;  %v3724_v28 = vadd.f32 1.0, %v15900_v26 }
 0x247   :  { %v15904_v51 = vpop.eup %15903  ;;  %15923 = vpow2.f32 %v13015_v52 }
 0x248   :  { %v15906_v30 = vpop.eup %15905  ;;  %15925 = vrcp.f32 %v3721_v4 }
 0x249   :  { %v17822_v25 = vpop.f32.mrb[172].mxu0  ;;  %v15908_v46 = vpop.eup %15907  ;;  %15927 = vpow2.f32 %v12886_v23  ;;  %5441 = vperm.xlu1 %14784, %v15898_v54   ;;  %5446 = vperm.xlu0 %14785, %v15902_v48   ;;  %v3726_v37 = vadd.f32 1.0, %v15906_v30  ;;  %v4532_v48 = vld [vmem:[%s22549_s2 + $0x300] sm:$0xff] }
 0x24a   :  { %v17826_v1 = vpop.f32.mrb[173].mxu0  ;;  %v15910_v13 = vpop.eup %15909  ;;  %15929 = vrcp.f32 %v3723_v62  ;;  %v3725_v26 = vadd.f32 1.0, %v15908_v46  ;;  %v14949_v62 = vld [vmem:[%s22548_s1 + $0x428] sm:$0xff]  }
 0x24b   :  { %v17829_v9 = vpop.f32.mrb[174].mxu0  ;;  %v15912_v45 = vpop.eup %15911  ;;  %15931 = vpow2.f32 %v13017_v29  ;;  %14008 = vmatmul.mubr.msk.bf16.gmra.mrb[8].mxu0 %vm1084_vm0, %v14949_v62 }
 0x24c   :  { %v17831_v52 = vpop.f32.mrb[175].mxu0  ;;  %v15914_v4 = vpop.eup %15913  ;;  %15933 = vrcp.f32 %v3724_v28 }
 0x24d   :  { %v15916_v23 = vpop.eup %15915  ;;  %15935 = vpow2.f32 %v12889_v22  ;;  %5451 = vperm.xlu1 %14784, %v15910_v13   ;;  %5456 = vperm.xlu0 %14785, %v15904_v51   ;;  %v3727_v21 = vadd.f32 1.0, %v15914_v4  ;;  %v12890_v22 = vmul.f32 -1.442695, %v17221_v36 }
 0x24e   :  { %v15918_v54 = vpop.eup %15917  ;;  %15937 = vpow2.f32 %v12887_v61  ;;  %v3728_v29 = vadd.f32 1.0, %v15916_v23 }
 0x24f   :  { %v15920_v7 = vpop.eup %15919  ;;  %15939 = vrcp.f32 %v3726_v37  ;;  %v12893_v37 = vmul.f32 -1.442695, %v17226_v38 }
 0x250   :  { %v15922_v51 = vpop.eup %15921  ;;  %15941 = vrcp.f32 %v3725_v26  ;;  %v5207_v30 = vpop.permute.xlu0 %5206  ;;  %v4534_v26 = vld [vmem:[%s22549_s2 + $0x310] sm:$0xff] }
 0x251   :  { %v17848_v28 = vpop.f32.mrb[176].mxu0  ;;  %v15924_v46 = vpop.eup %15923  ;;  %15943 = vrcp.f32 %v3598_v32  ;;  %5461 = vperm.xlu1 %14784, %v15912_v45   ;;  %5466 = vperm.xlu0 %14785, %v15918_v54   ;;  %v3730_v32 = vadd.f32 1.0, %v15922_v51  ;;  %v6260_v62 = vmul.f32 %v5207_v30, %v4532_v48  ;;  %v4535_v45 = vld [vmem:[%s22549_s2 + $0x318] sm:$0xff]  ;;  %v14951_v48 = vld [vmem:[%s22548_s1 + $0x430] sm:$0xff]   ;;  %v3596_v30 = vadd.f32 1.0, %v17721_v17 }
 0x252   :  { %v17852_v13 = vpop.f32.mrb[177].mxu0  ;;  %v15926_v61 = vpop.eup %15925  ;;  %15945 = vpow2.f32 %v12892_v12  ;;  %v3729_v38 = vadd.f32 1.0, %v15924_v46  ;;  %v3599_v46 = vadd.f32 1.0, %v17728_v39  ;;  %14011 = vmatprep.mubr.msk.bf16.mxu0 %vm1084_vm0, %v14951_v48  ;;  %v3597_v39 = vadd.f32 1.0, %v17738_v24 }
 0x253   :  { %v5212_v4 = vpop.permute.xlu1 %5211  ;;  %v17858_v23 = vpop.f32.mrb[178].mxu0  ;;  %15947 = vrcp.f32 %v3727_v21  ;;  %14012 = vmatmul.mubr.msk.bf16.gmra.mrb[12].mxu0 %vm1084_vm0, %v14954_v40 }
 0x254   :  { %v15928_v34 = vpop.eup %15927  ;;  %v6261_v36 = vmul.f32 %v5212_v4, %v4533_v35  ;;  %v17863_v54 = vpop.f32.mrb[179].mxu0  ;;  %15949 = vrcp.f32 %v3728_v29  ;;  %v4536_v29 = vld [vmem:[%s22549_s2 + $0x320] sm:$0xff] }
 0x255   :  { %v15930_v12 = vpop.eup %15929  ;;  %v5217_v11 = vpop.permute.xlu0 %5216  ;;  %15951 = vpow2.f32 %v12890_v22  ;;  %5471 = vperm.xlu1 %14784, %v15926_v61   ;;  %5476 = vperm.xlu0 %14785, %v15920_v7   ;;  %v3600_v40 = vadd.f32 1.0, %v15928_v34 }
 0x256   :  { %v15932_v10 = vpop.eup %15931  ;;  %v17866_v21 = vpack.c.bf16 %v6261_v36, %v6260_v62  ;;  %15953 = vpow2.f32 %v12893_v37  ;;  %v6262_v22 = vmul.f32 %v5217_v11, %v4534_v26  ;;  %v4537_v62 = vld [vmem:[%s22549_s2 + $0x328] sm:$0xff] }
 0x257   :  { %v15934_v51 = vpop.eup %15933  ;;  %v5222_v35 = vpop.permute.xlu1 %5221  ;;  %15955 = vrcp.f32 %v3730_v32  ;;  %v3731_v37 = vadd.f32 1.0, %v15932_v10 }
 0x258   :  { %22650 = vst [vmem:[#allocation47_spill] sm:$0xff] %v17866_v21  ;;  %v15936_v7 = vpop.eup %15935  ;;  %v6263_v61 = vmul.f32 %v5222_v35, %v4535_v45  ;;  %14047 = vmatpush1.bf16.msra.mxu1 %v17866_v21  ;;  %15957 = vrcp.f32 %v3729_v38  ;;  %v3602_v45 = vadd.f32 1.0, %v17798_v19 }
 0x259   :  { %v15938_v17 = vpop.eup %15937  ;;  %v5227_v4 = vpop.permute.xlu0 %5226  ;;  %14032 = vmatprep.subr.bf16.mxu1 %v22637_v31  ;;  %15959 = vpow2.f32 %v12891_v8  ;;  %5481 = vperm.xlu1 %14784, %v15930_v12   ;;  %v4538_v8 = vld [vmem:[%s22549_s2 + $0x330] sm:$0xff]  ;;  %v4539_v12 = vld [vmem:[%s22549_s2 + $0x338] sm:$0xff] }
 0x25a   :  { %v17885_v36 = vpop.f32.mrb[180].mxu0  ;;  %v15940_v11 = vpop.eup %15939  ;;  %v17889_v26 = vpack.c.bf16 %v6263_v61, %v6262_v22  ;;  %5486 = vperm.xlu0 %14785, %v15934_v51   ;;  %15961 = vrcp.f32 %v3596_v30  ;;  %v6264_v21 = vmul.f32 %v5227_v4, %v4536_v29  ;;  %v3603_v30 = vadd.f32 1.0, %v15936_v7  ;;  %v14956_v61 = vld [vmem:[%s22548_s1 + $0x440] sm:$0xff]  }
 0x25b   :  { %v17891_v10 = vpop.f32.mrb[181].mxu0  ;;  %v15942_v32 = vpop.eup %15941  ;;  %15963 = vrcp.f32 %v3599_v46  ;;  %v3601_v29 = vadd.f32 1.0, %v15938_v17  ;;  %14015 = vmatprep.mubr.msk.bf16.mxu0 %vm1084_vm0, %v14956_v61 }
 0x25c   :  { %22651 = vst [vmem:[#allocation48_spill] sm:$0xff] %v17889_v26  ;;  %v5232_v38 = vpop.permute.xlu1 %5231  ;;  %v17894_v48 = vpop.f32.mrb[182].mxu0  ;;  %14048 = vmatpush1.bf16.msra.mxu1 %v17889_v26  ;;  %15965 = vrcp.f32 %v3731_v37  ;;  %v4540_v37 = vld [vmem:[%s22549_s2 + $0x340] sm:$0xff] }
 0x25d   :  { %v17896_v35 = vpop.eup %15943  ;;  %v6265_v24 = vmul.f32 %v5232_v38, %v4537_v62  ;;  %v17905_v19 = vpop.f32.mrb[183].mxu0  ;;  %14033 = vmatprep.subr.bf16.mxu1 %v22637_v31  ;;  %15967 = vrcp.f32 %v3597_v39  ;;  %5491 = vperm.xlu1 %14784, %v15942_v32   ;;  %v12896_v62 = vmul.f32 -1.442695, %v17235_v41 }
 0x25e   :  { %v15946_v51 = vpop.eup %15945  ;;  %v5237_v22 = vpop.permute.xlu0 %5236  ;;  %5496 = vperm.xlu0 %14785, %v15940_v11   ;;  %15969 = vrcp.f32 %v3602_v45  ;;  %v12894_v11 = vmul.f32 -1.442695, %v17237_v42  ;;  %v12897_v45 = vmul.f32 -1.442695, %v17242_v44 }
 0x25f   :  { %v15948_v34 = vpop.eup %15947  ;;  %v17908_v46 = vpack.c.bf16 %v6265_v24, %v6264_v21  ;;  %v14959_v21 = vld [vmem:[%s22548_s1 + $0x448] sm:$0xff]   ;;  %15971 = vrcp.f32 %v3600_v40  ;;  %v6266_v39 = vmul.f32 %v5237_v22, %v4538_v8  ;;  %v12895_v8 = vmul.f32 -1.442695, %v17247_v47  ;;  %v4542_v47 = vld [vmem:[%s22549_s2 + $0x350] sm:$0xff] }
 0x260   :  { %v15950_v4 = vpop.eup %15949  ;;  %v5242_v7 = vpop.permute.xlu1 %5241  ;;  %15973 = vrcp.f32 %v3603_v30  ;;  %v4541_v24 = vld [vmem:[%s22549_s2 + $0x348] sm:$0xff]  ;;  %14016 = vmatmul.mubr.msk.bf16.gmra.mrb[16].mxu0 %vm1084_vm0, %v14959_v21  ;;  %v12900_v22 = vmul.f32 -1.442695, %v17251_v49  ;;  %v3606_v26 = vadd.f32 1.0, %v15946_v51 }
 0x261   :  { %22652 = vst [vmem:[#allocation49_spill] sm:$0xff] %v17908_v46  ;;  %v15952_v17 = vpop.eup %15951  ;;  %v6267_v32 = vmul.f32 %v5242_v7, %v4539_v12  ;;  %14049 = vmatpush1.bf16.msra.mxu1 %v17908_v46  ;;  %v17928_v40 = vpop.f32.mrb[184].mxu0  ;;  %15975 = vrcp.f32 %v3601_v29  ;;  %5501 = vperm.xlu1 %14784, %v15948_v34   ;;  %v4543_v34 = vld [vmem:[%s22549_s2 + $0x358] sm:$0xff] }
 0x262   :  { %v15954_v41 = vpop.eup %15953  ;;  %v5247_v38 = vpop.permute.xlu0 %5246  ;;  %14034 = vmatprep.subr.bf16.mxu1 %v22637_v31  ;;  %5506 = vperm.xlu0 %14785, %v15950_v4   ;;  %15977 = vpow2.f32 %v12896_v62  ;;  %v3604_v62 = vadd.f32 1.0, %v15952_v17 }
 0x263   :  { %v15956_v42 = vpop.eup %15955  ;;  %v17932_v12 = vpack.c.bf16 %v6267_v32, %v6266_v39  ;;  %v17934_v44 = vpop.f32.mrb[185].mxu0  ;;  %15979 = vpow2.f32 %v12894_v11  ;;  %v6268_v21 = vmul.f32 %v5247_v38, %v4540_v37  ;;  %v3607_v37 = vadd.f32 1.0, %v15954_v41  ;;  %v14961_v32 = vld [vmem:[%s22548_s1 + $0x450] sm:$0xff]  }
 0x264   :  { %v15958_v30 = vpop.eup %15957  ;;  %v5252_v61 = vpop.permute.xlu1 %5251  ;;  %15981 = vpow2.f32 %v12897_v45  ;;  %v14964_v45 = vld [vmem:[%s22548_s1 + $0x458] sm:$0xff]   ;;  %v12898_v41 = vmul.f32 -1.442695, %v17253_v50  ;;  %14019 = vmatprep.mubr.msk.bf16.mxu0 %vm1084_vm0, %v14961_v32  ;;  %v4545_v50 = vld [vmem:[%s22549_s2 + $0x368] sm:$0xff]  ;;  %v12901_v32 = vmul.f32 -1.442695, %v17258_v53 }
 0x265   :  { %22653 = vst [vmem:[#allocation50_spill] sm:$0xff] %v17932_v12  ;;  %v17937_v7 = vpop.f32.mrb[186].mxu0  ;;  %v15960_v46 = vpop.eup %15959  ;;  %v6269_v29 = vmul.f32 %v5252_v61, %v4541_v24  ;;  %14050 = vmatpush1.bf16.msra.mxu1 %v17932_v12  ;;  %15983 = vpow2.f32 %v12895_v8  ;;  %5511 = vperm.xlu1 %14784, %v15958_v30  }
 0x266   :  { %v17946_v4 = vpop.f32.mrb[187].mxu0  ;;  %v15962_v49 = vpop.eup %15961  ;;  %14035 = vmatprep.subr.bf16.mxu1 %v22637_v31  ;;  %5516 = vperm.xlu0 %14785, %v15956_v42   ;;  %v3605_v24 = vadd.f32 1.0, %v15960_v46  ;;  %15985 = vpow2.f32 %v12900_v22  ;;  %v4544_v42 = vld [vmem:[%s22549_s2 + $0x360] sm:$0xff] }
 0x267   :  { %v5257_v39 = vpop.permute.xlu0 %5256  ;;  %v17949_v51 = vpop.eup %15963  ;;  %v17951_v11 = vpack.c.bf16 %v6269_v29, %v6268_v21  ;;  %15987 = vrcp.f32 %v3606_v26  ;;  %v13018_v26 = vmul.f32 -1.442695, %v17772_v43 }
 0x268   :  { %v15966_v38 = vpop.eup %15965  ;;  %v5262_v17 = vpop.permute.xlu1 %5261  ;;  %v6270_v8 = vmul.f32 %v5257_v39, %v4542_v47  ;;  %15989 = vrcp.f32 %v3604_v62  ;;  %14020 = vmatmul.mubr.msk.bf16.gmra.mrb[20].mxu0 %vm1084_vm0, %v14964_v45 }
 0x269   :  { %22654 = vst [vmem:[#allocation51_spill] sm:$0xff] %v17951_v11  ;;  %v15968_v61 = vpop.eup %15967  ;;  %v6271_v21 = vmul.f32 %v5262_v17, %v4543_v34  ;;  %14051 = vmatpush1.bf16.msra.mxu1 %v17951_v11  ;;  %v17972_v22 = vpop.f32.mrb[188].mxu0  ;;  %15991 = vrcp.f32 %v3607_v37  ;;  %5521 = vperm.xlu1 %14784, %v15966_v38   ;;  %v13020_v34 = vmul.f32 -1.442695, %v17769_v20  ;;  %v13019_v20 = vmul.f32 -1.442695, %v17777_v3 }
 0x26a   :  { %v17965_v46 = vpop.eup %15969  ;;  %14036 = vmatprep.subr.bf16.mxu1 %v22637_v31  ;;  %4846 = vperm.xlu0 %14785, %v15962_v49   ;;  %v17978_v62 = vpop.f32.mrb[189].mxu0  ;;  %15993 = vrcp.f32 %v3605_v24  ;;  %v4546_v49 = vld [vmem:[%s22549_s2 + $0x370] sm:$0xff]  ;;  %v12899_v24 = vmul.f32 -1.442695, %v17263_v56  ;;  %v4547_v3 = vld [vmem:[%s22549_s2 + $0x378] sm:$0xff]  ;;  %v14966_v56 = vld [vmem:[%s22548_s1 + $0x460] sm:$0xff]  }
 0x26b   :  { %v5267_v30 = vpop.permute.xlu0 %5266  ;;  %v15972_v29 = vpop.eup %15971  ;;  %v17975_v47 = vpack.c.bf16 %v6271_v21, %v6270_v8  ;;  %15995 = vpow2.f32 %v12898_v41  ;;  %14023 = vmatprep.mubr.msk.bf16.mxu0 %vm1084_vm0, %v14966_v56  ;;  %v13022_v11 = vmul.f32 -1.442695, %v17783_v6 }
 0x26c   :  { %v17980_v39 = vpop.eup %15973  ;;  %v17983_v43 = vpop.f32.mrb[190].mxu0  ;;  %v6272_v53 = vmul.f32 %v5267_v30, %v4544_v42  ;;  %15997 = vpow2.f32 %v13018_v26  ;;  %v4548_v26 = vld [vmem:[%s22549_s2 + $0x380] sm:$0xff] }
 0x26d   :  { %22655 = vst [vmem:[#allocation52_spill] sm:$0xff] %v17975_v47  ;;  %v17985_v17 = vpop.eup %15975  ;;  %v5272_v45 = vpop.permute.xlu1 %5271  ;;  %14052 = vmatpush1.bf16.msra.mxu1 %v17975_v47  ;;  %v12904_v47 = vmul.f32 -1.442695, %v17267_v57  ;;  %4851 = vperm.xlu1 %14784, %v15968_v61   ;;  %15999 = vpow2.f32 %v13020_v34  ;;  %v14969_v57 = vld [vmem:[%s22548_s1 + $0x468] sm:$0xff]   ;;  %v13024_v34 = vmul.f32 -1.442695, %v17781_v55 }
 0x26e   :  { %v17992_v37 = vpop.f32.mrb[191].mxu0  ;;  %v15978_v38 = vpop.eup %15977  ;;  %v6273_v8 = vmul.f32 %v5272_v45, %v4545_v50  ;;  %14037 = vmatprep.subr.bf16.mxu1 %v22637_v31  ;;  %4856 = vperm.xlu0 %14785, %v17896_v35   ;;  %16001 = vpow2.f32 %v12901_v32  ;;  %v13021_v50 = vmul.f32 -1.442695, %v17774_v18 }
 0x26f   :  { %v5277_v21 = vpop.permute.xlu0 %5276  ;;  %v15980_v41 = vpop.eup %15979  ;;  %16003 = vpow2.f32 %v13019_v20  ;;  %v3610_v55 = vadd.f32 1.0, %v15978_v38 }
 0x270   :  { %v15982_v42 = vpop.eup %15981  ;;  %v18004_v30 = vpack.c.bf16 %v6273_v8, %v6272_v53  ;;  %16005 = vpow2.f32 %v12899_v24  ;;  %v6274_v45 = vmul.f32 %v5277_v21, %v4546_v49  ;;  %v4549_v8 = vld [vmem:[%s22549_s2 + $0x388] sm:$0xff]  ;;  %14024 = vmatmul.mubr.msk.bf16.gmra.mrb[24].mxu0 %vm1084_vm0, %v14969_v57  ;;  %v3608_v21 = vadd.f32 1.0, %v15980_v41 }
 0x271   :  { %v15984_v35 = vpop.eup %15983  ;;  %v5282_v61 = vpop.permute.xlu1 %5281  ;;  %16007 = vpow2.f32 %v12904_v47  ;;  %4861 = vperm.xlu1 %14784, %v17949_v51   ;;  %v13023_v47 = vmul.f32 -1.442695, %v17789_v33  ;;  %v4551_v33 = vld [vmem:[%s22549_s2 + $0x398] sm:$0xff] }
 0x272   :  { %22656 = vst [vmem:[#allocation53_spill] sm:$0xff] %v18004_v30  ;;  %v18015_v32 = vpop.eup %15985  ;;  %v6275_v18 = vmul.f32 %v5282_v61, %v4547_v3  ;;  %14053 = vmatpush1.bf16.msra.mxu1 %v18004_v30  ;;  %4866 = vperm.xlu0 %14785, %v15972_v29   ;;  %v18026_v49 = vpop.f32.mrb[192].mxu0  ;;  %16009 = vpow2.f32 %v13021_v50  ;;  %v3609_v29 = vadd.f32 1.0, %v15984_v35  ;;  %v4550_v50 = vld [vmem:[%s22549_s2 + $0x390] sm:$0xff]  ;;  %v13025_v35 = vmul.f32 -1.442695, %v17786_v27 }
 0x273   :  { %v5287_v53 = vpop.permute.xlu0 %5286  ;;  %v18023_v20 = vpop.eup %15987  ;;  %14038 = vmatprep.subr.bf16.mxu1 %v22637_v31  ;;  %16011 = vpow2.f32 %v13024_v34  ;;  %v4552_v27 = vld [vmem:[%s22549_s2 + $0x3a0] sm:$0xff] }
 0x274   :  { %v15990_v24 = vpop.eup %15989  ;;  %v18028_v3 = vpack.c.bf16 %v6275_v18, %v6274_v45  ;;  %v18031_v56 = vpop.f32.mrb[193].mxu0  ;;  %v6276_v61 = vmul.f32 %v5287_v53, %v4548_v26  ;;  %16013 = vpow2.f32 %v13022_v11  ;;  %v14971_v26 = vld [vmem:[%s22548_s1 + $0x470] sm:$0xff]  }
 0x275   :  { %v18033_v6 = vpop.eup %15991  ;;  %v5292_v57 = vpop.permute.xlu1 %5291  ;;  %16015 = vrcp.f32 %v3610_v55  ;;  %4871 = vperm.xlu1 %14784, %v17985_v17   ;;  %v13028_v17 = vmul.f32 -1.442695, %v17802_v16  ;;  %v3611_v55 = vadd.f32 1.0, %v15982_v42  ;;  %14027 = vmatprep.mubr.msk.bf16.mxu0 %vm1084_vm0, %v14971_v26  ;;  %v4553_v42 = vld [vmem:[%s22549_s2 + $0x3a8] sm:$0xff] }
 0x276   :  { %22657 = vst [vmem:[#allocation54_spill] sm:$0xff] %v18028_v3  ;;  %v18036_v38 = vpop.f32.mrb[194].mxu0  ;;  %v18038_v51 = vpop.eup %15993  ;;  %v6277_v41 = vmul.f32 %v5292_v57, %v4549_v8  ;;  %14054 = vmatpush1.bf16.msra.mxu1 %v18028_v3  ;;  %4876 = vperm.xlu0 %14785, %v17965_v46   ;;  %16017 = vrcp.f32 %v3608_v21  ;;  %v14974_v46 = vld [vmem:[%s22548_s1 + $0x478] sm:$0xff]   ;;  %v13026_v3 = vmul.f32 -1.442695, %v17805_v14 }
 0x277   :  { %v5297_v45 = vpop.permute.xlu0 %5296  ;;  %v18044_v18 = vpop.f32.mrb[195].mxu0  ;;  %14039 = vmatprep.subr.bf16.mxu1 %v22637_v31  ;;  %16019 = vpow2.f32 %v13023_v47 }
 0x278   :  { %v18046_v34 = vpop.eup %15995  ;;  %v18057_v53 = vpack.c.bf16 %v6277_v41, %v6276_v61  ;;  %16021 = vrcp.f32 %v3609_v29  ;;  %v6278_v61 = vmul.f32 %v5297_v45, %v4550_v50  ;;  %14028 = vmatmul.mubr.msk.bf16.gmra.mrb[28].mxu0 %vm1084_vm0, %v14974_v46 }
 0x279   :  { %v15998_v11 = vpop.eup %15997  ;;  %v5302_v57 = vpop.permute.xlu1 %5301  ;;  %4881 = vperm.xlu1 %14784, %v17980_v39   ;;  %16023 = vpow2.f32 %v13025_v35 }
 0x27a   :  { %22658 = vst [vmem:[#allocation55_spill] sm:$0xff] %v18057_v53  ;;  %v16000_v8 = vpop.eup %15999  ;;  %v6279_v41 = vmul.f32 %v5302_v57, %v4551_v33  ;;  %14055 = vmatpush1.bf16.msra.mxu1 %v18057_v53  ;;  %v3732_v47 = vadd.f32 1.0, %v15998_v11  ;;  %4886 = vperm.xlu0 %14785, %v15990_v24   ;;  %16025 = vpow2.f32 %v13028_v17  ;;  %v13027_v11 = vmul.f32 -1.442695, %v17811_v59  ;;  %v4554_v17 = vld [vmem:[%s22549_s2 + $0x3b0] sm:$0xff]  ;;  %v4555_v59 = vld [vmem:[%s22549_s2 + $0x3b8] sm:$0xff] }
 0x27b   :  { %v18068_v21 = vpop.eup %16001  ;;  %v5307_v16 = vpop.permute.xlu0 %5306  ;;  %v3734_v50 = vadd.f32 1.0, %v16000_v8  ;;  %14040 = vmatprep.subr.bf16.mxu1 %v22637_v31  ;;  %16027 = vrcp.f32 %v3611_v55 }
 0x27c   :  { %v16004_v30 = vpop.eup %16003  ;;  %v18079_v45 = vpack.c.bf16 %v6279_v41, %v6278_v61  ;;  %v18082_v33 = vpop.f32.mrb[196].mxu0  ;;  %v6280_v35 = vmul.f32 %v5307_v16, %v4552_v27  ;;  %16029 = vpow2.f32 %v13026_v3  ;;  %v14978_v3 = vld [vmem:[%s22550_s3 + $0x4] ss:$72 sps:$4 sm:$0xff]  }
 0x27d   :  { %v18077_v29 = vpop.eup %16005  ;;  %v5312_v14 = vpop.permute.xlu1 %5311  ;;  %v3733_v24 = vadd.f32 1.0, %v16004_v30  ;;  %16031 = vrcp.f32 %v3732_v47  ;;  %4891 = vperm.xlu1 %14784, %v18038_v51   ;;  %v13029_v30 = vmul.f32 -1.442695, %v17808_v15  ;;  %9220 = vmatprep.mubr.bf16.mxu0 %v14978_v3 }
 0x27e   :  { %22659 = vst [vmem:[#allocation56_spill] sm:$0xff] %v18079_v45  ;;  %v18084_v26 = vpop.eup %16007  ;;  %v18087_v46 = vpop.f32.mrb[197].mxu0  ;;  %v6281_v57 = vmul.f32 %v5312_v14, %v4553_v42  ;;  %14056 = vmatpush1.bf16.msra.mxu1 %v18079_v45  ;;  %4896 = vperm.xlu0 %14785, %v18023_v20   ;;  %16033 = vrcp.f32 %v3734_v50  ;;  %v13030_v20 = vmul.f32 -1.442695, %v17826_v1  ;;  %v4556_v50 = vld [vmem:[%s22549_s2 + $0x3c0] sm:$0xff] }
 0x27f   :  { %v16010_v39 = vpop.eup %16009  ;;  %v5317_v8 = vpop.permute.xlu0 %5316  ;;  %14041 = vmatprep.subr.bf16.mxu1 %v22637_v31  ;;  %16035 = vpow2.f32 %v13027_v11 }
 0x280   :  { %v18093_v61 = vpop.f32.mrb[198].mxu0  ;;  %v16012_v55 = vpop.eup %16011  ;;  %v18106_v16 = vpack.c.bf16 %v6281_v57, %v6280_v35  ;;  %v3735_v42 = vadd.f32 1.0, %v16010_v39  ;;  %16037 = vrcp.f32 %v3733_v24  ;;  %v6282_v45 = vmul.f32 %v5317_v8, %v4554_v17  ;;  %v4557_v39 = vld [vmem:[%s22549_s2 + $0x3c8] sm:$0xff] }
 0x281   :  { %v18101_v27 = vpop.f32.mrb[199].mxu0  ;;  %v16014_v41 = vpop.eup %16013  ;;  %v3738_v14 = vadd.f32 1.0, %v16012_v55  ;;  %4901 = vperm.xlu1 %14784, %v18033_v6   ;;  %16039 = vpow2.f32 %v13029_v30  ;;  %v13032_v24 = vmul.f32 -1.442695, %v17822_v25  ;;  %v13031_v6 = vmul.f32 -1.442695, %v17831_v52 }
 0x282   :  { %22660 = vst [vmem:[#allocation57_spill] sm:$0xff] %v18106_v16  ;;  %v16016_v51 = vpop.eup %16015  ;;  %v5322_v47 = vpop.permute.xlu1 %5321  ;;  %14057 = vmatpush1.bf16.msra.mxu1 %v18106_v16  ;;  %v3736_v12 = vadd.f32 1.0, %v16014_v41  ;;  %16041 = vpow2.f32 %v13030_v20  ;;  %v13033_v20 = vmul.f32 -1.442695, %v17829_v9 }
 0x283   :  { %v16018_v15 = vpop.eup %16017  ;;  %v6283_v53 = vmul.f32 %v5322_v47, %v4555_v59  ;;  %v5327_v35 = vpop.permute.xlu0 %5326  ;;  %14042 = vmatprep.subr.bf16.mxu1 %v22637_v31  ;;  %16043 = vrcp.f32 %v3735_v42 }
 0x284   :  { %v16020_v57 = vpop.eup %16019  ;;  %4906 = vperm.xlu0 %14785, %v16018_v15   ;;  %v18122_v17 = vpop.f32.mrb[200].mxu0  ;;  %16045 = vrcp.f32 %v3738_v14  ;;  %v6284_v41 = vmul.f32 %v5327_v35, %v4556_v50  ;;  %v4558_v15 = vld [vmem:[%s22549_s2 + $0x3d0] sm:$0xff] }
 0x285   :  { %v16022_v1 = vpop.eup %16021  ;;  %v18115_v11 = vpack.c.bf16 %v6283_v53, %v6282_v45  ;;  %v18125_v55 = vpop.f32.mrb[201].mxu0  ;;  %v3737_v53 = vadd.f32 1.0, %v16020_v57  ;;  %16047 = vrcp.f32 %v3736_v12  ;;  %v4559_v12 = vld [vmem:[%s22549_s2 + $0x3d8] sm:$0xff] }
 0x286   :  { %v16024_v8 = vpop.eup %16023  ;;  %v5332_v45 = vpop.permute.xlu1 %5331  ;;  %4911 = vperm.xlu1 %14784, %v16022_v1   ;;  %16049 = vpow2.f32 %v13032_v24  ;;  %v4560_v1 = vld [vmem:[%s22549_s2 + $0x3e0] sm:$0xff]  ;;  %v13034_v24 = vmul.f32 -1.442695, %v17852_v13 }
 0x287   :  { %22661 = vst [vmem:[#allocation58_spill] sm:$0xff] %v18115_v11  ;;  %v16026_v59 = vpop.eup %16025  ;;  %14058 = vmatpush1.bf16.msra.mxu1 %v18115_v11  ;;  %v5337_v30 = vpop.permute.xlu0 %5336  ;;  %v6285_v25 = vmul.f32 %v5332_v45, %v4557_v39  ;;  %v3739_v47 = vadd.f32 1.0, %v16024_v8  ;;  %16051 = vpow2.f32 %v13031_v6  ;;  %v4561_v6 = vld [vmem:[%s22549_s2 + $0x3e8] sm:$0xff] }
 0x288   :  { %v16028_v3 = vpop.eup %16027  ;;  %4916 = vperm.xlu0 %14785, %v16016_v51   ;;  %v18129_v42 = vpop.f32.mrb[202].mxu0  ;;  %14043 = vmatprep.subr.bf16.mxu1 %v22637_v31  ;;  %v3742_v50 = vadd.f32 1.0, %v16026_v59  ;;  %16053 = vrcp.f32 %v3737_v53  ;;  %v6286_v11 = vmul.f32 %v5337_v30, %v4558_v15  ;;  %v13036_v53 = vmul.f32 -1.442695, %v17848_v28 }
 0x289   :  { %v16030_v52 = vpop.eup %16029  ;;  %v18138_v14 = vpop.f32.mrb[203].mxu0  ;;  %v18140_v9 = vpack.c.bf16 %v6285_v25, %v6284_v41  ;;  %16055 = vpow2.f32 %v13033_v20  ;;  %v13037_v28 = vmul.f32 -1.442695, %v17858_v23 }
 0x28a   :  { %v16032_v51 = vpop.eup %16031  ;;  %v5342_v57 = vpop.permute.xlu1 %5341  ;;  %v3740_v45 = vadd.f32 1.0, %v16030_v52  ;;  %4921 = vperm.xlu1 %14784, %v16028_v3   ;;  %16057 = vrcp.f32 %v3739_v47  ;;  %v13035_v3 = vmul.f32 -1.442695, %v17863_v54 }
 0x28b   :  { %22662 = vst [vmem:[#allocation59_spill] sm:$0xff] %v18140_v9  ;;  %v16034_v35 = vpop.eup %16033  ;;  %v5347_v39 = vpop.permute.xlu0 %5346  ;;  %v6287_v16 = vmul.f32 %v5342_v57, %v4559_v12  ;;  %14059 = vmatpush1.bf16.msra.mxu1 %v18140_v9  ;;  %16059 = vrcp.f32 %v3742_v50  ;;  %v4562_v50 = vld [vmem:[%s22549_s2 + $0x3f0] sm:$0xff] }
 0x28c   :  { %v16036_v8 = vpop.eup %16035  ;;  %5526 = vperm.xlu0 %14785, %v16032_v51   ;;  %14044 = vmatprep.subr.bf16.mxu1 %v22637_v31  ;;  %v18152_v13 = vpop.f32.mrb[204].mxu0  ;;  %16061 = vpow2.f32 %v13034_v24  ;;  %v6288_v51 = vmul.f32 %v5347_v39, %v4560_v1  ;;  %v4563_v1 = vld [vmem:[%s22549_s2 + $0x3f8] sm:$0xff] }
 0x28d   :  { %v16038_v59 = vpop.eup %16037  ;;  %v18154_v30 = vpack.c.bf16 %v6287_v16, %v6286_v11  ;;  %v18157_v25 = vpop.f32.mrb[205].mxu0  ;;  %v3741_v52 = vadd.f32 1.0, %v16036_v8  ;;  %16063 = vrcp.f32 %v3740_v45 }
 0x28e   :  { %v16040_v41 = vpop.eup %16039  ;;  %v5352_v47 = vpop.permute.xlu1 %5351  ;;  %5531 = vperm.xlu1 %14784, %v16038_v59   ;;  %16065 = vpow2.f32 %v13036_v53  ;;  %v13038_v53 = vmul.f32 -1.442695, %v17891_v10  ;;  %v4449_v10 = vld [vmem:[%s22549_s2 + $0x68] sm:$0xff] }
 0x28f   :  { %22663 = vst [vmem:[#allocation60_spill] sm:$0xff] %v18154_v30  ;;  %v16042_v20 = vpop.eup %16041  ;;  %v5357_v15 = vpop.permute.xlu0 %5356  ;;  %v6289_v57 = vmul.f32 %v5352_v47, %v4561_v6  ;;  %14060 = vmatpush1.bf16.msra.mxu1 %v18154_v30  ;;  %v3743_v54 = vadd.f32 1.0, %v16040_v41  ;;  %16067 = vpow2.f32 %v13035_v3 }
 0x290   :  { %v16044_v12 = vpop.eup %16043  ;;  %v18161_v16 = vpop.f32.mrb[206].mxu0  ;;  %5536 = vperm.xlu0 %14785, %v16034_v35   ;;  %14045 = vmatprep.subr.bf16.mxu1 %v22637_v31  ;;  %v3744_v23 = vadd.f32 1.0, %v16042_v20  ;;  %16069 = vrcp.f32 %v3741_v52  ;;  %v4448_v35 = vld [vmem:[%s22549_s2 + $0x60] sm:$0xff]  ;;  %v6290_v47 = vmul.f32 %v5357_v15, %v4562_v50  ;;  %v13039_v20 = vmul.f32 -1.442695, %v17905_v19 }
 0x291   :  { %v16046_v11 = vpop.eup %16045  ;;  %v18170_v39 = vpop.f32.mrb[207].mxu0  ;;  %v18172_v8 = vpack.c.bf16 %v6289_v57, %v6288_v51  ;;  %16071 = vpow2.f32 %v13037_v28  ;;  %v3614_v52 = vadd.f32 1.0, %v18015_v32  ;;  %v14921_v19 = vld [vmem:[%s22550_s3 + $0x138] ss:$72 sps:$4 sm:$0xff]   ;;  %v13040_v32 = vmul.f32 -1.442695, %v17885_v36 }
 0x292   :  { %v16048_v24 = vpop.eup %16047  ;;  %v5362_v59 = vpop.permute.xlu1 %5361  ;;  %5541 = vperm.xlu1 %14784, %v16044_v12   ;;  %16073 = vrcp.f32 %v3743_v54 }
 0x293   :  { %22664 = vst [vmem:[#allocation61_spill] sm:$0xff] %v18172_v8  ;;  %v16050_v45 = vpop.eup %16049  ;;  %v4787_v6 = vpop.permute.xlu0 %4786  ;;  %v6291_v30 = vmul.f32 %v5362_v59, %v4563_v1  ;;  %14061 = vmatpush1.bf16.msra.mxu1 %v18172_v8  ;;  %16075 = vrcp.f32 %v3744_v23 }
 0x294   :  { %v16052_v41 = vpop.eup %16051  ;;  %5546 = vperm.xlu0 %14785, %v16048_v24   ;;  %14046 = vmatprep.subr.bf16.mxu1 %v22637_v31  ;;  %v18185_v51 = vpop.f32.mrb[208].mxu0  ;;  %16077 = vpow2.f32 %v13038_v53  ;;  %v3746_v59 = vadd.f32 1.0, %v16050_v45  ;;  %v6176_v8 = vmul.f32 %v4787_v6, %v4448_v35  ;;  %v4451_v45 = vld [vmem:[%s22549_s2 + $0x78] sm:$0xff] }
 0x295   :  { %v16054_v3 = vpop.eup %16053  ;;  %v18187_v57 = vpack.c.bf16 %v6291_v30, %v6290_v47  ;;  %v18193_v12 = vpop.f32.mrb[209].mxu0  ;;  %v3745_v54 = vadd.f32 1.0, %v16052_v41  ;;  %16079 = vpow2.f32 %v13039_v20  ;;  %v4450_v41 = vld [vmem:[%s22549_s2 + $0x70] sm:$0xff]  ;;  %v13041_v20 = vmul.f32 -1.442695, %v17894_v48 }
 0x296   :  { %v16056_v15 = vpop.eup %16055  ;;  %v4792_v50 = vpop.permute.xlu1 %4791  ;;  %5551 = vperm.xlu1 %14784, %v16054_v3   ;;  %16081 = vrcp.f32 %v3614_v52  ;;  %v14924_v3 = vld [vmem:[%s22550_s3 + $0x1cc] ss:$72 sps:$4 sm:$0xff]  }
 0x297   :  { %22665 = vst [vmem:[#allocation62_spill] sm:$0xff] %v18187_v57  ;;  %v16058_v28 = vpop.eup %16057  ;;  %v4797_v1 = vpop.permute.xlu0 %4796  ;;  %v6177_v23 = vmul.f32 %v4792_v50, %v4449_v10  ;;  %14062 = vmatpush1.bf16.msra.mxu1 %v18187_v57  ;;  %v3747_v36 = vadd.f32 1.0, %v16056_v15  ;;  %16083 = vpow2.f32 %v13040_v32  ;;  %v4452_v10 = vld [vmem:[%s22549_s2 + $0x80] sm:$0xff]  ;;  %v13042_v50 = vmul.f32 -1.442695, %v17934_v44 }
 0x298   :  { %v18195_v24 = vpop.eup %16059  ;;  %v18198_v30 = vpop.f32.mrb[210].mxu0  ;;  %5556 = vperm.xlu0 %14785, %v16046_v11   ;;  %10088 = vmatprep.subr.bf16.mxu1 %v22637_v31  ;;  %16085 = vrcp.f32 %v3745_v54  ;;  %v6178_v32 = vmul.f32 %v4797_v1, %v4450_v41  ;;  %v13044_v54 = vmul.f32 -1.442695, %v17928_v40  ;;  %v14926_v44 = vld [vmem:[%s22550_s3 + $0x1c8] ss:$72 sps:$4 sm:$0xff]  }
 0x299   :  { %22666 = vst [vmem:[#allocation63_spill] sm:$0xff] %v18198_v30  ;;  %v16062_v47 = vpop.eup %16061  ;;  %v18207_v35 = vpop.f32.mrb[211].mxu0  ;;  %v6458_v53 = vpack.c.bf16 %v6177_v23, %v6176_v8  ;;  %16087 = vrcp.f32 %v3746_v59 }
 0x29a   :  { %v16064_v6 = vpop.eup %16063  ;;  %9912 = vmatmul.mubr.bf16.vlgmr.msra.gmra.mrb[0].mxu1 %v14921_v19  ;;  %v4802_v11 = vpop.permute.xlu1 %4801  ;;  %v3748_v8 = vadd.f32 1.0, %v16062_v47  ;;  %5561 = vperm.xlu1 %14784, %v16058_v28   ;;  %16089 = vrcp.f32 %v3747_v36  ;;  %v4453_v19 = vld [vmem:[%s22549_s2 + $0x88] sm:$0xff]  ;;  %v13043_v28 = vmul.f32 -1.442695, %v17946_v4  ;;  %v4454_v4 = vld [vmem:[%s22549_s2 + $0x90] sm:$0xff] }
 0x29b   :  { %v16066_v52 = vpop.eup %16065  ;;  %v4807_v15 = vpop.permute.xlu0 %4806  ;;  %v6179_v48 = vmul.f32 %v4802_v11, %v4451_v45  ;;  %9201 = vmatpush1.bf16.msra.mxu0 %v6458_v53  ;;  %16091 = vpow2.f32 %v13041_v20  ;;  %9919 = vmatprep.mubr.bf16.mxu1 %v14924_v3 }
 0x29c   :  { %v16068_v57 = vpop.eup %16067  ;;  %5566 = vperm.xlu0 %14785, %v16064_v6   ;;  %9202 = vmatprep.subr.bf16.mxu0 %v22637_v31  ;;  %v18225_v59 = vpop.f32.mrb[212].mxu0  ;;  %16093 = vpow2.f32 %v13042_v50  ;;  %v3750_v11 = vadd.f32 1.0, %v16066_v52  ;;  %v6180_v9 = vmul.f32 %v4807_v15, %v4452_v10  ;;  %v13045_v50 = vmul.f32 -1.442695, %v17937_v7 }
 0x29d   :  { %v16070_v23 = vpop.eup %16069  ;;  %22667 = vst [vmem:[#allocation64_spill] sm:$0xff] %v18225_v59  ;;  %v6459_v47 = vpack.c.bf16 %v6179_v48, %v6178_v32  ;;  %v18228_v36 = vpop.f32.mrb[213].mxu0  ;;  %v3749_v45 = vadd.f32 1.0, %v16068_v57  ;;  %16095 = vrcp.f32 %v3748_v8  ;;  %v4455_v57 = vld [vmem:[%s22549_s2 + $0x98] sm:$0xff]  ;;  %v4456_v48 = vld [vmem:[%s22549_s2 + $0xa0] sm:$0xff] }
 0x29e   :  { %v16072_v1 = vpop.eup %16071  ;;  %v4812_v6 = vpop.permute.xlu1 %4811  ;;  %5571 = vperm.xlu1 %14784, %v16070_v23   ;;  %16097 = vpow2.f32 %v13044_v54  ;;  %v14927_v8 = vld [vmem:[%s22550_s3 + $0x25c] ss:$72 sps:$4 sm:$0xff]   ;;  %v13046_v7 = vmul.f32 -1.442695, %v17978_v62 }
 0x29f   :  { %v16074_v41 = vpop.eup %16073  ;;  %v4817_v53 = vpop.permute.xlu0 %4816  ;;  %v6181_v30 = vmul.f32 %v4812_v6, %v4453_v19  ;;  %9203 = vmatpush1.bf16.msra.mxu0 %v6459_v47  ;;  %v3751_v3 = vadd.f32 1.0, %v16072_v1  ;;  %16099 = vpow2.f32 %v13043_v28  ;;  %v14929_v28 = vld [vmem:[%s22550_s3 + $0x258] ss:$72 sps:$4 sm:$0xff]  }
 0x2a0   :  { %v16076_v40 = vpop.eup %16075  ;;  %v18230_v59 = vpop.f32.mrb[214].mxu0  ;;  %5576 = vperm.xlu0 %14785, %v18195_v24   ;;  %9204 = vmatprep.subr.bf16.mxu0 %v22637_v31  ;;  %16101 = vrcp.f32 %v3749_v45  ;;  %v6182_v54 = vmul.f32 %v4817_v53, %v4454_v4  ;;  %v13047_v53 = vmul.f32 -1.442695, %v17992_v37  ;;  %v12902_v37 = vmul.f32 -1.442695, %v17269_v58 }
 0x2a1   :  { %v16078_v20 = vpop.eup %16077  ;;  %v18240_v52 = vpop.f32.mrb[215].mxu0  ;;  %v6460_v15 = vpack.c.bf16 %v6181_v30, %v6180_v9  ;;  %v4457_v9 = vld [vmem:[%s22549_s2 + $0xa8] sm:$0xff]  ;;  %16103 = vrcp.f32 %v3750_v11 }
 0x2a2   :  { %v16080_v10 = vpop.eup %16079  ;;  %9920 = vmatmul.mubr.bf16.gmra.mrb[4].mxu1 %v14926_v44  ;;  %v4822_v24 = vpop.permute.xlu1 %4821  ;;  %v3752_v19 = vadd.f32 1.0, %v16078_v20  ;;  %5581 = vperm.xlu1 %14784, %v16074_v41   ;;  %16105 = vrcp.f32 %v3751_v3  ;;  %v14930_v58 = vld [vmem:[%s22550_s3 + $0x2ec] ss:$72 sps:$4 sm:$0xff]  }
 0x2a3   :  { %v18246_v32 = vpop.eup %16081  ;;  %v4827_v23 = vpop.permute.xlu0 %4826  ;;  %v6183_v1 = vmul.f32 %v4822_v24, %v4455_v57  ;;  %9205 = vmatpush1.bf16.msra.mxu0 %v6460_v15  ;;  %v3753_v47 = vadd.f32 1.0, %v16080_v10  ;;  %16107 = vpow2.f32 %v13045_v50  ;;  %9927 = vmatprep.mubr.bf16.mxu1 %v14927_v8  ;;  %v4458_v8 = vld [vmem:[%s22549_s2 + $0xb0] sm:$0xff] }
 0x2a4   :  { %v16084_v30 = vpop.eup %16083  ;;  %5586 = vperm.xlu0 %14785, %v16076_v40   ;;  %9206 = vmatprep.subr.bf16.mxu0 %v22637_v31  ;;  %v18259_v45 = vpop.f32.mrb[216].mxu0  ;;  %v13048_v40 = vmul.f32 -1.442695, %v17972_v22  ;;  %16109 = vpow2.f32 %v13046_v7  ;;  %v6184_v10 = vmul.f32 %v4827_v23, %v4456_v48  ;;  %v4459_v22 = vld [vmem:[%s22549_s2 + $0xb8] sm:$0xff]  ;;  %v13049_v7 = vmul.f32 -1.442695, %v17983_v43 }
 0x2a5   :  { %v16086_v44 = vpop.eup %16085  ;;  %v6461_v6 = vpack.c.bf16 %v6183_v1, %v6182_v54  ;;  %v18262_v11 = vpop.f32.mrb[217].mxu0  ;;  %v3754_v57 = vadd.f32 1.0, %v16084_v30  ;;  %16111 = vrcp.f32 %v3752_v19  ;;  %v12905_v19 = vmul.f32 -1.442695, %v17274_v60 }
 0x2a6   :  { %v16088_v62 = vpop.eup %16087  ;;  %v4832_v20 = vpop.permute.xlu1 %4831  ;;  %5591 = vperm.xlu1 %14784, %v16086_v44   ;;  %16113 = vrcp.f32 %v3753_v47  ;;  %v4564_v44 = vld [vmem:[%s22549_s2 + $0x400] sm:$0xff]  ;;  %v12903_v60 = vmul.f32 -1.442695, %v17279_v63 }
 0x2a7   :  { %v16090_v41 = vpop.eup %16089  ;;  %v4837_v3 = vpop.permute.xlu0 %4836  ;;  %v6185_v15 = vmul.f32 %v4832_v20, %v4457_v9  ;;  %9207 = vmatpush1.bf16.msra.mxu0 %v6461_v6  ;;  %16115 = vpow2.f32 %v13047_v53 }
 0x2a8   :  { %v16092_v4 = vpop.eup %16091  ;;  %v18265_v24 = vpop.f32.mrb[218].mxu0  ;;  %5596 = vperm.xlu0 %14785, %v16088_v62   ;;  %9208 = vmatprep.subr.bf16.mxu0 %v22637_v31  ;;  %16117 = vpow2.f32 %v13048_v40  ;;  %v6186_v6 = vmul.f32 %v4837_v3, %v4458_v8 }
 0x2a9   :  { %v16094_v50 = vpop.eup %16093  ;;  %v18275_v48 = vpop.f32.mrb[219].mxu0  ;;  %v6462_v9 = vpack.c.bf16 %v6185_v15, %v6184_v10  ;;  %v3755_v54 = vadd.f32 1.0, %v16092_v4  ;;  %16119 = vrcp.f32 %v3754_v57 }
 0x2aa   :  { %v16096_v23 = vpop.eup %16095  ;;  %9928 = vmatmul.mubr.bf16.gmra.mrb[8].mxu1 %v14929_v28  ;;  %v4842_v1 = vpop.permute.xlu1 %4841  ;;  %v3756_v43 = vadd.f32 1.0, %v16094_v50  ;;  %5601 = vperm.xlu1 %14784, %v16090_v41   ;;  %16121 = vpow2.f32 %v12902_v37  ;;  %v4565_v28 = vld [vmem:[%s22549_s2 + $0x408] sm:$0xff] }
 0x2ab   :  { %v16098_v30 = vpop.eup %16097  ;;  %v5367_v47 = vpop.permute.xlu0 %5366  ;;  %v6187_v53 = vmul.f32 %v4842_v1, %v4459_v22  ;;  %9209 = vmatpush1.bf16.msra.mxu0 %v6462_v9  ;;  %16123 = vpow2.f32 %v13049_v7  ;;  %9935 = vmatprep.mubr.bf16.mxu1 %v14930_v58  ;;  %v14932_v41 = vld [vmem:[%s22550_s3 + $0x2e8] ss:$72 sps:$4 sm:$0xff]   ;;  %v12908_v58 = vmul.f32 -1.442695, %v17283_v0  ;;  %v14933_v0 = vld [vmem:[%s22550_s3 + $0x37c] ss:$72 sps:$4 sm:$0xff]  }
 0x2ac   :  { %v16100_v62 = vpop.eup %16099  ;;  %5606 = vperm.xlu0 %14785, %v16096_v23   ;;  %9210 = vmatprep.subr.bf16.mxu0 %v22637_v31  ;;  %v18290_v40 = vpop.f32.mrb[220].mxu0  ;;  %16125 = vrcp.f32 %v3755_v54  ;;  %v3758_v8 = vadd.f32 1.0, %v16098_v30  ;;  %v6292_v22 = vmul.f32 %v5367_v47, %v4564_v44  ;;  %v4566_v54 = vld [vmem:[%s22549_s2 + $0x410] sm:$0xff]  ;;  %v4567_v30 = vld [vmem:[%s22549_s2 + $0x418] sm:$0xff]  ;;  %v3612_v47 = vadd.f32 1.0, %v18046_v34 }
 0x2ad   :  { %v16102_v20 = vpop.eup %16101  ;;  %v6463_v57 = vpack.c.bf16 %v6187_v53, %v6186_v6  ;;  %v18295_v3 = vpop.f32.mrb[221].mxu0  ;;  %v3757_v10 = vadd.f32 1.0, %v16100_v62  ;;  %16127 = vrcp.f32 %v3756_v43  ;;  %v12906_v43 = vmul.f32 -1.442695, %v17285_v2 }
 0x2ae   :  { %v16104_v4 = vpop.eup %16103  ;;  %v5372_v15 = vpop.permute.xlu1 %5371  ;;  %5611 = vperm.xlu1 %14784, %v16102_v20   ;;  %16129 = vpow2.f32 %v12905_v19  ;;  %v4568_v20 = vld [vmem:[%s22549_s2 + $0x420] sm:$0xff]  ;;  %v12909_v2 = vmul.f32 -1.442695, %v17290_v5 }
 0x2af   :  { %v16106_v63 = vpop.eup %16105  ;;  %v5377_v50 = vpop.permute.xlu0 %5376  ;;  %v6293_v23 = vmul.f32 %v5372_v15, %v4565_v28  ;;  %9211 = vmatpush1.bf16.msra.mxu0 %v6463_v57  ;;  %16131 = vpow2.f32 %v12903_v60 }
 0x2b0   :  { %v16108_v37 = vpop.eup %16107  ;;  %v18297_v9 = vpop.f32.mrb[222].mxu0  ;;  %5616 = vperm.xlu0 %14785, %v16104_v4   ;;  %9212 = vmatprep.subr.bf16.mxu0 %v22637_v31  ;;  %16133 = vrcp.f32 %v3757_v10  ;;  %v6294_v60 = vmul.f32 %v5377_v50, %v4566_v54 }
 0x2b1   :  { %v16110_v7 = vpop.eup %16109  ;;  %v18307_v1 = vpop.f32.mrb[223].mxu0  ;;  %v6516_v19 = vpack.c.bf16 %v6293_v23, %v6292_v22  ;;  %v3759_v6 = vadd.f32 1.0, %v16108_v37  ;;  %16135 = vrcp.f32 %v3758_v8 }
 0x2b2   :  { %v16112_v44 = vpop.eup %16111  ;;  %9936 = vmatmul.mubr.bf16.gmra.mrb[12].mxu1 %v14932_v41  ;;  %v5382_v53 = vpop.permute.xlu1 %5381  ;;  %v3760_v34 = vadd.f32 1.0, %v16110_v7  ;;  %5621 = vperm.xlu1 %14784, %v16106_v63   ;;  %16137 = vpow2.f32 %v12908_v58  ;;  %v4569_v41 = vld [vmem:[%s22549_s2 + $0x428] sm:$0xff]  ;;  %v14935_v63 = vld [vmem:[%s22550_s3 + $0x378] ss:$72 sps:$4 sm:$0xff]  }
 0x2b3   :  { %v16114_v62 = vpop.eup %16113  ;;  %v5387_v28 = vpop.permute.xlu0 %5386  ;;  %v6295_v57 = vmul.f32 %v5382_v53, %v4567_v30  ;;  %10089 = vmatpush1.bf16.msra.mxu1 %v6516_v19  ;;  %16139 = vrcp.f32 %v3612_v47  ;;  %9943 = vmatprep.mubr.bf16.mxu1 %v14933_v0  ;;  %v22668_v0 = vld [vmem:[#allocation2_spill] sm:$0xff] }
 0x2b4   :  { %v16116_v4 = vpop.eup %16115  ;;  %5626 = vperm.xlu0 %14785, %v16112_v44   ;;  %10090 = vmatprep.subr.bf16.mxu1 %v22637_v31  ;;  %v18322_v10 = vpop.f32.mrb[224].mxu0  ;;  %16141 = vrcp.f32 %v3759_v6  ;;  %v6296_v30 = vmul.f32 %v5387_v28, %v4568_v20  ;;  %v12907_v53 = vmul.f32 -1.442695, %v22668_v0  ;;  %v4570_v6 = vld [vmem:[%s22549_s2 + $0x430] sm:$0xff]  ;;  %v4571_v20 = vld [vmem:[%s22549_s2 + $0x438] sm:$0xff] }
 0x2b5   :  { %v16118_v15 = vpop.eup %16117  ;;  %v6517_v8 = vpack.c.bf16 %v6295_v57, %v6294_v60  ;;  %v18327_v50 = vpop.f32.mrb[225].mxu0  ;;  %v3761_v22 = vadd.f32 1.0, %v16116_v4  ;;  %16143 = vrcp.f32 %v3760_v34  ;;  %v22669_v4 = vld [vmem:[#allocation3_spill] sm:$0xff] }
 0x2b6   :  { %v16120_v37 = vpop.eup %16119  ;;  %v5392_v23 = vpop.permute.xlu1 %5391  ;;  %v3762_v54 = vadd.f32 1.0, %v16118_v15  ;;  %5631 = vperm.xlu1 %14784, %v16114_v62   ;;  %16145 = vpow2.f32 %v12906_v43  ;;  %v12912_v34 = vmul.f32 -1.442695, %v22669_v4  ;;  %v14937_v60 = vld [vmem:[%s22550_s3 + $0x40c] ss:$72 sps:$4 sm:$0xff]   ;;  %v3613_v4 = vadd.f32 1.0, %v18077_v29 }
 0x2b7   :  { %v16122_v5 = vpop.eup %16121  ;;  %v5397_v7 = vpop.permute.xlu0 %5396  ;;  %v6297_v44 = vmul.f32 %v5392_v23, %v4569_v41  ;;  %10091 = vmatpush1.bf16.msra.mxu1 %v6517_v8  ;;  %16147 = vpow2.f32 %v12909_v2  ;;  %v3615_v2 = vadd.f32 1.0, %v18068_v21  ;;  %v3618_v21 = vadd.f32 1.0, %v18084_v26  ;;  %v14940_v29 = vld [vmem:[%s22550_s3 + $0x408] ss:$72 sps:$4 sm:$0xff]  }
 0x2b8   :  { %v16124_v58 = vpop.eup %16123  ;;  %v18329_v47 = vpop.f32.mrb[226].mxu0  ;;  %5636 = vperm.xlu0 %14785, %v16120_v37   ;;  %10092 = vmatprep.subr.bf16.mxu1 %v22637_v31  ;;  %16149 = vrcp.f32 %v3761_v22  ;;  %v4572_v37 = vld [vmem:[%s22549_s2 + $0x440] sm:$0xff]  ;;  %v6298_v0 = vmul.f32 %v5397_v7, %v4570_v6 }
 0x2b9   :  { %v16126_v19 = vpop.eup %16125  ;;  %v18339_v28 = vpop.f32.mrb[227].mxu0  ;;  %v6518_v43 = vpack.c.bf16 %v6297_v44, %v6296_v30  ;;  %v3763_v15 = vadd.f32 1.0, %v16124_v58  ;;  %16151 = vrcp.f32 %v3762_v54 }
 0x2ba   :  { %v16128_v62 = vpop.eup %16127  ;;  %9944 = vmatmul.mubr.bf16.gmra.mrb[16].mxu1 %v14935_v63  ;;  %v5402_v41 = vpop.permute.xlu1 %5401  ;;  %5641 = vperm.xlu1 %14784, %v16126_v19   ;;  %16153 = vpow2.f32 %v12907_v53  ;;  %v4573_v63 = vld [vmem:[%s22549_s2 + $0x448] sm:$0xff]  ;;  %v22672_v53 = vld [vmem:[#allocation4_spill] sm:$0xff] }
 0x2bb   :  { %v16130_v57 = vpop.eup %16129  ;;  %v5407_v8 = vpop.permute.xlu0 %5406  ;;  %v6299_v30 = vmul.f32 %v5402_v41, %v4571_v20  ;;  %10093 = vmatpush1.bf16.msra.mxu1 %v6518_v43  ;;  %16155 = vpow2.f32 %v12912_v34  ;;  %9951 = vmatprep.mubr.bf16.mxu1 %v14937_v60  ;;  %v12910_v6 = vmul.f32 -1.442695, %v22672_v53  ;;  %v3616_v41 = vadd.f32 1.0, %v16122_v5  ;;  %v4574_v53 = vld [vmem:[%s22549_s2 + $0x450] sm:$0xff]  ;;  %v4575_v5 = vld [vmem:[%s22549_s2 + $0x458] sm:$0xff] }
 0x2bc   :  { %v16132_v23 = vpop.eup %16131  ;;  %5646 = vperm.xlu0 %14785, %v16128_v62   ;;  %10094 = vmatprep.subr.bf16.mxu1 %v22637_v31  ;;  %v18354_v22 = vpop.f32.mrb[228].mxu0  ;;  %16157 = vrcp.f32 %v3763_v15  ;;  %v6300_v26 = vmul.f32 %v5407_v8, %v4572_v37 }
 0x2bd   :  { %v16134_v44 = vpop.eup %16133  ;;  %22670 = vst [vmem:[#allocation2_spill] sm:$0xff] %v18354_v22  ;;  %v6519_v7 = vpack.c.bf16 %v6299_v30, %v6298_v0  ;;  %v18360_v54 = vpop.f32.mrb[229].mxu0  ;;  %16159 = vrcp.f32 %v3615_v2  ;;  %v3619_v30 = vadd.f32 1.0, %v16130_v57  ;;  %v3617_v8 = vadd.f32 1.0, %v16132_v23  ;;  %v14942_v57 = vld [vmem:[%s22550_s3 + $0x49c] ss:$72 sps:$4 sm:$0xff]  }
 0x2be   :  { %v16136_v58 = vpop.eup %16135  ;;  %22671 = vst [vmem:[#allocation3_spill] sm:$0xff] %v18360_v54  ;;  %v5412_v20 = vpop.permute.xlu1 %5411  ;;  %5651 = vperm.xlu1 %14784, %v16134_v44   ;;  %16161 = vrcp.f32 %v3613_v4  ;;  %v22676_v23 = vld [vmem:[#allocation6_spill] sm:$0xff] }
 0x2bf   :  { %v16138_v19 = vpop.eup %16137  ;;  %v5417_v62 = vpop.permute.xlu0 %5416  ;;  %v6301_v34 = vmul.f32 %v5412_v20, %v4573_v63  ;;  %10095 = vmatpush1.bf16.msra.mxu1 %v6519_v7  ;;  %16163 = vrcp.f32 %v3618_v21  ;;  %v22675_v63 = vld [vmem:[#allocation5_spill] sm:$0xff]  ;;  %v4576_v20 = vld [vmem:[%s22549_s2 + $0x460] sm:$0xff]  ;;  %v12911_v21 = vmul.f32 -1.442695, %v22676_v23 }
 0x2c0   :  { %v18363_v43 = vpop.eup %16139  ;;  %v18365_v60 = vpop.f32.mrb[230].mxu0  ;;  %5656 = vperm.xlu0 %14785, %v16136_v58   ;;  %10096 = vmatprep.subr.bf16.mxu1 %v22637_v31  ;;  %v3622_v4 = vadd.f32 1.0, %v16138_v19  ;;  %16165 = vpow2.f32 %v12910_v6  ;;  %v12913_v58 = vmul.f32 -1.442695, %v22675_v63  ;;  %v22677_v19 = vld [vmem:[#allocation7_spill] sm:$0xff] }
 0x2c1   :  { %22673 = vst [vmem:[#allocation4_spill] sm:$0xff] %v18365_v60  ;;  %v16142_v0 = vpop.eup %16141  ;;  %v18374_v15 = vpop.f32.mrb[231].mxu0  ;;  %v6520_v2 = vpack.c.bf16 %v6301_v34, %v6300_v26  ;;  %16167 = vrcp.f32 %v3616_v41  ;;  %v6302_v26 = vmul.f32 %v5417_v62, %v4574_v53  ;;  %v12916_v6 = vmul.f32 -1.442695, %v22677_v19  ;;  %v14945_v62 = vld [vmem:[%s22550_s3 + $0x498] ss:$72 sps:$4 sm:$0xff]  }
 0x2c2   :  { %22674 = vst [vmem:[#allocation65_spill] sm:$0xff] %v18374_v15  ;;  %v16144_v37 = vpop.eup %16143  ;;  %9952 = vmatmul.mubr.bf16.gmra.mrb[20].mxu1 %v14940_v29  ;;  %v5422_v7 = vpop.permute.xlu1 %5421  ;;  %5661 = vperm.xlu1 %14784, %v16142_v0   ;;  %16169 = vrcp.f32 %v3619_v30  ;;  %v4577_v29 = vld [vmem:[%s22549_s2 + $0x468] sm:$0xff]  ;;  %v22679_v53 = vld [vmem:[#allocation8_spill] sm:$0xff] }
 0x2c3   :  { %v16146_v44 = vpop.eup %16145  ;;  %v5427_v15 = vpop.permute.xlu0 %5426  ;;  %v6303_v34 = vmul.f32 %v5422_v7, %v4575_v5  ;;  %10097 = vmatpush1.bf16.msra.mxu1 %v6520_v2  ;;  %16171 = vrcp.f32 %v3617_v8  ;;  %9959 = vmatprep.mubr.bf16.mxu1 %v14942_v57  ;;  %v12914_v5 = vmul.f32 -1.442695, %v22679_v53 }
 0x2c4   :  { %v16148_v60 = vpop.eup %16147  ;;  %5666 = vperm.xlu0 %14785, %v16144_v37   ;;  %10098 = vmatprep.subr.bf16.mxu1 %v22637_v31  ;;  %v18389_v63 = vpop.f32.mrb[232].mxu0  ;;  %16173 = vrcp.f32 %v3622_v4  ;;  %v3620_v19 = vadd.f32 1.0, %v16146_v44  ;;  %v4579_v44 = vld [vmem:[%s22549_s2 + $0x478] sm:$0xff] }
 0x2c5   :  { %v16150_v54 = vpop.eup %16149  ;;  %22678 = vst [vmem:[#allocation5_spill] sm:$0xff] %v18389_v63  ;;  %v6521_v23 = vpack.c.bf16 %v6303_v34, %v6302_v26  ;;  %v18394_v0 = vpop.f32.mrb[233].mxu0  ;;  %16175 = vpow2.f32 %v12913_v58  ;;  %v6304_v63 = vmul.f32 %v5427_v15, %v4576_v20  ;;  %v4578_v26 = vld [vmem:[%s22549_s2 + $0x470] sm:$0xff]  ;;  %v13050_v15 = vmul.f32 -1.442695, %v18031_v56  ;;  %v4580_v56 = vld [vmem:[%s22549_s2 + $0x480] sm:$0xff] }
 0x2c6   :  { %v16152_v41 = vpop.eup %16151  ;;  %v5432_v37 = vpop.permute.xlu1 %5431  ;;  %5671 = vperm.xlu1 %14784, %v16150_v54   ;;  %16177 = vpow2.f32 %v12911_v21  ;;  %v3623_v58 = vadd.f32 1.0, %v16148_v60  ;;  %v14947_v21 = vld [vmem:[%s22550_s3 + $0x52c] ss:$72 sps:$4 sm:$0xff]  }
 0x2c7   :  { %v16154_v30 = vpop.eup %16153  ;;  %v5437_v2 = vpop.permute.xlu0 %5436  ;;  %v6305_v22 = vmul.f32 %v5432_v37, %v4577_v29  ;;  %10099 = vmatpush1.bf16.msra.mxu1 %v6521_v23  ;;  %16179 = vpow2.f32 %v12916_v6 }
 0x2c8   :  { %v16156_v7 = vpop.eup %16155  ;;  %v18397_v8 = vpop.f32.mrb[234].mxu0  ;;  %5676 = vperm.xlu0 %14785, %v16152_v41   ;;  %10100 = vmatprep.subr.bf16.mxu1 %v22637_v31  ;;  %v3621_v29 = vadd.f32 1.0, %v16154_v30  ;;  %16181 = vpow2.f32 %v12914_v5  ;;  %v6306_v6 = vmul.f32 %v5437_v2, %v4578_v26  ;;  %v14950_v5 = vld [vmem:[%s22550_s3 + $0x528] ss:$72 sps:$4 sm:$0xff]  }
 0x2c9   :  { %v16158_v57 = vpop.eup %16157  ;;  %v18407_v4 = vpop.f32.mrb[235].mxu0  ;;  %v6522_v20 = vpack.c.bf16 %v6305_v22, %v6304_v63  ;;  %16183 = vrcp.f32 %v3620_v19  ;;  %v3626_v60 = vadd.f32 1.0, %v16156_v7  ;;  %v4581_v63 = vld [vmem:[%s22549_s2 + $0x488] sm:$0xff]  ;;  %v13051_v19 = vmul.f32 -1.442695, %v18044_v18  ;;  %v4582_v18 = vld [vmem:[%s22549_s2 + $0x490] sm:$0xff] }
 0x2ca   :  { %v18409_v54 = vpop.eup %16159  ;;  %9960 = vmatmul.mubr.bf16.gmra.mrb[24].mxu1 %v14945_v62  ;;  %v5442_v41 = vpop.permute.xlu1 %5441  ;;  %5681 = vperm.xlu1 %14784, %v16158_v57   ;;  %v13052_v62 = vmul.f32 -1.442695, %v18026_v49  ;;  %16185 = vpow2.f32 %v13050_v15 }
 0x2cb   :  { %v16162_v34 = vpop.eup %16161  ;;  %v5447_v23 = vpop.permute.xlu0 %5446  ;;  %v6307_v22 = vmul.f32 %v5442_v41, %v4579_v44  ;;  %10101 = vmatpush1.bf16.msra.mxu1 %v6522_v20  ;;  %16187 = vrcp.f32 %v3623_v58  ;;  %9967 = vmatprep.mubr.bf16.mxu1 %v14947_v21  ;;  %v13053_v44 = vmul.f32 -1.442695, %v18036_v38  ;;  %v4583_v38 = vld [vmem:[%s22549_s2 + $0x498] sm:$0xff] }
 0x2cc   :  { %v18417_v53 = vpop.eup %16163  ;;  %4926 = vperm.xlu0 %14785, %v18363_v43   ;;  %10102 = vmatprep.subr.bf16.mxu1 %v22637_v31  ;;  %v18428_v37 = vpop.f32.mrb[236].mxu0  ;;  %16189 = vrcp.f32 %v3621_v29  ;;  %v6308_v41 = vmul.f32 %v5447_v23, %v4580_v56  ;;  %v13056_v29 = vmul.f32 -1.442695, %v18082_v33  ;;  %v22682_v23 = vld [vmem:[#allocation9_spill] sm:$0xff]  ;;  %v4584_v33 = vld [vmem:[%s22549_s2 + $0x4a0] sm:$0xff] }
 0x2cd   :  { %v16166_v30 = vpop.eup %16165  ;;  %22680 = vst [vmem:[#allocation6_spill] sm:$0xff] %v18428_v37  ;;  %v6523_v7 = vpack.c.bf16 %v6307_v22, %v6306_v6  ;;  %v18431_v57 = vpop.f32.mrb[237].mxu0  ;;  %16191 = vrcp.f32 %v3626_v60  ;;  %v12917_v60 = vmul.f32 -1.442695, %v22682_v23 }
 0x2ce   :  { %v16168_v2 = vpop.eup %16167  ;;  %v5452_v26 = vpop.permute.xlu1 %5451  ;;  %v3624_v15 = vadd.f32 1.0, %v16166_v30  ;;  %4931 = vperm.xlu1 %14784, %v16162_v34   ;;  %16193 = vpow2.f32 %v13052_v62  ;;  %v13054_v62 = vmul.f32 -1.442695, %v18087_v46 }
 0x2cf   :  { %v18433_v43 = vpop.eup %16169  ;;  %v5457_v49 = vpop.permute.xlu0 %5456  ;;  %v6309_v37 = vmul.f32 %v5452_v26, %v4581_v63  ;;  %10103 = vmatpush1.bf16.msra.mxu1 %v6523_v7  ;;  %16195 = vpow2.f32 %v13051_v19  ;;  %v13055_v26 = vmul.f32 -1.442695, %v18101_v27  ;;  %v14955_v27 = vld [vmem:[%s22550_s3 + $0x5b8] ss:$72 sps:$4 sm:$0xff]  }
 0x2d0   :  { %v16172_v20 = vpop.eup %16171  ;;  %v18436_v58 = vpop.f32.mrb[238].mxu0  ;;  %4936 = vperm.xlu0 %14785, %v18246_v32   ;;  %10104 = vmatprep.subr.bf16.mxu1 %v22637_v31  ;;  %v14952_v32 = vld [vmem:[%s22550_s3 + $0x5bc] ss:$72 sps:$4 sm:$0xff]   ;;  %16197 = vpow2.f32 %v13053_v44 }
 0x2d1   :  { %v18438_v21 = vpop.eup %16173  ;;  %v18449_v34 = vpop.f32.mrb[239].mxu0  ;;  %v6524_v6 = vpack.c.bf16 %v6309_v37, %v6308_v41  ;;  %16199 = vrcp.f32 %v3624_v15  ;;  %v6310_v37 = vmul.f32 %v5457_v49, %v4582_v18  ;;  %v22683_v41 = vld [vmem:[#allocation10_spill] sm:$0xff]  ;;  %v22685_v15 = vld [vmem:[#allocation11_spill] sm:$0xff] }
 0x2d2   :  { %22681 = vst [vmem:[#allocation7_spill] sm:$0xff] %v18449_v34  ;;  %v18451_v56 = vpop.eup %16175  ;;  %9968 = vmatmul.mubr.bf16.gmra.mrb[28].mxu1 %v14950_v5  ;;  %v5462_v63 = vpop.permute.xlu1 %5461  ;;  %4941 = vperm.xlu1 %14784, %v18409_v54   ;;  %v4585_v5 = vld [vmem:[%s22549_s2 + $0x4a8] sm:$0xff]  ;;  %v12915_v23 = vmul.f32 -1.442695, %v22683_v41  ;;  %16201 = vpow2.f32 %v13056_v29  ;;  %v12920_v54 = vmul.f32 -1.442695, %v22685_v15 }
 0x2d3   :  { %v16178_v22 = vpop.eup %16177  ;;  %v5467_v30 = vpop.permute.xlu0 %5466  ;;  %v6311_v19 = vmul.f32 %v5462_v63, %v4583_v38  ;;  %10105 = vmatpush1.bf16.msra.mxu1 %v6524_v6  ;;  %16203 = vpow2.f32 %v12917_v60  ;;  %9975 = vmatprep.mubr.bf16.mxu1 %v14952_v32  ;;  %v13057_v60 = vmul.f32 -1.442695, %v18093_v61  ;;  %v13058_v15 = vmul.f32 -1.442695, %v18125_v55 }
 0x2d4   :  { %v18461_v7 = vpop.eup %16179  ;;  %4946 = vperm.xlu0 %14785, %v16168_v2   ;;  %10106 = vmatprep.subr.bf16.mxu1 %v22637_v31  ;;  %v18472_v46 = vpop.f32.mrb[240].mxu0  ;;  %v3625_v63 = vadd.f32 1.0, %v16178_v22  ;;  %16205 = vpow2.f32 %v13054_v62  ;;  %v4586_v22 = vld [vmem:[%s22549_s2 + $0x4b0] sm:$0xff] }
 0x2d5   :  { %v18468_v44 = vpop.eup %16181  ;;  %22684 = vst [vmem:[#allocation8_spill] sm:$0xff] %v18472_v46  ;;  %v6525_v18 = vpack.c.bf16 %v6311_v19, %v6310_v37  ;;  %v18478_v38 = vpop.f32.mrb[241].mxu0  ;;  %v6312_v46 = vmul.f32 %v5467_v30, %v4584_v33  ;;  %16207 = vpow2.f32 %v13055_v26  ;;  %v4587_v33 = vld [vmem:[%s22549_s2 + $0x4b8] sm:$0xff] }
 0x2d6   :  { %v16184_v49 = vpop.eup %16183  ;;  %v5472_v2 = vpop.permute.xlu1 %5471  ;;  %4951 = vperm.xlu1 %14784, %v16172_v20   ;;  %16209 = vpow2.f32 %v12915_v23  ;;  %v13060_v20 = vmul.f32 -1.442695, %v18122_v17  ;;  %v4588_v23 = vld [vmem:[%s22549_s2 + $0x4c0] sm:$0xff] }
 0x2d7   :  { %v16186_v6 = vpop.eup %16185  ;;  %v5477_v41 = vpop.permute.xlu0 %5476  ;;  %v6313_v34 = vmul.f32 %v5472_v2, %v4585_v5  ;;  %10107 = vmatpush1.bf16.msra.mxu1 %v6525_v18  ;;  %16211 = vpow2.f32 %v12920_v54  ;;  %v14957_v5 = vld [vmem:[%s22550_s3 + $0x64c] ss:$72 sps:$4 sm:$0xff]  }
 0x2d8   :  { %v18480_v29 = vpop.eup %16187  ;;  %v18483_v32 = vpop.f32.mrb[242].mxu0  ;;  %4956 = vperm.xlu0 %14785, %v18417_v53   ;;  %10108 = vmatprep.subr.bf16.mxu1 %v22637_v31  ;;  %v3764_v62 = vadd.f32 1.0, %v16186_v6  ;;  %16213 = vrcp.f32 %v3625_v63  ;;  %v6314_v2 = vmul.f32 %v5477_v41, %v4586_v22  ;;  %v3627_v6 = vadd.f32 1.0, %v18451_v56 }
 0x2d9   :  { %v16190_v37 = vpop.eup %16189  ;;  %v18494_v61 = vpop.f32.mrb[243].mxu0  ;;  %v6526_v19 = vpack.c.bf16 %v6313_v34, %v6312_v46  ;;  %16215 = vpow2.f32 %v13057_v60  ;;  %v4589_v34 = vld [vmem:[%s22549_s2 + $0x4c8] sm:$0xff]  ;;  %v13059_v46 = vmul.f32 -1.442695, %v18138_v14 }
 0x2da   :  { %v18496_v30 = vpop.eup %16191  ;;  %9976 = vmatmul.mubr.bf16.gmra.mrb[32].mxu1 %v14955_v27  ;;  %v5482_v26 = vpop.permute.xlu1 %5481  ;;  %4961 = vperm.xlu1 %14784, %v18433_v43   ;;  %16217 = vpow2.f32 %v13060_v20  ;;  %v14960_v60 = vld [vmem:[%s22550_s3 + $0x648] ss:$72 sps:$4 sm:$0xff]  }
 0x2db   :  { %v16194_v53 = vpop.eup %16193  ;;  %v5487_v17 = vpop.permute.xlu0 %5486  ;;  %v6315_v54 = vmul.f32 %v5482_v26, %v4587_v33  ;;  %10109 = vmatpush1.bf16.msra.mxu1 %v6526_v19  ;;  %16219 = vrcp.f32 %v3764_v62  ;;  %9983 = vmatprep.mubr.bf16.mxu1 %v14957_v5 }
 0x2dc   :  { %v16196_v18 = vpop.eup %16195  ;;  %4966 = vperm.xlu0 %14785, %v16184_v49   ;;  %10110 = vmatprep.subr.bf16.mxu1 %v22637_v31  ;;  %v18512_v55 = vpop.f32.mrb[244].mxu0  ;;  %v3766_v41 = vadd.f32 1.0, %v16194_v53  ;;  %16221 = vpow2.f32 %v13058_v15  ;;  %v6316_v26 = vmul.f32 %v5487_v17, %v4588_v23  ;;  %v4590_v53 = vld [vmem:[%s22549_s2 + $0x4d0] sm:$0xff]  ;;  %v4591_v23 = vld [vmem:[%s22549_s2 + $0x4d8] sm:$0xff]  ;;  %v13061_v17 = vmul.f32 -1.442695, %v18129_v42 }
 0x2dd   :  { %v16198_v27 = vpop.eup %16197  ;;  %22686 = vst [vmem:[#allocation9_spill] sm:$0xff] %v18512_v55  ;;  %v6527_v43 = vpack.c.bf16 %v6315_v54, %v6314_v2  ;;  %v18517_v22 = vpop.f32.mrb[245].mxu0  ;;  %v3765_v33 = vadd.f32 1.0, %v16196_v18  ;;  %16223 = vpow2.f32 %v13059_v46  ;;  %v14962_v54 = vld [vmem:[%s22550_s3 + $0x6dc] ss:$72 sps:$4 sm:$0xff]  }
 0x2de   :  { %v16200_v63 = vpop.eup %16199  ;;  %v5492_v56 = vpop.permute.xlu1 %5491  ;;  %v3767_v20 = vadd.f32 1.0, %v16198_v27  ;;  %4971 = vperm.xlu1 %14784, %v16190_v37   ;;  %16225 = vrcp.f32 %v3627_v6  ;;  %v4592_v46 = vld [vmem:[%s22549_s2 + $0x4e0] sm:$0xff]  ;;  %v13062_v27 = vmul.f32 -1.442695, %v18157_v25 }
 0x2df   :  { %v16202_v14 = vpop.eup %16201  ;;  %v5497_v49 = vpop.permute.xlu0 %5496  ;;  %v6317_v55 = vmul.f32 %v5492_v56, %v4589_v34  ;;  %10111 = vmatpush1.bf16.msra.mxu1 %v6527_v43  ;;  %16227 = vrcp.f32 %v3766_v41 }
 0x2e0   :  { %v18519_v19 = vpop.eup %16203  ;;  %v18521_v62 = vpop.f32.mrb[246].mxu0  ;;  %4976 = vperm.xlu0 %14785, %v18438_v21   ;;  %10112 = vmatprep.subr.bf16.mxu1 %v22637_v31  ;;  %v3770_v18 = vadd.f32 1.0, %v16202_v14  ;;  %16229 = vrcp.f32 %v3765_v33  ;;  %v6318_v41 = vmul.f32 %v5497_v49, %v4590_v53  ;;  %v13063_v49 = vmul.f32 -1.442695, %v18170_v39 }
 0x2e1   :  { %v16206_v5 = vpop.eup %16205  ;;  %v18532_v37 = vpop.f32.mrb[247].mxu0  ;;  %v6528_v2 = vpack.c.bf16 %v6317_v55, %v6316_v26  ;;  %16231 = vrcp.f32 %v3767_v20 }
 0x2e2   :  { %v16208_v15 = vpop.eup %16207  ;;  %9984 = vmatmul.mubr.bf16.gmra.mrb[36].mxu1 %v14960_v60  ;;  %v5502_v21 = vpop.permute.xlu1 %5501  ;;  %v3768_v55 = vadd.f32 1.0, %v16206_v5  ;;  %4981 = vperm.xlu1 %14784, %v18480_v29   ;;  %v4593_v60 = vld [vmem:[%s22549_s2 + $0x4e8] sm:$0xff]  ;;  %16233 = vpow2.f32 %v13061_v17  ;;  %v14965_v29 = vld [vmem:[%s22550_s3 + $0x6d8] ss:$72 sps:$4 sm:$0xff]  }
 0x2e3   :  { %v18537_v34 = vpop.eup %16209  ;;  %v5507_v42 = vpop.permute.xlu0 %5506  ;;  %v6319_v43 = vmul.f32 %v5502_v21, %v4591_v23  ;;  %10113 = vmatpush1.bf16.msra.mxu1 %v6528_v2  ;;  %v3769_v33 = vadd.f32 1.0, %v16208_v15  ;;  %16235 = vrcp.f32 %v3770_v18  ;;  %9991 = vmatprep.mubr.bf16.mxu1 %v14962_v54  ;;  %v13065_v2 = vmul.f32 -1.442695, %v18161_v16 }
 0x2e4   :  { %v18543_v6 = vpop.eup %16211  ;;  %4986 = vperm.xlu0 %14785, %v16200_v63   ;;  %10114 = vmatprep.subr.bf16.mxu1 %v22637_v31  ;;  %v18550_v25 = vpop.f32.mrb[248].mxu0  ;;  %v13064_v63 = vmul.f32 -1.442695, %v18152_v13  ;;  %16237 = vpow2.f32 %v13062_v27  ;;  %v6320_v15 = vmul.f32 %v5507_v42, %v4592_v46  ;;  %v4595_v13 = vld [vmem:[%s22549_s2 + $0x4f8] sm:$0xff] }
 0x2e5   :  { %v16214_v14 = vpop.eup %16213  ;;  %v6529_v20 = vpack.c.bf16 %v6319_v43, %v6318_v41  ;;  %v18556_v26 = vpop.f32.mrb[249].mxu0  ;;  %16239 = vrcp.f32 %v3768_v55  ;;  %v4594_v41 = vld [vmem:[%s22549_s2 + $0x4f0] sm:$0xff] }
 0x2e6   :  { %v16216_v56 = vpop.eup %16215  ;;  %v5512_v53 = vpop.permute.xlu1 %5511  ;;  %4991 = vperm.xlu1 %14784, %v16214_v14   ;;  %16241 = vrcp.f32 %v3769_v33  ;;  %v14967_v55 = vld [vmem:[%s22550_s3 + $0x76c] ss:$72 sps:$4 sm:$0xff]   ;;  %v13066_v33 = vmul.f32 -1.442695, %v18193_v12 }
 0x2e7   :  { %v16218_v5 = vpop.eup %16217  ;;  %v5517_v23 = vpop.permute.xlu0 %5516  ;;  %v6321_v18 = vmul.f32 %v5512_v53, %v4593_v60  ;;  %10115 = vmatpush1.bf16.msra.mxu1 %v6529_v20  ;;  %v3771_v39 = vadd.f32 1.0, %v16216_v56  ;;  %16243 = vpow2.f32 %v13063_v49  ;;  %v4460_v60 = vld [vmem:[%s22549_s2 + $0xc0] sm:$0xff]  ;;  %v4461_v49 = vld [vmem:[%s22549_s2 + $0xc8] sm:$0xff] }
 0x2e8   :  { %v16220_v17 = vpop.eup %16219  ;;  %v18560_v54 = vpop.f32.mrb[250].mxu0  ;;  %4996 = vperm.xlu0 %14785, %v18496_v30   ;;  %10116 = vmatprep.subr.bf16.mxu1 %v22637_v31  ;;  %v3774_v42 = vadd.f32 1.0, %v16218_v5  ;;  %16245 = vpow2.f32 %v13064_v63  ;;  %v6322_v5 = vmul.f32 %v5517_v23, %v4594_v41  ;;  %v14970_v23 = vld [vmem:[%s22550_s3 + $0x768] ss:$72 sps:$4 sm:$0xff]  }
 0x2e9   :  { %v16222_v21 = vpop.eup %16221  ;;  %v18570_v46 = vpop.f32.mrb[251].mxu0  ;;  %v6530_v27 = vpack.c.bf16 %v6321_v18, %v6320_v15  ;;  %16247 = vpow2.f32 %v13065_v2  ;;  %v13067_v2 = vmul.f32 -1.442695, %v18207_v35  ;;  %v22690_v35 = vld [vmem:[#allocation12_spill] sm:$0xff] }
 0x2ea   :  { %v16224_v16 = vpop.eup %16223  ;;  %9992 = vmatmul.mubr.bf16.gmra.mrb[40].mxu1 %v14965_v29  ;;  %v5522_v30 = vpop.permute.xlu1 %5521  ;;  %v3772_v20 = vadd.f32 1.0, %v16222_v21  ;;  %16249 = vrcp.f32 %v3771_v39 }
 0x2eb   :  { %v16226_v43 = vpop.eup %16225  ;;  %v4847_v14 = vpop.permute.xlu0 %4846  ;;  %v6323_v53 = vmul.f32 %v5522_v30, %v4595_v13  ;;  %10117 = vmatpush1.bf16.msra.mxu1 %v6530_v27  ;;  %v3773_v63 = vadd.f32 1.0, %v16224_v16  ;;  %16251 = vrcp.f32 %v3774_v42  ;;  %9999 = vmatprep.mubr.bf16.mxu1 %v14967_v55  ;;  %v22688_v55 = vld [vmem:[#allocation63_spill] sm:$0xff] }
 0x2ec   :  { %v16228_v56 = vpop.eup %16227  ;;  %5001 = vperm.xlu1 %14784, %v16226_v43   ;;  %5686 = vperm.xlu0 %14785, %v16220_v17   ;;  %v18583_v15 = vpop.f32.mrb[252].mxu0  ;;  %v13068_v17 = vmul.f32 -1.442695, %v18185_v51  ;;  %16253 = vpow2.f32 %v13066_v33  ;;  %v6188_v27 = vmul.f32 %v4847_v14, %v4460_v60  ;;  %v13069_v43 = vmul.f32 -1.442695, %v22688_v55  ;;  %v4463_v51 = vld [vmem:[%s22549_s2 + $0xd8] sm:$0xff] }
 0x2ed   :  { %v16230_v29 = vpop.eup %16229  ;;  %10118 = vmatprep.subr.bf16.mxu1 %v22637_v31  ;;  %22687 = vst [vmem:[#allocation10_spill] sm:$0xff] %v18583_v15  ;;  %v6531_v18 = vpack.c.bf16 %v6323_v53, %v6322_v5  ;;  %v18589_v21 = vpop.f32.mrb[253].mxu0  ;;  %16255 = vrcp.f32 %v3772_v20  ;;  %v12918_v53 = vmul.f32 -1.442695, %v22690_v35  ;;  %v4462_v15 = vld [vmem:[%s22549_s2 + $0xd0] sm:$0xff] }
 0x2ee   :  { %v16232_v12 = vpop.eup %16231  ;;  %v4852_v39 = vpop.permute.xlu1 %4851  ;;  %16257 = vrcp.f32 %v3773_v63  ;;  %v4464_v63 = vld [vmem:[%s22549_s2 + $0xe0] sm:$0xff] }
 0x2ef   :  { %v16234_v41 = vpop.eup %16233  ;;  %v4857_v13 = vpop.permute.xlu0 %4856  ;;  %v6189_v42 = vmul.f32 %v4852_v39, %v4461_v49  ;;  %10119 = vmatpush1.bf16.msra.mxu1 %v6531_v18  ;;  %16259 = vpow2.f32 %v13067_v2  ;;  %v14972_v49 = vld [vmem:[%s22550_s3 + $0x7fc] ss:$72 sps:$4 sm:$0xff]   ;;  %v13070_v39 = vmul.f32 -1.442695, %v18228_v36  ;;  %v4465_v2 = vld [vmem:[%s22549_s2 + $0xe8] sm:$0xff] }
 0x2f0   :  { %v16236_v16 = vpop.eup %16235  ;;  %5691 = vperm.xlu1 %14784, %v16230_v29   ;;  %v18593_v30 = vpop.f32.mrb[254].mxu0  ;;  %5696 = vperm.xlu0 %14785, %v16228_v56   ;;  %v3775_v33 = vadd.f32 1.0, %v16234_v41  ;;  %16261 = vpow2.f32 %v13068_v17  ;;  %v6190_v41 = vmul.f32 %v4857_v13, %v4462_v15  ;;  %v22691_v17 = vld [vmem:[#allocation64_spill] sm:$0xff]  ;;  %v14975_v15 = vld [vmem:[%s22550_s3 + $0x7f8] ss:$72 sps:$4 sm:$0xff]  }
 0x2f1   :  { %22689 = vst [vmem:[#allocation11_spill] sm:$0xff] %v18593_v30  ;;  %v16238_v5 = vpop.eup %16237  ;;  %10313 = vmatprep.subr.bf16.mxu1 %v22637_v31  ;;  %v18603_v60 = vpop.f32.mrb[255].mxu0  ;;  %v6464_v20 = vpack.c.bf16 %v6189_v42, %v6188_v27  ;;  %16263 = vpow2.f32 %v13069_v43  ;;  %v13072_v42 = vmul.f32 -1.442695, %v22691_v17 }
 0x2f2   :  { %v16240_v14 = vpop.eup %16239  ;;  %10000 = vmatmul.mubr.bf16.gmra.mrb[44].mxu1 %v14970_v23  ;;  %v4862_v56 = vpop.permute.xlu1 %4861  ;;  %v3776_v35 = vadd.f32 1.0, %v16238_v5  ;;  %16265 = vpow2.f32 %v12918_v53 }
 0x2f3   :  { %v16242_v29 = vpop.eup %16241  ;;  %v4867_v18 = vpop.permute.xlu0 %4866  ;;  %v6191_v27 = vmul.f32 %v4862_v56, %v4463_v51  ;;  %9213 = vmatpush1.bf16.msra.mxu0 %v6464_v20  ;;  %16267 = vrcp.f32 %v3775_v33  ;;  %10007 = vmatprep.mubr.bf16.mxu1 %v14972_v49 }
 0x2f4   :  { %v16244_v55 = vpop.eup %16243  ;;  %5701 = vperm.xlu1 %14784, %v16232_v12   ;;  %5706 = vperm.xlu0 %14785, %v16240_v14   ;;  %v13071_v12 = vmul.f32 -1.442695, %v18240_v52  ;;  %16269 = vpow2.f32 %v13070_v39  ;;  %v6192_v20 = vmul.f32 %v4867_v18, %v4464_v63  ;;  %v4467_v52 = vld [vmem:[%s22549_s2 + $0xf8] sm:$0xff]  ;;  %v13073_v63 = vmul.f32 -1.442695, %v18230_v59  ;;  %v4468_v18 = vld [vmem:[%s22549_s2 + $0x100] sm:$0xff] }
 0x2f5   :  { %v16246_v23 = vpop.eup %16245  ;;  %9214 = vmatprep.subr.bf16.mxu0 %v22637_v31  ;;  %v6465_v36 = vpack.c.bf16 %v6191_v27, %v6190_v41  ;;  %v3777_v43 = vadd.f32 1.0, %v16244_v55  ;;  %16271 = vrcp.f32 %v3776_v35  ;;  %v4466_v41 = vld [vmem:[%s22549_s2 + $0xf0] sm:$0xff]  ;;  %v13074_v27 = vmul.f32 -1.442695, %v18262_v11  ;;  %v14976_v11 = vld [vmem:[%s22550_s3] ss:$72 sps:$4 sm:$0xff]  }
 0x2f6   :  { %v16248_v30 = vpop.eup %16247  ;;  %v4872_v5 = vpop.permute.xlu1 %4871  ;;  %v3778_v14 = vadd.f32 1.0, %v16246_v23  ;;  %16273 = vpow2.f32 %v13072_v42  ;;  %v4469_v42 = vld [vmem:[%s22549_s2 + $0x108] sm:$0xff] }
 0x2f7   :  { %v16250_v13 = vpop.eup %16249  ;;  %v4877_v51 = vpop.permute.xlu0 %4876  ;;  %v6193_v56 = vmul.f32 %v4872_v5, %v4465_v2  ;;  %9215 = vmatpush1.bf16.msra.mxu0 %v6465_v36  ;;  %v3779_v49 = vadd.f32 1.0, %v16248_v30  ;;  %16275 = vpow2.f32 %v13071_v12  ;;  %v14979_v30 = vld [vmem:[%s22550_s3 + $0x88c] ss:$72 sps:$4 sm:$0xff]   ;;  %v13075_v5 = vmul.f32 -1.442695, %v18275_v48  ;;  %v4471_v48 = vld [vmem:[%s22549_s2 + $0x118] sm:$0xff] }
 0x2f8   :  { %v16252_v53 = vpop.eup %16251  ;;  %5711 = vperm.xlu1 %14784, %v16242_v29   ;;  %5716 = vperm.xlu0 %14785, %v16236_v16   ;;  %16277 = vrcp.f32 %v3777_v43  ;;  %v6194_v59 = vmul.f32 %v4877_v51, %v4466_v41 }
 0x2f9   :  { %v16254_v33 = vpop.eup %16253  ;;  %9216 = vmatprep.subr.bf16.mxu0 %v22637_v31  ;;  %v6466_v55 = vpack.c.bf16 %v6193_v56, %v6192_v20  ;;  %16279 = vrcp.f32 %v3778_v14 }
 0x2fa   :  { %v16256_v39 = vpop.eup %16255  ;;  %10008 = vmatmul.mubr.bf16.gmra.mrb[48].mxu1 %v14975_v15  ;;  %v4882_v16 = vpop.permute.xlu1 %4881  ;;  %v3780_v23 = vadd.f32 1.0, %v16254_v33  ;;  %16281 = vrcp.f32 %v3779_v49  ;;  %v13076_v15 = vmul.f32 -1.442695, %v18259_v45 }
 0x2fb   :  { %v16258_v29 = vpop.eup %16257  ;;  %v4887_v35 = vpop.permute.xlu0 %4886  ;;  %v6195_v17 = vmul.f32 %v4882_v16, %v4467_v52  ;;  %9217 = vmatpush1.bf16.msra.mxu0 %v6466_v55  ;;  %16283 = vpow2.f32 %v13073_v63  ;;  %10015 = vmatprep.mubr.bf16.mxu1 %v14979_v30  ;;  %v4470_v55 = vld [vmem:[%s22549_s2 + $0x110] sm:$0xff]  ;;  %v13077_v16 = vmul.f32 -1.442695, %v18265_v24  ;;  %v13078_v24 = vmul.f32 -1.442695, %v18295_v3 }
 0x2fc   :  { %v16260_v2 = vpop.eup %16259  ;;  %5721 = vperm.xlu1 %14784, %v16250_v13   ;;  %5726 = vperm.xlu0 %14785, %v16256_v39   ;;  %v14981_v13 = vld [vmem:[%s22550_s3 + $0x888] ss:$72 sps:$4 sm:$0xff]   ;;  %16285 = vpow2.f32 %v13074_v27  ;;  %v6196_v45 = vmul.f32 %v4887_v35, %v4468_v18  ;;  %v4472_v27 = vld [vmem:[%s22549_s2 + $0x120] sm:$0xff] }
 0x2fd   :  { %v16262_v36 = vpop.eup %16261  ;;  %9218 = vmatprep.subr.bf16.mxu0 %v22637_v31  ;;  %v6467_v43 = vpack.c.bf16 %v6195_v17, %v6194_v59  ;;  %v3781_v14 = vadd.f32 1.0, %v16260_v2  ;;  %16287 = vrcp.f32 %v3780_v23  ;;  %v14982_v3 = vld [vmem:[%s22550_s3 + $0x90] ss:$72 sps:$4 sm:$0xff]  }
 0x2fe   :  { %v16264_v12 = vpop.eup %16263  ;;  %v4892_v20 = vpop.permute.xlu1 %4891  ;;  %v3782_v49 = vadd.f32 1.0, %v16262_v36  ;;  %16289 = vpow2.f32 %v13076_v15  ;;  %v4473_v36 = vld [vmem:[%s22549_s2 + $0x128] sm:$0xff]  ;;  %v13080_v15 = vmul.f32 -1.442695, %v18290_v40 }
 0x2ff   :  { %v18648_v51 = vpop.eup %16265  ;;  %v4897_v56 = vpop.permute.xlu0 %4896  ;;  %v6197_v41 = vmul.f32 %v4892_v20, %v4469_v42  ;;  %9219 = vmatpush1.bf16.msra.mxu0 %v6467_v43  ;;  %v3783_v39 = vadd.f32 1.0, %v16264_v12  ;;  %16291 = vpow2.f32 %v13075_v5  ;;  %v13079_v5 = vmul.f32 -1.442695, %v18307_v1  ;;  %v4475_v1 = vld [vmem:[%s22549_s2 + $0x138] sm:$0xff] }
 0x300   :  { %v16268_v33 = vpop.eup %16267  ;;  %5731 = vperm.xlu1 %14784, %v16258_v29   ;;  %5736 = vperm.xlu0 %14785, %v16252_v53   ;;  %v14984_v29 = vld [vmem:[%s22550_s3 + $0x94] ss:$72 sps:$4 sm:$0xff]   ;;  %16293 = vrcp.f32 %v3781_v14  ;;  %v6198_v17 = vmul.f32 %v4897_v56, %v4470_v55 }
 0x301   :  { %v16270_v52 = vpop.eup %16269  ;;  %9413 = vmatprep.subr.bf16.mxu0 %v22637_v31  ;;  %v6468_v30 = vpack.c.bf16 %v6197_v41, %v6196_v45  ;;  %v14985_v53 = vld [vmem:[%s22550_s3 + $0x91c] ss:$72 sps:$4 sm:$0xff]   ;;  %16295 = vrcp.f32 %v3782_v49  ;;  %v4474_v55 = vld [vmem:[%s22549_s2 + $0x130] sm:$0xff] }
 0x302   :  { %v16272_v63 = vpop.eup %16271  ;;  %9221 = vmatmul.mubr.bf16.vlgmr.msra.gmra.mrb[32].mxu0 %v14976_v11  ;;  %10016 = vmatmul.mubr.bf16.gmra.mrb[52].mxu1 %v14981_v13  ;;  %v4902_v35 = vpop.permute.xlu1 %4901  ;;  %v3784_v59 = vadd.f32 1.0, %v16270_v52  ;;  %16297 = vrcp.f32 %v3783_v39  ;;  %v14987_v13 = vld [vmem:[%s22550_s3 + $0x918] ss:$72 sps:$4 sm:$0xff]   ;;  %v3630_v39 = vadd.f32 1.0, %v18461_v7  ;;  %v14990_v7 = vld [vmem:[%s22550_s3 + $0x124] ss:$72 sps:$4 sm:$0xff]  }
 0x303   :  { %v16274_v18 = vpop.eup %16273  ;;  %v4907_v2 = vpop.permute.xlu0 %4906  ;;  %v6199_v42 = vmul.f32 %v4902_v35, %v4471_v48  ;;  %9414 = vmatpush1.bf16.msra.mxu0 %v6468_v30  ;;  %16299 = vpow2.f32 %v13077_v16  ;;  %9228 = vmatprep.mubr.bf16.mxu0 %v14984_v29  ;;  %v13081_v30 = vmul.f32 -1.442695, %v18297_v9  ;;  %v14991_v16 = vld [vmem:[%s22550_s3 + $0x9ac] ss:$72 sps:$4 sm:$0xff]  }
 0x304   :  { %v16276_v23 = vpop.eup %16275  ;;  %5741 = vperm.xlu1 %14784, %v16268_v33   ;;  %5746 = vperm.xlu0 %14785, %v16272_v63   ;;  %16301 = vpow2.f32 %v13078_v24  ;;  %v3786_v45 = vadd.f32 1.0, %v16274_v18  ;;  %v6200_v40 = vmul.f32 %v4907_v2, %v4472_v27 }
 0x305   :  { %v16278_v11 = vpop.eup %16277  ;;  %9415 = vmatprep.subr.bf16.mxu0 %v22637_v31  ;;  %v6469_v43 = vpack.c.bf16 %v6199_v42, %v6198_v17  ;;  %10023 = vmatprep.mubr.bf16.mxu1 %v14985_v53  ;;  %v3785_v20 = vadd.f32 1.0, %v16276_v23  ;;  %16303 = vrcp.f32 %v3784_v59  ;;  %v22692_v59 = vld [vmem:[#allocation13_spill] sm:$0xff] }
 0x306   :  { %v16280_v12 = vpop.eup %16279  ;;  %v4912_v56 = vpop.permute.xlu1 %4911  ;;  %16305 = vpow2.f32 %v13080_v15  ;;  %v12921_v17 = vmul.f32 -1.442695, %v22692_v59  ;;  %v14994_v59 = vld [vmem:[%s22550_s3 + $0x1b0] ss:$72 sps:$4 sm:$0xff]  }
 0x307   :  { %v16282_v14 = vpop.eup %16281  ;;  %v4917_v33 = vpop.permute.xlu0 %4916  ;;  %v6201_v41 = vmul.f32 %v4912_v56, %v4473_v36  ;;  %9416 = vmatpush1.bf16.msra.mxu0 %v6469_v43  ;;  %16307 = vpow2.f32 %v13079_v5  ;;  %v22693_v36 = vld [vmem:[#allocation14_spill] sm:$0xff]  ;;  %v14993_v5 = vld [vmem:[%s22550_s3 + $0x9a8] ss:$72 sps:$4 sm:$0xff]  }
 0x308   :  { %v16284_v49 = vpop.eup %16283  ;;  %5751 = vperm.xlu1 %14784, %v16278_v11   ;;  %5756 = vperm.xlu0 %14785, %v16280_v12   ;;  %16309 = vrcp.f32 %v3785_v20  ;;  %v6202_v2 = vmul.f32 %v4917_v33, %v4474_v55  ;;  %v12919_v11 = vmul.f32 -1.442695, %v22693_v36  ;;  %v14996_v33 = vld [vmem:[%s22550_s3 + $0x1b4] ss:$72 sps:$4 sm:$0xff]  }
 0x309   :  { %v16286_v52 = vpop.eup %16285  ;;  %9417 = vmatprep.subr.bf16.mxu0 %v22637_v31  ;;  %v6470_v63 = vpack.c.bf16 %v6201_v41, %v6200_v40  ;;  %v3787_v53 = vadd.f32 1.0, %v16284_v49  ;;  %16311 = vrcp.f32 %v3786_v45  ;;  %v22694_v45 = vld [vmem:[#allocation15_spill] sm:$0xff]  ;;  %v14997_v41 = vld [vmem:[%s22550_s3 + $0xa3c] ss:$72 sps:$4 sm:$0xff]  }
 0x30a   :  { %v16288_v48 = vpop.eup %16287  ;;  %9229 = vmatmul.mubr.bf16.gmra.mrb[36].mxu0 %v14982_v3  ;;  %10024 = vmatmul.mubr.bf16.gmra.mrb[56].mxu1 %v14987_v13  ;;  %v4922_v18 = vpop.permute.xlu1 %4921  ;;  %v3788_v27 = vadd.f32 1.0, %v16286_v52  ;;  %16313 = vrcp.f32 %v3630_v39  ;;  %v14988_v13 = vld [vmem:[%s22550_s3 + $0x120] ss:$72 sps:$4 sm:$0xff]   ;;  %v12924_v40 = vmul.f32 -1.442695, %v22694_v45  ;;  %v22695_v39 = vld [vmem:[#allocation16_spill] sm:$0xff] }
 0x30b   :  { %v16290_v29 = vpop.eup %16289  ;;  %v6203_v9 = vmul.f32 %v4922_v18, %v4475_v1  ;;  %9418 = vmatpush1.bf16.msra.mxu0 %v6470_v63  ;;  %v18695_v24 = vpop.permute.xlu0 %5526  ;;  %16315 = vpow2.f32 %v13081_v30  ;;  %9236 = vmatprep.mubr.bf16.mxu0 %v14990_v7  ;;  %v12922_v55 = vmul.f32 -1.442695, %v22695_v39 }
 0x30c   :  { %v16292_v35 = vpop.eup %16291  ;;  %5761 = vperm.xlu1 %14784, %v16282_v14   ;;  %5766 = vperm.xlu0 %14785, %v16288_v48   ;;  %16317 = vrcp.f32 %v3787_v53  ;;  %v3790_v20 = vadd.f32 1.0, %v16290_v29  ;;  %v3628_v53 = vadd.f32 1.0, %v18468_v44  ;;  %v14999_v44 = vld [vmem:[%s22550_s3 + $0xa38] ss:$72 sps:$4 sm:$0xff]  }
 0x30d   :  { %v16294_v23 = vpop.eup %16293  ;;  %9419 = vmatprep.subr.bf16.mxu0 %v22637_v31  ;;  %v6471_v3 = vpack.c.bf16 %v6203_v9, %v6202_v2  ;;  %10031 = vmatprep.mubr.bf16.mxu1 %v14991_v16  ;;  %v3789_v12 = vadd.f32 1.0, %v16292_v35  ;;  %16319 = vrcp.f32 %v3788_v27  ;;  %v22696_v35 = vld [vmem:[#allocation17_spill] sm:$0xff] }
 0x30e   :  { %v16296_v42 = vpop.eup %16295  ;;  %v18700_v43 = vpop.permute.xlu1 %5531  ;;  %16321 = vpow2.f32 %v12921_v17  ;;  %v12925_v27 = vmul.f32 -1.442695, %v22696_v35 }
 0x30f   :  { %v16298_v15 = vpop.eup %16297  ;;  %9420 = vmatpush1.bf16.msra.mxu0 %v6471_v3  ;;  %v18708_v56 = vpop.permute.xlu0 %5536  ;;  %16323 = vpow2.f32 %v12919_v11  ;;  %v15002_v11 = vld [vmem:[%s22550_s3 + $0x244] ss:$72 sps:$4 sm:$0xff]  }
 0x310   :  { %v16300_v14 = vpop.eup %16299  ;;  %5771 = vperm.xlu1 %14784, %v16294_v23   ;;  %5776 = vperm.xlu0 %14785, %v16296_v42   ;;  %16325 = vrcp.f32 %v3789_v12  ;;  %v15003_v12 = vld [vmem:[%s22550_s3 + $0xacc] ss:$72 sps:$4 sm:$0xff]  }
 0x311   :  { %v16302_v49 = vpop.eup %16301  ;;  %9421 = vmatprep.subr.bf16.mxu0 %v22637_v31  ;;  %v3791_v48 = vadd.f32 1.0, %v16300_v14  ;;  %16327 = vrcp.f32 %v3790_v20 }
 0x312   :  { %v16304_v52 = vpop.eup %16303  ;;  %9237 = vmatmul.mubr.bf16.gmra.mrb[40].mxu0 %v14988_v13  ;;  %10032 = vmatmul.mubr.bf16.gmra.mrb[60].mxu1 %v14993_v5  ;;  %v18719_v63 = vpop.permute.xlu1 %5541  ;;  %v3792_v7 = vadd.f32 1.0, %v16302_v49  ;;  %16329 = vpow2.f32 %v12924_v40  ;;  %v22697_v5 = vld [vmem:[#allocation18_spill] sm:$0xff]  ;;  %v3629_v40 = vadd.f32 1.0, %v18537_v34 }
 0x313   :  { %v16306_v1 = vpop.eup %16305  ;;  %v18721_v16 = vpop.permute.xlu0 %5546  ;;  %9244 = vmatprep.mubr.bf16.mxu0 %v14996_v33  ;;  %10039 = vmatprep.mubr.bf16.mxu1 %v14997_v41  ;;  %16331 = vpow2.f32 %v12922_v55  ;;  %v12923_v14 = vmul.f32 -1.442695, %v22697_v5  ;;  %v22698_v55 = vld [vmem:[#allocation19_spill] sm:$0xff] }
 0x314   :  { %v16308_v30 = vpop.eup %16307  ;;  %5781 = vperm.xlu1 %14784, %v16298_v15   ;;  %5786 = vperm.xlu0 %14785, %v16304_v52   ;;  %16333 = vrcp.f32 %v3791_v48  ;;  %v3794_v42 = vadd.f32 1.0, %v16306_v1  ;;  %v3631_v15 = vadd.f32 1.0, %v18519_v19  ;;  %v3634_v52 = vadd.f32 1.0, %v18543_v6  ;;  %v15005_v6 = vld [vmem:[%s22550_s3 + $0xac8] ss:$72 sps:$4 sm:$0xff]  }
 0x315   :  { %v16310_v29 = vpop.eup %16309  ;;  %v3793_v9 = vadd.f32 1.0, %v16308_v30  ;;  %16335 = vrcp.f32 %v3792_v7  ;;  %v12928_v1 = vmul.f32 -1.442695, %v22698_v55  ;;  %v22699_v30 = vld [vmem:[#allocation20_spill] sm:$0xff] }
 0x316   :  { %v16312_v18 = vpop.eup %16311  ;;  %v18727_v23 = vpop.permute.xlu1 %5551  ;;  %16337 = vrcp.f32 %v3628_v53  ;;  %v12926_v7 = vmul.f32 -1.442695, %v22699_v30 }
 0x317   :  { %v18725_v2 = vpop.eup %16313  ;;  %v18735_v36 = vpop.permute.xlu0 %5556  ;;  %16339 = vpow2.f32 %v12925_v27  ;;  %v15008_v27 = vld [vmem:[%s22550_s3 + $0x2d4] ss:$72 sps:$4 sm:$0xff]  }
 0x318   :  { %v16316_v17 = vpop.eup %16315  ;;  %5791 = vperm.xlu1 %14784, %v16310_v29   ;;  %5796 = vperm.xlu0 %14785, %v16312_v18   ;;  %16341 = vrcp.f32 %v3793_v9  ;;  %v15000_v29 = vld [vmem:[%s22550_s3 + $0x240] ss:$72 sps:$4 sm:$0xff]   ;;  %v3632_v18 = vadd.f32 1.0, %v18648_v51  ;;  %v18767_v9 = vpop.f32.mrb[0].mxu0 }
 0x319   :  { %v16318_v3 = vpop.eup %16317  ;;  %v3795_v33 = vadd.f32 1.0, %v16316_v17  ;;  %16343 = vrcp.f32 %v3794_v42  ;;  %22700 = vst [vmem:[#allocation63_spill] sm:$0xff] %v18767_v9  ;;  %v15009_v42 = vld [vmem:[%s22550_s3 + $0xb5c] ss:$72 sps:$4 sm:$0xff]  }
 0x31a   :  { %v16320_v13 = vpop.eup %16319  ;;  %9245 = vmatmul.mubr.bf16.gmra.mrb[44].mxu0 %v14994_v59  ;;  %10040 = vmatmul.mubr.bf16.gmra.mrb[64].mxu1 %v14999_v44  ;;  %v18745_v49 = vpop.permute.xlu1 %5561  ;;  %16345 = vrcp.f32 %v3631_v15  ;;  %v22701_v44 = vld [vmem:[#allocation21_spill] sm:$0xff] }
 0x31b   :  { %v16322_v20 = vpop.eup %16321  ;;  %v18748_v19 = vpop.permute.xlu0 %5566  ;;  %9252 = vmatprep.mubr.bf16.mxu0 %v15002_v11  ;;  %10047 = vmatprep.mubr.bf16.mxu1 %v15003_v12  ;;  %16347 = vpow2.f32 %v12923_v14  ;;  %v12929_v17 = vmul.f32 -1.442695, %v22701_v44 }
 0x31c   :  { %v16324_v45 = vpop.eup %16323  ;;  %5801 = vperm.xlu1 %14784, %v16318_v3   ;;  %5806 = vperm.xlu0 %14785, %v16320_v13   ;;  %16349 = vrcp.f32 %v3795_v33  ;;  %v18773_v11 = vpop.f32.mrb[1].mxu0  ;;  %v3635_v3 = vadd.f32 1.0, %v16322_v20 }
 0x31d   :  { %v16326_v41 = vpop.eup %16325  ;;  %16351 = vrcp.f32 %v3629_v40  ;;  %22702 = vst [vmem:[#allocation12_spill] sm:$0xff] %v18773_v11  ;;  %v18775_v15 = vpop.f32.mrb[2].mxu0  ;;  %v3633_v13 = vadd.f32 1.0, %v16324_v45  ;;  %v22704_v45 = vld [vmem:[#allocation22_spill] sm:$0xff] }
 0x31e   :  { %v16328_v39 = vpop.eup %16327  ;;  %v18753_v34 = vpop.permute.xlu1 %5571  ;;  %16353 = vrcp.f32 %v3634_v52  ;;  %22703 = vst [vmem:[#allocation64_spill] sm:$0xff] %v18775_v15 }
 0x31f   :  { %v16330_v48 = vpop.eup %16329  ;;  %v18762_v35 = vpop.permute.xlu0 %5576  ;;  %16355 = vpow2.f32 %v12928_v1 }
 0x320   :  { %v16332_v53 = vpop.eup %16331  ;;  %5811 = vperm.xlu1 %14784, %v16326_v41   ;;  %5816 = vperm.xlu0 %14785, %v16328_v39   ;;  %16357 = vpow2.f32 %v12926_v7  ;;  %v3638_v33 = vadd.f32 1.0, %v16330_v48  ;;  %v12927_v39 = vmul.f32 -1.442695, %v22704_v45  ;;  %v18782_v55 = vpop.f32.mrb[3].mxu0  ;;  %v15006_v48 = vld [vmem:[%s22550_s3 + $0x2d0] ss:$72 sps:$4 sm:$0xff]  }
 0x321   :  { %v16334_v59 = vpop.eup %16333  ;;  %16359 = vrcp.f32 %v3632_v18  ;;  %v3636_v52 = vadd.f32 1.0, %v16332_v53  ;;  %22705 = vst [vmem:[#allocation13_spill] sm:$0xff] %v18782_v55  ;;  %v15011_v7 = vld [vmem:[%s22550_s3 + $0xb58] ss:$72 sps:$4 sm:$0xff]   ;;  %v15014_v18 = vld [vmem:[%s22550_s3 + $0x364] ss:$72 sps:$4 sm:$0xff]  }
 0x322   :  { %v16336_v51 = vpop.eup %16335  ;;  %9253 = vmatmul.mubr.bf16.gmra.mrb[48].mxu0 %v15000_v29  ;;  %10048 = vmatmul.mubr.bf16.gmra.mrb[68].mxu1 %v15005_v6  ;;  %v18777_v5 = vpop.permute.xlu1 %5581  ;;  %16361 = vpow2.f32 %v12929_v17  ;;  %v13084_v29 = vmul.f32 -1.442695, %v18322_v10  ;;  %v15015_v10 = vld [vmem:[%s22550_s3 + $0xbec] ss:$72 sps:$4 sm:$0xff]   ;;  %v13085_v45 = vmul.f32 -1.442695, %v18329_v47 }
 0x323   :  { %v16338_v12 = vpop.eup %16337  ;;  %v18779_v40 = vpop.permute.xlu0 %5586  ;;  %9260 = vmatprep.mubr.bf16.mxu0 %v15008_v27  ;;  %10055 = vmatprep.mubr.bf16.mxu1 %v15009_v42  ;;  %16363 = vrcp.f32 %v3635_v3  ;;  %v13082_v27 = vmul.f32 -1.442695, %v18327_v50  ;;  %v22708_v3 = vld [vmem:[#allocation23_spill] sm:$0xff] }
 0x324   :  { %v16340_v14 = vpop.eup %16339  ;;  %5821 = vperm.xlu1 %14784, %v16334_v59   ;;  %5826 = vperm.xlu0 %14785, %v16336_v51   ;;  %16365 = vrcp.f32 %v3633_v13  ;;  %v18801_v59 = vpop.f32.mrb[4].mxu0  ;;  %v12932_v13 = vmul.f32 -1.442695, %v22708_v3  ;;  %v13083_v3 = vmul.f32 -1.442695, %v18339_v28 }
 0x325   :  { %v16342_v41 = vpop.eup %16341  ;;  %16367 = vrcp.f32 %v3638_v33  ;;  %22706 = vst [vmem:[#allocation14_spill] sm:$0xff] %v18801_v59  ;;  %v3639_v17 = vadd.f32 1.0, %v16340_v14  ;;  %v18806_v42 = vpop.f32.mrb[5].mxu0  ;;  %v15012_v47 = vld [vmem:[%s22550_s3 + $0x360] ss:$72 sps:$4 sm:$0xff]  }
 0x326   :  { %v16344_v20 = vpop.eup %16343  ;;  %v18786_v30 = vpop.permute.xlu1 %5591  ;;  %16369 = vrcp.f32 %v3636_v52  ;;  %22707 = vst [vmem:[#allocation15_spill] sm:$0xff] %v18806_v42 }
 0x327   :  { %v18784_v1 = vpop.eup %16345  ;;  %v18795_v53 = vpop.permute.xlu0 %5596  ;;  %16371 = vpow2.f32 %v12927_v39 }
 0x328   :  { %v16348_v6 = vpop.eup %16347  ;;  %5831 = vperm.xlu1 %14784, %v16342_v41   ;;  %5836 = vperm.xlu0 %14785, %v16344_v20   ;;  %v18809_v33 = vpop.f32.mrb[6].mxu0  ;;  %16373 = vpow2.f32 %v13084_v29 }
 0x329   :  { %v16350_v44 = vpop.eup %16349  ;;  %22709 = vst [vmem:[#allocation16_spill] sm:$0xff] %v18809_v33  ;;  %v3637_v50 = vadd.f32 1.0, %v16348_v6  ;;  %16375 = vpow2.f32 %v13082_v27  ;;  %v18820_v42 = vpop.f32.mrb[7].mxu0 }
 0x32a   :  { %v16352_v51 = vpop.eup %16351  ;;  %9261 = vmatmul.mubr.bf16.gmra.mrb[52].mxu0 %v15006_v48  ;;  %10056 = vmatmul.mubr.bf16.gmra.mrb[72].mxu1 %v15011_v7  ;;  %v18813_v52 = vpop.permute.xlu1 %5601  ;;  %16377 = vrcp.f32 %v3639_v17  ;;  %v22710_v48 = vld [vmem:[#allocation2_spill] sm:$0xff]  ;;  %22711 = vst [vmem:[#allocation17_spill] sm:$0xff] %v18820_v42  ;;  %v15020_v17 = vld [vmem:[%s22550_s3 + $0x3f4] ss:$72 sps:$4 sm:$0xff]  }
 0x32b   :  { %v18811_v41 = vpop.eup %16353  ;;  %v18815_v20 = vpop.permute.xlu0 %5606  ;;  %9268 = vmatprep.mubr.bf16.mxu0 %v15014_v18  ;;  %10063 = vmatprep.mubr.bf16.mxu1 %v15015_v10  ;;  %16379 = vpow2.f32 %v12932_v13  ;;  %v13088_v7 = vmul.f32 -1.442695, %v22710_v48 }
 0x32c   :  { %v16356_v14 = vpop.eup %16355  ;;  %5841 = vperm.xlu1 %14784, %v16350_v44   ;;  %5006 = vperm.xlu0 %14785, %v16338_v12   ;;  %16381 = vrcp.f32 %v3637_v50  ;;  %v15017_v12 = vld [vmem:[%s22550_s3 + $0xbe8] ss:$72 sps:$4 sm:$0xff]   ;;  %v18837_v10 = vpop.f32.mrb[8].mxu0  ;;  %v15021_v50 = vld [vmem:[%s22550_s3 + $0xc7c] ss:$72 sps:$4 sm:$0xff]  }
 0x32d   :  { %v16358_v39 = vpop.eup %16357  ;;  %v3642_v44 = vadd.f32 1.0, %v16356_v14  ;;  %16383 = vpow2.f32 %v13085_v45  ;;  %22712 = vst [vmem:[#allocation18_spill] sm:$0xff] %v18837_v10  ;;  %v22713_v14 = vld [vmem:[#allocation3_spill] sm:$0xff]  ;;  %v22715_v45 = vld [vmem:[#allocation4_spill] sm:$0xff] }
 0x32e   :  { %v16360_v6 = vpop.eup %16359  ;;  %v18822_v33 = vpop.permute.xlu1 %5611  ;;  %v3640_v18 = vadd.f32 1.0, %v16358_v39  ;;  %16385 = vpow2.f32 %v13083_v3  ;;  %v13086_v39 = vmul.f32 -1.442695, %v22713_v14  ;;  %v13089_v42 = vmul.f32 -1.442695, %v22715_v45  ;;  %v22717_v3 = vld [vmem:[#allocation65_spill] sm:$0xff] }
 0x32f   :  { %v16362_v29 = vpop.eup %16361  ;;  %v18832_v27 = vpop.permute.xlu0 %5616  ;;  %16387 = vpow2.f32 %v13088_v7  ;;  %v13087_v55 = vmul.f32 -1.442695, %v22717_v3  ;;  %v22718_v7 = vld [vmem:[#allocation5_spill] sm:$0xff] }
 0x330   :  { %v18830_v28 = vpop.eup %16363  ;;  %5011 = vperm.xlu1 %14784, %v16352_v51   ;;  %5016 = vperm.xlu0 %14785, %v18725_v2   ;;  %v18844_v51 = vpop.f32.mrb[9].mxu0  ;;  %16389 = vrcp.f32 %v3642_v44  ;;  %v3643_v15 = vadd.f32 1.0, %v16362_v29 }
 0x331   :  { %v16366_v13 = vpop.eup %16365  ;;  %22714 = vst [vmem:[#allocation19_spill] sm:$0xff] %v18844_v51  ;;  %v18849_v59 = vpop.f32.mrb[10].mxu0  ;;  %16391 = vrcp.f32 %v3640_v18  ;;  %v13092_v51 = vmul.f32 -1.442695, %v22718_v7 }
 0x332   :  { %v18846_v48 = vpop.eup %16367  ;;  %22716 = vst [vmem:[#allocation20_spill] sm:$0xff] %v18849_v59  ;;  %9269 = vmatmul.mubr.bf16.gmra.mrb[56].mxu0 %v15012_v47  ;;  %10064 = vmatmul.mubr.bf16.gmra.mrb[76].mxu1 %v15017_v12  ;;  %v18851_v2 = vpop.permute.xlu1 %5621  ;;  %16393 = vpow2.f32 %v13086_v39  ;;  %v13090_v47 = vmul.f32 -1.442695, %v18394_v0 }
 0x333   :  { %v16370_v10 = vpop.eup %16369  ;;  %v18855_v14 = vpop.permute.xlu0 %5626  ;;  %9276 = vmatprep.mubr.bf16.mxu0 %v15020_v17  ;;  %10071 = vmatprep.mubr.bf16.mxu1 %v15021_v50  ;;  %16395 = vpow2.f32 %v13089_v42  ;;  %v15018_v17 = vld [vmem:[%s22550_s3 + $0x3f0] ss:$72 sps:$4 sm:$0xff]  }
 0x334   :  { %v16372_v11 = vpop.eup %16371  ;;  %5021 = vperm.xlu1 %14784, %v18784_v1   ;;  %5026 = vperm.xlu0 %14785, %v16360_v6   ;;  %v18859_v12 = vpop.f32.mrb[11].mxu0  ;;  %v15023_v6 = vld [vmem:[%s22550_s3 + $0xc78] ss:$72 sps:$4 sm:$0xff]   ;;  %16397 = vpow2.f32 %v13087_v55  ;;  %v15027_v55 = vld [vmem:[%s22550_s3 + $0xd0c] ss:$72 sps:$4 sm:$0xff]  }
 0x335   :  { %v16374_v45 = vpop.eup %16373  ;;  %22719 = vst [vmem:[#allocation21_spill] sm:$0xff] %v18859_v12  ;;  %v3641_v18 = vadd.f32 1.0, %v16372_v11  ;;  %v15026_v11 = vld [vmem:[%s22550_s3 + $0x484] ss:$72 sps:$4 sm:$0xff]   ;;  %16399 = vpow2.f32 %v13092_v51  ;;  %v18878_v50 = vpop.f32.mrb[12].mxu0 }
 0x336   :  { %v16376_v44 = vpop.eup %16375  ;;  %v18863_v1 = vpop.permute.xlu1 %5631  ;;  %v3798_v42 = vadd.f32 1.0, %v16374_v45  ;;  %22721 = vst [vmem:[#allocation23_spill] sm:$0xff] %v18878_v50  ;;  %16401 = vrcp.f32 %v3643_v15  ;;  %v13093_v12 = vmul.f32 -1.442695, %v18397_v8 }
 0x337   :  { %v18861_v3 = vpop.eup %16377  ;;  %v18873_v0 = vpop.permute.xlu0 %5636  ;;  %v3796_v7 = vadd.f32 1.0, %v16376_v44  ;;  %16403 = vpow2.f32 %v13090_v47  ;;  %v22724_v47 = vld [vmem:[#allocation6_spill] sm:$0xff] }
 0x338   :  { %v18871_v29 = vpop.eup %16379  ;;  %5031 = vperm.xlu1 %14784, %v16366_v13   ;;  %5036 = vperm.xlu0 %14785, %v18811_v41   ;;  %v18884_v45 = vpop.f32.mrb[13].mxu0  ;;  %16405 = vrcp.f32 %v3641_v18  ;;  %v13091_v41 = vmul.f32 -1.442695, %v18407_v4 }
 0x339   :  { %22720 = vst [vmem:[#allocation22_spill] sm:$0xff] %v18871_v29  ;;  %v16382_v39 = vpop.eup %16381  ;;  %22722 = vst [vmem:[#allocation2_spill] sm:$0xff] %v18884_v45  ;;  %v18887_v59 = vpop.f32.mrb[14].mxu0  ;;  %16407 = vrcp.f32 %v3798_v42  ;;  %v13096_v45 = vmul.f32 -1.442695, %v22724_v47 }
 0x33a   :  { %v16384_v13 = vpop.eup %16383  ;;  %22723 = vst [vmem:[#allocation3_spill] sm:$0xff] %v18887_v59  ;;  %9277 = vmatmul.mubr.bf16.gmra.mrb[60].mxu0 %v15018_v17  ;;  %10072 = vmatmul.mubr.bf16.gmra.mrb[80].mxu1 %v15023_v6  ;;  %v18889_v15 = vpop.permute.xlu1 %5641  ;;  %16409 = vrcp.f32 %v3796_v7 }
 0x33b   :  { %v16386_v51 = vpop.eup %16385  ;;  %v18893_v50 = vpop.permute.xlu0 %5646  ;;  %9284 = vmatprep.mubr.bf16.mxu0 %v15026_v11  ;;  %v3799_v59 = vadd.f32 1.0, %v16384_v13  ;;  %10079 = vmatprep.mubr.bf16.mxu1 %v15027_v55  ;;  %16411 = vpow2.f32 %v13093_v12  ;;  %v15029_v11 = vld [vmem:[%s22550_s3 + $0xd08] ss:$72 sps:$4 sm:$0xff]   ;;  %v15032_v12 = vld [vmem:[%s22550_s3 + $0x514] ss:$72 sps:$4 sm:$0xff]  }
 0x33c   :  { %v16388_v44 = vpop.eup %16387  ;;  %5041 = vperm.xlu1 %14784, %v18830_v28   ;;  %5046 = vperm.xlu0 %14785, %v16370_v10   ;;  %v3797_v17 = vadd.f32 1.0, %v16386_v51  ;;  %v18898_v6 = vpop.f32.mrb[15].mxu0  ;;  %v15024_v28 = vld [vmem:[%s22550_s3 + $0x480] ss:$72 sps:$4 sm:$0xff]   ;;  %16413 = vpow2.f32 %v13091_v41  ;;  %v13094_v55 = vmul.f32 -1.442695, %v18431_v57 }
 0x33d   :  { %v18896_v8 = vpop.eup %16389  ;;  %22725 = vst [vmem:[#allocation4_spill] sm:$0xff] %v18898_v6  ;;  %v3802_v42 = vadd.f32 1.0, %v16388_v44  ;;  %16415 = vpow2.f32 %v13096_v45  ;;  %v18914_v13 = vpop.f32.mrb[16].mxu0  ;;  %v15035_v41 = vld [vmem:[%s22550_s3 + $0x24] ss:$72 sps:$4 sm:$0xff]  }
 0x33e   :  { %v16392_v18 = vpop.eup %16391  ;;  %v18900_v9 = vpop.permute.xlu1 %5651  ;;  %22726 = vst [vmem:[#allocation65_spill] sm:$0xff] %v18914_v13  ;;  %16417 = vrcp.f32 %v3799_v59  ;;  %v4597_v59 = vld [vmem:[%s22549_s2 + $0x508] sm:$0xff] }
 0x33f   :  { %v16394_v4 = vpop.eup %16393  ;;  %v18908_v7 = vpop.permute.xlu0 %5656  ;;  %16419 = vrcp.f32 %v3797_v17 }
 0x340   :  { %v16396_v10 = vpop.eup %16395  ;;  %5051 = vperm.xlu1 %14784, %v16382_v39   ;;  %5056 = vperm.xlu0 %14785, %v18846_v48   ;;  %v13097_v39 = vmul.f32 -1.442695, %v18436_v58  ;;  %v18921_v44 = vpop.f32.mrb[17].mxu0  ;;  %v3800_v6 = vadd.f32 1.0, %v16394_v4  ;;  %16421 = vrcp.f32 %v3802_v42  ;;  %v4596_v4 = vld [vmem:[%s22549_s2 + $0x500] sm:$0xff] }
 0x341   :  { %v16398_v51 = vpop.eup %16397  ;;  %22727 = vst [vmem:[#allocation5_spill] sm:$0xff] %v18921_v44  ;;  %v18923_v45 = vpop.f32.mrb[18].mxu0  ;;  %v3803_v48 = vadd.f32 1.0, %v16396_v10  ;;  %16423 = vpow2.f32 %v13094_v55  ;;  %v4599_v55 = vld [vmem:[%s22549_s2 + $0x518] sm:$0xff] }
 0x342   :  { %v16400_v47 = vpop.eup %16399  ;;  %22728 = vst [vmem:[#allocation6_spill] sm:$0xff] %v18923_v45  ;;  %9285 = vmatmul.mubr.bf16.gmra.mrb[64].mxu0 %v15024_v28  ;;  %10080 = vmatmul.mubr.bf16.gmra.mrb[84].mxu1 %v15029_v11  ;;  %v18928_v13 = vpop.permute.xlu1 %5661  ;;  %v3801_v58 = vadd.f32 1.0, %v16398_v51  ;;  %16425 = vpow2.f32 %v13097_v39  ;;  %v6325_v28 = vmul.f32 %v18700_v43, %v4597_v59  ;;  %v22730_v11 = vld [vmem:[#allocation7_spill] sm:$0xff]  ;;  %v22733_v59 = vld [vmem:[#allocation8_spill] sm:$0xff] }
 0x343   :  { %v16402_v57 = vpop.eup %16401  ;;  %v18931_v44 = vpop.permute.xlu0 %5666  ;;  %9292 = vmatprep.mubr.bf16.mxu0 %v15032_v12  ;;  %v3806_v45 = vadd.f32 1.0, %v16400_v47  ;;  %10120 = vmatprep.mubr.bf16.mxu1 %v15035_v41  ;;  %16427 = vrcp.f32 %v3800_v6  ;;  %v15033_v43 = vld [vmem:[%s22550_s3 + $0x20] ss:$72 sps:$4 sm:$0xff]   ;;  %v6324_v41 = vmul.f32 %v18695_v24, %v4596_v4  ;;  %v13098_v24 = vmul.f32 -1.442695, %v18478_v38 }
 0x344   :  { %v16404_v29 = vpop.eup %16403  ;;  %5061 = vperm.xlu1 %14784, %v18861_v3   ;;  %22729 = vst [vmem:[#allocation66_spill] sm:$0xff] %v18931_v44  ;;  %5066 = vperm.xlu0 %14785, %v16392_v18   ;;  %v13095_v3 = vmul.f32 -1.442695, %v22730_v11  ;;  %v18940_v10 = vpop.f32.mrb[19].mxu0  ;;  %16429 = vrcp.f32 %v3803_v48  ;;  %v15030_v18 = vld [vmem:[%s22550_s3 + $0x510] ss:$72 sps:$4 sm:$0xff]   ;;  %v6327_v4 = vmul.f32 %v18719_v63, %v4599_v55 }
 0x345   :  { %v16406_v17 = vpop.eup %16405  ;;  %22731 = vst [vmem:[#allocation7_spill] sm:$0xff] %v18940_v10  ;;  %v3804_v51 = vadd.f32 1.0, %v16404_v29  ;;  %16431 = vrcp.f32 %v3801_v58  ;;  %v13100_v48 = vmul.f32 -1.442695, %v22733_v59  ;;  %v4598_v11 = vld [vmem:[%s22549_s2 + $0x510] sm:$0xff]  ;;  %v4601_v44 = vld [vmem:[%s22549_s2 + $0x528] sm:$0xff] }
 0x346   :  { %v18936_v42 = vpop.eup %16407  ;;  %v18945_v47 = vpop.permute.xlu1 %5671  ;;  %16433 = vrcp.f32 %v3806_v45  ;;  %v15038_v10 = vld [vmem:[%s22550_s3 + $0x5a4] ss:$72 sps:$4 sm:$0xff]   ;;  %v15039_v59 = vld [vmem:[%s22550_s3 + $0xb4] ss:$72 sps:$4 sm:$0xff]  }
 0x347   :  { %v16410_v12 = vpop.eup %16409  ;;  %v18954_v39 = vpop.permute.xlu0 %5676  ;;  %16435 = vpow2.f32 %v13095_v3  ;;  %v6326_v3 = vmul.f32 %v18708_v56, %v4598_v11  ;;  %v4477_v56 = vld [vmem:[%s22549_s2 + $0x148] sm:$0xff]  ;;  %v4603_v11 = vld [vmem:[%s22549_s2 + $0x538] sm:$0xff] }
 0x348   :  { %v16412_v6 = vpop.eup %16411  ;;  %5071 = vperm.xlu1 %14784, %v16406_v17   ;;  %22732 = vst [vmem:[#allocation67_spill] sm:$0xff] %v18954_v39  ;;  %5076 = vperm.xlu0 %14785, %v18896_v8   ;;  %v6532_v17 = vpack.c.bf16 %v6325_v28, %v6324_v41  ;;  %v13101_v39 = vmul.f32 -1.442695, %v18483_v32  ;;  %v18970_v45 = vpop.f32.mrb[20].mxu0  ;;  %16437 = vrcp.f32 %v3804_v51  ;;  %v4600_v51 = vld [vmem:[%s22549_s2 + $0x520] sm:$0xff] }
 0x349   :  { %v16414_v29 = vpop.eup %16413  ;;  %22734 = vst [vmem:[#allocation8_spill] sm:$0xff] %v18970_v45  ;;  %v3807_v38 = vadd.f32 1.0, %v16412_v6  ;;  %16439 = vpow2.f32 %v13100_v48  ;;  %v18980_v41 = vpop.f32.mrb[21].mxu0  ;;  %v6533_v48 = vpack.c.bf16 %v6327_v4, %v6326_v3 }
 0x34a   :  { %v16416_v58 = vpop.eup %16415  ;;  %9293 = vmatmul.mubr.bf16.gmra.mrb[68].mxu0 %v15030_v18  ;;  %10121 = vmatmul.mubr.bf16.vlgmr.msra.gmra.mrb[88].mxu1 %v15033_v43  ;;  %v18977_v63 = vpop.permute.xlu1 %5681  ;;  %v3805_v55 = vadd.f32 1.0, %v16414_v29  ;;  %v4476_v43 = vld [vmem:[%s22549_s2 + $0x140] sm:$0xff]  ;;  %16441 = vpow2.f32 %v13098_v24  ;;  %v6329_v29 = vmul.f32 %v18727_v23, %v4601_v44  ;;  %v15041_v23 = vld [vmem:[%s22550_s3 + $0xb0] ss:$72 sps:$4 sm:$0xff]   ;;  %v13099_v44 = vmul.f32 -1.442695, %v18494_v61 }
 0x34b   :  { %v18972_v8 = vpop.eup %16417  ;;  %10314 = vmatpush1.bf16.msra.mxu1 %v6532_v17  ;;  %v4927_v32 = vpop.permute.xlu0 %4926  ;;  %v3810_v18 = vadd.f32 1.0, %v16416_v58  ;;  %9300 = vmatprep.mubr.bf16.mxu0 %v15038_v10  ;;  %16443 = vpow2.f32 %v13101_v39  ;;  %v15036_v24 = vld [vmem:[%s22550_s3 + $0x5a0] ss:$72 sps:$4 sm:$0xff]   ;;  %v6328_v10 = vmul.f32 %v18721_v16, %v4600_v51  ;;  %v4478_v61 = vld [vmem:[%s22549_s2 + $0x150] sm:$0xff]  ;;  %v4479_v16 = vld [vmem:[%s22549_s2 + $0x158] sm:$0xff] }
 0x34c   :  { %v16420_v28 = vpop.eup %16419  ;;  %5081 = vperm.xlu1 %14784, %v16402_v57   ;;  %10315 = vmatprep.subr.bf16.mxu1 %v22637_v31  ;;  %v18994_v57 = vpop.f32.mrb[22].mxu0  ;;  %16445 = vrcp.f32 %v3807_v38  ;;  %v6204_v39 = vmul.f32 %v4927_v32, %v4476_v43  ;;  %v6331_v32 = vmul.f32 %v18745_v49, %v4603_v11  ;;  %v4605_v51 = vld [vmem:[%s22549_s2 + $0x548] sm:$0xff] }
 0x34d   :  { %v18982_v45 = vpop.eup %16421  ;;  %5846 = vperm.xlu0 %14785, %v16410_v12   ;;  %22735 = vst [vmem:[#allocation68_spill] sm:$0xff] %v18994_v57  ;;  %10128 = vmatprep.mubr.bf16.mxu1 %v15039_v59  ;;  %v19000_v58 = vpop.f32.mrb[23].mxu0  ;;  %16447 = vrcp.f32 %v3805_v55  ;;  %v4602_v57 = vld [vmem:[%s22549_s2 + $0x530] sm:$0xff]  ;;  %v6534_v55 = vpack.c.bf16 %v6329_v29, %v6328_v10  ;;  %v15045_v49 = vld [vmem:[%s22550_s3 + $0x144] ss:$72 sps:$4 sm:$0xff]   ;;  %v22738_v29 = vld [vmem:[#allocation9_spill] sm:$0xff] }
 0x34e   :  { %v16424_v6 = vpop.eup %16423  ;;  %22736 = vst [vmem:[#allocation69_spill] sm:$0xff] %v19000_v58  ;;  %v4932_v17 = vpop.permute.xlu1 %4931  ;;  %16449 = vrcp.f32 %v3810_v18  ;;  %v13104_v11 = vmul.f32 -1.442695, %v22738_v29 }
 0x34f   :  { %v16426_v12 = vpop.eup %16425  ;;  %10316 = vmatpush1.bf16.msra.mxu1 %v6533_v48  ;;  %v6205_v59 = vmul.f32 %v4932_v17, %v4477_v56  ;;  %v4937_v38 = vpop.permute.xlu0 %4936  ;;  %v3808_v58 = vadd.f32 1.0, %v16424_v6  ;;  %16451 = vpow2.f32 %v13099_v44  ;;  %v15044_v48 = vld [vmem:[%s22550_s3 + $0x634] ss:$72 sps:$4 sm:$0xff]   ;;  %v6330_v17 = vmul.f32 %v18735_v36, %v4602_v57  ;;  %v4480_v36 = vld [vmem:[%s22549_s2 + $0x160] sm:$0xff] }
 0x350   :  { %v16428_v4 = vpop.eup %16427  ;;  %5851 = vperm.xlu1 %14784, %v16420_v28   ;;  %10317 = vmatprep.subr.bf16.mxu1 %v22637_v31  ;;  %v3811_v18 = vadd.f32 1.0, %v16426_v12  ;;  %v19027_v56 = vpop.f32.mrb[24].mxu0  ;;  %v6206_v10 = vmul.f32 %v4937_v38, %v4478_v61  ;;  %v13105_v57 = vmul.f32 -1.442695, %v18521_v62  ;;  %v4607_v62 = vld [vmem:[%s22549_s2 + $0x558] sm:$0xff] }
 0x351   :  { %v19010_v3 = vpop.eup %16429  ;;  %5856 = vperm.xlu0 %14785, %v18936_v42   ;;  %v6472_v43 = vpack.c.bf16 %v6205_v59, %v6204_v39  ;;  %22737 = vst [vmem:[#allocation70_spill] sm:$0xff] %v19027_v56  ;;  %v19040_v44 = vpop.f32.mrb[25].mxu0  ;;  %v4604_v56 = vld [vmem:[%s22549_s2 + $0x540] sm:$0xff]  ;;  %16453 = vrcp.f32 %v3808_v58  ;;  %v6333_v58 = vmul.f32 %v18753_v34, %v4605_v51 }
 0x352   :  { %v16432_v28 = vpop.eup %16431  ;;  %9301 = vmatmul.mubr.bf16.gmra.mrb[72].mxu0 %v15036_v24  ;;  %10129 = vmatmul.mubr.bf16.gmra.mrb[92].mxu1 %v15041_v23  ;;  %v4942_v42 = vpop.permute.xlu1 %4941  ;;  %v13102_v23 = vmul.f32 -1.442695, %v18517_v22  ;;  %v4481_v22 = vld [vmem:[%s22549_s2 + $0x168] sm:$0xff]  ;;  %16455 = vrcp.f32 %v3811_v18  ;;  %v6332_v18 = vmul.f32 %v18748_v19, %v4604_v56  ;;  %v4483_v19 = vld [vmem:[%s22549_s2 + $0x178] sm:$0xff] }
 0x353   :  { %v19029_v6 = vpop.eup %16433  ;;  %10318 = vmatpush1.bf16.msra.mxu1 %v6534_v55  ;;  %v6207_v39 = vmul.f32 %v4942_v42, %v4479_v16  ;;  %9422 = vmatpush1.bf16.msra.mxu0 %v6472_v43  ;;  %v4947_v24 = vpop.permute.xlu0 %4946  ;;  %v6535_v16 = vpack.c.bf16 %v6331_v32, %v6330_v17  ;;  %v15042_v55 = vld [vmem:[%s22550_s3 + $0x630] ss:$72 sps:$4 sm:$0xff]   ;;  %16457 = vpow2.f32 %v13104_v11  ;;  %v15047_v34 = vld [vmem:[%s22550_s3 + $0x140] ss:$72 sps:$4 sm:$0xff]  }
 0x354   :  { %v16436_v12 = vpop.eup %16435  ;;  %5861 = vperm.xlu1 %14784, %v18972_v8   ;;  %10319 = vmatprep.subr.bf16.mxu1 %v22637_v31  ;;  %v19056_v38 = vpop.f32.mrb[26].mxu0  ;;  %v6208_v17 = vmul.f32 %v4947_v24, %v4480_v36  ;;  %16459 = vpow2.f32 %v13102_v23  ;;  %v6536_v11 = vpack.c.bf16 %v6333_v58, %v6332_v18  ;;  %v6335_v24 = vmul.f32 %v18777_v5, %v4607_v62  ;;  %v15051_v5 = vld [vmem:[%s22550_s3 + $0x1d4] ss:$72 sps:$4 sm:$0xff]  }
 0x355   :  { %v19042_v59 = vpop.eup %16437  ;;  %v6473_v8 = vpack.c.bf16 %v6207_v39, %v6206_v10  ;;  %5866 = vperm.xlu0 %14785, %v16428_v4   ;;  %9423 = vmatprep.subr.bf16.mxu0 %v22637_v31  ;;  %v19063_v43 = vpop.f32.mrb[27].mxu0  ;;  %v3809_v29 = vadd.f32 1.0, %v16436_v12  ;;  %v13103_v4 = vmul.f32 -1.442695, %v18532_v37  ;;  %v4482_v37 = vld [vmem:[%s22549_s2 + $0x170] sm:$0xff]  ;;  %16461 = vpow2.f32 %v13105_v57  ;;  %v4609_v57 = vld [vmem:[%s22549_s2 + $0x568] sm:$0xff] }
 0x356   :  { %v16440_v61 = vpop.eup %16439  ;;  %v4952_v32 = vpop.permute.xlu1 %4951  ;;  %9308 = vmatprep.mubr.bf16.mxu0 %v15044_v48  ;;  %10136 = vmatprep.mubr.bf16.mxu1 %v15045_v49  ;;  %v4606_v48 = vld [vmem:[%s22549_s2 + $0x550] sm:$0xff] }
 0x357   :  { %v16442_v42 = vpop.eup %16441  ;;  %10320 = vmatpush1.bf16.msra.mxu1 %v6535_v16  ;;  %v6209_v10 = vmul.f32 %v4952_v32, %v4481_v22  ;;  %9424 = vmatpush1.bf16.msra.mxu0 %v6473_v8  ;;  %v4957_v39 = vpop.permute.xlu0 %4956  ;;  %v3814_v49 = vadd.f32 1.0, %v16440_v61  ;;  %16463 = vpow2.f32 %v13103_v4  ;;  %v6334_v58 = vmul.f32 %v18762_v35, %v4606_v48  ;;  %v4608_v8 = vld [vmem:[%s22549_s2 + $0x560] sm:$0xff]  ;;  %v4485_v35 = vld [vmem:[%s22549_s2 + $0x188] sm:$0xff] }
 0x358   :  { %v16444_v51 = vpop.eup %16443  ;;  %5871 = vperm.xlu1 %14784, %v16432_v28   ;;  %10321 = vmatprep.subr.bf16.mxu1 %v22637_v31  ;;  %v3812_v23 = vadd.f32 1.0, %v16442_v42  ;;  %v15050_v28 = vld [vmem:[%s22550_s3 + $0x6c4] ss:$72 sps:$4 sm:$0xff]   ;;  %v19100_v16 = vpop.f32.mrb[28].mxu0  ;;  %16465 = vrcp.f32 %v3809_v29  ;;  %v6210_v42 = vmul.f32 %v4957_v39, %v4482_v37  ;;  %v13108_v29 = vmul.f32 -1.442695, %v18550_v25 }
 0x359   :  { %v19073_v12 = vpop.eup %16445  ;;  %v6474_v36 = vpack.c.bf16 %v6209_v10, %v6208_v17  ;;  %5876 = vperm.xlu0 %14785, %v18982_v45   ;;  %9425 = vmatprep.subr.bf16.mxu0 %v22637_v31  ;;  %v13106_v45 = vmul.f32 -1.442695, %v18556_v26  ;;  %v19106_v32 = vpop.f32.mrb[29].mxu0  ;;  %16467 = vrcp.f32 %v3814_v49  ;;  %v3815_v4 = vadd.f32 1.0, %v16444_v51  ;;  %v4484_v26 = vld [vmem:[%s22549_s2 + $0x180] sm:$0xff] }
 0x35a   :  { %v16448_v56 = vpop.eup %16447  ;;  %9309 = vmatmul.mubr.bf16.gmra.mrb[76].mxu0 %v15042_v55  ;;  %10137 = vmatmul.mubr.bf16.gmra.mrb[0].mxu1 %v15047_v34  ;;  %v4962_v61 = vpop.permute.xlu1 %4961  ;;  %v6537_v17 = vpack.c.bf16 %v6335_v24, %v6334_v58  ;;  %v6337_v10 = vmul.f32 %v18786_v30, %v4609_v57  ;;  %16469 = vrcp.f32 %v3812_v23  ;;  %v15048_v25 = vld [vmem:[%s22550_s3 + $0x6c0] ss:$72 sps:$4 sm:$0xff]   ;;  %v15053_v30 = vld [vmem:[%s22550_s3 + $0x1d0] ss:$72 sps:$4 sm:$0xff]   ;;  %v13107_v37 = vmul.f32 -1.442695, %v18570_v46 }
 0x35b   :  { %v19091_v22 = vpop.eup %16449  ;;  %10322 = vmatpush1.bf16.msra.mxu1 %v6536_v11  ;;  %v6211_v55 = vmul.f32 %v4962_v61, %v4483_v19  ;;  %9426 = vmatpush1.bf16.msra.mxu0 %v6474_v36  ;;  %v4967_v62 = vpop.permute.xlu0 %4966  ;;  %16471 = vpow2.f32 %v13106_v45  ;;  %v6336_v19 = vmul.f32 %v18779_v40, %v4608_v8  ;;  %v4486_v46 = vld [vmem:[%s22549_s2 + $0x190] sm:$0xff]  ;;  %v4487_v40 = vld [vmem:[%s22549_s2 + $0x198] sm:$0xff]  ;;  %v13109_v61 = vmul.f32 -1.442695, %v18560_v54 }
 0x35c   :  { %v16452_v34 = vpop.eup %16451  ;;  %5881 = vperm.xlu1 %14784, %v19010_v3   ;;  %10323 = vmatprep.subr.bf16.mxu1 %v22637_v31  ;;  %v19117_v18 = vpop.f32.mrb[30].mxu0  ;;  %v4611_v3 = vld [vmem:[%s22549_s2 + $0x578] sm:$0xff]  ;;  %v6212_v24 = vmul.f32 %v4967_v62, %v4484_v26  ;;  %16473 = vrcp.f32 %v3815_v4  ;;  %v13110_v62 = vmul.f32 -1.442695, %v18589_v21  ;;  %v4488_v21 = vld [vmem:[%s22549_s2 + $0x1a0] sm:$0xff] }
 0x35d   :  { %v6475_v51 = vpack.c.bf16 %v6211_v55, %v6210_v42  ;;  %5886 = vperm.xlu0 %14785, %v19042_v59   ;;  %9427 = vmatprep.subr.bf16.mxu0 %v22637_v31  ;;  %v19125_v39 = vpop.f32.mrb[31].mxu0  ;;  %v16454_v48 = vpop.eup %16453  ;;  %v3813_v11 = vadd.f32 1.0, %v16452_v34  ;;  %v6538_v45 = vpack.c.bf16 %v6337_v10, %v6336_v19  ;;  %v6339_v58 = vmul.f32 %v18813_v52, %v4611_v3  ;;  %v15056_v54 = vld [vmem:[%s22550_s3 + $0x754] ss:$72 sps:$4 sm:$0xff]   ;;  %v15057_v52 = vld [vmem:[%s22550_s3 + $0x264] ss:$72 sps:$4 sm:$0xff]  }
 0x35e   :  { %v4972_v49 = vpop.permute.xlu1 %4971  ;;  %9316 = vmatprep.mubr.bf16.mxu0 %v15050_v28  ;;  %10144 = vmatprep.mubr.bf16.mxu1 %v15051_v5  ;;  %v19134_v59 = vpop.eup %16455  ;;  %v4610_v28 = vld [vmem:[%s22549_s2 + $0x570] sm:$0xff]  ;;  %16475 = vpow2.f32 %v13108_v29  ;;  %v4612_v10 = vld [vmem:[%s22549_s2 + $0x580] sm:$0xff] }
 0x35f   :  { %10324 = vmatpush1.bf16.msra.mxu1 %v6537_v17  ;;  %v6213_v23 = vmul.f32 %v4972_v49, %v4485_v35  ;;  %9428 = vmatpush1.bf16.msra.mxu0 %v6475_v51  ;;  %v4977_v36 = vpop.permute.xlu0 %4976  ;;  %v19137_v57 = vpop.eup %16457  ;;  %16477 = vpow2.f32 %v13107_v37  ;;  %v22739_v29 = vld [vmem:[#allocation24_spill] sm:$0xff]  ;;  %v22740_v37 = vld [vmem:[#allocation10_spill] sm:$0xff] }
 0x360   :  { %5891 = vperm.xlu1 %14784, %v16448_v56   ;;  %10325 = vmatprep.subr.bf16.mxu1 %v22637_v31  ;;  %v16460_v5 = vpop.eup %16459  ;;  %v4613_v56 = vld [vmem:[%s22549_s2 + $0x588] sm:$0xff]  ;;  %16479 = vrcp.f32 %v3813_v11  ;;  %v6214_v34 = vmul.f32 %v4977_v36, %v4486_v46  ;;  %v19165_v17 = vmul.f32 -1.442695, %v22739_v29  ;;  %v13112_v19 = vmul.f32 -1.442695, %v22740_v37 }
 0x361   :  { %v6476_v8 = vpack.c.bf16 %v6213_v23, %v6212_v24  ;;  %5896 = vperm.xlu0 %14785, %v19029_v6   ;;  %9429 = vmatprep.subr.bf16.mxu0 %v22637_v31  ;;  %v16462_v42 = vpop.eup %16461  ;;  %v6338_v6 = vmul.f32 %v18795_v53, %v4610_v28  ;;  %v3816_v3 = vadd.f32 1.0, %v16460_v5  ;;  %16481 = vpow2.f32 %v13109_v61  ;;  %v4489_v53 = vld [vmem:[%s22549_s2 + $0x1a8] sm:$0xff]  ;;  %v15054_v23 = vld [vmem:[%s22550_s3 + $0x750] ss:$72 sps:$4 sm:$0xff]  }
 0x362   :  { %9317 = vmatmul.mubr.bf16.gmra.mrb[80].mxu0 %v15048_v25  ;;  %10145 = vmatmul.mubr.bf16.gmra.mrb[4].mxu1 %v15053_v30  ;;  %v4982_v55 = vpop.permute.xlu1 %4981  ;;  %v16464_v35 = vpop.eup %16463  ;;  %v6341_v25 = vmul.f32 %v18822_v33, %v4613_v56  ;;  %v4615_v30 = vld [vmem:[%s22549_s2 + $0x598] sm:$0xff]  ;;  %v15059_v33 = vld [vmem:[%s22550_s3 + $0x260] ss:$72 sps:$4 sm:$0xff]   ;;  %16483 = vpow2.f32 %v13110_v62  ;;  %v6340_v28 = vmul.f32 %v18815_v20, %v4612_v10  ;;  %v3818_v56 = vadd.f32 1.0, %v19137_v57 }
 0x363   :  { %10326 = vmatpush1.bf16.msra.mxu1 %v6538_v45  ;;  %v6215_v4 = vmul.f32 %v4982_v55, %v4487_v40  ;;  %9430 = vmatpush1.bf16.msra.mxu0 %v6476_v8  ;;  %v4987_v26 = vpop.permute.xlu0 %4986  ;;  %v16466_v51 = vpop.eup %16465  ;;  %v6539_v49 = vpack.c.bf16 %v6339_v58, %v6338_v6  ;;  %v3817_v46 = vadd.f32 1.0, %v16464_v35  ;;  %v4614_v58 = vld [vmem:[%s22549_s2 + $0x590] sm:$0xff]  ;;  %16485 = vrcp.f32 %v3816_v3  ;;  %v4491_v20 = vld [vmem:[%s22549_s2 + $0x1b8] sm:$0xff]  ;;  %v4617_v57 = vld [vmem:[%s22549_s2 + $0x5a8] sm:$0xff] }
 0x364   :  { %5901 = vperm.xlu1 %14784, %v19073_v12   ;;  %10327 = vmatprep.subr.bf16.mxu1 %v22637_v31  ;;  %v19184_v11 = vpop.eup %16467  ;;  %v6216_v40 = vmul.f32 %v4987_v26, %v4488_v21  ;;  %v3819_v8 = vadd.f32 1.0, %v16462_v42  ;;  %v6540_v55 = vpack.c.bf16 %v6341_v25, %v6340_v28  ;;  %16487 = vpow2.f32 %v13112_v19  ;;  %v22741_v6 = vld [vmem:[#allocation11_spill] sm:$0xff]  ;;  %v22742_v21 = vld [vmem:[#allocation25_spill] sm:$0xff]  ;;  %v4616_v25 = vld [vmem:[%s22549_s2 + $0x5a0] sm:$0xff] }
 0x365   :  { %v6477_v12 = vpack.c.bf16 %v6215_v4, %v6214_v34  ;;  %5906 = vperm.xlu0 %14785, %v16454_v48   ;;  %9431 = vmatprep.subr.bf16.mxu0 %v22637_v31  ;;  %v13111_v48 = vmul.f32 -1.442695, %v18603_v60  ;;  %v16470_v36 = vpop.eup %16469  ;;  %v4490_v60 = vld [vmem:[%s22549_s2 + $0x1b0] sm:$0xff]  ;;  %v13113_v34 = vmul.f32 -1.442695, %v22741_v6  ;;  %v6342_v26 = vmul.f32 %v18832_v27, %v4614_v58  ;;  %v22746_v6 = vld [vmem:[#allocation29_spill] sm:$0xff] }
 0x366   :  { %v4992_v24 = vpop.permute.xlu1 %4991  ;;  %9324 = vmatprep.mubr.bf16.mxu0 %v15056_v54  ;;  %10152 = vmatprep.mubr.bf16.mxu1 %v15057_v52  ;;  %v16472_v45 = vpop.eup %16471  ;;  %v6343_v54 = vmul.f32 %v18851_v2, %v4615_v30  ;;  %v15062_v2 = vld [vmem:[%s22550_s3 + $0x7e4] ss:$72 sps:$4 sm:$0xff]   ;;  %v15063_v4 = vld [vmem:[%s22550_s3 + $0x2f4] ss:$72 sps:$4 sm:$0xff]   ;;  %v6345_v37 = vmul.f32 %v18863_v1, %v4617_v57  ;;  %v15065_v1 = vld [vmem:[%s22550_s3 + $0x2f0] ss:$72 sps:$4 sm:$0xff]  }
 0x367   :  { %10328 = vmatpush1.bf16.msra.mxu1 %v6539_v49  ;;  %v6217_v61 = vmul.f32 %v4992_v24, %v4489_v53  ;;  %9432 = vmatpush1.bf16.msra.mxu0 %v6477_v12  ;;  %v4997_v5 = vpop.permute.xlu0 %4996  ;;  %v19211_v42 = vpop.eup %16473  ;;  %16489 = vpow2.f32 %v13111_v48  ;;  %v12933_v53 = vmul.f32 -1.442695, %v22742_v21  ;;  %v3820_v30 = vadd.f32 1.0, %v16472_v45  ;;  %v15068_v28 = vld [vmem:[%s22550_s3 + $0x874] ss:$72 sps:$4 sm:$0xff]  }
 0x368   :  { %5911 = vperm.xlu1 %14784, %v16466_v51   ;;  %10329 = vmatprep.subr.bf16.mxu1 %v22637_v31  ;;  %16491 = vrcp.f32 %v3817_v46  ;;  %v6218_v35 = vmul.f32 %v4997_v5, %v4490_v60  ;;  %v22743_v51 = vld [vmem:[#allocation26_spill] sm:$0xff]  ;;  %v6541_v12 = vpack.c.bf16 %v6343_v54, %v6342_v26  ;;  %v22745_v60 = vld [vmem:[#allocation28_spill] sm:$0xff]  ;;  %v4623_v21 = vld [vmem:[%s22549_s2 + $0x5d8] sm:$0xff] }
 0x369   :  { %v6478_v52 = vpack.c.bf16 %v6217_v61, %v6216_v40  ;;  %5916 = vperm.xlu0 %14785, %v19091_v22   ;;  %9433 = vmatprep.subr.bf16.mxu0 %v22637_v31  ;;  %v16476_v22 = vpop.eup %16475  ;;  %v12931_v49 = vmul.f32 -1.442695, %v22743_v51  ;;  %16493 = vrcp.f32 %v3818_v56  ;;  %v4618_v40 = vld [vmem:[%s22549_s2 + $0x5b0] sm:$0xff]  ;;  %v15069_v56 = vld [vmem:[%s22550_s3 + $0x384] ss:$72 sps:$4 sm:$0xff]  }
 0x36a   :  { %9325 = vmatmul.mubr.bf16.gmra.mrb[84].mxu0 %v15054_v23  ;;  %10153 = vmatmul.mubr.bf16.gmra.mrb[8].mxu1 %v15059_v33  ;;  %v16478_v3 = vpop.eup %16477  ;;  %16495 = vpow2.f32 %v19165_v17  ;;  %v4619_v23 = vld [vmem:[%s22549_s2 + $0x5b8] sm:$0xff]  ;;  %v6344_v17 = vmul.f32 %v18855_v14, %v4616_v25  ;;  %v3822_v61 = vadd.f32 1.0, %v16476_v22  ;;  %v22744_v14 = vld [vmem:[#allocation27_spill] sm:$0xff]  ;;  %v22747_v22 = vld [vmem:[#allocation30_spill] sm:$0xff] }
 0x36b   :  { %v5002_v62 = vpop.permute.xlu1 %5001  ;;  %10330 = vmatpush1.bf16.msra.mxu1 %v6540_v55  ;;  %9434 = vmatpush1.bf16.msra.mxu0 %v6478_v52  ;;  %v19221_v10 = vpop.permute.xlu0 %5686  ;;  %16497 = vpow2.f32 %v13113_v34  ;;  %v3821_v48 = vadd.f32 1.0, %v16478_v3  ;;  %v12936_v5 = vmul.f32 -1.442695, %v22744_v14  ;;  %v6347_v58 = vmul.f32 %v18889_v15, %v4619_v23  ;;  %v4621_v55 = vld [vmem:[%s22549_s2 + $0x5c8] sm:$0xff] }
 0x36c   :  { %v6219_v29 = vmul.f32 %v5002_v62, %v4491_v20  ;;  %5921 = vperm.xlu1 %14784, %v19134_v59   ;;  %10331 = vmatprep.subr.bf16.mxu1 %v22637_v31  ;;  %v16480_v27 = vpop.eup %16479  ;;  %v15060_v59 = vld [vmem:[%s22550_s3 + $0x7e0] ss:$72 sps:$4 sm:$0xff]   ;;  %16499 = vrcp.f32 %v3819_v8  ;;  %v6542_v45 = vpack.c.bf16 %v6345_v37, %v6344_v17  ;;  %v12934_v20 = vmul.f32 -1.442695, %v22745_v60  ;;  %v4622_v37 = vld [vmem:[%s22549_s2 + $0x5d0] sm:$0xff] }
 0x36d   :  { %5926 = vperm.xlu0 %14785, %v16470_v36   ;;  %9435 = vmatprep.subr.bf16.mxu0 %v22637_v31  ;;  %v16482_v24 = vpop.eup %16481  ;;  %16501 = vrcp.f32 %v3820_v30  ;;  %v12937_v34 = vmul.f32 -1.442695, %v22746_v6  ;;  %v12935_v26 = vmul.f32 -1.442695, %v22747_v22  ;;  %v15071_v51 = vld [vmem:[%s22550_s3 + $0x380] ss:$72 sps:$4 sm:$0xff]  }
 0x36e   :  { %v6479_v19 = vpack.c.bf16 %v6219_v29, %v6218_v35  ;;  %9332 = vmatprep.mubr.bf16.mxu0 %v15062_v2  ;;  %10160 = vmatprep.mubr.bf16.mxu1 %v15063_v4  ;;  %v16484_v46 = vpop.eup %16483  ;;  %16503 = vpow2.f32 %v12933_v53  ;;  %v3823_v57 = vadd.f32 1.0, %v16482_v24  ;;  %v4620_v2 = vld [vmem:[%s22549_s2 + $0x5c0] sm:$0xff]  ;;  %v6349_v29 = vmul.f32 %v18900_v9, %v4621_v55  ;;  %v22748_v24 = vld [vmem:[#allocation31_spill] sm:$0xff]  ;;  %v15075_v17 = vld [vmem:[%s22550_s3 + $0x414] ss:$72 sps:$4 sm:$0xff]  }
 0x36f   :  { %v19236_v33 = vpop.permute.xlu1 %5691  ;;  %10332 = vmatpush1.bf16.msra.mxu1 %v6541_v12  ;;  %v19245_v36 = vpop.permute.xlu0 %5696  ;;  %16505 = vpow2.f32 %v12931_v49  ;;  %v3824_v4 = vadd.f32 1.0, %v16484_v46  ;;  %v6348_v9 = vmul.f32 %v18893_v50, %v4620_v2  ;;  %v12940_v23 = vmul.f32 -1.442695, %v22748_v24  ;;  %v4624_v60 = vld [vmem:[%s22549_s2 + $0x5e0] sm:$0xff]  ;;  %v4627_v6 = vld [vmem:[%s22549_s2 + $0x5f8] sm:$0xff] }
 0x370   :  { %9436 = vmatpush1.bf16.msra.mxu0 %v6479_v19  ;;  %5931 = vperm.xlu1 %14784, %v16480_v27   ;;  %v16486_v8 = vpop.eup %16485  ;;  %16507 = vrcp.f32 %v3821_v48  ;;  %v15074_v27 = vld [vmem:[%s22550_s3 + $0x904] ss:$72 sps:$4 sm:$0xff]   ;;  %v15072_v2 = vld [vmem:[%s22550_s3 + $0x900] ss:$72 sps:$4 sm:$0xff]  }
 0x371   :  { %10333 = vmatprep.subr.bf16.mxu1 %v22637_v31  ;;  %5936 = vperm.xlu0 %14785, %v19184_v11   ;;  %v16488_v15 = vpop.eup %16487  ;;  %v6346_v11 = vmul.f32 %v18873_v0, %v4618_v40  ;;  %16509 = vrcp.f32 %v3822_v61  ;;  %v4625_v40 = vld [vmem:[%s22549_s2 + $0x5e8] sm:$0xff] }
 0x372   :  { %9437 = vmatprep.subr.bf16.mxu0 %v22637_v31  ;;  %9333 = vmatmul.mubr.bf16.gmra.mrb[88].mxu0 %v15060_v59  ;;  %v16490_v62 = vpop.eup %16489  ;;  %16511 = vpow2.f32 %v12936_v5  ;;  %v3826_v19 = vadd.f32 1.0, %v16488_v15  ;;  %v6544_v59 = vpack.c.bf16 %v6349_v29, %v6348_v9 }
 0x373   :  { %10161 = vmatmul.mubr.bf16.gmra.mrb[12].mxu1 %v15065_v1  ;;  %v19265_v54 = vpop.permute.xlu1 %5701  ;;  %v19268_v52 = vpop.permute.xlu0 %5706  ;;  %9340 = vmatprep.mubr.bf16.mxu0 %v15068_v28  ;;  %v6543_v35 = vpack.c.bf16 %v6347_v58, %v6346_v11  ;;  %16513 = vpow2.f32 %v12934_v20  ;;  %v3825_v25 = vadd.f32 1.0, %v16490_v62  ;;  %v6351_v1 = vmul.f32 %v18928_v13, %v4623_v21  ;;  %v22749_v28 = vld [vmem:[#allocation32_spill] sm:$0xff] }
 0x374   :  { %10334 = vmatpush1.bf16.msra.mxu1 %v6542_v45  ;;  %5941 = vperm.xlu1 %14784, %v19211_v42   ;;  %v16492_v0 = vpop.eup %16491  ;;  %v15066_v42 = vld [vmem:[%s22550_s3 + $0x870] ss:$72 sps:$4 sm:$0xff]   ;;  %16515 = vrcp.f32 %v3823_v57  ;;  %v12938_v46 = vmul.f32 -1.442695, %v22749_v28  ;;  %v6350_v13 = vmul.f32 %v18908_v7, %v4622_v37  ;;  %v6353_v11 = vmul.f32 %v18945_v47, %v4625_v40 }
 0x375   :  { %10335 = vmatprep.subr.bf16.mxu1 %v22637_v31  ;;  %5946 = vperm.xlu0 %14785, %v16486_v8   ;;  %v16494_v3 = vpop.eup %16493  ;;  %16517 = vrcp.f32 %v3824_v4  ;;  %v22751_v7 = vld [vmem:[#allocation33_spill] sm:$0xff]  ;;  %v22756_v40 = vld [vmem:[#allocation36_spill] sm:$0xff] }
 0x376   :  { %10168 = vmatprep.mubr.bf16.mxu1 %v15069_v56  ;;  %v16496_v49 = vpop.eup %16495  ;;  %16519 = vpow2.f32 %v12937_v34  ;;  %v22750_v56 = vld [vmem:[#allocation22_spill] sm:$0xff]  ;;  %v12941_v55 = vmul.f32 -1.442695, %v22751_v7  ;;  %v6545_v15 = vpack.c.bf16 %v6351_v1, %v6350_v13  ;;  %v15077_v4 = vld [vmem:[%s22550_s3 + $0x410] ss:$72 sps:$4 sm:$0xff]   ;;  %v22755_v1 = vld [vmem:[#allocation67_spill] sm:$0xff] }
 0x377   :  { %v19281_v53 = vpop.permute.xlu1 %5711  ;;  %v19290_v30 = vpop.permute.xlu0 %5716  ;;  %16521 = vpow2.f32 %v12935_v26  ;;  %v3646_v8 = vadd.f32 1.0, %v22750_v56  ;;  %v3644_v62 = vadd.f32 1.0, %v16496_v49  ;;  %v22753_v26 = vld [vmem:[#allocation66_spill] sm:$0xff] }
 0x378   :  { %10336 = vmatpush1.bf16.msra.mxu1 %v6543_v35  ;;  %v16498_v12 = vpop.eup %16497  ;;  %5951 = vperm.xlu1 %14784, %v16492_v0   ;;  %16523 = vrcp.f32 %v3825_v25  ;;  %v22752_v0 = vld [vmem:[#allocation34_spill] sm:$0xff]  ;;  %v6352_v35 = vmul.f32 %v22753_v26, %v4624_v60 }
 0x379   :  { %10337 = vmatprep.subr.bf16.mxu1 %v22637_v31  ;;  %v16500_v50 = vpop.eup %16499  ;;  %5956 = vperm.xlu0 %14785, %v16494_v3   ;;  %v3827_v5 = vadd.f32 1.0, %v16498_v12  ;;  %16525 = vrcp.f32 %v3826_v19  ;;  %v12939_v22 = vmul.f32 -1.442695, %v22752_v0  ;;  %v15080_v3 = vld [vmem:[%s22550_s3 + $0x994] ss:$72 sps:$4 sm:$0xff]   ;;  %v22754_v19 = vld [vmem:[#allocation35_spill] sm:$0xff] }
 0x37a   :  { %v16502_v48 = vpop.eup %16501  ;;  %9341 = vmatmul.mubr.bf16.gmra.mrb[92].mxu0 %v15066_v42  ;;  %16527 = vpow2.f32 %v12940_v23  ;;  %v6546_v25 = vpack.c.bf16 %v6353_v11, %v6352_v35  ;;  %v15081_v12 = vld [vmem:[%s22550_s3 + $0x4a4] ss:$72 sps:$4 sm:$0xff]   ;;  %v15083_v60 = vld [vmem:[%s22550_s3 + $0x4a0] ss:$72 sps:$4 sm:$0xff]  }
 0x37b   :  { %10169 = vmatmul.mubr.bf16.gmra.mrb[16].mxu1 %v15071_v51  ;;  %v19308_v61 = vpop.permute.xlu1 %5721  ;;  %v16504_v14 = vpop.eup %16503  ;;  %9348 = vmatprep.mubr.bf16.mxu0 %v15074_v27  ;;  %16529 = vpow2.f32 %v12938_v46  ;;  %v4626_v51 = vld [vmem:[%s22549_s2 + $0x5f0] sm:$0xff]  ;;  %v6355_v27 = vmul.f32 %v18977_v63, %v4627_v6  ;;  %v22757_v7 = vld [vmem:[#allocation38_spill] sm:$0xff] }
 0x37c   :  { %10338 = vmatpush1.bf16.msra.mxu1 %v6544_v59  ;;  %v19311_v45 = vpop.permute.xlu0 %5726  ;;  %v16506_v58 = vpop.eup %16505  ;;  %5961 = vperm.xlu1 %14784, %v16500_v50   ;;  %16531 = vrcp.f32 %v3827_v5  ;;  %v3647_v42 = vadd.f32 1.0, %v16504_v14  ;;  %v12944_v50 = vmul.f32 -1.442695, %v22754_v19  ;;  %v12942_v14 = vmul.f32 -1.442695, %v22756_v40 }
 0x37d   :  { %10339 = vmatprep.subr.bf16.mxu1 %v22637_v31  ;;  %v16508_v20 = vpop.eup %16507  ;;  %5966 = vperm.xlu0 %14785, %v16502_v48   ;;  %16533 = vrcp.f32 %v3646_v8  ;;  %v3645_v9 = vadd.f32 1.0, %v16506_v58  ;;  %v15078_v8 = vld [vmem:[%s22550_s3 + $0x990] ss:$72 sps:$4 sm:$0xff]   ;;  %v15086_v11 = vld [vmem:[%s22550_s3 + $0xa24] ss:$72 sps:$4 sm:$0xff]  }
 0x37e   :  { %10176 = vmatprep.mubr.bf16.mxu1 %v15075_v17  ;;  %v16510_v57 = vpop.eup %16509  ;;  %16535 = vpow2.f32 %v12941_v55  ;;  %v6354_v17 = vmul.f32 %v22755_v1, %v4626_v51  ;;  %v12943_v55 = vmul.f32 -1.442695, %v22757_v7  ;;  %v22759_v51 = vld [vmem:[#allocation39_spill] sm:$0xff]  ;;  %v22761_v1 = vld [vmem:[#allocation42_spill] sm:$0xff] }
 0x37f   :  { %v19323_v34 = vpop.permute.xlu1 %5731  ;;  %v16512_v47 = vpop.eup %16511  ;;  %16537 = vrcp.f32 %v3644_v62 }
 0x380   :  { %10340 = vmatpush1.bf16.msra.mxu1 %v6545_v15  ;;  %v19333_v29 = vpop.permute.xlu0 %5736  ;;  %v16514_v21 = vpop.eup %16513  ;;  %5971 = vperm.xlu1 %14784, %v16508_v20   ;;  %v3650_v59 = vadd.f32 1.0, %v16512_v47  ;;  %16539 = vpow2.f32 %v12939_v22  ;;  %v6547_v13 = vpack.c.bf16 %v6355_v27, %v6354_v17  ;;  %v12947_v17 = vmul.f32 -1.442695, %v22761_v1  ;;  %v22767_v1 = vld [vmem:[#allocation64_spill] sm:$0xff] }
 0x381   :  { %10341 = vmatprep.subr.bf16.mxu1 %v22637_v31  ;;  %v16516_v49 = vpop.eup %16515  ;;  %5976 = vperm.xlu0 %14785, %v16510_v57   ;;  %16541 = vrcp.f32 %v3647_v42  ;;  %v3648_v28 = vadd.f32 1.0, %v16514_v21  ;;  %v15087_v57 = vld [vmem:[%s22550_s3 + $0x534] ss:$72 sps:$4 sm:$0xff]  }
 0x382   :  { %v16518_v37 = vpop.eup %16517  ;;  %9349 = vmatmul.mubr.bf16.gmra.mrb[96].mxu0 %v15072_v2  ;;  %16543 = vrcp.f32 %v3645_v9 }
 0x383   :  { %10177 = vmatmul.mubr.bf16.gmra.mrb[20].mxu1 %v15077_v4  ;;  %v19347_v24 = vpop.permute.xlu1 %5741  ;;  %v16520_v23 = vpop.eup %16519  ;;  %9356 = vmatprep.mubr.bf16.mxu0 %v15080_v3  ;;  %16545 = vpow2.f32 %v12944_v50  ;;  %v22758_v4 = vld [vmem:[#allocation37_spill] sm:$0xff]  ;;  %v15084_v50 = vld [vmem:[%s22550_s3 + $0xa20] ss:$72 sps:$4 sm:$0xff]  }
 0x384   :  { %10342 = vmatpush1.bf16.msra.mxu1 %v6546_v25  ;;  %v19350_v63 = vpop.permute.xlu0 %5746  ;;  %v16522_v48 = vpop.eup %16521  ;;  %5981 = vperm.xlu1 %14784, %v16516_v49   ;;  %v3651_v58 = vadd.f32 1.0, %v16520_v23  ;;  %16547 = vrcp.f32 %v3650_v59  ;;  %v12945_v47 = vmul.f32 -1.442695, %v22758_v4  ;;  %v12948_v49 = vmul.f32 -1.442695, %v22759_v51  ;;  %v22760_v25 = vld [vmem:[#allocation40_spill] sm:$0xff] }
 0x385   :  { %10343 = vmatprep.subr.bf16.mxu1 %v22637_v31  ;;  %v16524_v46 = vpop.eup %16523  ;;  %5986 = vperm.xlu0 %14785, %v16518_v37   ;;  %16549 = vrcp.f32 %v3648_v28  ;;  %v3649_v6 = vadd.f32 1.0, %v16522_v48  ;;  %v12946_v27 = vmul.f32 -1.442695, %v22760_v25  ;;  %v15089_v23 = vld [vmem:[%s22550_s3 + $0x530] ss:$72 sps:$4 sm:$0xff]   ;;  %v22766_v25 = vld [vmem:[#allocation63_spill] sm:$0xff] }
 0x386   :  { %10184 = vmatprep.mubr.bf16.mxu1 %v15081_v12  ;;  %v16526_v5 = vpop.eup %16525  ;;  %16551 = vpow2.f32 %v12942_v14  ;;  %v15092_v28 = vld [vmem:[%s22550_s3 + $0xab4] ss:$72 sps:$4 sm:$0xff]   ;;  %v15095_v51 = vld [vmem:[%s22550_s3 + $0x5c0] ss:$72 sps:$4 sm:$0xff]  }
 0x387   :  { %v19354_v56 = vpop.permute.xlu1 %5751  ;;  %v16528_v20 = vpop.eup %16527  ;;  %16553 = vrcp.f32 %v3651_v58 }
 0x388   :  { %10344 = vmatpush1.bf16.msra.mxu1 %v6547_v13  ;;  %v19363_v15 = vpop.permute.xlu0 %5756  ;;  %v16530_v62 = vpop.eup %16529  ;;  %5991 = vperm.xlu1 %14784, %v16524_v46   ;;  %v3654_v22 = vadd.f32 1.0, %v16528_v20  ;;  %16555 = vpow2.f32 %v12943_v55  ;;  %v15093_v46 = vld [vmem:[%s22550_s3 + $0x5c4] ss:$72 sps:$4 sm:$0xff]  }
 0x389   :  { %10538 = vmatprep.subr.bf16.mxu1 %v22637_v31  ;;  %v16532_v2 = vpop.eup %16531  ;;  %5996 = vperm.xlu0 %14785, %v16526_v5   ;;  %v3652_v3 = vadd.f32 1.0, %v16530_v62  ;;  %16557 = vrcp.f32 %v3649_v6  ;;  %v22762_v5 = vld [vmem:[#allocation41_spill] sm:$0xff]  ;;  %v22764_v6 = vld [vmem:[#allocation44_spill] sm:$0xff] }
 0x38a   :  { %v16534_v0 = vpop.eup %16533  ;;  %9357 = vmatmul.mubr.bf16.gmra.mrb[100].mxu0 %v15078_v8  ;;  %16559 = vpow2.f32 %v12945_v47  ;;  %v12949_v58 = vmul.f32 -1.442695, %v22762_v5  ;;  %v22765_v47 = vld [vmem:[#allocation46_spill] sm:$0xff] }
 0x38b   :  { %10185 = vmatmul.mubr.bf16.gmra.mrb[24].mxu1 %v15083_v60  ;;  %v19373_v26 = vpop.permute.xlu1 %5761  ;;  %v16536_v35 = vpop.eup %16535  ;;  %9364 = vmatprep.mubr.bf16.mxu0 %v15086_v11  ;;  %16561 = vrcp.f32 %v3654_v22  ;;  %v22763_v60 = vld [vmem:[#allocation43_spill] sm:$0xff] }
 0x38c   :  { %v19375_v21 = vpop.permute.xlu0 %5766  ;;  %10192 = vmatprep.mubr.bf16.mxu1 %v15087_v57  ;;  %v16538_v42 = vpop.eup %16537  ;;  %6001 = vperm.xlu1 %14784, %v16532_v2   ;;  %v3655_v37 = vadd.f32 1.0, %v16536_v35  ;;  %16563 = vrcp.f32 %v3652_v3  ;;  %v12952_v20 = vmul.f32 -1.442695, %v22763_v60  ;;  %v12950_v2 = vmul.f32 -1.442695, %v22764_v6 }
 0x38d   :  { %v16540_v9 = vpop.eup %16539  ;;  %5086 = vperm.xlu0 %14785, %v16538_v42   ;;  %16565 = vpow2.f32 %v12948_v49  ;;  %v15090_v42 = vld [vmem:[%s22550_s3 + $0xab0] ss:$72 sps:$4 sm:$0xff]  }
 0x38e   :  { %v16542_v12 = vpop.eup %16541  ;;  %v3653_v14 = vadd.f32 1.0, %v16540_v9  ;;  %16567 = vpow2.f32 %v12946_v27  ;;  %v13116_v27 = vmul.f32 -1.442695, %v22766_v25 }
 0x38f   :  { %v19379_v19 = vpop.permute.xlu1 %5771  ;;  %v16544_v59 = vpop.eup %16543  ;;  %16569 = vrcp.f32 %v3655_v37  ;;  %v15099_v37 = vld [vmem:[%s22550_s3 + $0x654] ss:$72 sps:$4 sm:$0xff]  }
 0x390   :  { %v19388_v48 = vpop.permute.xlu0 %5776  ;;  %v16546_v40 = vpop.eup %16545  ;;  %5091 = vperm.xlu1 %14784, %v16544_v59   ;;  %16571 = vpow2.f32 %v12947_v17  ;;  %v13117_v17 = vmul.f32 -1.442695, %v22767_v1 }
 0x391   :  { %v16548_v13 = vpop.eup %16547  ;;  %5096 = vperm.xlu0 %14785, %v16534_v0   ;;  %v3658_v11 = vadd.f32 1.0, %v16546_v40  ;;  %16573 = vrcp.f32 %v3653_v14  ;;  %v12951_v0 = vmul.f32 -1.442695, %v22765_v47  ;;  %v15096_v47 = vld [vmem:[%s22550_s3 + $0xb40] ss:$72 sps:$4 sm:$0xff]  }
 0x392   :  { %v16550_v8 = vpop.eup %16549  ;;  %9365 = vmatmul.mubr.bf16.gmra.mrb[104].mxu0 %v15084_v50  ;;  %16575 = vpow2.f32 %v12949_v58  ;;  %v22768_v58 = vld [vmem:[#allocation12_spill] sm:$0xff] }
 0x393   :  { %10193 = vmatmul.mubr.bf16.gmra.mrb[28].mxu1 %v15089_v23  ;;  %v19398_v7 = vpop.permute.xlu1 %5781  ;;  %v16552_v55 = vpop.eup %16551  ;;  %9372 = vmatprep.mubr.bf16.mxu0 %v15092_v28  ;;  %16577 = vpow2.f32 %v12952_v20 }
 0x394   :  { %v19400_v57 = vpop.permute.xlu0 %5786  ;;  %10200 = vmatprep.mubr.bf16.mxu1 %v15093_v46  ;;  %v16554_v62 = vpop.eup %16553  ;;  %5101 = vperm.xlu1 %14784, %v16542_v12   ;;  %v3656_v35 = vadd.f32 1.0, %v16552_v55  ;;  %16579 = vrcp.f32 %v3658_v11  ;;  %v15098_v12 = vld [vmem:[%s22550_s3 + $0xb44] ss:$72 sps:$4 sm:$0xff]  }
 0x395   :  { %v16556_v4 = vpop.eup %16555  ;;  %5106 = vperm.xlu0 %14785, %v16550_v8   ;;  %16581 = vpow2.f32 %v12950_v2  ;;  %v13114_v8 = vmul.f32 -1.442695, %v22768_v58 }
 0x396   :  { %v16558_v22 = vpop.eup %16557  ;;  %v3657_v23 = vadd.f32 1.0, %v16556_v4  ;;  %16583 = vpow2.f32 %v12951_v0  ;;  %v15101_v0 = vld [vmem:[%s22550_s3 + $0x650] ss:$72 sps:$4 sm:$0xff]  }
 0x397   :  { %v19404_v3 = vpop.permute.xlu1 %5791  ;;  %v16560_v49 = vpop.eup %16559  ;;  %16585 = vrcp.f32 %v3656_v35  ;;  %v22771_v35 = vld [vmem:[#allocation14_spill] sm:$0xff] }
 0x398   :  { %v19412_v9 = vpop.permute.xlu0 %5796  ;;  %v16562_v50 = vpop.eup %16561  ;;  %5111 = vperm.xlu1 %14784, %v16558_v22   ;;  %v3659_v46 = vadd.f32 1.0, %v16560_v49  ;;  %16587 = vpow2.f32 %v13116_v27  ;;  %v15105_v49 = vld [vmem:[%s22550_s3 + $0x6e4] ss:$72 sps:$4 sm:$0xff]  }
 0x399   :  { %v16564_v59 = vpop.eup %16563  ;;  %5116 = vperm.xlu0 %14785, %v16548_v13   ;;  %16589 = vrcp.f32 %v3657_v23  ;;  %v22769_v13 = vld [vmem:[#allocation13_spill] sm:$0xff] }
 0x39a   :  { %v16566_v28 = vpop.eup %16565  ;;  %9373 = vmatmul.mubr.bf16.gmra.mrb[108].mxu0 %v15090_v42  ;;  %v13115_v20 = vmul.f32 -1.442695, %v22769_v13  ;;  %16591 = vpow2.f32 %v13117_v17  ;;  %v13120_v42 = vmul.f32 -1.442695, %v22771_v35  ;;  %v22778_v35 = vld [vmem:[#allocation18_spill] sm:$0xff] }
 0x39b   :  { %10201 = vmatmul.mubr.bf16.gmra.mrb[32].mxu1 %v15095_v51  ;;  %v19422_v40 = vpop.permute.xlu1 %5801  ;;  %v16568_v14 = vpop.eup %16567  ;;  %9380 = vmatprep.mubr.bf16.mxu0 %v15098_v12  ;;  %v3662_v11 = vadd.f32 1.0, %v16566_v28  ;;  %16593 = vrcp.f32 %v3659_v46  ;;  %v15104_v51 = vld [vmem:[%s22550_s3 + $0xbd4] ss:$72 sps:$4 sm:$0xff]  }
 0x39c   :  { %v19424_v5 = vpop.permute.xlu0 %5806  ;;  %10208 = vmatprep.mubr.bf16.mxu1 %v15099_v37  ;;  %v16570_v60 = vpop.eup %16569  ;;  %5121 = vperm.xlu1 %14784, %v16554_v62   ;;  %v3660_v2 = vadd.f32 1.0, %v16568_v14  ;;  %16595 = vpow2.f32 %v13114_v8  ;;  %v22772_v37 = vld [vmem:[#allocation16_spill] sm:$0xff]  ;;  %v22774_v14 = vld [vmem:[#allocation15_spill] sm:$0xff] }
 0x39d   :  { %v16572_v55 = vpop.eup %16571  ;;  %5126 = vperm.xlu0 %14785, %v16564_v59   ;;  %16597 = vpow2.f32 %v13115_v20  ;;  %v13121_v23 = vmul.f32 -1.442695, %v22772_v37  ;;  %v13118_v58 = vmul.f32 -1.442695, %v22774_v14 }
 0x39e   :  { %v16574_v6 = vpop.eup %16573  ;;  %v3661_v27 = vadd.f32 1.0, %v16572_v55  ;;  %16599 = vrcp.f32 %v3662_v11 }
 0x39f   :  { %v19428_v4 = vpop.permute.xlu1 %5811  ;;  %v16576_v62 = vpop.eup %16575  ;;  %16601 = vrcp.f32 %v3660_v2 }
 0x3a0   :  { %v19436_v22 = vpop.permute.xlu0 %5816  ;;  %v19445_v25 = vpop.eup %16577  ;;  %5131 = vperm.xlu1 %14784, %v16574_v6   ;;  %v3663_v1 = vadd.f32 1.0, %v16576_v62  ;;  %16603 = vpow2.f32 %v13120_v42  ;;  %v13124_v42 = vmul.f32 -1.442695, %v22778_v35  ;;  %v22781_v35 = vld [vmem:[#allocation19_spill] sm:$0xff] }
 0x3a1   :  { %22770 = vst [vmem:[#allocation9_spill] sm:$0xff] %v19436_v22  ;;  %v16580_v12 = vpop.eup %16579  ;;  %5136 = vperm.xlu0 %14785, %v16562_v50   ;;  %16605 = vrcp.f32 %v3661_v27  ;;  %v22775_v50 = vld [vmem:[#allocation17_spill] sm:$0xff] }
 0x3a2   :  { %v16582_v59 = vpop.eup %16581  ;;  %9381 = vmatmul.mubr.bf16.gmra.mrb[112].mxu0 %v15096_v47  ;;  %v13119_v13 = vmul.f32 -1.442695, %v22775_v50  ;;  %16607 = vpow2.f32 %v13121_v23  ;;  %v15102_v47 = vld [vmem:[%s22550_s3 + $0xbd0] ss:$72 sps:$4 sm:$0xff]  }
 0x3a3   :  { %10209 = vmatmul.mubr.bf16.gmra.mrb[36].mxu1 %v15101_v0  ;;  %v19448_v17 = vpop.permute.xlu1 %5821  ;;  %v16584_v28 = vpop.eup %16583  ;;  %9388 = vmatprep.mubr.bf16.mxu0 %v15104_v51  ;;  %v3664_v55 = vadd.f32 1.0, %v16582_v59  ;;  %16609 = vrcp.f32 %v3663_v1  ;;  %v15107_v0 = vld [vmem:[%s22550_s3 + $0x6e0] ss:$72 sps:$4 sm:$0xff]   ;;  %v15110_v51 = vld [vmem:[%s22550_s3 + $0xc64] ss:$72 sps:$4 sm:$0xff]   ;;  %v22779_v59 = vld [vmem:[#allocation20_spill] sm:$0xff] }
 0x3a4   :  { %v19450_v46 = vpop.permute.xlu0 %5826  ;;  %10216 = vmatprep.mubr.bf16.mxu1 %v15105_v49  ;;  %v16586_v8 = vpop.eup %16585  ;;  %5141 = vperm.xlu1 %14784, %v16570_v60   ;;  %v3665_v6 = vadd.f32 1.0, %v16584_v28  ;;  %16611 = vpow2.f32 %v13118_v58  ;;  %v15111_v49 = vld [vmem:[%s22550_s3 + $0x774] ss:$72 sps:$4 sm:$0xff]   ;;  %v13125_v1 = vmul.f32 -1.442695, %v22779_v59 }
 0x3a5   :  { %22773 = vst [vmem:[#allocation24_spill] sm:$0xff] %v19450_v46  ;;  %v16588_v20 = vpop.eup %16587  ;;  %5146 = vperm.xlu0 %14785, %v16586_v8   ;;  %16613 = vpow2.f32 %v13119_v13 }
 0x3a6   :  { %v16590_v11 = vpop.eup %16589  ;;  %v3830_v37 = vadd.f32 1.0, %v16588_v20  ;;  %16615 = vrcp.f32 %v3664_v55  ;;  %v4493_v55 = vld [vmem:[%s22549_s2 + $0x1c8] sm:$0xff] }
 0x3a7   :  { %v19454_v2 = vpop.permute.xlu1 %5831  ;;  %v16592_v60 = vpop.eup %16591  ;;  %16617 = vrcp.f32 %v3665_v6 }
 0x3a8   :  { %22776 = vst [vmem:[#allocation10_spill] sm:$0xff] %v19454_v2  ;;  %v19462_v62 = vpop.permute.xlu0 %5836  ;;  %v16594_v27 = vpop.eup %16593  ;;  %5151 = vperm.xlu1 %14784, %v16590_v11   ;;  %v3831_v14 = vadd.f32 1.0, %v16592_v60  ;;  %16619 = vpow2.f32 %v13124_v42  ;;  %v15108_v60 = vld [vmem:[%s22550_s3 + $0xc60] ss:$72 sps:$4 sm:$0xff]   ;;  %v15113_v42 = vld [vmem:[%s22550_s3 + $0x770] ss:$72 sps:$4 sm:$0xff]  }
 0x3a9   :  { %22777 = vst [vmem:[#allocation11_spill] sm:$0xff] %v19462_v62  ;;  %v16596_v23 = vpop.eup %16595  ;;  %5156 = vperm.xlu0 %14785, %v16580_v12   ;;  %v13122_v62 = vmul.f32 -1.442695, %v22781_v35  ;;  %16621 = vrcp.f32 %v3830_v37  ;;  %v4492_v12 = vld [vmem:[%s22549_s2 + $0x1c0] sm:$0xff] }
 0x3aa   :  { %v16598_v28 = vpop.eup %16597  ;;  %9389 = vmatmul.mubr.bf16.gmra.mrb[116].mxu0 %v15102_v47  ;;  %v3828_v20 = vadd.f32 1.0, %v16596_v23  ;;  %16623 = vpow2.f32 %v13125_v1 }
 0x3ab   :  { %10217 = vmatmul.mubr.bf16.gmra.mrb[40].mxu1 %v15107_v0  ;;  %v19472_v58 = vpop.permute.xlu1 %5841  ;;  %v16600_v8 = vpop.eup %16599  ;;  %9396 = vmatprep.mubr.bf16.mxu0 %v15110_v51  ;;  %v3829_v6 = vadd.f32 1.0, %v16598_v28  ;;  %16625 = vrcp.f32 %v3831_v14  ;;  %v22782_v51 = vld [vmem:[#allocation21_spill] sm:$0xff]  ;;  %v22783_v28 = vld [vmem:[#allocation23_spill] sm:$0xff] }
 0x3ac   :  { %22780 = vst [vmem:[#allocation25_spill] sm:$0xff] %v19472_v58  ;;  %v5007_v50 = vpop.permute.xlu0 %5006  ;;  %10224 = vmatprep.mubr.bf16.mxu1 %v15111_v49  ;;  %v16602_v13 = vpop.eup %16601  ;;  %5161 = vperm.xlu1 %14784, %v16594_v27   ;;  %v13123_v49 = vmul.f32 -1.442695, %v22782_v51  ;;  %16627 = vpow2.f32 %v13122_v62  ;;  %v13128_v1 = vmul.f32 -1.442695, %v22783_v28  ;;  %v4494_v58 = vld [vmem:[%s22549_s2 + $0x1d0] sm:$0xff] }
 0x3ad   :  { %v16604_v11 = vpop.eup %16603  ;;  %5166 = vperm.xlu0 %14785, %v16602_v13   ;;  %v6220_v37 = vmul.f32 %v5007_v50, %v4492_v12  ;;  %v15116_v14 = vld [vmem:[%s22550_s3 + $0xcf4] ss:$72 sps:$4 sm:$0xff]   ;;  %16629 = vrcp.f32 %v3828_v20  ;;  %v15117_v20 = vld [vmem:[%s22550_s3 + $0x804] ss:$72 sps:$4 sm:$0xff]  }
 0x3ae   :  { %v16606_v47 = vpop.eup %16605  ;;  %v3834_v13 = vadd.f32 1.0, %v16604_v11  ;;  %v4495_v50 = vld [vmem:[%s22549_s2 + $0x1d8] sm:$0xff]  ;;  %16631 = vrcp.f32 %v3829_v6  ;;  %v22785_v6 = vld [vmem:[#allocation2_spill] sm:$0xff] }
 0x3af   :  { %v5012_v0 = vpop.permute.xlu1 %5011  ;;  %v16608_v27 = vpop.eup %16607  ;;  %16633 = vpow2.f32 %v13123_v49 }
 0x3b0   :  { %v6221_v23 = vmul.f32 %v5012_v0, %v4493_v55  ;;  %v5017_v59 = vpop.permute.xlu0 %5016  ;;  %v16610_v35 = vpop.eup %16609  ;;  %5171 = vperm.xlu1 %14784, %v16606_v47   ;;  %v22784_v55 = vld [vmem:[#allocation3_spill] sm:$0xff]  ;;  %v3835_v47 = vadd.f32 1.0, %v16608_v27  ;;  %16635 = vpow2.f32 %v13128_v1 }
 0x3b1   :  { %v16612_v62 = vpop.eup %16611  ;;  %5176 = vperm.xlu0 %14785, %v16600_v8   ;;  %v13129_v0 = vmul.f32 -1.442695, %v22784_v55  ;;  %v6222_v46 = vmul.f32 %v5017_v59, %v4494_v58  ;;  %v13126_v8 = vmul.f32 -1.442695, %v22785_v6  ;;  %16637 = vrcp.f32 %v3834_v13  ;;  %v4497_v58 = vld [vmem:[%s22549_s2 + $0x1e8] sm:$0xff]  ;;  %v22786_v13 = vld [vmem:[#allocation4_spill] sm:$0xff] }
 0x3b2   :  { %v6480_v12 = vpack.c.bf16 %v6221_v23, %v6220_v37  ;;  %v16614_v11 = vpop.eup %16613  ;;  %9397 = vmatmul.mubr.bf16.gmra.mrb[120].mxu0 %v15108_v60  ;;  %v3832_v23 = vadd.f32 1.0, %v16612_v62  ;;  %v4496_v60 = vld [vmem:[%s22549_s2 + $0x1e0] sm:$0xff] }
 0x3b3   :  { %10225 = vmatmul.mubr.bf16.gmra.mrb[44].mxu1 %v15113_v42  ;;  %v5022_v51 = vpop.permute.xlu1 %5021  ;;  %v16616_v28 = vpop.eup %16615  ;;  %9404 = vmatprep.mubr.bf16.mxu0 %v15116_v14  ;;  %v3833_v49 = vadd.f32 1.0, %v16614_v11  ;;  %16639 = vpow2.f32 %v13129_v0  ;;  %v15114_v14 = vld [vmem:[%s22550_s3 + $0xcf0] ss:$72 sps:$4 sm:$0xff]  }
 0x3b4   :  { %v6223_v2 = vmul.f32 %v5022_v51, %v4495_v50  ;;  %9438 = vmatpush1.bf16.msra.mxu0 %v6480_v12  ;;  %v5027_v22 = vpop.permute.xlu0 %5026  ;;  %v16618_v37 = vpop.eup %16617  ;;  %5181 = vperm.xlu1 %14784, %v16610_v35   ;;  %16641 = vrcp.f32 %v3835_v47  ;;  %v15119_v35 = vld [vmem:[%s22550_s3 + $0x800] ss:$72 sps:$4 sm:$0xff]   ;;  %v13127_v50 = vmul.f32 -1.442695, %v22786_v13  ;;  %v4498_v51 = vld [vmem:[%s22549_s2 + $0x1f0] sm:$0xff] }
 0x3b5   :  { %9439 = vmatprep.subr.bf16.mxu0 %v22637_v31  ;;  %v16620_v42 = vpop.eup %16619  ;;  %5186 = vperm.xlu0 %14785, %v16616_v28   ;;  %v6224_v12 = vmul.f32 %v5027_v22, %v4496_v60  ;;  %16643 = vpow2.f32 %v13126_v8  ;;  %v4499_v22 = vld [vmem:[%s22549_s2 + $0x1f8] sm:$0xff]  ;;  %v22788_v8 = vld [vmem:[#allocation6_spill] sm:$0xff] }
 0x3b6   :  { %v6481_v27 = vpack.c.bf16 %v6223_v2, %v6222_v46  ;;  %10232 = vmatprep.mubr.bf16.mxu1 %v15117_v20  ;;  %v16622_v59 = vpop.eup %16621  ;;  %v22787_v2 = vld [vmem:[#allocation65_spill] sm:$0xff]  ;;  %v15122_v20 = vld [vmem:[%s22550_s3 + $0xc] ss:$72 sps:$4 sm:$0xff]   ;;  %16645 = vrcp.f32 %v3832_v23  ;;  %v3838_v47 = vadd.f32 1.0, %v16620_v42  ;;  %v13133_v60 = vmul.f32 -1.442695, %v22788_v8 }
 0x3b7   :  { %v5032_v1 = vpop.permute.xlu1 %5031  ;;  %v16624_v62 = vpop.eup %16623  ;;  %v13132_v0 = vmul.f32 -1.442695, %v22787_v2  ;;  %16647 = vrcp.f32 %v3833_v49  ;;  %v22789_v49 = vld [vmem:[#allocation5_spill] sm:$0xff] }
 0x3b8   :  { %v6225_v55 = vmul.f32 %v5032_v1, %v4497_v58  ;;  %9440 = vmatpush1.bf16.msra.mxu0 %v6481_v27  ;;  %v5037_v46 = vpop.permute.xlu0 %5036  ;;  %v16626_v11 = vpop.eup %16625  ;;  %5191 = vperm.xlu1 %14784, %v16618_v37   ;;  %v15123_v37 = vld [vmem:[%s22550_s3 + $0x894] ss:$72 sps:$4 sm:$0xff]   ;;  %v3839_v58 = vadd.f32 1.0, %v16624_v62  ;;  %16649 = vpow2.f32 %v13127_v50 }
 0x3b9   :  { %9441 = vmatprep.subr.bf16.mxu0 %v22637_v31  ;;  %v16628_v28 = vpop.eup %16627  ;;  %6016 = vperm.xlu0 %14785, %v16622_v59   ;;  %v6226_v1 = vmul.f32 %v5037_v46, %v4498_v51  ;;  %16651 = vpow2.f32 %v13132_v0  ;;  %v13130_v59 = vmul.f32 -1.442695, %v22789_v49  ;;  %v22790_v62 = vld [vmem:[#allocation45_spill] sm:$0xff] }
 0x3ba   :  { %v6482_v6 = vpack.c.bf16 %v6225_v55, %v6224_v12  ;;  %v16630_v23 = vpop.eup %16629  ;;  %9405 = vmatmul.mubr.bf16.gmra.mrb[124].mxu0 %v15114_v14  ;;  %16653 = vrcp.f32 %v3838_v47  ;;  %v3836_v55 = vadd.f32 1.0, %v16628_v28  ;;  %v4500_v14 = vld [vmem:[%s22549_s2 + $0x200] sm:$0xff]  ;;  %v12953_v46 = vmul.f32 -1.442695, %v22790_v62  ;;  %v15120_v47 = vld [vmem:[%s22550_s3 + $0x8] ss:$72 sps:$4 sm:$0xff]  }
 0x3bb   :  { %10233 = vmatmul.mubr.bf16.gmra.mrb[48].mxu1 %v15119_v35  ;;  %v5042_v42 = vpop.permute.xlu1 %5041  ;;  %v16632_v27 = vpop.eup %16631  ;;  %9445 = vmatprep.mubr.bf16.mxu0 %v15122_v20  ;;  %v4501_v35 = vld [vmem:[%s22549_s2 + $0x208] sm:$0xff]  ;;  %16655 = vpow2.f32 %v13133_v60  ;;  %v15125_v51 = vld [vmem:[%s22550_s3 + $0x890] ss:$72 sps:$4 sm:$0xff]  }
 0x3bc   :  { %v6227_v13 = vmul.f32 %v5042_v42, %v4499_v22  ;;  %9442 = vmatpush1.bf16.msra.mxu0 %v6482_v6  ;;  %v5047_v2 = vpop.permute.xlu0 %5046  ;;  %v16634_v12 = vpop.eup %16633  ;;  %6021 = vperm.xlu1 %14784, %v16626_v11   ;;  %16657 = vrcp.f32 %v3839_v58  ;;  %v22791_v22 = vld [vmem:[#allocation7_spill] sm:$0xff] }
 0x3bd   :  { %9443 = vmatprep.subr.bf16.mxu0 %v22637_v31  ;;  %v16636_v50 = vpop.eup %16635  ;;  %6006 = vperm.xlu0 %14785, %v16630_v23   ;;  %v13131_v28 = vmul.f32 -1.442695, %v22791_v22  ;;  %v3837_v8 = vadd.f32 1.0, %v16634_v12  ;;  %v6228_v42 = vmul.f32 %v5047_v2, %v4500_v14  ;;  %16659 = vpow2.f32 %v13130_v59  ;;  %v4503_v2 = vld [vmem:[%s22549_s2 + $0x218] sm:$0xff]  ;;  %v15129_v12 = vld [vmem:[%s22550_s3 + $0x924] ss:$72 sps:$4 sm:$0xff]  }
 0x3be   :  { %v6483_v0 = vpack.c.bf16 %v6227_v13, %v6226_v1  ;;  %10240 = vmatprep.mubr.bf16.mxu1 %v15123_v37  ;;  %v16638_v20 = vpop.eup %16637  ;;  %v15128_v37 = vld [vmem:[%s22550_s3 + $0x9c] ss:$72 sps:$4 sm:$0xff]   ;;  %16661 = vrcp.f32 %v3836_v55  ;;  %v3842_v58 = vadd.f32 1.0, %v16636_v50  ;;  %v4502_v13 = vld [vmem:[%s22549_s2 + $0x210] sm:$0xff] }
 0x3bf   :  { %v5052_v11 = vpop.permute.xlu1 %5051  ;;  %v16640_v6 = vpop.eup %16639  ;;  %16663 = vpow2.f32 %v12953_v46  ;;  %v13134_v46 = vmul.f32 -1.442695, %v18980_v41 }
 0x3c0   :  { %v6229_v1 = vmul.f32 %v5052_v11, %v4501_v35  ;;  %9444 = vmatpush1.bf16.msra.mxu0 %v6483_v0  ;;  %v5057_v60 = vpop.permute.xlu0 %5056  ;;  %v16642_v23 = vpop.eup %16641  ;;  %6011 = vperm.xlu1 %14784, %v16632_v27   ;;  %v3843_v27 = vadd.f32 1.0, %v16640_v6  ;;  %16665 = vpow2.f32 %v13131_v28  ;;  %v22792_v6 = vld [vmem:[#allocation8_spill] sm:$0xff] }
 0x3c1   :  { %9638 = vmatprep.subr.bf16.mxu0 %v22637_v31  ;;  %v16644_v49 = vpop.eup %16643  ;;  %6036 = vperm.xlu0 %14785, %v16638_v20   ;;  %16667 = vrcp.f32 %v3837_v8  ;;  %v6230_v50 = vmul.f32 %v5057_v60, %v4502_v13  ;;  %v13136_v41 = vmul.f32 -1.442695, %v22792_v6  ;;  %v15131_v60 = vld [vmem:[%s22550_s3 + $0x920] ss:$72 sps:$4 sm:$0xff]  }
 0x3c2   :  { %v6484_v59 = vpack.c.bf16 %v6229_v1, %v6228_v42  ;;  %v16646_v55 = vpop.eup %16645  ;;  %16669 = vrcp.f32 %v3842_v58  ;;  %v3840_v11 = vadd.f32 1.0, %v16644_v49  ;;  %v15126_v1 = vld [vmem:[%s22550_s3 + $0x98] ss:$72 sps:$4 sm:$0xff]  }
 0x3c3   :  { %9446 = vmatmul.mubr.bf16.vlgmr.msra.gmra.mrb[32].mxu0 %v15120_v47  ;;  %10241 = vmatmul.mubr.bf16.gmra.mrb[52].mxu1 %v15125_v51  ;;  %v5062_v14 = vpop.permute.xlu1 %5061  ;;  %v16648_v35 = vpop.eup %16647  ;;  %v4504_v47 = vld [vmem:[%s22549_s2 + $0x220] sm:$0xff]  ;;  %v4505_v51 = vld [vmem:[%s22549_s2 + $0x228] sm:$0xff]  ;;  %16671 = vrcp.f32 %v3843_v27 }
 0x3c4   :  { %v6231_v62 = vmul.f32 %v5062_v14, %v4503_v2  ;;  %9639 = vmatpush1.bf16.msra.mxu0 %v6484_v59  ;;  %v5067_v0 = vpop.permute.xlu0 %5066  ;;  %9453 = vmatprep.mubr.bf16.mxu0 %v15128_v37  ;;  %v16650_v20 = vpop.eup %16649  ;;  %v22793_v37 = vld [vmem:[#allocation69_spill] sm:$0xff]  ;;  %16673 = vpow2.f32 %v13134_v46  ;;  %v4506_v14 = vld [vmem:[%s22549_s2 + $0x230] sm:$0xff] }
 0x3c5   :  { %6041 = vperm.xlu1 %14784, %v16642_v23   ;;  %9640 = vmatprep.subr.bf16.mxu0 %v22637_v31  ;;  %v16652_v22 = vpop.eup %16651  ;;  %v13135_v23 = vmul.f32 -1.442695, %v22793_v37  ;;  %v3841_v13 = vadd.f32 1.0, %v16650_v20  ;;  %v6232_v2 = vmul.f32 %v5067_v0, %v4504_v47  ;;  %16675 = vrcp.f32 %v3840_v11  ;;  %v22794_v46 = vld [vmem:[#allocation68_spill] sm:$0xff] }
 0x3c6   :  { %v6485_v28 = vpack.c.bf16 %v6231_v62, %v6230_v50  ;;  %6026 = vperm.xlu0 %14785, %v16646_v55   ;;  %10248 = vmatprep.mubr.bf16.mxu1 %v15129_v12  ;;  %v16654_v8 = vpop.eup %16653  ;;  %v15134_v12 = vld [vmem:[%s22550_s3 + $0x12c] ss:$72 sps:$4 sm:$0xff]   ;;  %v3846_v27 = vadd.f32 1.0, %v16652_v22  ;;  %v4507_v50 = vld [vmem:[%s22549_s2 + $0x238] sm:$0xff]  ;;  %16677 = vpow2.f32 %v13136_v41  ;;  %v13137_v20 = vmul.f32 -1.442695, %v22794_v46 }
 0x3c7   :  { %v5072_v42 = vpop.permute.xlu1 %5071  ;;  %v16656_v58 = vpop.eup %16655  ;;  %16679 = vpow2.f32 %v13135_v23  ;;  %v13138_v41 = vmul.f32 -1.442695, %v19040_v44  ;;  %v22795_v23 = vld [vmem:[#allocation70_spill] sm:$0xff]  ;;  %v15132_v44 = vld [vmem:[%s22550_s3 + $0x128] ss:$72 sps:$4 sm:$0xff]  }
 0x3c8   :  { %v6233_v49 = vmul.f32 %v5072_v42, %v4505_v51  ;;  %9641 = vmatpush1.bf16.msra.mxu0 %v6485_v28  ;;  %v5077_v59 = vpop.permute.xlu0 %5076  ;;  %v16658_v55 = vpop.eup %16657  ;;  %v3847_v47 = vadd.f32 1.0, %v16656_v58  ;;  %16681 = vrcp.f32 %v3841_v13  ;;  %v13140_v58 = vmul.f32 -1.442695, %v22795_v23  ;;  %v15147_v23 = vld [vmem:[%s22550_s3 + $0xad4] ss:$72 sps:$4 sm:$0xff]  }
 0x3c9   :  { %6031 = vperm.xlu1 %14784, %v16648_v35   ;;  %9642 = vmatprep.subr.bf16.mxu0 %v22637_v31  ;;  %v16660_v62 = vpop.eup %16659  ;;  %v15135_v35 = vld [vmem:[%s22550_s3 + $0x9b4] ss:$72 sps:$4 sm:$0xff]   ;;  %v6234_v28 = vmul.f32 %v5077_v59, %v4506_v14  ;;  %16683 = vrcp.f32 %v3846_v27  ;;  %v13139_v59 = vmul.f32 -1.442695, %v19063_v43  ;;  %v15141_v14 = vld [vmem:[%s22550_s3 + $0xa44] ss:$72 sps:$4 sm:$0xff]  }
 0x3ca   :  { %v6486_v0 = vpack.c.bf16 %v6233_v49, %v6232_v2  ;;  %6056 = vperm.xlu0 %14785, %v16654_v8   ;;  %v16662_v11 = vpop.eup %16661  ;;  %v3844_v37 = vadd.f32 1.0, %v16660_v62  ;;  %16685 = vpow2.f32 %v13137_v20  ;;  %v15137_v49 = vld [vmem:[%s22550_s3 + $0x9b0] ss:$72 sps:$4 sm:$0xff]   ;;  %v15140_v27 = vld [vmem:[%s22550_s3 + $0x1bc] ss:$72 sps:$4 sm:$0xff]   ;;  %v3666_v62 = vadd.f32 1.0, %v19445_v25 }
 0x3cb   :  { %9454 = vmatmul.mubr.bf16.gmra.mrb[36].mxu0 %v15126_v1  ;;  %10249 = vmatmul.mubr.bf16.gmra.mrb[56].mxu1 %v15131_v60  ;;  %v5082_v51 = vpop.permute.xlu1 %5081  ;;  %v16664_v22 = vpop.eup %16663  ;;  %16687 = vrcp.f32 %v3847_v47  ;;  %v13141_v20 = vmul.f32 -1.442695, %v19056_v38  ;;  %v13142_v25 = vmul.f32 -1.442695, %v19106_v32  ;;  %v13144_v38 = vmul.f32 -1.442695, %v19100_v16 }
 0x3cc   :  { %v6235_v6 = vmul.f32 %v5082_v51, %v4507_v50  ;;  %9643 = vmatpush1.bf16.msra.mxu0 %v6486_v0  ;;  %v19591_v42 = vpop.permute.xlu0 %5846  ;;  %9461 = vmatprep.mubr.bf16.mxu0 %v15134_v12  ;;  %v16666_v8 = vpop.eup %16665  ;;  %16689 = vpow2.f32 %v13138_v41  ;;  %v3667_v0 = vadd.f32 1.0, %v16664_v22  ;;  %v15138_v41 = vld [vmem:[%s22550_s3 + $0x1b8] ss:$72 sps:$4 sm:$0xff]   ;;  %v15146_v16 = vld [vmem:[%s22550_s3 + $0x24c] ss:$72 sps:$4 sm:$0xff]  }
 0x3cd   :  { %6061 = vperm.xlu1 %14784, %v16658_v55   ;;  %9644 = vmatprep.subr.bf16.mxu0 %v22637_v31  ;;  %v16668_v1 = vpop.eup %16667  ;;  %v3845_v12 = vadd.f32 1.0, %v16666_v8  ;;  %16691 = vrcp.f32 %v3844_v37  ;;  %v15143_v32 = vld [vmem:[%s22550_s3 + $0xa40] ss:$72 sps:$4 sm:$0xff]   ;;  %v13143_v8 = vmul.f32 -1.442695, %v19125_v39 }
 0x3ce   :  { %v6487_v60 = vpack.c.bf16 %v6235_v6, %v6234_v28  ;;  %6046 = vperm.xlu0 %14785, %v16662_v11   ;;  %10256 = vmatprep.mubr.bf16.mxu1 %v15135_v35  ;;  %v16670_v13 = vpop.eup %16669  ;;  %16693 = vpow2.f32 %v13140_v58 }
 0x3cf   :  { %v19596_v2 = vpop.permute.xlu1 %5851  ;;  %v16672_v50 = vpop.eup %16671  ;;  %16695 = vpow2.f32 %v13139_v59  ;;  %v13145_v59 = vmul.f32 -1.442695, %v19117_v18  ;;  %v15144_v18 = vld [vmem:[%s22550_s3 + $0x248] ss:$72 sps:$4 sm:$0xff]  }
 0x3d0   :  { %9645 = vmatpush1.bf16.msra.mxu0 %v6487_v60  ;;  %v19605_v55 = vpop.permute.xlu0 %5856  ;;  %v16674_v43 = vpop.eup %16673  ;;  %16697 = vrcp.f32 %v3845_v12 }
 0x3d1   :  { %6051 = vperm.xlu1 %14784, %v16668_v1   ;;  %9646 = vmatprep.subr.bf16.mxu0 %v22637_v31  ;;  %v16676_v46 = vpop.eup %16675  ;;  %16699 = vrcp.f32 %v3666_v62  ;;  %v3848_v51 = vadd.f32 1.0, %v16674_v43 }
 0x3d2   :  { %6076 = vperm.xlu0 %14785, %v16670_v13   ;;  %v16678_v35 = vpop.eup %16677  ;;  %16701 = vrcp.f32 %v3667_v0 }
 0x3d3   :  { %9462 = vmatmul.mubr.bf16.gmra.mrb[40].mxu0 %v15132_v44  ;;  %10257 = vmatmul.mubr.bf16.gmra.mrb[60].mxu1 %v15137_v49  ;;  %v19616_v11 = vpop.permute.xlu1 %5861  ;;  %v16680_v47 = vpop.eup %16679  ;;  %16703 = vpow2.f32 %v13141_v20  ;;  %v3850_v13 = vadd.f32 1.0, %v16678_v35  ;;  %v15149_v20 = vld [vmem:[%s22550_s3 + $0xad0] ss:$72 sps:$4 sm:$0xff]  }
 0x3d4   :  { %9469 = vmatprep.mubr.bf16.mxu0 %v15140_v27  ;;  %10264 = vmatprep.mubr.bf16.mxu1 %v15141_v14  ;;  %v19619_v22 = vpop.permute.xlu0 %5866  ;;  %v16682_v28 = vpop.eup %16681  ;;  %v3849_v1 = vadd.f32 1.0, %v16680_v47  ;;  %16705 = vpow2.f32 %v13142_v25 }
 0x3d5   :  { %6081 = vperm.xlu1 %14784, %v16672_v50   ;;  %v16684_v6 = vpop.eup %16683  ;;  %16707 = vrcp.f32 %v3848_v51  ;;  %v15152_v51 = vld [vmem:[%s22550_s3 + $0x2dc] ss:$72 sps:$4 sm:$0xff]  }
 0x3d6   :  { %6066 = vperm.xlu0 %14785, %v16676_v46   ;;  %v16686_v37 = vpop.eup %16685  ;;  %16709 = vpow2.f32 %v13144_v38 }
 0x3d7   :  { %v19629_v60 = vpop.permute.xlu1 %5871  ;;  %v16688_v58 = vpop.eup %16687  ;;  %16711 = vpow2.f32 %v13143_v8  ;;  %v3851_v27 = vadd.f32 1.0, %v16686_v37 }
 0x3d8   :  { %v19637_v44 = vpop.permute.xlu0 %5876  ;;  %v16690_v39 = vpop.eup %16689  ;;  %16713 = vrcp.f32 %v3849_v1 }
 0x3d9   :  { %6071 = vperm.xlu1 %14784, %v16682_v28   ;;  %v16692_v49 = vpop.eup %16691  ;;  %16715 = vrcp.f32 %v3850_v13  ;;  %v3852_v62 = vadd.f32 1.0, %v16690_v39  ;;  %v15153_v28 = vld [vmem:[%s22550_s3 + $0xb64] ss:$72 sps:$4 sm:$0xff]  }
 0x3da   :  { %6096 = vperm.xlu0 %14785, %v16684_v6   ;;  %v16694_v12 = vpop.eup %16693  ;;  %16717 = vpow2.f32 %v13145_v59  ;;  %v15150_v59 = vld [vmem:[%s22550_s3 + $0x2d8] ss:$72 sps:$4 sm:$0xff]  }
 0x3db   :  { %9470 = vmatmul.mubr.bf16.gmra.mrb[44].mxu0 %v15138_v41  ;;  %10265 = vmatmul.mubr.bf16.gmra.mrb[64].mxu1 %v15143_v32  ;;  %v19640_v14 = vpop.permute.xlu1 %5881  ;;  %v16696_v50 = vpop.eup %16695  ;;  %16719 = vrcp.f32 %v3851_v27  ;;  %v3854_v6 = vadd.f32 1.0, %v16694_v12  ;;  %v15155_v12 = vld [vmem:[%s22550_s3 + $0xb60] ss:$72 sps:$4 sm:$0xff]  }
 0x3dc   :  { %9477 = vmatprep.mubr.bf16.mxu0 %v15146_v16  ;;  %10272 = vmatprep.mubr.bf16.mxu1 %v15147_v23  ;;  %v19642_v43 = vpop.permute.xlu0 %5886  ;;  %v16698_v0 = vpop.eup %16697  ;;  %v3853_v25 = vadd.f32 1.0, %v16696_v50  ;;  %16721 = vrcp.f32 %v3852_v62  ;;  %v15158_v62 = vld [vmem:[%s22550_s3 + $0x36c] ss:$72 sps:$4 sm:$0xff]  }
 0x3dd   :  { %6101 = vperm.xlu1 %14784, %v16688_v58   ;;  %v16700_v46 = vpop.eup %16699 }
 0x3de   :  { %6086 = vperm.xlu0 %14785, %v16692_v49   ;;  %v16702_v35 = vpop.eup %16701  ;;  %16723 = vrcp.f32 %v3853_v25 }
 0x3df   :  { %v19650_v47 = vpop.permute.xlu1 %5891  ;;  %v16704_v38 = vpop.eup %16703  ;;  %16725 = vrcp.f32 %v3854_v6 }
 0x3e0   :  { %v19658_v41 = vpop.permute.xlu0 %5896  ;;  %v16706_v32 = vpop.eup %16705  ;;  %v3855_v1 = vadd.f32 1.0, %v16704_v38 }
 0x3e1   :  { %6091 = vperm.xlu1 %14784, %v16698_v0   ;;  %v16708_v8 = vpop.eup %16707  ;;  %v3856_v58 = vadd.f32 1.0, %v16706_v32  ;;  %v15159_v0 = vld [vmem:[%s22550_s3 + $0xbf4] ss:$72 sps:$4 sm:$0xff]  }
 0x3e2   :  { %5196 = vperm.xlu0 %14785, %v16700_v46   ;;  %v16710_v37 = vpop.eup %16709  ;;  %16727 = vrcp.f32 %v3855_v1 }
 0x3e3   :  { %9478 = vmatmul.mubr.bf16.gmra.mrb[48].mxu0 %v15144_v18  ;;  %10273 = vmatmul.mubr.bf16.gmra.mrb[68].mxu1 %v15149_v20  ;;  %v19660_v16 = vpop.permute.xlu1 %5901  ;;  %v16712_v23 = vpop.eup %16711  ;;  %v3858_v18 = vadd.f32 1.0, %v16710_v37  ;;  %16729 = vrcp.f32 %v3856_v58  ;;  %v15161_v37 = vld [vmem:[%s22550_s3 + $0xbf0] ss:$72 sps:$4 sm:$0xff]   ;;  %v15165_v58 = vld [vmem:[%s22550_s3 + $0xc84] ss:$72 sps:$4 sm:$0xff]  }
 0x3e4   :  { %9485 = vmatprep.mubr.bf16.mxu0 %v15152_v51  ;;  %10280 = vmatprep.mubr.bf16.mxu1 %v15153_v28  ;;  %v19662_v13 = vpop.permute.xlu0 %5906  ;;  %v16714_v39 = vpop.eup %16713  ;;  %v3857_v27 = vadd.f32 1.0, %v16712_v23  ;;  %v15164_v23 = vld [vmem:[%s22550_s3 + $0x3fc] ss:$72 sps:$4 sm:$0xff]  }
 0x3e5   :  { %5201 = vperm.xlu1 %14784, %v16702_v35   ;;  %v16716_v49 = vpop.eup %16715 }
 0x3e6   :  { %6106 = vperm.xlu0 %14785, %v16708_v8   ;;  %v16718_v46 = vpop.eup %16717  ;;  %16731 = vrcp.f32 %v3857_v27  ;;  %v15156_v8 = vld [vmem:[%s22550_s3 + $0x368] ss:$72 sps:$4 sm:$0xff]  }
 0x3e7   :  { %v19670_v50 = vpop.permute.xlu1 %5911  ;;  %v16720_v35 = vpop.eup %16719  ;;  %v3859_v51 = vadd.f32 1.0, %v16718_v46  ;;  %16733 = vrcp.f32 %v3858_v18  ;;  %v15162_v46 = vld [vmem:[%s22550_s3 + $0x3f8] ss:$72 sps:$4 sm:$0xff]  }
 0x3e8   :  { %v19678_v20 = vpop.permute.xlu0 %5916  ;;  %v16722_v25 = vpop.eup %16721  ;;  %v15167_v18 = vld [vmem:[%s22550_s3 + $0xc80] ss:$72 sps:$4 sm:$0xff]  }
 0x3e9   :  { %6111 = vperm.xlu1 %14784, %v16714_v39   ;;  %v16724_v6 = vpop.eup %16723  ;;  %16735 = vrcp.f32 %v3859_v51  ;;  %v15171_v51 = vld [vmem:[%s22550_s3 + $0xd14] ss:$72 sps:$4 sm:$0xff]  }
 0x3ea   :  { %6116 = vperm.xlu0 %14785, %v16716_v49   ;;  %v16726_v32 = vpop.eup %16725 }
 0x3eb   :  { %9486 = vmatmul.mubr.bf16.gmra.mrb[52].mxu0 %v15150_v59  ;;  %10281 = vmatmul.mubr.bf16.gmra.mrb[72].mxu1 %v15155_v12  ;;  %v19680_v28 = vpop.permute.xlu1 %5921 }
 0x3ec   :  { %9493 = vmatprep.mubr.bf16.mxu0 %v15158_v62  ;;  %10288 = vmatprep.mubr.bf16.mxu1 %v15159_v0  ;;  %v19682_v38 = vpop.permute.xlu0 %5926  ;;  %v16728_v49 = vpop.eup %16727 }
 0x3ed   :  { %6121 = vperm.xlu1 %14784, %v16720_v35   ;;  %v16730_v59 = vpop.eup %16729 }
 0x3ee   :  { %6126 = vperm.xlu0 %14785, %v16722_v25   ;;  %v15170_v25 = vld [vmem:[%s22550_s3 + $0x48c] ss:$72 sps:$4 sm:$0xff]  }
 0x3ef   :  { %v19690_v1 = vpop.permute.xlu1 %5931 }
 0x3f0   :  { %v19698_v39 = vpop.permute.xlu0 %5936  ;;  %v16732_v62 = vpop.eup %16731 }
 0x3f1   :  { %6131 = vperm.xlu1 %14784, %v16724_v6   ;;  %v16734_v0 = vpop.eup %16733 }
 0x3f2   :  { %6136 = vperm.xlu0 %14785, %v16726_v32  }
 0x3f3   :  { %9494 = vmatmul.mubr.bf16.gmra.mrb[56].mxu0 %v15156_v8  ;;  %10289 = vmatmul.mubr.bf16.gmra.mrb[76].mxu1 %v15161_v37  ;;  %v19700_v12 = vpop.permute.xlu1 %5941  ;;  %v16736_v32 = vpop.eup %16735  ;;  %v12175_v8 = vld [vmem:[%s22551_s5] sm:$0xff] }
 0x3f4   :  { %9501 = vmatprep.mubr.bf16.mxu0 %v15164_v23  ;;  %10296 = vmatprep.mubr.bf16.mxu1 %v15165_v58  ;;  %v19702_v27 = vpop.permute.xlu0 %5946  ;;  %v12176_v58 = vld [vmem:[%s22551_s5 + $0x8] sm:$0xff] }
 0x3f5   :  { %6141 = vperm.xlu1 %14784, %v16728_v49   ;;  %22796 = vst [vmem:[#allocation26_spill] sm:$0xff] %v19702_v27  ;;  %v15168_v49 = vld [vmem:[%s22550_s3 + $0x488] ss:$72 sps:$4 sm:$0xff]  }
 0x3f6   :  { %6146 = vperm.xlu0 %14785, %v16730_v59   ;;  %v12177_v59 = vld [vmem:[%s22551_s5 + $0x10] sm:$0xff] }
 0x3f7   :  { %v19710_v35 = vpop.permute.xlu1 %5951 }
 0x3f8   :  { %v19718_v6 = vpop.permute.xlu0 %5956 }
 0x3f9   :  { %6151 = vperm.xlu1 %14784, %v16732_v62   ;;  %22797 = vst [vmem:[#allocation27_spill] sm:$0xff] %v19718_v6  ;;  %v15173_v62 = vld [vmem:[%s22550_s3 + $0xd10] ss:$72 sps:$4 sm:$0xff]  }
 0x3fa   :  { %6156 = vperm.xlu0 %14785, %v16734_v0  }
 0x3fb   :  { %9502 = vmatmul.mubr.bf16.gmra.mrb[60].mxu0 %v15162_v46  ;;  %10297 = vmatmul.mubr.bf16.gmra.mrb[80].mxu1 %v15167_v18  ;;  %v19723_v37 = vpop.permute.xlu1 %5961  ;;  %v15176_v46 = vld [vmem:[%s22550_s3 + $0x51c] ss:$72 sps:$4 sm:$0xff]   ;;  %v15179_v18 = vld [vmem:[%s22550_s3 + $0x2c] ss:$72 sps:$4 sm:$0xff]  }
 0x3fc   :  { %22798 = vst [vmem:[#allocation28_spill] sm:$0xff] %v19723_v37  ;;  %9509 = vmatprep.mubr.bf16.mxu0 %v15170_v25  ;;  %10304 = vmatprep.mubr.bf16.mxu1 %v15171_v51  ;;  %v19725_v23 = vpop.permute.xlu0 %5966  ;;  %v12178_v51 = vld [vmem:[%s22551_s5 + $0x18] sm:$0xff] }
 0x3fd   :  { %6161 = vperm.xlu1 %14784, %v16736_v32   ;;  %22799 = vst [vmem:[#allocation29_spill] sm:$0xff] %v19725_v23  ;;  %v4629_v32 = vld [vmem:[%s22549_s2 + $0x608] sm:$0xff] }
 0x3fe   :  { %12225 = vperm.xlu0 %14785, %v12175_v8   ;;  %v12179_v8 = vld [vmem:[%s22551_s5 + $0x20] sm:$0xff] }
 0x3ff   :  { %v19739_v0 = vpop.permute.xlu1 %5971 }
 0x400   :  { %22800 = vst [vmem:[#allocation30_spill] sm:$0xff] %v19739_v0  ;;  %v19747_v25 = vpop.permute.xlu0 %5976 }
 0x401   :  { %12230 = vperm.xlu1 %14784, %v12176_v58   ;;  %22801 = vst [vmem:[#allocation31_spill] sm:$0xff] %v19747_v25  ;;  %v4628_v58 = vld [vmem:[%s22549_s2 + $0x600] sm:$0xff]  ;;  %v6357_v25 = vmul.f32 %v19236_v33, %v4629_v32  ;;  %v12181_v33 = vld [vmem:[%s22551_s5 + $0x30] sm:$0xff] }
 0x402   :  { %12235 = vperm.xlu0 %14785, %v12177_v59  }
 0x403   :  { %9510 = vmatmul.mubr.bf16.gmra.mrb[64].mxu0 %v15168_v49  ;;  %10305 = vmatmul.mubr.bf16.gmra.mrb[84].mxu1 %v15173_v62  ;;  %v19758_v23 = vpop.permute.xlu1 %5981  ;;  %v4631_v49 = vld [vmem:[%s22549_s2 + $0x618] sm:$0xff]  ;;  %v12180_v62 = vld [vmem:[%s22551_s5 + $0x28] sm:$0xff] }
 0x404   :  { %22802 = vst [vmem:[#allocation32_spill] sm:$0xff] %v19758_v23  ;;  %9517 = vmatprep.mubr.bf16.mxu0 %v15176_v46  ;;  %10345 = vmatprep.mubr.bf16.mxu1 %v15179_v18  ;;  %v19763_v59 = vpop.permute.xlu0 %5986  ;;  %v15174_v46 = vld [vmem:[%s22550_s3 + $0x518] ss:$72 sps:$4 sm:$0xff]   ;;  %v15177_v18 = vld [vmem:[%s22550_s3 + $0x28] ss:$72 sps:$4 sm:$0xff]   ;;  %v6359_v6 = vmul.f32 %v19265_v54, %v4631_v49 }
 0x405   :  { %12240 = vperm.xlu1 %14784, %v12178_v51   ;;  %22803 = vst [vmem:[#allocation22_spill] sm:$0xff] %v19763_v59  ;;  %v6356_v51 = vmul.f32 %v19221_v10, %v4628_v58  ;;  %v4630_v59 = vld [vmem:[%s22549_s2 + $0x610] sm:$0xff]  ;;  %v12182_v10 = vld [vmem:[%s22551_s5 + $0x38] sm:$0xff] }
 0x406   :  { %12245 = vperm.xlu0 %14785, %v12179_v8   ;;  %v15182_v8 = vld [vmem:[%s22550_s3 + $0x5ac] ss:$72 sps:$4 sm:$0xff]   ;;  %v15183_v58 = vld [vmem:[%s22550_s3 + $0xbc] ss:$72 sps:$4 sm:$0xff]   ;;  %v6358_v54 = vmul.f32 %v19245_v36, %v4630_v59 }
 0x407   :  { %v19782_v32 = vpop.permute.xlu1 %5991  ;;  %v6548_v0 = vpack.c.bf16 %v6357_v25, %v6356_v51  ;;  %v12183_v25 = vld [vmem:[%s22551_s5 + $0x40] sm:$0xff]  ;;  %v12184_v59 = vld [vmem:[%s22551_s5 + $0x48] sm:$0xff] }
 0x408   :  { %22804 = vst [vmem:[#allocation33_spill] sm:$0xff] %v19782_v32  ;;  %v19790_v23 = vpop.permute.xlu0 %5996  ;;  %v4633_v32 = vld [vmem:[%s22549_s2 + $0x628] sm:$0xff]  ;;  %v4508_v36 = vld [vmem:[%s22549_s2 + $0x240] sm:$0xff] }
 0x409   :  { %12250 = vperm.xlu1 %14784, %v12180_v62   ;;  %22805 = vst [vmem:[#allocation34_spill] sm:$0xff] %v19790_v23  ;;  %v4632_v62 = vld [vmem:[%s22549_s2 + $0x620] sm:$0xff]  ;;  %v6361_v51 = vmul.f32 %v19281_v53, %v4633_v32  ;;  %v12185_v53 = vld [vmem:[%s22551_s5 + $0x50] sm:$0xff] }
 0x40a   :  { %12255 = vperm.xlu0 %14785, %v12181_v33   ;;  %v4635_v33 = vld [vmem:[%s22549_s2 + $0x638] sm:$0xff] }
 0x40b   :  { %9518 = vmatmul.mubr.bf16.gmra.mrb[68].mxu0 %v15174_v46  ;;  %10346 = vmatmul.mubr.bf16.vlgmr.msra.gmra.mrb[88].mxu1 %v15177_v18  ;;  %v19806_v49 = vpop.permute.xlu1 %6001  ;;  %v6549_v18 = vpack.c.bf16 %v6359_v6, %v6358_v54  ;;  %v15180_v6 = vld [vmem:[%s22550_s3 + $0x5a8] ss:$72 sps:$4 sm:$0xff]   ;;  %v15185_v32 = vld [vmem:[%s22550_s3 + $0xb8] ss:$72 sps:$4 sm:$0xff]   ;;  %v6363_v27 = vmul.f32 %v19308_v61, %v4635_v33  ;;  %v15189_v33 = vld [vmem:[%s22550_s3 + $0x14c] ss:$72 sps:$4 sm:$0xff]  }
 0x40c   :  { %10539 = vmatpush1.bf16.msra.mxu1 %v6548_v0  ;;  %22806 = vst [vmem:[#allocation66_spill] sm:$0xff] %v19806_v49  ;;  %9525 = vmatprep.mubr.bf16.mxu0 %v15182_v8  ;;  %v5087_v46 = vpop.permute.xlu0 %5086  ;;  %v4509_v0 = vld [vmem:[%s22549_s2 + $0x248] sm:$0xff]  ;;  %v6360_v8 = vmul.f32 %v19268_v52, %v4632_v62  ;;  %v4510_v52 = vld [vmem:[%s22549_s2 + $0x250] sm:$0xff]  ;;  %v4511_v62 = vld [vmem:[%s22549_s2 + $0x258] sm:$0xff] }
 0x40d   :  { %12260 = vperm.xlu1 %14784, %v12182_v10   ;;  %10540 = vmatprep.subr.bf16.mxu1 %v22637_v31  ;;  %v6236_v54 = vmul.f32 %v5087_v46, %v4508_v36  ;;  %v12186_v46 = vld [vmem:[%s22551_s5 + $0x58] sm:$0xff]  ;;  %v12187_v61 = vld [vmem:[%s22551_s5 + $0x60] sm:$0xff]  ;;  %v4637_v36 = vld [vmem:[%s22549_s2 + $0x648] sm:$0xff] }
 0x40e   :  { %12265 = vperm.xlu0 %14785, %v12183_v25   ;;  %10353 = vmatprep.mubr.bf16.mxu1 %v15183_v58  ;;  %v15188_v58 = vld [vmem:[%s22550_s3 + $0x63c] ss:$72 sps:$4 sm:$0xff]   ;;  %v4634_v25 = vld [vmem:[%s22549_s2 + $0x630] sm:$0xff]  ;;  %v6550_v37 = vpack.c.bf16 %v6361_v51, %v6360_v8  ;;  %v6365_v8 = vmul.f32 %v19323_v34, %v4637_v36 }
 0x40f   :  { %v5092_v10 = vpop.permute.xlu1 %5091  ;;  %v6362_v51 = vmul.f32 %v19290_v30, %v4634_v25  ;;  %v4512_v30 = vld [vmem:[%s22549_s2 + $0x260] sm:$0xff]  ;;  %v4639_v25 = vld [vmem:[%s22549_s2 + $0x658] sm:$0xff]  ;;  %v15191_v34 = vld [vmem:[%s22550_s3 + $0x148] ss:$72 sps:$4 sm:$0xff]  }
 0x410   :  { %10541 = vmatpush1.bf16.msra.mxu1 %v6549_v18  ;;  %v6237_v23 = vmul.f32 %v5092_v10, %v4509_v0  ;;  %v5097_v49 = vpop.permute.xlu0 %5096 }
 0x411   :  { %12270 = vperm.xlu1 %14784, %v12184_v59   ;;  %10542 = vmatprep.subr.bf16.mxu1 %v22637_v31  ;;  %v6238_v59 = vmul.f32 %v5097_v49, %v4510_v52  ;;  %v12188_v49 = vld [vmem:[%s22551_s5 + $0x68] sm:$0xff] }
 0x412   :  { %12275 = vperm.xlu0 %14785, %v12185_v53   ;;  %v6488_v18 = vpack.c.bf16 %v6237_v23, %v6236_v54  ;;  %v4636_v23 = vld [vmem:[%s22549_s2 + $0x640] sm:$0xff]  ;;  %v15194_v52 = vld [vmem:[%s22550_s3 + $0x6cc] ss:$72 sps:$4 sm:$0xff]  }
 0x413   :  { %9526 = vmatmul.mubr.bf16.gmra.mrb[72].mxu0 %v15180_v6  ;;  %10354 = vmatmul.mubr.bf16.gmra.mrb[92].mxu1 %v15185_v32  ;;  %v5102_v0 = vpop.permute.xlu1 %5101  ;;  %v6551_v32 = vpack.c.bf16 %v6363_v27, %v6362_v51  ;;  %v15186_v27 = vld [vmem:[%s22550_s3 + $0x638] ss:$72 sps:$4 sm:$0xff]   ;;  %v4514_v51 = vld [vmem:[%s22549_s2 + $0x270] sm:$0xff] }
 0x414   :  { %10543 = vmatpush1.bf16.msra.mxu1 %v6550_v37  ;;  %9533 = vmatprep.mubr.bf16.mxu0 %v15188_v58  ;;  %v6239_v6 = vmul.f32 %v5102_v0, %v4511_v62  ;;  %v5107_v53 = vpop.permute.xlu0 %5106  ;;  %v4513_v37 = vld [vmem:[%s22549_s2 + $0x268] sm:$0xff]  ;;  %v12189_v58 = vld [vmem:[%s22551_s5 + $0x70] sm:$0xff]  ;;  %v6364_v62 = vmul.f32 %v19311_v45, %v4636_v23  ;;  %v4515_v45 = vld [vmem:[%s22549_s2 + $0x278] sm:$0xff]  ;;  %v6367_v0 = vmul.f32 %v19347_v24, %v4639_v25 }
 0x415   :  { %9647 = vmatpush1.bf16.msra.mxu0 %v6488_v18  ;;  %12280 = vperm.xlu1 %14784, %v12186_v46   ;;  %v6240_v46 = vmul.f32 %v5107_v53, %v4512_v30  ;;  %v15195_v24 = vld [vmem:[%s22550_s3 + $0x1dc] ss:$72 sps:$4 sm:$0xff]  }
 0x416   :  { %10544 = vmatprep.subr.bf16.mxu1 %v22637_v31  ;;  %12285 = vperm.xlu0 %14785, %v12187_v61   ;;  %v6489_v10 = vpack.c.bf16 %v6239_v6, %v6238_v59  ;;  %v6552_v36 = vpack.c.bf16 %v6365_v8, %v6364_v62  ;;  %v12190_v59 = vld [vmem:[%s22551_s5 + $0x78] sm:$0xff]  ;;  %v4641_v6 = vld [vmem:[%s22549_s2 + $0x668] sm:$0xff] }
 0x417   :  { %9648 = vmatprep.subr.bf16.mxu0 %v22637_v31  ;;  %10361 = vmatprep.mubr.bf16.mxu1 %v15189_v33  ;;  %v5112_v54 = vpop.permute.xlu1 %5111  ;;  %v4638_v33 = vld [vmem:[%s22549_s2 + $0x650] sm:$0xff]  ;;  %v6369_v25 = vmul.f32 %v19354_v56, %v4641_v6  ;;  %v4643_v62 = vld [vmem:[%s22549_s2 + $0x678] sm:$0xff]  ;;  %v4645_v6 = vld [vmem:[%s22549_s2 + $0x688] sm:$0xff] }
 0x418   :  { %10545 = vmatpush1.bf16.msra.mxu1 %v6551_v32  ;;  %v6241_v18 = vmul.f32 %v5112_v54, %v4513_v37  ;;  %v5117_v61 = vpop.permute.xlu0 %5116  ;;  %v12191_v32 = vld [vmem:[%s22551_s5 + $0x80] sm:$0xff]  ;;  %v6366_v30 = vmul.f32 %v19333_v29, %v4638_v33  ;;  %v4517_v29 = vld [vmem:[%s22549_s2 + $0x288] sm:$0xff]  ;;  %v12193_v56 = vld [vmem:[%s22551_s5 + $0x90] sm:$0xff] }
 0x419   :  { %9649 = vmatpush1.bf16.msra.mxu0 %v6489_v10  ;;  %12290 = vperm.xlu1 %14784, %v12188_v49   ;;  %v6242_v37 = vmul.f32 %v5117_v61, %v4514_v51  ;;  %v4640_v10 = vld [vmem:[%s22549_s2 + $0x660] sm:$0xff] }
 0x41a   :  { %10546 = vmatprep.subr.bf16.mxu1 %v22637_v31  ;;  %12295 = vperm.xlu0 %14785, %v12189_v58   ;;  %v6490_v23 = vpack.c.bf16 %v6241_v18, %v6240_v46  ;;  %v6553_v58 = vpack.c.bf16 %v6367_v0, %v6366_v30  ;;  %v15197_v18 = vld [vmem:[%s22550_s3 + $0x1d8] ss:$72 sps:$4 sm:$0xff]   ;;  %v6368_v61 = vmul.f32 %v19350_v63, %v4640_v10  ;;  %v4518_v0 = vld [vmem:[%s22549_s2 + $0x290] sm:$0xff] }
 0x41b   :  { %9534 = vmatmul.mubr.bf16.gmra.mrb[76].mxu0 %v15186_v27  ;;  %9650 = vmatprep.subr.bf16.mxu0 %v22637_v31  ;;  %v5122_v53 = vpop.permute.xlu1 %5121  ;;  %v4516_v27 = vld [vmem:[%s22549_s2 + $0x280] sm:$0xff]  ;;  %v4519_v63 = vld [vmem:[%s22549_s2 + $0x298] sm:$0xff] }
 0x41c   :  { %10362 = vmatmul.mubr.bf16.gmra.mrb[0].mxu1 %v15191_v34  ;;  %9541 = vmatprep.mubr.bf16.mxu0 %v15194_v52  ;;  %v6243_v49 = vmul.f32 %v5122_v53, %v4515_v45  ;;  %v5127_v8 = vpop.permute.xlu0 %5126  ;;  %v12192_v34 = vld [vmem:[%s22551_s5 + $0x88] sm:$0xff]  ;;  %v12195_v30 = vld [vmem:[%s22551_s5 + $0xa0] sm:$0xff] }
 0x41d   :  { %10547 = vmatpush1.bf16.msra.mxu1 %v6552_v36  ;;  %9651 = vmatpush1.bf16.msra.mxu0 %v6490_v23  ;;  %v15192_v52 = vld [vmem:[%s22550_s3 + $0x6c8] ss:$72 sps:$4 sm:$0xff]   ;;  %v6244_v33 = vmul.f32 %v5127_v8, %v4516_v27  ;;  %v6554_v23 = vpack.c.bf16 %v6369_v25, %v6368_v61 }
 0x41e   :  { %12300 = vperm.xlu1 %14784, %v12190_v59   ;;  %10548 = vmatprep.subr.bf16.mxu1 %v22637_v31  ;;  %v6491_v54 = vpack.c.bf16 %v6243_v49, %v6242_v37  ;;  %v4642_v36 = vld [vmem:[%s22549_s2 + $0x670] sm:$0xff]  ;;  %v6371_v59 = vmul.f32 %v19373_v26, %v4643_v62  ;;  %v15200_v26 = vld [vmem:[%s22550_s3 + $0x75c] ss:$72 sps:$4 sm:$0xff]   ;;  %v15198_v62 = vld [vmem:[%s22550_s3 + $0x758] ss:$72 sps:$4 sm:$0xff]  }
 0x41f   :  { %12305 = vperm.xlu0 %14785, %v12191_v32   ;;  %9652 = vmatprep.subr.bf16.mxu0 %v22637_v31  ;;  %v5132_v46 = vpop.permute.xlu1 %5131  ;;  %v12194_v32 = vld [vmem:[%s22551_s5 + $0x98] sm:$0xff]  ;;  %v15201_v37 = vld [vmem:[%s22550_s3 + $0x26c] ss:$72 sps:$4 sm:$0xff]   ;;  %v6370_v49 = vmul.f32 %v19363_v15, %v4642_v36 }
 0x420   :  { %10369 = vmatprep.mubr.bf16.mxu1 %v15195_v24  ;;  %v6245_v51 = vmul.f32 %v5132_v46, %v4517_v29  ;;  %v5137_v45 = vpop.permute.xlu0 %5136  ;;  %v4644_v29 = vld [vmem:[%s22549_s2 + $0x680] sm:$0xff]  ;;  %v4521_v15 = vld [vmem:[%s22549_s2 + $0x2a8] sm:$0xff]  ;;  %v4647_v46 = vld [vmem:[%s22549_s2 + $0x698] sm:$0xff] }
 0x421   :  { %10549 = vmatpush1.bf16.msra.mxu1 %v6553_v58  ;;  %9653 = vmatpush1.bf16.msra.mxu0 %v6491_v54  ;;  %v6246_v8 = vmul.f32 %v5137_v45, %v4518_v0  ;;  %v4520_v58 = vld [vmem:[%s22549_s2 + $0x2a0] sm:$0xff]  ;;  %v6555_v25 = vpack.c.bf16 %v6371_v59, %v6370_v49  ;;  %v6373_v54 = vmul.f32 %v19379_v19, %v4645_v6  ;;  %v12197_v19 = vld [vmem:[%s22551_s5 + $0xb0] sm:$0xff]  ;;  %v4649_v59 = vld [vmem:[%s22549_s2 + $0x6a8] sm:$0xff] }
 0x422   :  { %12310 = vperm.xlu1 %14784, %v12192_v34   ;;  %10550 = vmatprep.subr.bf16.mxu1 %v22637_v31  ;;  %v6492_v53 = vpack.c.bf16 %v6245_v51, %v6244_v33  ;;  %v6372_v61 = vmul.f32 %v19375_v21, %v4644_v29  ;;  %v4646_v36 = vld [vmem:[%s22549_s2 + $0x690] sm:$0xff]  ;;  %v4523_v21 = vld [vmem:[%s22549_s2 + $0x2b8] sm:$0xff] }
 0x423   :  { %12315 = vperm.xlu0 %14785, %v12193_v56   ;;  %9542 = vmatmul.mubr.bf16.gmra.mrb[80].mxu0 %v15192_v52  ;;  %v5142_v24 = vpop.permute.xlu1 %5141  ;;  %v12196_v52 = vld [vmem:[%s22551_s5 + $0xa8] sm:$0xff]  ;;  %v4522_v0 = vld [vmem:[%s22549_s2 + $0x2b0] sm:$0xff] }
 0x424   :  { %9654 = vmatprep.subr.bf16.mxu0 %v22637_v31  ;;  %10370 = vmatmul.mubr.bf16.gmra.mrb[4].mxu1 %v15197_v18  ;;  %v6247_v10 = vmul.f32 %v5142_v24, %v4519_v63  ;;  %v5147_v27 = vpop.permute.xlu0 %5146  ;;  %v15203_v18 = vld [vmem:[%s22550_s3 + $0x268] ss:$72 sps:$4 sm:$0xff]   ;;  %v6556_v63 = vpack.c.bf16 %v6373_v54, %v6372_v61  ;;  %v12199_v24 = vld [vmem:[%s22551_s5 + $0xc0] sm:$0xff] }
 0x425   :  { %10551 = vmatpush1.bf16.msra.mxu1 %v6554_v23  ;;  %9655 = vmatpush1.bf16.msra.mxu0 %v6492_v53  ;;  %v6248_v33 = vmul.f32 %v5147_v27, %v4520_v58  ;;  %v6375_v23 = vmul.f32 %v19398_v7, %v4647_v46  ;;  %v12198_v53 = vld [vmem:[%s22551_s5 + $0xb8] sm:$0xff]  ;;  %v15206_v7 = vld [vmem:[%s22550_s3 + $0x7ec] ss:$72 sps:$4 sm:$0xff]   ;;  %v4524_v27 = vld [vmem:[%s22549_s2 + $0x2c0] sm:$0xff]  ;;  %v6377_v58 = vmul.f32 %v19404_v3, %v4649_v59 }
 0x426   :  { %12320 = vperm.xlu1 %14784, %v12194_v32   ;;  %10552 = vmatprep.subr.bf16.mxu1 %v22637_v31  ;;  %v6493_v34 = vpack.c.bf16 %v6247_v10, %v6246_v8  ;;  %v4648_v10 = vld [vmem:[%s22549_s2 + $0x6a0] sm:$0xff]  ;;  %v15204_v54 = vld [vmem:[%s22550_s3 + $0x7e8] ss:$72 sps:$4 sm:$0xff]   ;;  %v15213_v59 = vld [vmem:[%s22550_s3 + $0x38c] ss:$72 sps:$4 sm:$0xff]  }
 0x427   :  { %12325 = vperm.xlu0 %14785, %v12195_v30   ;;  %9656 = vmatprep.subr.bf16.mxu0 %v22637_v31  ;;  %v5152_v56 = vpop.permute.xlu1 %5151  ;;  %v15207_v30 = vld [vmem:[%s22550_s3 + $0x2fc] ss:$72 sps:$4 sm:$0xff]   ;;  %v12201_v3 = vld [vmem:[%s22551_s5 + $0xd0] sm:$0xff]  ;;  %v6376_v46 = vmul.f32 %v19400_v57, %v4648_v10  ;;  %v15210_v10 = vld [vmem:[%s22550_s3 + $0x878] ss:$72 sps:$4 sm:$0xff]  }
 0x428   :  { %9549 = vmatprep.mubr.bf16.mxu0 %v15200_v26  ;;  %10377 = vmatprep.mubr.bf16.mxu1 %v15201_v37  ;;  %v6249_v51 = vmul.f32 %v5152_v56, %v4521_v15  ;;  %v5157_v45 = vpop.permute.xlu0 %5156  ;;  %v6374_v26 = vmul.f32 %v19388_v48, %v4646_v36  ;;  %v4525_v48 = vld [vmem:[%s22549_s2 + $0x2c8] sm:$0xff]  ;;  %v4650_v61 = vld [vmem:[%s22549_s2 + $0x6b0] sm:$0xff]  ;;  %v4527_v57 = vld [vmem:[%s22549_s2 + $0x2d8] sm:$0xff] }
 0x429   :  { %10553 = vmatpush1.bf16.msra.mxu1 %v6555_v25  ;;  %9657 = vmatpush1.bf16.msra.mxu0 %v6493_v34  ;;  %v6250_v37 = vmul.f32 %v5157_v45, %v4522_v0  ;;  %v12200_v25 = vld [vmem:[%s22551_s5 + $0xc8] sm:$0xff]  ;;  %v4651_v34 = vld [vmem:[%s22549_s2 + $0x6b8] sm:$0xff] }
 0x42a   :  { %12330 = vperm.xlu1 %14784, %v12196_v52   ;;  %10554 = vmatprep.subr.bf16.mxu1 %v22637_v31  ;;  %v6494_v6 = vpack.c.bf16 %v6249_v51, %v6248_v33  ;;  %v6557_v29 = vpack.c.bf16 %v6375_v23, %v6374_v26  ;;  %v4526_v33 = vld [vmem:[%s22549_s2 + $0x2d0] sm:$0xff]  ;;  %v6558_v51 = vpack.c.bf16 %v6377_v58, %v6376_v46  ;;  %v4653_v36 = vld [vmem:[%s22549_s2 + $0x6c8] sm:$0xff]  ;;  %v12203_v23 = vld [vmem:[%s22551_s5 + $0xe0] sm:$0xff] }
 0x42b   :  { %12335 = vperm.xlu0 %14785, %v12197_v19   ;;  %9550 = vmatmul.mubr.bf16.gmra.mrb[84].mxu0 %v15198_v62  ;;  %v5162_v32 = vpop.permute.xlu1 %5161  ;;  %v15209_v62 = vld [vmem:[%s22550_s3 + $0x2f8] ss:$72 sps:$4 sm:$0xff]   ;;  %v6379_v45 = vmul.f32 %v19422_v40, %v4651_v34  ;;  %v15212_v40 = vld [vmem:[%s22550_s3 + $0x87c] ss:$72 sps:$4 sm:$0xff]   ;;  %v4654_v34 = vld [vmem:[%s22549_s2 + $0x6d0] sm:$0xff] }
 0x42c   :  { %9658 = vmatprep.subr.bf16.mxu0 %v22637_v31  ;;  %10378 = vmatmul.mubr.bf16.gmra.mrb[8].mxu1 %v15203_v18  ;;  %v6251_v49 = vmul.f32 %v5162_v32, %v4523_v21  ;;  %v5167_v8 = vpop.permute.xlu0 %5166  ;;  %v12202_v21 = vld [vmem:[%s22551_s5 + $0xd8] sm:$0xff]  ;;  %v15218_v46 = vld [vmem:[%s22550_s3 + $0x90c] ss:$72 sps:$4 sm:$0xff]  }
 0x42d   :  { %10555 = vmatpush1.bf16.msra.mxu1 %v6556_v63  ;;  %9659 = vmatpush1.bf16.msra.mxu0 %v6494_v6  ;;  %v6252_v56 = vmul.f32 %v5167_v8, %v4524_v27  ;;  %v6378_v6 = vmul.f32 %v19412_v9, %v4650_v61  ;;  %v4529_v9 = vld [vmem:[%s22549_s2 + $0x2e8] sm:$0xff]  ;;  %v4655_v27 = vld [vmem:[%s22549_s2 + $0x6d8] sm:$0xff] }
 0x42e   :  { %12340 = vperm.xlu1 %14784, %v12198_v53   ;;  %10556 = vmatprep.subr.bf16.mxu1 %v22637_v31  ;;  %v6495_v15 = vpack.c.bf16 %v6251_v49, %v6250_v37  ;;  %v6381_v37 = vmul.f32 %v19428_v4, %v4653_v36  ;;  %v12204_v8 = vld [vmem:[%s22551_s5 + $0xe8] sm:$0xff]  ;;  %v12205_v4 = vld [vmem:[%s22551_s5 + $0xf0] sm:$0xff]  ;;  %v22807_v61 = vld [vmem:[#allocation9_spill] sm:$0xff] }
 0x42f   :  { %12345 = vperm.xlu0 %14785, %v12199_v24   ;;  %9660 = vmatprep.subr.bf16.mxu0 %v22637_v31  ;;  %v5172_v52 = vpop.permute.xlu1 %5171  ;;  %v6559_v26 = vpack.c.bf16 %v6379_v45, %v6378_v6  ;;  %v22808_v36 = vld [vmem:[#allocation10_spill] sm:$0xff] }
 0x430   :  { %9557 = vmatprep.mubr.bf16.mxu0 %v15206_v7  ;;  %10385 = vmatprep.mubr.bf16.mxu1 %v15207_v30  ;;  %v6253_v19 = vmul.f32 %v5172_v52, %v4525_v48  ;;  %v5177_v18 = vpop.permute.xlu0 %5176  ;;  %v4652_v7 = vld [vmem:[%s22549_s2 + $0x6c0] sm:$0xff] }
 0x431   :  { %10557 = vmatpush1.bf16.msra.mxu1 %v6557_v29  ;;  %9661 = vmatpush1.bf16.msra.mxu0 %v6495_v15  ;;  %v6254_v53 = vmul.f32 %v5177_v18, %v4526_v33  ;;  %v4528_v30 = vld [vmem:[%s22549_s2 + $0x2e0] sm:$0xff]  ;;  %v15215_v29 = vld [vmem:[%s22550_s3 + $0x388] ss:$72 sps:$4 sm:$0xff]   ;;  %v6380_v58 = vmul.f32 %v19424_v5, %v4652_v7  ;;  %v12206_v5 = vld [vmem:[%s22551_s5 + $0xf8] sm:$0xff]  ;;  %v6382_v33 = vmul.f32 %v22807_v61, %v4654_v34 }
 0x432   :  { %12350 = vperm.xlu1 %14784, %v12200_v25   ;;  %10558 = vmatprep.subr.bf16.mxu1 %v22637_v31  ;;  %v6496_v0 = vpack.c.bf16 %v6253_v19, %v6252_v56  ;;  %v4657_v56 = vld [vmem:[%s22549_s2 + $0x6e8] sm:$0xff]  ;;  %v15219_v18 = vld [vmem:[%s22550_s3 + $0x41c] ss:$72 sps:$4 sm:$0xff]   ;;  %v15221_v6 = vld [vmem:[%s22550_s3 + $0x418] ss:$72 sps:$4 sm:$0xff]  }
 0x433   :  { %12355 = vperm.xlu0 %14785, %v12201_v3   ;;  %9558 = vmatmul.mubr.bf16.gmra.mrb[88].mxu0 %v15204_v54  ;;  %v5182_v63 = vpop.permute.xlu1 %5181  ;;  %v6560_v52 = vpack.c.bf16 %v6381_v37, %v6380_v58  ;;  %v6383_v3 = vmul.f32 %v19448_v17, %v4655_v27  ;;  %v12207_v17 = vld [vmem:[%s22551_s5 + $0x100] sm:$0xff]  ;;  %v22810_v37 = vld [vmem:[#allocation25_spill] sm:$0xff] }
 0x434   :  { %9662 = vmatprep.subr.bf16.mxu0 %v22637_v31  ;;  %10386 = vmatmul.mubr.bf16.gmra.mrb[12].mxu1 %v15209_v62  ;;  %v6255_v32 = vmul.f32 %v5182_v63, %v4527_v57  ;;  %v5187_v24 = vpop.permute.xlu0 %5186  ;;  %v12208_v63 = vld [vmem:[%s22551_s5 + $0x108] sm:$0xff]  ;;  %v12211_v27 = vld [vmem:[%s22551_s5 + $0x120] sm:$0xff] }
 0x435   :  { %10559 = vmatpush1.bf16.msra.mxu1 %v6558_v51  ;;  %9663 = vmatpush1.bf16.msra.mxu0 %v6496_v0  ;;  %v6256_v15 = vmul.f32 %v5187_v24, %v4528_v30  ;;  %v4656_v51 = vld [vmem:[%s22549_s2 + $0x6e0] sm:$0xff]  ;;  %v6561_v45 = vpack.c.bf16 %v6383_v3, %v6382_v33  ;;  %v6385_v0 = vmul.f32 %v22808_v36, %v4657_v56  ;;  %v15225_v30 = vld [vmem:[%s22550_s3 + $0x4ac] ss:$72 sps:$4 sm:$0xff]   ;;  %v15227_v3 = vld [vmem:[%s22550_s3 + $0x4a8] ss:$72 sps:$4 sm:$0xff]  }
 0x436   :  { %12360 = vperm.xlu1 %14784, %v12202_v21   ;;  %10560 = vmatprep.subr.bf16.mxu1 %v22637_v31  ;;  %v6497_v49 = vpack.c.bf16 %v6255_v32, %v6254_v53  ;;  %v4659_v21 = vld [vmem:[%s22549_s2 + $0x6f8] sm:$0xff]  ;;  %v22809_v32 = vld [vmem:[#allocation24_spill] sm:$0xff]  ;;  %v12216_v33 = vld [vmem:[%s22551_s5 + $0x148] sm:$0xff] }
 0x437   :  { %12365 = vperm.xlu0 %14785, %v12203_v23   ;;  %9664 = vmatprep.subr.bf16.mxu0 %v22637_v31  ;;  %v5192_v48 = vpop.permute.xlu1 %5191  ;;  %v15216_v23 = vld [vmem:[%s22550_s3 + $0x908] ss:$72 sps:$4 sm:$0xff]   ;;  %v15224_v53 = vld [vmem:[%s22550_s3 + $0x99c] ss:$72 sps:$4 sm:$0xff]   ;;  %v6384_v24 = vmul.f32 %v22809_v32, %v4656_v51 }
 0x438   :  { %9565 = vmatprep.mubr.bf16.mxu0 %v15212_v40  ;;  %10393 = vmatprep.mubr.bf16.mxu1 %v15213_v59  ;;  %v6257_v25 = vmul.f32 %v5192_v48, %v4529_v9  ;;  %v20114_v54 = vpop.permute.xlu0 %6016  ;;  %v12209_v59 = vld [vmem:[%s22551_s5 + $0x110] sm:$0xff]  ;;  %v22811_v48 = vld [vmem:[#allocation11_spill] sm:$0xff]  ;;  %v12214_v56 = vld [vmem:[%s22551_s5 + $0x138] sm:$0xff] }
 0x439   :  { %10561 = vmatpush1.bf16.msra.mxu1 %v6559_v26  ;;  %9665 = vmatpush1.bf16.msra.mxu0 %v6497_v49  ;;  %v4658_v9 = vld [vmem:[%s22549_s2 + $0x6f0] sm:$0xff]  ;;  %v6562_v26 = vpack.c.bf16 %v6385_v0, %v6384_v24  ;;  %v6387_v49 = vmul.f32 %v22810_v37, %v4659_v21  ;;  %v15233_v0 = vld [vmem:[%s22550_s3 + $0x538] ss:$72 sps:$4 sm:$0xff]   ;;  %v15236_v21 = vld [vmem:[%s22550_s3 + $0xabc] ss:$72 sps:$4 sm:$0xff]  }
 0x43a   :  { %12370 = vperm.xlu1 %14784, %v12204_v8   ;;  %10562 = vmatprep.subr.bf16.mxu1 %v22637_v31  ;;  %v6498_v62 = vpack.c.bf16 %v6257_v25, %v6256_v15  ;;  %v12210_v8 = vld [vmem:[%s22551_s5 + $0x118] sm:$0xff]  ;;  %v12212_v15 = vld [vmem:[%s22551_s5 + $0x128] sm:$0xff]  ;;  %v12217_v36 = vld [vmem:[%s22551_s5 + $0x150] sm:$0xff] }
 0x43b   :  { %12375 = vperm.xlu0 %14785, %v12205_v4   ;;  %9566 = vmatmul.mubr.bf16.gmra.mrb[92].mxu0 %v15210_v10  ;;  %v20131_v19 = vpop.permute.xlu1 %6021  ;;  %v6386_v4 = vmul.f32 %v22811_v48, %v4658_v9  ;;  %v15222_v25 = vld [vmem:[%s22550_s3 + $0x998] ss:$72 sps:$4 sm:$0xff]   ;;  %v15228_v51 = vld [vmem:[%s22550_s3 + $0xa28] ss:$72 sps:$4 sm:$0xff]   ;;  %v15242_v37 = vld [vmem:[%s22550_s3 + $0xb4c] ss:$72 sps:$4 sm:$0xff]  }
 0x43c   :  { %9666 = vmatprep.subr.bf16.mxu0 %v22637_v31  ;;  %10394 = vmatmul.mubr.bf16.gmra.mrb[16].mxu1 %v15215_v29  ;;  %v20140_v57 = vpop.permute.xlu0 %6006  ;;  %v12220_v24 = vld [vmem:[%s22551_s5 + $0x168] sm:$0xff] }
 0x43d   :  { %10563 = vmatpush1.bf16.msra.mxu1 %v6560_v52  ;;  %9667 = vmatpush1.bf16.msra.mxu0 %v6498_v62  ;;  %v6563_v58 = vpack.c.bf16 %v6387_v49, %v6386_v4  ;;  %v12213_v52 = vld [vmem:[%s22551_s5 + $0x130] sm:$0xff] }
 0x43e   :  { %12380 = vperm.xlu1 %14784, %v12206_v5   ;;  %10564 = vmatprep.subr.bf16.mxu1 %v22637_v31  ;;  %v15230_v62 = vld [vmem:[%s22550_s3 + $0xa2c] ss:$72 sps:$4 sm:$0xff]   ;;  %v15240_v4 = vld [vmem:[%s22550_s3 + $0xb48] ss:$72 sps:$4 sm:$0xff]  }
 0x43f   :  { %12385 = vperm.xlu0 %14785, %v12207_v17   ;;  %9573 = vmatprep.mubr.bf16.mxu0 %v15218_v46  ;;  %v20156_v40 = vpop.permute.xlu1 %6011  ;;  %v15231_v46 = vld [vmem:[%s22550_s3 + $0x53c] ss:$72 sps:$4 sm:$0xff]  }
 0x440   :  { %10401 = vmatprep.mubr.bf16.mxu1 %v15219_v18  ;;  %9668 = vmatprep.subr.bf16.mxu0 %v22637_v31  ;;  %v20169_v7 = vpop.permute.xlu0 %6036  ;;  %v12215_v18 = vld [vmem:[%s22551_s5 + $0x140] sm:$0xff] }
 0x441   :  { %10565 = vmatpush1.bf16.msra.mxu1 %v6561_v45 }
 0x442   :  { %12390 = vperm.xlu1 %14784, %v12208_v63   ;;  %10566 = vmatprep.subr.bf16.mxu1 %v22637_v31 }
 0x443   :  { %12395 = vperm.xlu0 %14785, %v12209_v59   ;;  %9574 = vmatmul.mubr.bf16.gmra.mrb[96].mxu0 %v15216_v23  ;;  %v15237_v23 = vld [vmem:[%s22550_s3 + $0x5cc] ss:$72 sps:$4 sm:$0xff]   ;;  %v12218_v59 = vld [vmem:[%s22551_s5 + $0x158] sm:$0xff] }
 0x444   :  { %10402 = vmatmul.mubr.bf16.gmra.mrb[20].mxu1 %v15221_v6  ;;  %v20182_v10 = vpop.permute.xlu1 %6041  ;;  %9581 = vmatprep.mubr.bf16.mxu0 %v15224_v53  ;;  %v12219_v53 = vld [vmem:[%s22551_s5 + $0x160] sm:$0xff] }
 0x445   :  { %10567 = vmatpush1.bf16.msra.mxu1 %v6562_v26  ;;  %v20188_v29 = vpop.permute.xlu0 %6026  ;;  %10409 = vmatprep.mubr.bf16.mxu1 %v15225_v30  ;;  %v15234_v30 = vld [vmem:[%s22550_s3 + $0xab8] ss:$72 sps:$4 sm:$0xff]   ;;  %v15239_v26 = vld [vmem:[%s22550_s3 + $0x5c8] ss:$72 sps:$4 sm:$0xff]  }
 0x446   :  { %12400 = vperm.xlu1 %14784, %v12210_v8   ;;  %10568 = vmatprep.subr.bf16.mxu1 %v22637_v31  ;;  %v15243_v8 = vld [vmem:[%s22550_s3 + $0x65c] ss:$72 sps:$4 sm:$0xff]  }
 0x447   :  { %12405 = vperm.xlu0 %14785, %v12211_v27  }
 0x448   :  { %v20197_v34 = vpop.permute.xlu1 %6031 }
 0x449   :  { %10569 = vmatpush1.bf16.msra.mxu1 %v6563_v58  ;;  %v20208_v5 = vpop.permute.xlu0 %6056 }
 0x44a   :  { %12410 = vperm.xlu1 %14784, %v12212_v15   ;;  %10763 = vmatprep.subr.bf16.mxu1 %v22637_v31  ;;  %v15245_v15 = vld [vmem:[%s22550_s3 + $0x658] ss:$72 sps:$4 sm:$0xff]  }
 0x44b   :  { %12415 = vperm.xlu0 %14785, %v12213_v52   ;;  %9582 = vmatmul.mubr.bf16.gmra.mrb[100].mxu0 %v15222_v25  ;;  %v15248_v25 = vld [vmem:[%s22550_s3 + $0xbdc] ss:$72 sps:$4 sm:$0xff]   ;;  %v15249_v52 = vld [vmem:[%s22550_s3 + $0x6ec] ss:$72 sps:$4 sm:$0xff]  }
 0x44c   :  { %10410 = vmatmul.mubr.bf16.gmra.mrb[24].mxu1 %v15227_v3  ;;  %v20217_v17 = vpop.permute.xlu1 %6061  ;;  %9589 = vmatprep.mubr.bf16.mxu0 %v15230_v62  ;;  %v4530_v3 = vld [vmem:[%s22549_s2 + $0x2f0] sm:$0xff] }
 0x44d   :  { %v20222_v61 = vpop.permute.xlu0 %6046  ;;  %10417 = vmatprep.mubr.bf16.mxu1 %v15231_v46  ;;  %v4531_v46 = vld [vmem:[%s22549_s2 + $0x2f8] sm:$0xff] }
 0x44e   :  { %12420 = vperm.xlu1 %14784, %v12214_v56  }
 0x44f   :  { %12425 = vperm.xlu0 %14785, %v12215_v18  }
 0x450   :  { %v20230_v45 = vpop.permute.xlu1 %6051 }
 0x451   :  { %v20241_v63 = vpop.permute.xlu0 %6076 }
 0x452   :  { %12430 = vperm.xlu1 %14784, %v12216_v33  }
 0x453   :  { %12435 = vperm.xlu0 %14785, %v12217_v36   ;;  %9590 = vmatmul.mubr.bf16.gmra.mrb[104].mxu0 %v15228_v51  ;;  %v15246_v36 = vld [vmem:[%s22550_s3 + $0xbd8] ss:$72 sps:$4 sm:$0xff]  }
 0x454   :  { %10418 = vmatmul.mubr.bf16.gmra.mrb[28].mxu1 %v15233_v0  ;;  %v20249_v6 = vpop.permute.xlu1 %6081  ;;  %9597 = vmatprep.mubr.bf16.mxu0 %v15236_v21  ;;  %v15251_v0 = vld [vmem:[%s22550_s3 + $0x6e8] ss:$72 sps:$4 sm:$0xff]   ;;  %v15254_v21 = vld [vmem:[%s22550_s3 + $0xc6c] ss:$72 sps:$4 sm:$0xff]  }
 0x455   :  { %v20254_v32 = vpop.permute.xlu0 %6066  ;;  %10425 = vmatprep.mubr.bf16.mxu1 %v15237_v23  ;;  %v15255_v23 = vld [vmem:[%s22550_s3 + $0x77c] ss:$72 sps:$4 sm:$0xff]  }
 0x456   :  { %12440 = vperm.xlu1 %14784, %v12218_v59   ;;  %v15252_v59 = vld [vmem:[%s22550_s3 + $0xc68] ss:$72 sps:$4 sm:$0xff]  }
 0x457   :  { %12445 = vperm.xlu0 %14785, %v12219_v53   ;;  %v15257_v53 = vld [vmem:[%s22550_s3 + $0x778] ss:$72 sps:$4 sm:$0xff]  }
 0x458   :  { %v20262_v9 = vpop.permute.xlu1 %6071 }
 0x459   :  { %v20270_v49 = vpop.permute.xlu0 %6096 }
 0x45a   :  { %12450 = vperm.xlu1 %14784, %v12220_v24   ;;  %v15260_v24 = vld [vmem:[%s22550_s3 + $0xcfc] ss:$72 sps:$4 sm:$0xff]  }
 0x45b   :  { %9598 = vmatmul.mubr.bf16.gmra.mrb[108].mxu0 %v15234_v30  ;;  %v15261_v30 = vld [vmem:[%s22550_s3 + $0x80c] ss:$72 sps:$4 sm:$0xff]  }
 0x45c   :  { %10426 = vmatmul.mubr.bf16.gmra.mrb[32].mxu1 %v15239_v26  ;;  %v20275_v27 = vpop.permute.xlu1 %6101  ;;  %9605 = vmatprep.mubr.bf16.mxu0 %v15242_v37  ;;  %v15258_v26 = vld [vmem:[%s22550_s3 + $0xcf8] ss:$72 sps:$4 sm:$0xff]   ;;  %v15263_v37 = vld [vmem:[%s22550_s3 + $0x808] ss:$72 sps:$4 sm:$0xff]  }
 0x45d   :  { %v20277_v48 = vpop.permute.xlu0 %6086  ;;  %10433 = vmatprep.mubr.bf16.mxu1 %v15243_v8  ;;  %v15266_v8 = vld [vmem:[%s22550_s3 + $0x14] ss:$72 sps:$4 sm:$0xff]  }
 0x460   :  { %v20282_v58 = vpop.permute.xlu1 %6091 }
 0x461   :  { %v5197_v62 = vpop.permute.xlu0 %5196 }
 0x462   :  { %v6258_v18 = vmul.f32 %v5197_v62, %v4530_v3  ;;  %v15273_v3 = vld [vmem:[%s22550_s3 + $0x92c] ss:$72 sps:$4 sm:$0xff]  }
 0x463   :  { %9606 = vmatmul.mubr.bf16.gmra.mrb[112].mxu0 %v15240_v4  ;;  %v15267_v4 = vld [vmem:[%s22550_s3 + $0x89c] ss:$72 sps:$4 sm:$0xff]   ;;  %v22812_v62 = vld [vmem:[#allocation47_spill] sm:$0xff] }
 0x464   :  { %10434 = vmatmul.mubr.bf16.gmra.mrb[36].mxu1 %v15245_v15  ;;  %v5202_v56 = vpop.permute.xlu1 %5201  ;;  %9613 = vmatprep.mubr.bf16.mxu0 %v15248_v25  ;;  %v15264_v15 = vld [vmem:[%s22550_s3 + $0x10] ss:$72 sps:$4 sm:$0xff]  }
 0x465   :  { %v6259_v33 = vmul.f32 %v5202_v56, %v4531_v46  ;;  %10441 = vmatprep.mubr.bf16.mxu1 %v15249_v52  ;;  %v15269_v25 = vld [vmem:[%s22550_s3 + $0x898] ss:$72 sps:$4 sm:$0xff]   ;;  %v15272_v52 = vld [vmem:[%s22550_s3 + $0xa4] ss:$72 sps:$4 sm:$0xff]   ;;  %v22813_v56 = vld [vmem:[#allocation48_spill] sm:$0xff] }
 0x466   :  { %v15270_v46 = vld [vmem:[%s22550_s3 + $0xa0] ss:$72 sps:$4 sm:$0xff]  }
 0x467   :  { %v6499_v51 = vpack.c.bf16 %v6259_v33, %v6258_v18  ;;  %v15275_v18 = vld [vmem:[%s22550_s3 + $0x928] ss:$72 sps:$4 sm:$0xff]   ;;  %v15278_v33 = vld [vmem:[%s22550_s3 + $0x134] ss:$72 sps:$4 sm:$0xff]  }
 0x469   :  { %9669 = vmatpush1.bf16.msra.mxu0 %v6499_v51  ;;  %v15279_v51 = vld [vmem:[%s22550_s3 + $0x9bc] ss:$72 sps:$4 sm:$0xff]  }
 0x46a   :  { %9863 = vmatprep.subr.bf16.mxu0 %v22637_v31 }
 0x46b   :  { %9614 = vmatmul.mubr.bf16.gmra.mrb[116].mxu0 %v15246_v36  ;;  %v22814_v36 = vld [vmem:[#allocation49_spill] sm:$0xff] }
 0x46c   :  { %10442 = vmatmul.mubr.bf16.gmra.mrb[40].mxu1 %v15251_v0  ;;  %9621 = vmatprep.mubr.bf16.mxu0 %v15254_v21  ;;  %v15276_v0 = vld [vmem:[%s22550_s3 + $0x130] ss:$72 sps:$4 sm:$0xff]   ;;  %v22815_v21 = vld [vmem:[#allocation50_spill] sm:$0xff] }
 0x46d   :  { %10449 = vmatprep.mubr.bf16.mxu1 %v15255_v23  ;;  %v15281_v23 = vld [vmem:[%s22550_s3 + $0x9b8] ss:$72 sps:$4 sm:$0xff]  }
 0x473   :  { %9622 = vmatmul.mubr.bf16.gmra.mrb[120].mxu0 %v15252_v59  ;;  %v15284_v59 = vld [vmem:[%s22550_s3 + $0x1c4] ss:$72 sps:$4 sm:$0xff]  }
 0x474   :  { %10450 = vmatmul.mubr.bf16.gmra.mrb[44].mxu1 %v15257_v53  ;;  %9629 = vmatprep.mubr.bf16.mxu0 %v15260_v24  ;;  %v15285_v53 = vld [vmem:[%s22550_s3 + $0xa4c] ss:$72 sps:$4 sm:$0xff]  }
 0x475   :  { %10457 = vmatprep.mubr.bf16.mxu1 %v15261_v30  ;;  %v22816_v24 = vld [vmem:[#allocation51_spill] sm:$0xff] }
 0x476   :  { %v15282_v30 = vld [vmem:[%s22550_s3 + $0x1c0] ss:$72 sps:$4 sm:$0xff]  }
 0x47b   :  { %9630 = vmatmul.mubr.bf16.gmra.mrb[124].mxu0 %v15258_v26  ;;  %v22817_v26 = vld [vmem:[#allocation52_spill] sm:$0xff] }
 0x47c   :  { %10458 = vmatmul.mubr.bf16.gmra.mrb[48].mxu1 %v15263_v37  ;;  %9670 = vmatprep.mubr.bf16.mxu0 %v15266_v8  ;;  %v15287_v37 = vld [vmem:[%s22550_s3 + $0xa48] ss:$72 sps:$4 sm:$0xff]   ;;  %v15290_v8 = vld [vmem:[%s22550_s3 + $0x254] ss:$72 sps:$4 sm:$0xff]  }
 0x47d   :  { %10465 = vmatprep.mubr.bf16.mxu1 %v15267_v4  ;;  %v15291_v4 = vld [vmem:[%s22550_s3 + $0xadc] ss:$72 sps:$4 sm:$0xff]  }
 0x483   :  { %9671 = vmatmul.mubr.bf16.vlgmr.msra.gmra.mrb[32].mxu0 %v15264_v15  ;;  %v22818_v15 = vld [vmem:[#allocation53_spill] sm:$0xff] }
 0x484   :  { %9864 = vmatpush1.bf16.msra.mxu0 %v22812_v62  ;;  %10466 = vmatmul.mubr.bf16.gmra.mrb[52].mxu1 %v15269_v25  ;;  %v15288_v25 = vld [vmem:[%s22550_s3 + $0x250] ss:$72 sps:$4 sm:$0xff]   ;;  %v15296_v62 = vld [vmem:[%s22550_s3 + $0x2e4] ss:$72 sps:$4 sm:$0xff]  }
 0x485   :  { %9865 = vmatprep.subr.bf16.mxu0 %v22637_v31  ;;  %9678 = vmatprep.mubr.bf16.mxu0 %v15272_v52  ;;  %v22819_v52 = vld [vmem:[#allocation54_spill] sm:$0xff] }
 0x486   :  { %10473 = vmatprep.mubr.bf16.mxu1 %v15273_v3  ;;  %v15293_v3 = vld [vmem:[%s22550_s3 + $0xad8] ss:$72 sps:$4 sm:$0xff]  }
 0x488   :  { %9866 = vmatpush1.bf16.msra.mxu0 %v22813_v56  ;;  %v22820_v56 = vld [vmem:[#allocation55_spill] sm:$0xff] }
 0x489   :  { %9867 = vmatprep.subr.bf16.mxu0 %v22637_v31 }
 0x48b   :  { %9679 = vmatmul.mubr.bf16.gmra.mrb[36].mxu0 %v15270_v46  ;;  %v15297_v46 = vld [vmem:[%s22550_s3 + $0xb6c] ss:$72 sps:$4 sm:$0xff]  }
 0x48c   :  { %9868 = vmatpush1.bf16.msra.mxu0 %v22814_v36  ;;  %10474 = vmatmul.mubr.bf16.gmra.mrb[56].mxu1 %v15275_v18  ;;  %v15294_v18 = vld [vmem:[%s22550_s3 + $0x2e0] ss:$72 sps:$4 sm:$0xff]   ;;  %v15302_v36 = vld [vmem:[%s22550_s3 + $0x374] ss:$72 sps:$4 sm:$0xff]  }
 0x48d   :  { %9869 = vmatprep.subr.bf16.mxu0 %v22637_v31  ;;  %9686 = vmatprep.mubr.bf16.mxu0 %v15278_v33  ;;  %v22821_v33 = vld [vmem:[#allocation56_spill] sm:$0xff] }
 0x48e   :  { %10481 = vmatprep.mubr.bf16.mxu1 %v15279_v51  ;;  %v15299_v51 = vld [vmem:[%s22550_s3 + $0xb68] ss:$72 sps:$4 sm:$0xff]  }
 0x490   :  { %9870 = vmatpush1.bf16.msra.mxu0 %v22815_v21  ;;  %v22822_v21 = vld [vmem:[#allocation57_spill] sm:$0xff] }
 0x491   :  { %9871 = vmatprep.subr.bf16.mxu0 %v22637_v31 }
 0x493   :  { %9687 = vmatmul.mubr.bf16.gmra.mrb[40].mxu0 %v15276_v0  ;;  %v15303_v0 = vld [vmem:[%s22550_s3 + $0xbfc] ss:$72 sps:$4 sm:$0xff]  }
 0x494   :  { %9872 = vmatpush1.bf16.msra.mxu0 %v22816_v24  ;;  %10482 = vmatmul.mubr.bf16.gmra.mrb[60].mxu1 %v15281_v23  ;;  %v15300_v23 = vld [vmem:[%s22550_s3 + $0x370] ss:$72 sps:$4 sm:$0xff]   ;;  %v15308_v24 = vld [vmem:[%s22550_s3 + $0x404] ss:$72 sps:$4 sm:$0xff]  }
 0x495   :  { %9873 = vmatprep.subr.bf16.mxu0 %v22637_v31  ;;  %9694 = vmatprep.mubr.bf16.mxu0 %v15284_v59  ;;  %v22823_v59 = vld [vmem:[#allocation58_spill] sm:$0xff] }
 0x496   :  { %10489 = vmatprep.mubr.bf16.mxu1 %v15285_v53  ;;  %v15305_v53 = vld [vmem:[%s22550_s3 + $0xbf8] ss:$72 sps:$4 sm:$0xff]  }
 0x498   :  { %9874 = vmatpush1.bf16.msra.mxu0 %v22817_v26  ;;  %v22824_v26 = vld [vmem:[#allocation59_spill] sm:$0xff] }
 0x499   :  { %9875 = vmatprep.subr.bf16.mxu0 %v22637_v31 }
 0x49b   :  { %9695 = vmatmul.mubr.bf16.gmra.mrb[44].mxu0 %v15282_v30  ;;  %v15309_v30 = vld [vmem:[%s22550_s3 + $0xc8c] ss:$72 sps:$4 sm:$0xff]  }
 0x49c   :  { %9876 = vmatpush1.bf16.msra.mxu0 %v22818_v15  ;;  %10490 = vmatmul.mubr.bf16.gmra.mrb[64].mxu1 %v15287_v37  ;;  %v15306_v37 = vld [vmem:[%s22550_s3 + $0x400] ss:$72 sps:$4 sm:$0xff]   ;;  %v15314_v15 = vld [vmem:[%s22550_s3 + $0x494] ss:$72 sps:$4 sm:$0xff]  }
 0x49d   :  { %9877 = vmatprep.subr.bf16.mxu0 %v22637_v31  ;;  %9702 = vmatprep.mubr.bf16.mxu0 %v15290_v8  ;;  %v22825_v8 = vld [vmem:[#allocation60_spill] sm:$0xff] }
 0x49e   :  { %10497 = vmatprep.mubr.bf16.mxu1 %v15291_v4  ;;  %v15311_v4 = vld [vmem:[%s22550_s3 + $0xc88] ss:$72 sps:$4 sm:$0xff]  }
 0x4a0   :  { %9878 = vmatpush1.bf16.msra.mxu0 %v22819_v52  ;;  %v22826_v52 = vld [vmem:[#allocation61_spill] sm:$0xff] }
 0x4a1   :  { %9879 = vmatprep.subr.bf16.mxu0 %v22637_v31 }
 0x4a3   :  { %9703 = vmatmul.mubr.bf16.gmra.mrb[48].mxu0 %v15288_v25  ;;  %v15315_v25 = vld [vmem:[%s22550_s3 + $0xd1c] ss:$72 sps:$4 sm:$0xff]  }
 0x4a4   :  { %9880 = vmatpush1.bf16.msra.mxu0 %v22820_v56  ;;  %10498 = vmatmul.mubr.bf16.gmra.mrb[68].mxu1 %v15293_v3  ;;  %v15312_v3 = vld [vmem:[%s22550_s3 + $0x490] ss:$72 sps:$4 sm:$0xff]   ;;  %v15320_v56 = vld [vmem:[%s22550_s3 + $0x524] ss:$72 sps:$4 sm:$0xff]  }
 0x4a5   :  { %9881 = vmatprep.subr.bf16.mxu0 %v22637_v31  ;;  %9710 = vmatprep.mubr.bf16.mxu0 %v15296_v62  ;;  %v22827_v62 = vld [vmem:[#allocation62_spill] sm:$0xff] }
 0x4a6   :  { %10505 = vmatprep.mubr.bf16.mxu1 %v15297_v46  ;;  %v15317_v46 = vld [vmem:[%s22550_s3 + $0xd18] ss:$72 sps:$4 sm:$0xff]  }
 0x4a8   :  { %9882 = vmatpush1.bf16.msra.mxu0 %v22821_v33  ;;  %v4661_v33 = vld [vmem:[%s22549_s2 + $0x708] sm:$0xff] }
 0x4a9   :  { %9883 = vmatprep.subr.bf16.mxu0 %v22637_v31 }
 0x4ab   :  { %9711 = vmatmul.mubr.bf16.gmra.mrb[52].mxu0 %v15294_v18  ;;  %v15323_v18 = vld [vmem:[%s22550_s3 + $0x34] ss:$72 sps:$4 sm:$0xff]  }
 0x4ac   :  { %9884 = vmatpush1.bf16.msra.mxu0 %v22822_v21  ;;  %10506 = vmatmul.mubr.bf16.gmra.mrb[72].mxu1 %v15299_v51  ;;  %v4660_v51 = vld [vmem:[%s22549_s2 + $0x700] sm:$0xff]  ;;  %v4663_v21 = vld [vmem:[%s22549_s2 + $0x718] sm:$0xff] }
 0x4ad   :  { %9885 = vmatprep.subr.bf16.mxu0 %v22637_v31  ;;  %9718 = vmatprep.mubr.bf16.mxu0 %v15302_v36  ;;  %v6389_v36 = vmul.f32 %v19596_v2, %v4661_v33  ;;  %v15327_v2 = vld [vmem:[%s22550_s3 + $0xc4] ss:$72 sps:$4 sm:$0xff]  }
 0x4ae   :  { %10513 = vmatprep.mubr.bf16.mxu1 %v15303_v0  ;;  %v15318_v0 = vld [vmem:[%s22550_s3 + $0x520] ss:$72 sps:$4 sm:$0xff]  }
 0x4af   :  { %v4668_v33 = vld [vmem:[%s22549_s2 + $0x740] sm:$0xff] }
 0x4b0   :  { %9886 = vmatpush1.bf16.msra.mxu0 %v22823_v59  ;;  %v15326_v59 = vld [vmem:[%s22550_s3 + $0x5b4] ss:$72 sps:$4 sm:$0xff]  }
 0x4b1   :  { %9887 = vmatprep.subr.bf16.mxu0 %v22637_v31 }
 0x4b3   :  { %9719 = vmatmul.mubr.bf16.gmra.mrb[56].mxu0 %v15300_v23  ;;  %v15321_v23 = vld [vmem:[%s22550_s3 + $0x30] ss:$72 sps:$4 sm:$0xff]  }
 0x4b4   :  { %9888 = vmatpush1.bf16.msra.mxu0 %v22824_v26  ;;  %10514 = vmatmul.mubr.bf16.gmra.mrb[76].mxu1 %v15305_v53  ;;  %v6388_v53 = vmul.f32 %v19591_v42, %v4660_v51  ;;  %v6391_v26 = vmul.f32 %v19616_v11, %v4663_v21  ;;  %v15338_v21 = vld [vmem:[%s22550_s3 + $0x6d4] ss:$72 sps:$4 sm:$0xff]  }
 0x4b5   :  { %9889 = vmatprep.subr.bf16.mxu0 %v22637_v31  ;;  %9726 = vmatprep.mubr.bf16.mxu0 %v15308_v24  ;;  %v4662_v24 = vld [vmem:[%s22549_s2 + $0x710] sm:$0xff] }
 0x4b6   :  { %10521 = vmatprep.mubr.bf16.mxu1 %v15309_v30  ;;  %v6564_v30 = vpack.c.bf16 %v6389_v36, %v6388_v53  ;;  %v6390_v42 = vmul.f32 %v19605_v55, %v4662_v24  ;;  %v15329_v55 = vld [vmem:[%s22550_s3 + $0xc0] ss:$72 sps:$4 sm:$0xff]  }
 0x4b7   :  { %v15330_v36 = vld [vmem:[%s22550_s3 + $0x640] ss:$72 sps:$4 sm:$0xff]  }
 0x4b8   :  { %9890 = vmatpush1.bf16.msra.mxu0 %v22825_v8  ;;  %v4664_v8 = vld [vmem:[%s22549_s2 + $0x720] sm:$0xff]  ;;  %v4673_v24 = vld [vmem:[%s22549_s2 + $0x768] sm:$0xff] }
 0x4b9   :  { %9891 = vmatprep.subr.bf16.mxu0 %v22637_v31 }
 0x4bb   :  { %9727 = vmatmul.mubr.bf16.gmra.mrb[60].mxu0 %v15306_v37  ;;  %v4665_v37 = vld [vmem:[%s22549_s2 + $0x728] sm:$0xff] }
 0x4bc   :  { %9892 = vmatpush1.bf16.msra.mxu0 %v22826_v52  ;;  %10522 = vmatmul.mubr.bf16.gmra.mrb[80].mxu1 %v15311_v4  ;;  %v6565_v4 = vpack.c.bf16 %v6391_v26, %v6390_v42  ;;  %v6393_v11 = vmul.f32 %v19629_v60, %v4665_v37  ;;  %v15332_v52 = vld [vmem:[%s22550_s3 + $0x644] ss:$72 sps:$4 sm:$0xff]   ;;  %v15333_v60 = vld [vmem:[%s22550_s3 + $0x154] ss:$72 sps:$4 sm:$0xff]   ;;  %v15336_v37 = vld [vmem:[%s22550_s3 + $0x6d0] ss:$72 sps:$4 sm:$0xff]  }
 0x4bd   :  { %9893 = vmatprep.subr.bf16.mxu0 %v22637_v31  ;;  %9734 = vmatprep.mubr.bf16.mxu0 %v15314_v15  ;;  %v15324_v15 = vld [vmem:[%s22550_s3 + $0x5b0] ss:$72 sps:$4 sm:$0xff]  }
 0x4be   :  { %10529 = vmatprep.mubr.bf16.mxu1 %v15315_v25  ;;  %v4667_v25 = vld [vmem:[%s22549_s2 + $0x738] sm:$0xff] }
 0x4bf   :  { %v4675_v42 = vld [vmem:[%s22549_s2 + $0x778] sm:$0xff] }
 0x4c0   :  { %9894 = vmatpush1.bf16.msra.mxu0 %v22827_v62  ;;  %v4666_v62 = vld [vmem:[%s22549_s2 + $0x730] sm:$0xff] }
 0x4c3   :  { %9735 = vmatmul.mubr.bf16.gmra.mrb[64].mxu0 %v15312_v3  ;;  %v6392_v3 = vmul.f32 %v19619_v22, %v4664_v8  ;;  %v6394_v22 = vmul.f32 %v19637_v44, %v4666_v62  ;;  %v15335_v44 = vld [vmem:[%s22550_s3 + $0x150] ss:$72 sps:$4 sm:$0xff]   ;;  %v15344_v8 = vld [vmem:[%s22550_s3 + $0x764] ss:$72 sps:$4 sm:$0xff]  }
 0x4c4   :  { %10530 = vmatmul.mubr.bf16.gmra.mrb[84].mxu1 %v15317_v46  ;;  %9742 = vmatprep.mubr.bf16.mxu0 %v15320_v56  ;;  %v6395_v56 = vmul.f32 %v19640_v14, %v4667_v25  ;;  %v6403_v25 = vmul.f32 %v19680_v28, %v4675_v42  ;;  %v4679_v62 = vld [vmem:[%s22549_s2 + $0x798] sm:$0xff]  ;;  %v22831_v42 = vld [vmem:[#allocation30_spill] sm:$0xff] }
 0x4c5   :  { %10570 = vmatprep.mubr.bf16.mxu1 %v15323_v18  ;;  %v6566_v46 = vpack.c.bf16 %v6393_v11, %v6392_v3  ;;  %v4669_v18 = vld [vmem:[%s22549_s2 + $0x748] sm:$0xff]  ;;  %v4674_v11 = vld [vmem:[%s22549_s2 + $0x770] sm:$0xff] }
 0x4c6   :  { %v6567_v51 = vpack.c.bf16 %v6395_v56, %v6394_v22  ;;  %v6397_v14 = vmul.f32 %v19650_v47, %v4669_v18  ;;  %v15339_v47 = vld [vmem:[%s22550_s3 + $0x1e4] ss:$72 sps:$4 sm:$0xff]   ;;  %v4678_v18 = vld [vmem:[%s22549_s2 + $0x790] sm:$0xff] }
 0x4cb   :  { %9743 = vmatmul.mubr.bf16.gmra.mrb[68].mxu0 %v15318_v0  ;;  %v4671_v0 = vld [vmem:[%s22549_s2 + $0x758] sm:$0xff] }
 0x4cc   :  { %10571 = vmatmul.mubr.bf16.vlgmr.msra.gmra.mrb[88].mxu1 %v15321_v23  ;;  %9750 = vmatprep.mubr.bf16.mxu0 %v15326_v59  ;;  %v6396_v23 = vmul.f32 %v19642_v43, %v4668_v33  ;;  %v4670_v59 = vld [vmem:[%s22549_s2 + $0x750] sm:$0xff]  ;;  %v6407_v33 = vmul.f32 %v19700_v12, %v4679_v62  ;;  %v22834_v62 = vld [vmem:[#allocation31_spill] sm:$0xff] }
 0x4cd   :  { %10764 = vmatpush1.bf16.msra.mxu1 %v6564_v30  ;;  %10578 = vmatprep.mubr.bf16.mxu1 %v15327_v2  ;;  %v6399_v2 = vmul.f32 %v19660_v16, %v4671_v0  ;;  %v6398_v43 = vmul.f32 %v19658_v41, %v4670_v59  ;;  %v4672_v30 = vld [vmem:[%s22549_s2 + $0x760] sm:$0xff]  ;;  %v6401_v16 = vmul.f32 %v19670_v50, %v4673_v24  ;;  %v15345_v50 = vld [vmem:[%s22550_s3 + $0x274] ss:$72 sps:$4 sm:$0xff]   ;;  %v15348_v0 = vld [vmem:[%s22550_s3 + $0x7f0] ss:$72 sps:$4 sm:$0xff]  }
 0x4ce   :  { %10765 = vmatprep.subr.bf16.mxu1 %v22637_v31  ;;  %v6568_v53 = vpack.c.bf16 %v6397_v14, %v6396_v23  ;;  %v15341_v41 = vld [vmem:[%s22550_s3 + $0x1e0] ss:$72 sps:$4 sm:$0xff]   ;;  %v4682_v59 = vld [vmem:[%s22549_s2 + $0x7b0] sm:$0xff] }
 0x4cf   :  { %v6569_v26 = vpack.c.bf16 %v6399_v2, %v6398_v43  ;;  %v4680_v14 = vld [vmem:[%s22549_s2 + $0x7a0] sm:$0xff]  ;;  %v22829_v2 = vld [vmem:[#allocation28_spill] sm:$0xff]  ;;  %v4685_v43 = vld [vmem:[%s22549_s2 + $0x7c8] sm:$0xff] }
 0x4d0   :  { %v22828_v23 = vld [vmem:[#allocation26_spill] sm:$0xff] }
 0x4d1   :  { %10766 = vmatpush1.bf16.msra.mxu1 %v6565_v4  ;;  %v6400_v4 = vmul.f32 %v19662_v13, %v4672_v30  ;;  %v6402_v13 = vmul.f32 %v19678_v20, %v4674_v11  ;;  %v15347_v20 = vld [vmem:[%s22550_s3 + $0x270] ss:$72 sps:$4 sm:$0xff]   ;;  %v22830_v30 = vld [vmem:[#allocation27_spill] sm:$0xff]  ;;  %v15362_v11 = vld [vmem:[%s22550_s3 + $0x914] ss:$72 sps:$4 sm:$0xff]  }
 0x4d2   :  { %10767 = vmatprep.subr.bf16.mxu1 %v22637_v31 }
 0x4d3   :  { %9751 = vmatmul.mubr.bf16.gmra.mrb[72].mxu0 %v15324_v15  ;;  %v6570_v15 = vpack.c.bf16 %v6401_v16, %v6400_v4  ;;  %v6571_v3 = vpack.c.bf16 %v6403_v25, %v6402_v13  ;;  %v4684_v16 = vld [vmem:[%s22549_s2 + $0x7c0] sm:$0xff]  ;;  %v4687_v4 = vld [vmem:[%s22549_s2 + $0x7d8] sm:$0xff]  ;;  %v4686_v13 = vld [vmem:[%s22549_s2 + $0x7d0] sm:$0xff] }
 0x4d4   :  { %10579 = vmatmul.mubr.bf16.gmra.mrb[92].mxu1 %v15329_v55  ;;  %9758 = vmatprep.mubr.bf16.mxu0 %v15332_v52  ;;  %v4677_v55 = vld [vmem:[%s22549_s2 + $0x788] sm:$0xff]  ;;  %v4676_v52 = vld [vmem:[%s22549_s2 + $0x780] sm:$0xff] }
 0x4d5   :  { %10768 = vmatpush1.bf16.msra.mxu1 %v6566_v46  ;;  %10586 = vmatprep.mubr.bf16.mxu1 %v15333_v60  ;;  %v6405_v28 = vmul.f32 %v19690_v1, %v4677_v55  ;;  %v15342_v60 = vld [vmem:[%s22550_s3 + $0x760] ss:$72 sps:$4 sm:$0xff]   ;;  %v15350_v46 = vld [vmem:[%s22550_s3 + $0x7f4] ss:$72 sps:$4 sm:$0xff]   ;;  %v6404_v56 = vmul.f32 %v19682_v38, %v4676_v52  ;;  %v15351_v1 = vld [vmem:[%s22550_s3 + $0x304] ss:$72 sps:$4 sm:$0xff]   ;;  %v6406_v38 = vmul.f32 %v19698_v39, %v4678_v18 }
 0x4d6   :  { %10769 = vmatprep.subr.bf16.mxu1 %v22637_v31  ;;  %v15353_v39 = vld [vmem:[%s22550_s3 + $0x300] ss:$72 sps:$4 sm:$0xff]   ;;  %v15363_v55 = vld [vmem:[%s22550_s3 + $0x424] ss:$72 sps:$4 sm:$0xff]  }
 0x4d7   :  { %v6572_v22 = vpack.c.bf16 %v6405_v28, %v6404_v56 }
 0x4d9   :  { %10770 = vmatpush1.bf16.msra.mxu1 %v6567_v51  ;;  %v4681_v51 = vld [vmem:[%s22549_s2 + $0x7a8] sm:$0xff] }
 0x4da   :  { %10771 = vmatprep.subr.bf16.mxu1 %v22637_v31  ;;  %v6409_v12 = vmul.f32 %v19710_v35, %v4681_v51  ;;  %v15357_v35 = vld [vmem:[%s22550_s3 + $0x394] ss:$72 sps:$4 sm:$0xff]   ;;  %v15365_v51 = vld [vmem:[%s22550_s3 + $0x420] ss:$72 sps:$4 sm:$0xff]  }
 0x4db   :  { %9759 = vmatmul.mubr.bf16.gmra.mrb[76].mxu0 %v15330_v36  ;;  %v6573_v36 = vpack.c.bf16 %v6407_v33, %v6406_v38  ;;  %v4691_v33 = vld [vmem:[%s22549_s2 + $0x7f8] sm:$0xff]  ;;  %v15368_v38 = vld [vmem:[%s22550_s3 + $0x9a4] ss:$72 sps:$4 sm:$0xff]  }
 0x4dc   :  { %10587 = vmatmul.mubr.bf16.gmra.mrb[0].mxu1 %v15335_v44  ;;  %9766 = vmatprep.mubr.bf16.mxu0 %v15338_v21  ;;  %v4683_v44 = vld [vmem:[%s22549_s2 + $0x7b8] sm:$0xff]  ;;  %v15356_v21 = vld [vmem:[%s22550_s3 + $0x884] ss:$72 sps:$4 sm:$0xff]  }
 0x4dd   :  { %10772 = vmatpush1.bf16.msra.mxu1 %v6568_v53  ;;  %10594 = vmatprep.mubr.bf16.mxu1 %v15339_v47  ;;  %v6408_v47 = vmul.f32 %v22828_v23, %v4680_v14  ;;  %v6411_v24 = vmul.f32 %v22829_v2, %v4683_v44  ;;  %v22836_v14 = vld [vmem:[#allocation22_spill] sm:$0xff]  ;;  %v15374_v2 = vld [vmem:[%s22550_s3 + $0xa34] ss:$72 sps:$4 sm:$0xff]  }
 0x4de   :  { %10773 = vmatprep.subr.bf16.mxu1 %v22637_v31  ;;  %v22838_v23 = vld [vmem:[#allocation34_spill] sm:$0xff] }
 0x4df   :  { %v6574_v53 = vpack.c.bf16 %v6409_v12, %v6408_v47  ;;  %v15369_v12 = vld [vmem:[%s22550_s3 + $0x4b4] ss:$72 sps:$4 sm:$0xff]  }
 0x4e1   :  { %10774 = vmatpush1.bf16.msra.mxu1 %v6569_v26  ;;  %v6410_v26 = vmul.f32 %v22830_v30, %v4682_v59  ;;  %v15366_v59 = vld [vmem:[%s22550_s3 + $0x9a0] ss:$72 sps:$4 sm:$0xff]  }
 0x4e2   :  { %10775 = vmatprep.subr.bf16.mxu1 %v22637_v31  ;;  %v15377_v30 = vld [vmem:[%s22550_s3 + $0x540] ss:$72 sps:$4 sm:$0xff]  }
 0x4e3   :  { %9767 = vmatmul.mubr.bf16.gmra.mrb[80].mxu0 %v15336_v37  ;;  %v6575_v37 = vpack.c.bf16 %v6411_v24, %v6410_v26  ;;  %v15375_v24 = vld [vmem:[%s22550_s3 + $0x544] ss:$72 sps:$4 sm:$0xff]  }
 0x4e4   :  { %10595 = vmatmul.mubr.bf16.gmra.mrb[4].mxu1 %v15341_v41  ;;  %9774 = vmatprep.mubr.bf16.mxu0 %v15344_v8  ;;  %v6413_v41 = vmul.f32 %v22831_v42, %v4685_v43  ;;  %v15354_v8 = vld [vmem:[%s22550_s3 + $0x880] ss:$72 sps:$4 sm:$0xff]   ;;  %v15372_v43 = vld [vmem:[%s22550_s3 + $0xa30] ss:$72 sps:$4 sm:$0xff]   ;;  %v15380_v26 = vld [vmem:[%s22550_s3 + $0xac4] ss:$72 sps:$4 sm:$0xff]  }
 0x4e5   :  { %10776 = vmatpush1.bf16.msra.mxu1 %v6570_v15  ;;  %10602 = vmatprep.mubr.bf16.mxu1 %v15345_v50  ;;  %v15359_v50 = vld [vmem:[%s22550_s3 + $0x390] ss:$72 sps:$4 sm:$0xff]  }
 0x4e6   :  { %10777 = vmatprep.subr.bf16.mxu1 %v22637_v31  ;;  %v22832_v15 = vld [vmem:[#allocation29_spill] sm:$0xff] }
 0x4e7   :  { %v6412_v25 = vmul.f32 %v22832_v15, %v4684_v16  ;;  %v15381_v16 = vld [vmem:[%s22550_s3 + $0x5d4] ss:$72 sps:$4 sm:$0xff]   ;;  %v15383_v42 = vld [vmem:[%s22550_s3 + $0x5d0] ss:$72 sps:$4 sm:$0xff]  }
 0x4e8   :  { %v15393_v15 = vld [vmem:[%s22550_s3 + $0x6f4] ss:$72 sps:$4 sm:$0xff]  }
 0x4e9   :  { %10778 = vmatpush1.bf16.msra.mxu1 %v6571_v3  ;;  %v6576_v52 = vpack.c.bf16 %v6413_v41, %v6412_v25  ;;  %v22833_v3 = vld [vmem:[#allocation32_spill] sm:$0xff]  ;;  %v15390_v25 = vld [vmem:[%s22550_s3 + $0xbe0] ss:$72 sps:$4 sm:$0xff]  }
 0x4ea   :  { %10779 = vmatprep.subr.bf16.mxu1 %v22637_v31  ;;  %v6415_v28 = vmul.f32 %v22833_v3, %v4687_v4  ;;  %v15386_v41 = vld [vmem:[%s22550_s3 + $0xb54] ss:$72 sps:$4 sm:$0xff]   ;;  %v15384_v4 = vld [vmem:[%s22550_s3 + $0xb50] ss:$72 sps:$4 sm:$0xff]  }
 0x4eb   :  { %9775 = vmatmul.mubr.bf16.gmra.mrb[84].mxu0 %v15342_v60  ;;  %v4689_v60 = vld [vmem:[%s22549_s2 + $0x7e8] sm:$0xff]  ;;  %v15396_v3 = vld [vmem:[%s22550_s3 + $0xc70] ss:$72 sps:$4 sm:$0xff]  }
 0x4ec   :  { %10603 = vmatmul.mubr.bf16.gmra.mrb[8].mxu1 %v15347_v20  ;;  %9782 = vmatprep.mubr.bf16.mxu0 %v15350_v46  ;;  %v6414_v20 = vmul.f32 %v22834_v62, %v4686_v13  ;;  %v4688_v46 = vld [vmem:[%s22549_s2 + $0x7e0] sm:$0xff]  ;;  %v15398_v13 = vld [vmem:[%s22550_s3 + $0xc74] ss:$72 sps:$4 sm:$0xff]  }
 0x4ed   :  { %10780 = vmatpush1.bf16.msra.mxu1 %v6572_v22  ;;  %10610 = vmatprep.mubr.bf16.mxu1 %v15351_v1  ;;  %v22835_v1 = vld [vmem:[#allocation33_spill] sm:$0xff] }
 0x4ee   :  { %10781 = vmatprep.subr.bf16.mxu1 %v22637_v31  ;;  %v6577_v56 = vpack.c.bf16 %v6415_v28, %v6414_v20  ;;  %v6417_v18 = vmul.f32 %v22835_v1, %v4689_v60  ;;  %v15360_v22 = vld [vmem:[%s22550_s3 + $0x910] ss:$72 sps:$4 sm:$0xff]   ;;  %v15401_v28 = vld [vmem:[%s22550_s3 + $0x780] ss:$72 sps:$4 sm:$0xff]   ;;  %v15404_v60 = vld [vmem:[%s22550_s3 + $0xd04] ss:$72 sps:$4 sm:$0xff]  }
 0x4ef   :  { %v15405_v62 = vld [vmem:[%s22550_s3 + $0x814] ss:$72 sps:$4 sm:$0xff]   ;;  %v15402_v20 = vld [vmem:[%s22550_s3 + $0xd00] ss:$72 sps:$4 sm:$0xff]   ;;  %v15411_v1 = vld [vmem:[%s22550_s3 + $0x8a4] ss:$72 sps:$4 sm:$0xff]  }
 0x4f1   :  { %10782 = vmatpush1.bf16.msra.mxu1 %v6573_v36  ;;  %v6416_v36 = vmul.f32 %v22836_v14, %v4688_v46  ;;  %v15407_v46 = vld [vmem:[%s22550_s3 + $0x810] ss:$72 sps:$4 sm:$0xff]  }
 0x4f2   :  { %10783 = vmatprep.subr.bf16.mxu1 %v22637_v31  ;;  %v15419_v14 = vld [vmem:[%s22550_s3 + $0x930] ss:$72 sps:$4 sm:$0xff]  }
 0x4f3   :  { %9783 = vmatmul.mubr.bf16.gmra.mrb[88].mxu0 %v15348_v0  ;;  %v4690_v0 = vld [vmem:[%s22549_s2 + $0x7f0] sm:$0xff]  ;;  %v6578_v44 = vpack.c.bf16 %v6417_v18, %v6416_v36  ;;  %v15408_v18 = vld [vmem:[%s22550_s3 + $0x18] ss:$72 sps:$4 sm:$0xff]   ;;  %v15420_v36 = vld [vmem:[%s22550_s3 + $0x9c4] ss:$72 sps:$4 sm:$0xff]  }
 0x4f4   :  { %10611 = vmatmul.mubr.bf16.gmra.mrb[12].mxu1 %v15353_v39  ;;  %9790 = vmatprep.mubr.bf16.mxu0 %v15356_v21  ;;  %v22837_v39 = vld [vmem:[#allocation66_spill] sm:$0xff]  ;;  %v6418_v47 = vmul.f32 %v22838_v23, %v4690_v0  ;;  %v15423_v0 = vld [vmem:[%s22550_s3 + $0xa54] ss:$72 sps:$4 sm:$0xff]  }
 0x4f5   :  { %10784 = vmatpush1.bf16.msra.mxu1 %v6574_v53  ;;  %10618 = vmatprep.mubr.bf16.mxu1 %v15357_v35  ;;  %v6419_v21 = vmul.f32 %v22837_v39, %v4691_v33  ;;  %v15371_v53 = vld [vmem:[%s22550_s3 + $0x4b0] ss:$72 sps:$4 sm:$0xff]   ;;  %v15416_v33 = vld [vmem:[%s22550_s3 + $0xac] ss:$72 sps:$4 sm:$0xff]  }
 0x4f6   :  { %10785 = vmatprep.subr.bf16.mxu1 %v22637_v31  ;;  %v15426_v39 = vld [vmem:[%s22550_s3 + $0xae4] ss:$72 sps:$4 sm:$0xff]   ;;  %v15429_v23 = vld [vmem:[%s22550_s3 + $0xb74] ss:$72 sps:$4 sm:$0xff]  }
 0x4f7   :  { %v6579_v35 = vpack.c.bf16 %v6419_v21, %v6418_v47  ;;  %v15428_v21 = vld [vmem:[%s22550_s3 + $0xae0] ss:$72 sps:$4 sm:$0xff]  }
 0x4f9   :  { %10786 = vmatpush1.bf16.msra.mxu1 %v6575_v37  ;;  %v15378_v37 = vld [vmem:[%s22550_s3 + $0xac0] ss:$72 sps:$4 sm:$0xff]  }
 0x4fa   :  { %10787 = vmatprep.subr.bf16.mxu1 %v22637_v31 }
 0x4fb   :  { %9791 = vmatmul.mubr.bf16.gmra.mrb[92].mxu0 %v15354_v8  ;;  %v15387_v8 = vld [vmem:[%s22550_s3 + $0x664] ss:$72 sps:$4 sm:$0xff]  }
 0x4fc   :  { %10619 = vmatmul.mubr.bf16.gmra.mrb[16].mxu1 %v15359_v50  ;;  %9798 = vmatprep.mubr.bf16.mxu0 %v15362_v11  ;;  %v15389_v50 = vld [vmem:[%s22550_s3 + $0x660] ss:$72 sps:$4 sm:$0xff]   ;;  %v15392_v11 = vld [vmem:[%s22550_s3 + $0xbe4] ss:$72 sps:$4 sm:$0xff]  }
 0x4fd   :  { %10788 = vmatpush1.bf16.msra.mxu1 %v6576_v52  ;;  %10626 = vmatprep.mubr.bf16.mxu1 %v15363_v55  ;;  %v15395_v55 = vld [vmem:[%s22550_s3 + $0x6f0] ss:$72 sps:$4 sm:$0xff]   ;;  %v15399_v52 = vld [vmem:[%s22550_s3 + $0x784] ss:$72 sps:$4 sm:$0xff]  }
 0x4fe   :  { %10789 = vmatprep.subr.bf16.mxu1 %v22637_v31 }
 0x501   :  { %10790 = vmatpush1.bf16.msra.mxu1 %v6577_v56  ;;  %v15410_v56 = vld [vmem:[%s22550_s3 + $0x1c] ss:$72 sps:$4 sm:$0xff]  }
 0x502   :  { %10791 = vmatprep.subr.bf16.mxu1 %v22637_v31 }
 0x503   :  { %9799 = vmatmul.mubr.bf16.gmra.mrb[96].mxu0 %v15360_v22  ;;  %v15413_v22 = vld [vmem:[%s22550_s3 + $0x8a0] ss:$72 sps:$4 sm:$0xff]  }
 0x504   :  { %10627 = vmatmul.mubr.bf16.gmra.mrb[20].mxu1 %v15365_v51  ;;  %9806 = vmatprep.mubr.bf16.mxu0 %v15368_v38  ;;  %v15417_v51 = vld [vmem:[%s22550_s3 + $0x934] ss:$72 sps:$4 sm:$0xff]   ;;  %v15414_v38 = vld [vmem:[%s22550_s3 + $0xa8] ss:$72 sps:$4 sm:$0xff]  }
 0x505   :  { %10792 = vmatpush1.bf16.msra.mxu1 %v6578_v44  ;;  %10634 = vmatprep.mubr.bf16.mxu1 %v15369_v12  ;;  %v15422_v12 = vld [vmem:[%s22550_s3 + $0x9c0] ss:$72 sps:$4 sm:$0xff]   ;;  %v15425_v44 = vld [vmem:[%s22550_s3 + $0xa50] ss:$72 sps:$4 sm:$0xff]  }
 0x506   :  { %10793 = vmatprep.subr.bf16.mxu1 %v22637_v31 }
 0x509   :  { %10794 = vmatpush1.bf16.msra.mxu1 %v6579_v35 }
 0x50a   :  { %10988 = vmatprep.subr.bf16.mxu1 %v22637_v31 }
 0x50b   :  { %9807 = vmatmul.mubr.bf16.gmra.mrb[100].mxu0 %v15366_v59 }
 0x50c   :  { %10635 = vmatmul.mubr.bf16.gmra.mrb[24].mxu1 %v15371_v53  ;;  %9814 = vmatprep.mubr.bf16.mxu0 %v15374_v2  ;;  %v15431_v53 = vld [vmem:[%s22550_s3 + $0xb70] ss:$72 sps:$4 sm:$0xff]  }
 0x50d   :  { %10642 = vmatprep.mubr.bf16.mxu1 %v15375_v24  ;;  %v15432_v24 = vld [vmem:[%s22550_s3 + $0xc04] ss:$72 sps:$4 sm:$0xff]  }
 0x513   :  { %9815 = vmatmul.mubr.bf16.gmra.mrb[104].mxu0 %v15372_v43 }
 0x514   :  { %10643 = vmatmul.mubr.bf16.gmra.mrb[28].mxu1 %v15377_v30  ;;  %9822 = vmatprep.mubr.bf16.mxu0 %v15380_v26 }
 0x515   :  { %10650 = vmatprep.mubr.bf16.mxu1 %v15381_v16  ;;  %v15434_v16 = vld [vmem:[%s22550_s3 + $0xc00] ss:$72 sps:$4 sm:$0xff]  }
 0x51b   :  { %9823 = vmatmul.mubr.bf16.gmra.mrb[108].mxu0 %v15378_v37 }
 0x51c   :  { %10651 = vmatmul.mubr.bf16.gmra.mrb[32].mxu1 %v15383_v42  ;;  %9830 = vmatprep.mubr.bf16.mxu0 %v15386_v41  ;;  %v15435_v42 = vld [vmem:[%s22550_s3 + $0xc94] ss:$72 sps:$4 sm:$0xff]  }
 0x51d   :  { %10658 = vmatprep.mubr.bf16.mxu1 %v15387_v8 }
 0x523   :  { %9831 = vmatmul.mubr.bf16.gmra.mrb[112].mxu0 %v15384_v4 }
 0x524   :  { %10659 = vmatmul.mubr.bf16.gmra.mrb[36].mxu1 %v15389_v50  ;;  %9838 = vmatprep.mubr.bf16.mxu0 %v15392_v11  ;;  %v15437_v50 = vld [vmem:[%s22550_s3 + $0xc90] ss:$72 sps:$4 sm:$0xff]  }
 0x525   :  { %10666 = vmatprep.mubr.bf16.mxu1 %v15393_v15  ;;  %v15438_v15 = vld [vmem:[%s22550_s3 + $0xd24] ss:$72 sps:$4 sm:$0xff]  }
 0x52b   :  { %9839 = vmatmul.mubr.bf16.gmra.mrb[116].mxu0 %v15390_v25 }
 0x52c   :  { %10667 = vmatmul.mubr.bf16.gmra.mrb[40].mxu1 %v15395_v55  ;;  %9846 = vmatprep.mubr.bf16.mxu0 %v15398_v13 }
 0x52d   :  { %10674 = vmatprep.mubr.bf16.mxu1 %v15399_v52  ;;  %v15440_v52 = vld [vmem:[%s22550_s3 + $0xd20] ss:$72 sps:$4 sm:$0xff]  }
 0x533   :  { %9847 = vmatmul.mubr.bf16.gmra.mrb[120].mxu0 %v15396_v3 }
 0x534   :  { %10675 = vmatmul.mubr.bf16.gmra.mrb[44].mxu1 %v15401_v28  ;;  %9854 = vmatprep.mubr.bf16.mxu0 %v15404_v60  ;;  %v15443_v28 = vld [vmem:[%s22550_s3 + $0x3c] ss:$72 sps:$4 sm:$0xff]   ;;  %v4693_v60 = vld [vmem:[%s22549_s2 + $0x808] sm:$0xff] }
 0x535   :  { %10682 = vmatprep.mubr.bf16.mxu1 %v15405_v62  ;;  %v4692_v62 = vld [vmem:[%s22549_s2 + $0x800] sm:$0xff] }
 0x53b   :  { %9855 = vmatmul.mubr.bf16.gmra.mrb[124].mxu0 %v15402_v20 }
 0x53c   :  { %10683 = vmatmul.mubr.bf16.gmra.mrb[48].mxu1 %v15407_v46  ;;  %9895 = vmatprep.mubr.bf16.mxu0 %v15410_v56  ;;  %v6421_v46 = vmul.f32 %v20156_v40, %v4693_v60  ;;  %v4694_v40 = vld [vmem:[%s22549_s2 + $0x810] sm:$0xff] }
 0x53d   :  { %10690 = vmatprep.mubr.bf16.mxu1 %v15411_v1  ;;  %v4695_v1 = vld [vmem:[%s22549_s2 + $0x818] sm:$0xff] }
 0x543   :  { %9896 = vmatmul.mubr.bf16.vlgmr.msra.gmra.mrb[32].mxu0 %v15408_v18 }
 0x544   :  { %10691 = vmatmul.mubr.bf16.gmra.mrb[52].mxu1 %v15413_v22  ;;  %9903 = vmatprep.mubr.bf16.mxu0 %v15416_v33  ;;  %v15441_v22 = vld [vmem:[%s22550_s3 + $0x38] ss:$72 sps:$4 sm:$0xff]   ;;  %v6420_v33 = vmul.f32 %v20140_v57, %v4692_v62 }
 0x545   :  { %10698 = vmatprep.mubr.bf16.mxu1 %v15417_v51  ;;  %v4696_v57 = vld [vmem:[%s22549_s2 + $0x820] sm:$0xff] }
 0x54b   :  { %9904 = vmatmul.mubr.bf16.gmra.mrb[36].mxu0 %v15414_v38  ;;  %v15444_v38 = vld [vmem:[%s22550_s3 + $0xcc] ss:$72 sps:$4 sm:$0xff]  }
 0x54c   :  { %10699 = vmatmul.mubr.bf16.gmra.mrb[56].mxu1 %v15419_v14  ;;  %v6423_v14 = vmul.f32 %v20131_v19, %v4695_v1 }
 0x54d   :  { %10706 = vmatprep.mubr.bf16.mxu1 %v15420_v36  ;;  %v6580_v36 = vpack.c.bf16 %v6421_v46, %v6420_v33  ;;  %v4705_v46 = vld [vmem:[%s22549_s2 + $0x868] sm:$0xff] }
 0x554   :  { %10707 = vmatmul.mubr.bf16.gmra.mrb[60].mxu1 %v15422_v12  ;;  %v4697_v12 = vld [vmem:[%s22549_s2 + $0x828] sm:$0xff] }
 0x555   :  { %10714 = vmatprep.mubr.bf16.mxu1 %v15423_v0  ;;  %v6422_v0 = vmul.f32 %v20114_v54, %v4694_v40  ;;  %v6425_v19 = vmul.f32 %v20197_v34, %v4697_v12  ;;  %v15446_v54 = vld [vmem:[%s22550_s3 + $0xc8] ss:$72 sps:$4 sm:$0xff]   ;;  %v6112_v12 = vpop.permute.xlu1 %6111 }
 0x556   :  { %v4698_v34 = vld [vmem:[%s22549_s2 + $0x830] sm:$0xff] }
 0x55c   :  { %10715 = vmatmul.mubr.bf16.gmra.mrb[64].mxu1 %v15425_v44 }
 0x55d   :  { %10722 = vmatprep.mubr.bf16.mxu1 %v15426_v39  ;;  %v6581_v39 = vpack.c.bf16 %v6423_v14, %v6422_v0 }
 0x564   :  { %10723 = vmatmul.mubr.bf16.gmra.mrb[68].mxu1 %v15428_v21 }
 0x565   :  { %10730 = vmatprep.mubr.bf16.mxu1 %v15429_v23  ;;  %v4699_v23 = vld [vmem:[%s22549_s2 + $0x838] sm:$0xff] }
 0x566   :  { %v20838_v47 = vpop.f32.mrb[40].mxu0 }
 0x567   :  { %v9690_v35 = vpop.f32.mrb[41].mxu0 }
 0x568   :  { %v20840_v59 = vpop.f32.mrb[42].mxu0 }
 0x569   :  { %v9693_v2 = vpop.f32.mrb[43].mxu0 }
 0x56c   :  { %10731 = vmatmul.mubr.bf16.gmra.mrb[72].mxu1 %v15431_v53  ;;  %v6424_v53 = vmul.f32 %v20188_v29, %v4696_v57  ;;  %v6426_v29 = vmul.f32 %v20169_v7, %v4698_v34  ;;  %v15449_v7 = vld [vmem:[%s22550_s3 + $0x158] ss:$72 sps:$4 sm:$0xff]  }
 0x56d   :  { %10738 = vmatprep.mubr.bf16.mxu1 %v15432_v24  ;;  %v15447_v24 = vld [vmem:[%s22550_s3 + $0x15c] ss:$72 sps:$4 sm:$0xff]   ;;  %v15455_v34 = vld [vmem:[%s22550_s3 + $0x278] ss:$72 sps:$4 sm:$0xff]  }
 0x56e   :  { %v20848_v43 = vpop.f32.mrb[44].mxu0 }
 0x56f   :  { %v9698_v30 = vpop.f32.mrb[45].mxu0 }
 0x570   :  { %v20850_v26 = vpop.f32.mrb[46].mxu0  ;;  %v6427_v30 = vmul.f32 %v20182_v10, %v4699_v23 }
 0x571   :  { %v9701_v37 = vpop.f32.mrb[47].mxu0 }
 0x572   :  { %v4701_v37 = vld [vmem:[%s22549_s2 + $0x848] sm:$0xff] }
 0x573   :  { %v6429_v10 = vmul.f32 %v20230_v45, %v4701_v37  ;;  %v4702_v45 = vld [vmem:[%s22549_s2 + $0x850] sm:$0xff] }
 0x574   :  { %10739 = vmatmul.mubr.bf16.gmra.mrb[76].mxu1 %v15434_v16  ;;  %v6582_v16 = vpack.c.bf16 %v6425_v19, %v6424_v53  ;;  %v4710_v37 = vld [vmem:[%s22549_s2 + $0x890] sm:$0xff] }
 0x575   :  { %10746 = vmatprep.mubr.bf16.mxu1 %v15435_v42  ;;  %v4700_v42 = vld [vmem:[%s22549_s2 + $0x840] sm:$0xff] }
 0x576   :  { %v20858_v41 = vpop.f32.mrb[48].mxu0 }
 0x577   :  { %v9706_v8 = vpop.f32.mrb[49].mxu0 }
 0x578   :  { %v20860_v4 = vpop.f32.mrb[50].mxu0 }
 0x579   :  { %v9709_v11 = vpop.f32.mrb[51].mxu0 }
 0x57c   :  { %10747 = vmatmul.mubr.bf16.gmra.mrb[80].mxu1 %v15437_v50  ;;  %v6583_v50 = vpack.c.bf16 %v6427_v30, %v6426_v29 }
 0x57d   :  { %10754 = vmatprep.mubr.bf16.mxu1 %v15438_v15  ;;  %v4703_v15 = vld [vmem:[%s22549_s2 + $0x858] sm:$0xff] }
 0x57e   :  { %v20868_v25 = vpop.f32.mrb[52].mxu0  ;;  %v6431_v60 = vmul.f32 %v20217_v17, %v4703_v15  ;;  %v6433_v17 = vmul.f32 %v20262_v9, %v4705_v46  ;;  %v4706_v9 = vld [vmem:[%s22549_s2 + $0x870] sm:$0xff] }
 0x57f   :  { %v9714_v55 = vpop.f32.mrb[53].mxu0  ;;  %v6434_v19 = vmul.f32 %v20241_v63, %v4706_v9 }
 0x580   :  { %v20870_v13 = vpop.f32.mrb[54].mxu0 }
 0x581   :  { %v9717_v3 = vpop.f32.mrb[55].mxu0 }
 0x584   :  { %10755 = vmatmul.mubr.bf16.gmra.mrb[84].mxu1 %v15440_v52  ;;  %v6428_v52 = vmul.f32 %v20222_v61, %v4700_v42  ;;  %v6430_v61 = vmul.f32 %v20208_v5, %v4702_v45  ;;  %v15452_v5 = vld [vmem:[%s22550_s3 + $0x1e8] ss:$72 sps:$4 sm:$0xff]  }
 0x585   :  { %10795 = vmatprep.mubr.bf16.mxu1 %v15443_v28  ;;  %v15450_v28 = vld [vmem:[%s22550_s3 + $0x1ec] ss:$72 sps:$4 sm:$0xff]  }
 0x586   :  { %v20884_v20 = vpop.f32.mrb[56].mxu0  ;;  %v6584_v62 = vpack.c.bf16 %v6429_v10, %v6428_v52  ;;  %v6438_v10 = vmul.f32 %v20270_v49, %v4710_v37 }
 0x587   :  { %v9722_v56 = vpop.f32.mrb[57].mxu0 }
 0x588   :  { %v20890_v18 = vpop.f32.mrb[58].mxu0  ;;  %v4704_v56 = vld [vmem:[%s22549_s2 + $0x860] sm:$0xff] }
 0x589   :  { %v9725_v51 = vpop.f32.mrb[59].mxu0  ;;  %v6432_v40 = vmul.f32 %v20254_v32, %v4704_v56  ;;  %v4709_v32 = vld [vmem:[%s22549_s2 + $0x888] sm:$0xff]  ;;  %v4714_v56 = vld [vmem:[%s22549_s2 + $0x8b0] sm:$0xff] }
 0x58a   :  { %v4707_v51 = vld [vmem:[%s22549_s2 + $0x878] sm:$0xff] }
 0x58b   :  { %v6435_v0 = vmul.f32 %v20249_v6, %v4707_v51  ;;  %v6586_v57 = vpack.c.bf16 %v6433_v17, %v6432_v40  ;;  %v4716_v40 = vld [vmem:[%s22549_s2 + $0x8c0] sm:$0xff] }
 0x58c   :  { %10796 = vmatmul.mubr.bf16.vlgmr.msra.gmra.mrb[88].mxu1 %v15441_v22  ;;  %v6585_v22 = vpack.c.bf16 %v6431_v60, %v6430_v61  ;;  %v15458_v60 = vld [vmem:[%s22550_s3 + $0x308] ss:$72 sps:$4 sm:$0xff]   ;;  %v15459_v61 = vld [vmem:[%s22550_s3 + $0x39c] ss:$72 sps:$4 sm:$0xff]  }
 0x58d   :  { %10989 = vmatpush1.bf16.msra.mxu1 %v6580_v36  ;;  %10803 = vmatprep.mubr.bf16.mxu1 %v15444_v38  ;;  %v15453_v36 = vld [vmem:[%s22550_s3 + $0x27c] ss:$72 sps:$4 sm:$0xff]   ;;  %v6587_v6 = vpack.c.bf16 %v6435_v0, %v6434_v19 }
 0x58e   :  { %v20910_v44 = vpop.f32.mrb[60].mxu0  ;;  %10990 = vmatprep.subr.bf16.mxu1 %v22637_v31 }
 0x58f   :  { %v9730_v21 = vpop.f32.mrb[61].mxu0 }
 0x590   :  { %v20917_v35 = vpop.f32.mrb[62].mxu0  ;;  %v4708_v21 = vld [vmem:[%s22549_s2 + $0x880] sm:$0xff] }
 0x591   :  { %10991 = vmatpush1.bf16.msra.mxu1 %v6581_v39  ;;  %v9733_v2 = vpop.f32.mrb[63].mxu0  ;;  %v6107_v39 = vpop.permute.xlu0 %6106  ;;  %v6436_v30 = vmul.f32 %v20277_v48, %v4708_v21  ;;  %v4713_v48 = vld [vmem:[%s22549_s2 + $0x8a8] sm:$0xff] }
 0x592   :  { %10992 = vmatprep.subr.bf16.mxu1 %v22637_v31  ;;  %v4711_v2 = vld [vmem:[%s22549_s2 + $0x898] sm:$0xff]  ;;  %v6441_v52 = vmul.f32 %v6112_v12, %v4713_v48 }
 0x593   :  { %v6439_v42 = vmul.f32 %v20275_v27, %v4711_v2  ;;  %v4723_v48 = vld [vmem:[%s22549_s2 + $0x8f8] sm:$0xff] }
 0x594   :  { %10804 = vmatmul.mubr.bf16.gmra.mrb[92].mxu1 %v15446_v54  ;;  %v6437_v54 = vmul.f32 %v20282_v58, %v4709_v32  ;;  %v15456_v58 = vld [vmem:[%s22550_s3 + $0x30c] ss:$72 sps:$4 sm:$0xff]  }
 0x595   :  { %10993 = vmatpush1.bf16.msra.mxu1 %v6582_v16  ;;  %10811 = vmatprep.mubr.bf16.mxu1 %v15447_v24  ;;  %v6122_v24 = vpop.permute.xlu1 %6121  ;;  %v6117_v29 = vpop.permute.xlu0 %6116  ;;  %v6589_v27 = vpack.c.bf16 %v6439_v42, %v6438_v10 }
 0x596   :  { %v20938_v8 = vpop.f32.mrb[64].mxu0  ;;  %10994 = vmatprep.subr.bf16.mxu1 %v22637_v31 }
 0x597   :  { %v9738_v11 = vpop.f32.mrb[65].mxu0 }
 0x598   :  { %v20945_v55 = vpop.f32.mrb[66].mxu0  ;;  %v4712_v11 = vld [vmem:[%s22549_s2 + $0x8a0] sm:$0xff] }
 0x599   :  { %10995 = vmatpush1.bf16.msra.mxu1 %v6583_v50  ;;  %v9741_v3 = vpop.f32.mrb[67].mxu0  ;;  %v6588_v50 = vpack.c.bf16 %v6437_v54, %v6436_v30  ;;  %v6132_v15 = vpop.permute.xlu1 %6131  ;;  %v4718_v54 = vld [vmem:[%s22549_s2 + $0x8d0] sm:$0xff]  ;;  %v4721_v30 = vld [vmem:[%s22549_s2 + $0x8e8] sm:$0xff] }
 0x59a   :  { %10996 = vmatprep.subr.bf16.mxu1 %v22637_v31  ;;  %v6127_v45 = vpop.permute.xlu0 %6126 }
 0x59b   :  { %v6444_v19 = vmul.f32 %v6127_v45, %v4716_v40 }
 0x59c   :  { %10812 = vmatmul.mubr.bf16.gmra.mrb[0].mxu1 %v15449_v7 }
 0x59d   :  { %10997 = vmatpush1.bf16.msra.mxu1 %v6584_v62  ;;  %10819 = vmatprep.mubr.bf16.mxu1 %v15450_v28  ;;  %v4715_v28 = vld [vmem:[%s22549_s2 + $0x8b8] sm:$0xff]  ;;  %v6440_v62 = vmul.f32 %v6107_v39, %v4712_v11  ;;  %v6142_v51 = vpop.permute.xlu1 %6141 }
 0x59e   :  { %v20966_v1 = vpop.f32.mrb[68].mxu0  ;;  %10998 = vmatprep.subr.bf16.mxu1 %v22637_v31  ;;  %v6443_v17 = vmul.f32 %v6122_v24, %v4715_v28  ;;  %v15461_v39 = vld [vmem:[%s22550_s3 + $0x398] ss:$72 sps:$4 sm:$0xff]   ;;  %v4722_v28 = vld [vmem:[%s22549_s2 + $0x8f0] sm:$0xff] }
 0x59f   :  { %v9746_v33 = vpop.f32.mrb[69].mxu0 }
 0x5a0   :  { %v20973_v38 = vpop.f32.mrb[70].mxu0  ;;  %v4717_v33 = vld [vmem:[%s22549_s2 + $0x8c8] sm:$0xff] }
 0x5a1   :  { %10999 = vmatpush1.bf16.msra.mxu1 %v6585_v22  ;;  %v9749_v14 = vpop.f32.mrb[71].mxu0  ;;  %v6590_v22 = vpack.c.bf16 %v6441_v52, %v6440_v62  ;;  %v6445_v12 = vmul.f32 %v6132_v15, %v4717_v33  ;;  %v15464_v15 = vld [vmem:[%s22550_s3 + $0x428] ss:$72 sps:$4 sm:$0xff]   ;;  %v15467_v33 = vld [vmem:[%s22550_s3 + $0x4b8] ss:$72 sps:$4 sm:$0xff]  }
 0x5a2   :  { %11000 = vmatprep.subr.bf16.mxu1 %v22637_v31  ;;  %v6137_v14 = vpop.permute.xlu0 %6136 }
 0x5a3   :  { %v6592_v2 = vpack.c.bf16 %v6445_v12, %v6444_v19 }
 0x5a4   :  { %10820 = vmatmul.mubr.bf16.gmra.mrb[4].mxu1 %v15452_v5  ;;  %v6442_v5 = vmul.f32 %v6117_v29, %v4714_v56 }
 0x5a5   :  { %11001 = vmatpush1.bf16.msra.mxu1 %v6586_v57  ;;  %10827 = vmatprep.mubr.bf16.mxu1 %v15453_v36  ;;  %v4719_v57 = vld [vmem:[%s22549_s2 + $0x8d8] sm:$0xff] }
 0x5a6   :  { %v20994_v23 = vpop.f32.mrb[72].mxu0  ;;  %11002 = vmatprep.subr.bf16.mxu1 %v22637_v31  ;;  %v6591_v9 = vpack.c.bf16 %v6443_v17, %v6442_v5  ;;  %v6447_v24 = vmul.f32 %v6142_v51, %v4719_v57  ;;  %v15468_v5 = vld [vmem:[%s22550_s3 + $0x54c] ss:$72 sps:$4 sm:$0xff]  }
 0x5a7   :  { %v9754_v53 = vpop.f32.mrb[73].mxu0 }
 0x5a8   :  { %v21001_v63 = vpop.f32.mrb[74].mxu0  ;;  %v6152_v53 = vpop.permute.xlu1 %6151 }
 0x5a9   :  { %11003 = vmatpush1.bf16.msra.mxu1 %v6587_v6  ;;  %v9757_v16 = vpop.f32.mrb[75].mxu0  ;;  %v15462_v6 = vld [vmem:[%s22550_s3 + $0x42c] ss:$72 sps:$4 sm:$0xff]   ;;  %v6449_v42 = vmul.f32 %v6152_v53, %v4721_v30 }
 0x5aa   :  { %11004 = vmatprep.subr.bf16.mxu1 %v22637_v31  ;;  %v6446_v16 = vmul.f32 %v6137_v14, %v4718_v54  ;;  %v15474_v54 = vld [vmem:[%s22550_s3 + $0x66c] ss:$72 sps:$4 sm:$0xff]  }
 0x5ac   :  { %10828 = vmatmul.mubr.bf16.gmra.mrb[8].mxu1 %v15455_v34  ;;  %v6147_v34 = vpop.permute.xlu0 %6146  ;;  %v6593_v29 = vpack.c.bf16 %v6447_v24, %v6446_v16  ;;  %v6162_v10 = vpop.permute.xlu1 %6161  ;;  %v15477_v16 = vld [vmem:[%s22550_s3 + $0x6fc] ss:$72 sps:$4 sm:$0xff]  }
 0x5ad   :  { %11005 = vmatpush1.bf16.msra.mxu1 %v6588_v50  ;;  %10835 = vmatprep.mubr.bf16.mxu1 %v15456_v58  ;;  %v4720_v58 = vld [vmem:[%s22549_s2 + $0x8e0] sm:$0xff]  ;;  %v6451_v62 = vmul.f32 %v6162_v10, %v4723_v48  ;;  %v15480_v10 = vld [vmem:[%s22550_s3 + $0x78c] ss:$72 sps:$4 sm:$0xff]  }
 0x5ae   :  { %v21022_v7 = vpop.f32.mrb[76].mxu0  ;;  %11006 = vmatprep.subr.bf16.mxu1 %v22637_v31 }
 0x5af   :  { %v9762_v3 = vpop.f32.mrb[77].mxu0 }
 0x5b0   :  { %v21028_v49 = vpop.f32.mrb[78].mxu0  ;;  %v15465_v3 = vld [vmem:[%s22550_s3 + $0x4bc] ss:$72 sps:$4 sm:$0xff]   ;;  %v6157_v45 = vpop.permute.xlu0 %6156 }
 0x5b1   :  { %11007 = vmatpush1.bf16.msra.mxu1 %v6589_v27  ;;  %v9765_v46 = vpop.f32.mrb[79].mxu0  ;;  %v6448_v27 = vmul.f32 %v6147_v34, %v4720_v58  ;;  %v15476_v34 = vld [vmem:[%s22550_s3 + $0x668] ss:$72 sps:$4 sm:$0xff]  }
 0x5b2   :  { %11008 = vmatprep.subr.bf16.mxu1 %v22637_v31  ;;  %v6450_v46 = vmul.f32 %v6157_v45, %v4722_v28  ;;  %v15483_v45 = vld [vmem:[%s22550_s3 + $0x81c] ss:$72 sps:$4 sm:$0xff]  }
 0x5b4   :  { %10836 = vmatmul.mubr.bf16.gmra.mrb[12].mxu1 %v15458_v60  ;;  %v6594_v60 = vpack.c.bf16 %v6449_v42, %v6448_v27  ;;  %v6595_v56 = vpack.c.bf16 %v6451_v62, %v6450_v46 }
 0x5b5   :  { %11009 = vmatpush1.bf16.msra.mxu1 %v6590_v22  ;;  %10843 = vmatprep.mubr.bf16.mxu1 %v15459_v61 }
 0x5b6   :  { %v21046_v36 = vpop.f32.mrb[80].mxu0  ;;  %11010 = vmatprep.subr.bf16.mxu1 %v22637_v31 }
 0x5b7   :  { %v9770_v0 = vpop.f32.mrb[81].mxu0 }
 0x5b8   :  { %v21052_v32 = vpop.f32.mrb[82].mxu0  ;;  %v15471_v0 = vld [vmem:[%s22550_s3 + $0x5dc] ss:$72 sps:$4 sm:$0xff]  }
 0x5b9   :  { %11011 = vmatpush1.bf16.msra.mxu1 %v6591_v9  ;;  %v9773_v21 = vpop.f32.mrb[83].mxu0  ;;  %v15470_v9 = vld [vmem:[%s22550_s3 + $0x548] ss:$72 sps:$4 sm:$0xff]  }
 0x5ba   :  { %11012 = vmatprep.subr.bf16.mxu1 %v22637_v31  ;;  %v15473_v21 = vld [vmem:[%s22550_s3 + $0x5d8] ss:$72 sps:$4 sm:$0xff]  }
 0x5bc   :  { %10844 = vmatmul.mubr.bf16.gmra.mrb[16].mxu1 %v15461_v39 }
 0x5bd   :  { %11013 = vmatpush1.bf16.msra.mxu1 %v6592_v2  ;;  %10851 = vmatprep.mubr.bf16.mxu1 %v15462_v6 }
 0x5be   :  { %v21070_v37 = vpop.f32.mrb[84].mxu0  ;;  %11014 = vmatprep.subr.bf16.mxu1 %v22637_v31 }
 0x5bf   :  { %v9778_v50 = vpop.f32.mrb[85].mxu0 }
 0x5c0   :  { %v21076_v11 = vpop.f32.mrb[86].mxu0  ;;  %v15479_v50 = vld [vmem:[%s22550_s3 + $0x6f8] ss:$72 sps:$4 sm:$0xff]  }
 0x5c1   :  { %11015 = vmatpush1.bf16.msra.mxu1 %v6593_v29  ;;  %v9781_v52 = vpop.f32.mrb[87].mxu0 }
 0x5c2   :  { %11016 = vmatprep.subr.bf16.mxu1 %v22637_v31 }
 0x5c4   :  { %10852 = vmatmul.mubr.bf16.gmra.mrb[20].mxu1 %v15464_v15 }
 0x5c5   :  { %11017 = vmatpush1.bf16.msra.mxu1 %v6594_v60  ;;  %10859 = vmatprep.mubr.bf16.mxu1 %v15465_v3  ;;  %v15482_v3 = vld [vmem:[%s22550_s3 + $0x788] ss:$72 sps:$4 sm:$0xff]  }
 0x5c6   :  { %v21088_v61 = vpop.f32.mrb[88].mxu0  ;;  %11018 = vmatprep.subr.bf16.mxu1 %v22637_v31 }
 0x5c7   :  { %v9786_v22 = vpop.f32.mrb[89].mxu0 }
 0x5c8   :  { %v21091_v17 = vpop.f32.mrb[90].mxu0 }
 0x5c9   :  { %11019 = vmatpush1.bf16.msra.mxu1 %v6595_v56  ;;  %v9789_v51 = vpop.f32.mrb[91].mxu0  ;;  %v15485_v56 = vld [vmem:[%s22550_s3 + $0x818] ss:$72 sps:$4 sm:$0xff]  }
 0x5cc   :  { %10860 = vmatmul.mubr.bf16.gmra.mrb[24].mxu1 %v15467_v33  ;;  %v15486_v33 = vld [vmem:[%s22550_s3 + $0x8ac] ss:$72 sps:$4 sm:$0xff]  }
 0x5cd   :  { %10867 = vmatprep.mubr.bf16.mxu1 %v15468_v5 }
 0x5ce   :  { %v21099_v40 = vpop.f32.mrb[92].mxu0 }
 0x5cf   :  { %v9794_v14 = vpop.f32.mrb[93].mxu0 }
 0x5d0   :  { %v21101_v31 = vpop.f32.mrb[94].mxu0 }
 0x5d1   :  { %v9797_v12 = vpop.f32.mrb[95].mxu0 }
 0x5d4   :  { %10868 = vmatmul.mubr.bf16.gmra.mrb[28].mxu1 %v15470_v9  ;;  %v15488_v9 = vld [vmem:[%s22550_s3 + $0x8a8] ss:$72 sps:$4 sm:$0xff]  }
 0x5d5   :  { %10875 = vmatprep.mubr.bf16.mxu1 %v15471_v0  ;;  %v15489_v0 = vld [vmem:[%s22550_s3 + $0x93c] ss:$72 sps:$4 sm:$0xff]  }
 0x5d6   :  { %v21109_v57 = vpop.f32.mrb[96].mxu0 }
 0x5d7   :  { %v9802_v39 = vpop.f32.mrb[97].mxu0 }
 0x5d8   :  { %v21111_v19 = vpop.f32.mrb[98].mxu0 }
 0x5d9   :  { %v9805_v6 = vpop.f32.mrb[99].mxu0 }
 0x5dc   :  { %10876 = vmatmul.mubr.bf16.gmra.mrb[32].mxu1 %v15473_v21 }
 0x5dd   :  { %10883 = vmatprep.mubr.bf16.mxu1 %v15474_v54  ;;  %v15491_v54 = vld [vmem:[%s22550_s3 + $0x938] ss:$72 sps:$4 sm:$0xff]  }
 0x5de   :  { %v21119_v53 = vpop.f32.mrb[100].mxu0 }
 0x5df   :  { %v9810_v2 = vpop.f32.mrb[101].mxu0 }
 0x5e0   :  { %v21121_v24 = vpop.f32.mrb[102].mxu0 }
 0x5e1   :  { %v9813_v30 = vpop.f32.mrb[103].mxu0 }
 0x5e4   :  { %10884 = vmatmul.mubr.bf16.gmra.mrb[36].mxu1 %v15476_v34  ;;  %v15492_v34 = vld [vmem:[%s22550_s3 + $0x9cc] ss:$72 sps:$4 sm:$0xff]  }
 0x5e5   :  { %10891 = vmatprep.mubr.bf16.mxu1 %v15477_v16 }
 0x5e6   :  { %v21129_v58 = vpop.f32.mrb[104].mxu0 }
 0x5e7   :  { %v9818_v29 = vpop.f32.mrb[105].mxu0 }
 0x5e8   :  { %v21131_v42 = vpop.f32.mrb[106].mxu0 }
 0x5e9   :  { %v9821_v48 = vpop.f32.mrb[107].mxu0 }
 0x5ec   :  { %10892 = vmatmul.mubr.bf16.gmra.mrb[40].mxu1 %v15479_v50  ;;  %v15494_v50 = vld [vmem:[%s22550_s3 + $0x9c8] ss:$72 sps:$4 sm:$0xff]  }
 0x5ed   :  { %10899 = vmatprep.mubr.bf16.mxu1 %v15480_v10  ;;  %v15495_v10 = vld [vmem:[%s22550_s3 + $0xa5c] ss:$72 sps:$4 sm:$0xff]  }
 0x5ee   :  { %v21139_v15 = vpop.f32.mrb[108].mxu0 }
 0x5ef   :  { %v9826_v27 = vpop.f32.mrb[109].mxu0 }
 0x5f0   :  { %v21141_v52 = vpop.f32.mrb[110].mxu0 }
 0x5f1   :  { %v9829_v28 = vpop.f32.mrb[111].mxu0 }
 0x5f4   :  { %10900 = vmatmul.mubr.bf16.gmra.mrb[44].mxu1 %v15482_v3 }
 0x5f5   :  { %10907 = vmatprep.mubr.bf16.mxu1 %v15483_v45  ;;  %v15497_v45 = vld [vmem:[%s22550_s3 + $0xa58] ss:$72 sps:$4 sm:$0xff]  }
 0x5f6   :  { %v21149_v60 = vpop.f32.mrb[112].mxu0 }
 0x5f7   :  { %v9834_v62 = vpop.f32.mrb[113].mxu0 }
 0x5f8   :  { %v21151_v46 = vpop.f32.mrb[114].mxu0 }
 0x5f9   :  { %v9837_v22 = vpop.f32.mrb[115].mxu0 }
 0x5fc   :  { %10908 = vmatmul.mubr.bf16.gmra.mrb[48].mxu1 %v15485_v56  ;;  %v15498_v56 = vld [vmem:[%s22550_s3 + $0xaec] ss:$72 sps:$4 sm:$0xff]  }
 0x5fd   :  { %10915 = vmatprep.mubr.bf16.mxu1 %v15486_v33 }
 0x5fe   :  { %v21159_v51 = vpop.f32.mrb[116].mxu0 }
 0x5ff   :  { %v9842_v5 = vpop.f32.mrb[117].mxu0 }
 0x600   :  { %v21161_v14 = vpop.f32.mrb[118].mxu0 }
 0x601   :  { %v9845_v12 = vpop.f32.mrb[119].mxu0 }
 0x604   :  { %10916 = vmatmul.mubr.bf16.gmra.mrb[52].mxu1 %v15488_v9  ;;  %v15500_v9 = vld [vmem:[%s22550_s3 + $0xae8] ss:$72 sps:$4 sm:$0xff]  }
 0x605   :  { %10923 = vmatprep.mubr.bf16.mxu1 %v15489_v0  ;;  %v15501_v0 = vld [vmem:[%s22550_s3 + $0xb7c] ss:$72 sps:$4 sm:$0xff]  }
 0x606   :  { %v21169_v39 = vpop.f32.mrb[120].mxu0 }
 0x607   :  { %v9850_v21 = vpop.f32.mrb[121].mxu0 }
 0x608   :  { %v21171_v6 = vpop.f32.mrb[122].mxu0  ;;  %v15503_v21 = vld [vmem:[%s22550_s3 + $0xb78] ss:$72 sps:$4 sm:$0xff]  }
 0x609   :  { %v9853_v2 = vpop.f32.mrb[123].mxu0 }
 0x60a   :  { %v15506_v2 = vld [vmem:[%s22550_s3 + $0xc08] ss:$72 sps:$4 sm:$0xff]  }
 0x60c   :  { %10924 = vmatmul.mubr.bf16.gmra.mrb[56].mxu1 %v15491_v54  ;;  %v15504_v54 = vld [vmem:[%s22550_s3 + $0xc0c] ss:$72 sps:$4 sm:$0xff]  }
 0x60d   :  { %10931 = vmatprep.mubr.bf16.mxu1 %v15492_v34  ;;  %v15507_v34 = vld [vmem:[%s22550_s3 + $0xc9c] ss:$72 sps:$4 sm:$0xff]  }
 0x60e   :  { %v21179_v30 = vpop.f32.mrb[124].mxu0 }
 0x60f   :  { %v9858_v16 = vpop.f32.mrb[125].mxu0 }
 0x610   :  { %v21181_v29 = vpop.f32.mrb[126].mxu0  ;;  %v15509_v16 = vld [vmem:[%s22550_s3 + $0xc98] ss:$72 sps:$4 sm:$0xff]  }
 0x611   :  { %v9861_v48 = vpop.f32.mrb[127].mxu0 }
 0x612   :  { %v15512_v48 = vld [vmem:[%s22550_s3 + $0xd28] ss:$72 sps:$4 sm:$0xff]  }
 0x614   :  { %10932 = vmatmul.mubr.bf16.gmra.mrb[60].mxu1 %v15494_v50  ;;  %v15510_v50 = vld [vmem:[%s22550_s3 + $0xd2c] ss:$72 sps:$4 sm:$0xff]  }
 0x615   :  { %10939 = vmatprep.mubr.bf16.mxu1 %v15495_v10  ;;  %v15515_v10 = vld [vmem:[%s22550_s3 + $0x44] ss:$72 sps:$4 sm:$0xff]  }
 0x616   :  { %v21189_v27 = vpop.f32.mrb[32].mxu0 }
 0x617   :  { %v9899_v3 = vpop.f32.mrb[33].mxu0 }
 0x618   :  { %v21191_v28 = vpop.f32.mrb[34].mxu0  ;;  %v15513_v3 = vld [vmem:[%s22550_s3 + $0x40] ss:$72 sps:$4 sm:$0xff]  }
 0x619   :  { %v9902_v62 = vpop.f32.mrb[35].mxu0 }
 0x61a   :  { %v15518_v62 = vld [vmem:[%s22550_s3 + $0xd0] ss:$72 sps:$4 sm:$0xff]  }
 0x61c   :  { %10940 = vmatmul.mubr.bf16.gmra.mrb[64].mxu1 %v15497_v45  ;;  %v15516_v45 = vld [vmem:[%s22550_s3 + $0xd4] ss:$72 sps:$4 sm:$0xff]  }
 0x61d   :  { %10947 = vmatprep.mubr.bf16.mxu1 %v15498_v56  ;;  %v15519_v56 = vld [vmem:[%s22550_s3 + $0x164] ss:$72 sps:$4 sm:$0xff]  }
 0x61e   :  { %v21199_v22 = vpop.f32.mrb[36].mxu0 }
 0x61f   :  { %v9907_v33 = vpop.f32.mrb[37].mxu0 }
 0x620   :  { %v21201_v5 = vpop.f32.mrb[38].mxu0  ;;  %v15521_v33 = vld [vmem:[%s22550_s3 + $0x160] ss:$72 sps:$4 sm:$0xff]  }
 0x621   :  { %v9910_v12 = vpop.f32.mrb[39].mxu0 }
 0x622   :  { %v15524_v12 = vld [vmem:[%s22550_s3 + $0x1f0] ss:$72 sps:$4 sm:$0xff]  }
 0x624   :  { %10948 = vmatmul.mubr.bf16.gmra.mrb[68].mxu1 %v15500_v9  ;;  %v15522_v9 = vld [vmem:[%s22550_s3 + $0x1f4] ss:$72 sps:$4 sm:$0xff]  }
 0x625   :  { %10955 = vmatprep.mubr.bf16.mxu1 %v15501_v0  ;;  %v15525_v0 = vld [vmem:[%s22550_s3 + $0x284] ss:$72 sps:$4 sm:$0xff]  }
 0x62c   :  { %10956 = vmatmul.mubr.bf16.gmra.mrb[72].mxu1 %v15503_v21  ;;  %v15527_v21 = vld [vmem:[%s22550_s3 + $0x280] ss:$72 sps:$4 sm:$0xff]  }
 0x62d   :  { %10963 = vmatprep.mubr.bf16.mxu1 %v15504_v54  ;;  %v15528_v54 = vld [vmem:[%s22550_s3 + $0x314] ss:$72 sps:$4 sm:$0xff]  }
 0x634   :  { %10964 = vmatmul.mubr.bf16.gmra.mrb[76].mxu1 %v15506_v2  ;;  %v15530_v2 = vld [vmem:[%s22550_s3 + $0x310] ss:$72 sps:$4 sm:$0xff]  }
 0x635   :  { %10971 = vmatprep.mubr.bf16.mxu1 %v15507_v34  ;;  %v15531_v34 = vld [vmem:[%s22550_s3 + $0x3a4] ss:$72 sps:$4 sm:$0xff]  }
 0x63c   :  { %10972 = vmatmul.mubr.bf16.gmra.mrb[80].mxu1 %v15509_v16  ;;  %v15533_v16 = vld [vmem:[%s22550_s3 + $0x3a0] ss:$72 sps:$4 sm:$0xff]  }
 0x63d   :  { %10979 = vmatprep.mubr.bf16.mxu1 %v15510_v50  ;;  %v15534_v50 = vld [vmem:[%s22550_s3 + $0x434] ss:$72 sps:$4 sm:$0xff]  }
 0x644   :  { %10980 = vmatmul.mubr.bf16.gmra.mrb[84].mxu1 %v15512_v48  ;;  %v15536_v48 = vld [vmem:[%s22550_s3 + $0x430] ss:$72 sps:$4 sm:$0xff]  }
 0x645   :  { %11020 = vmatprep.mubr.bf16.mxu1 %v15515_v10  ;;  %v15537_v10 = vld [vmem:[%s22550_s3 + $0x4c4] ss:$72 sps:$4 sm:$0xff]  }
 0x64c   :  { %11021 = vmatmul.mubr.bf16.vlgmr.msra.gmra.mrb[88].mxu1 %v15513_v3  ;;  %v15539_v3 = vld [vmem:[%s22550_s3 + $0x4c0] ss:$72 sps:$4 sm:$0xff]  }
 0x64d   :  { %11028 = vmatprep.mubr.bf16.mxu1 %v15516_v45  ;;  %v15540_v45 = vld [vmem:[%s22550_s3 + $0x554] ss:$72 sps:$4 sm:$0xff]  }
 0x654   :  { %11029 = vmatmul.mubr.bf16.gmra.mrb[92].mxu1 %v15518_v62  ;;  %v15542_v62 = vld [vmem:[%s22550_s3 + $0x550] ss:$72 sps:$4 sm:$0xff]  }
 0x655   :  { %11036 = vmatprep.mubr.bf16.mxu1 %v15519_v56  ;;  %v15543_v56 = vld [vmem:[%s22550_s3 + $0x5e4] ss:$72 sps:$4 sm:$0xff]  }
 0x65c   :  { %11037 = vmatmul.mubr.bf16.gmra.mrb[0].mxu1 %v15521_v33  ;;  %v15545_v33 = vld [vmem:[%s22550_s3 + $0x5e0] ss:$72 sps:$4 sm:$0xff]  }
 0x65d   :  { %11044 = vmatprep.mubr.bf16.mxu1 %v15522_v9  ;;  %v15546_v9 = vld [vmem:[%s22550_s3 + $0x674] ss:$72 sps:$4 sm:$0xff]  }
 0x664   :  { %11045 = vmatmul.mubr.bf16.gmra.mrb[4].mxu1 %v15524_v12  ;;  %v15548_v12 = vld [vmem:[%s22550_s3 + $0x670] ss:$72 sps:$4 sm:$0xff]  }
 0x665   :  { %11052 = vmatprep.mubr.bf16.mxu1 %v15525_v0  ;;  %v15549_v0 = vld [vmem:[%s22550_s3 + $0x704] ss:$72 sps:$4 sm:$0xff]  }
 0x66c   :  { %11053 = vmatmul.mubr.bf16.gmra.mrb[8].mxu1 %v15527_v21  ;;  %v15551_v21 = vld [vmem:[%s22550_s3 + $0x700] ss:$72 sps:$4 sm:$0xff]  }
 0x66d   :  { %11060 = vmatprep.mubr.bf16.mxu1 %v15528_v54  ;;  %v15552_v54 = vld [vmem:[%s22550_s3 + $0x794] ss:$72 sps:$4 sm:$0xff]  }
 0x674   :  { %11061 = vmatmul.mubr.bf16.gmra.mrb[12].mxu1 %v15530_v2  ;;  %v15554_v2 = vld [vmem:[%s22550_s3 + $0x790] ss:$72 sps:$4 sm:$0xff]  }
 0x675   :  { %11068 = vmatprep.mubr.bf16.mxu1 %v15531_v34  ;;  %v15555_v34 = vld [vmem:[%s22550_s3 + $0x824] ss:$72 sps:$4 sm:$0xff]  }
 0x67c   :  { %11069 = vmatmul.mubr.bf16.gmra.mrb[16].mxu1 %v15533_v16  ;;  %v15557_v16 = vld [vmem:[%s22550_s3 + $0x820] ss:$72 sps:$4 sm:$0xff]  }
 0x67d   :  { %11076 = vmatprep.mubr.bf16.mxu1 %v15534_v50  ;;  %v15558_v50 = vld [vmem:[%s22550_s3 + $0x8b4] ss:$72 sps:$4 sm:$0xff]  }
 0x684   :  { %11077 = vmatmul.mubr.bf16.gmra.mrb[20].mxu1 %v15536_v48  ;;  %v15560_v48 = vld [vmem:[%s22550_s3 + $0x8b0] ss:$72 sps:$4 sm:$0xff]  }
 0x685   :  { %11084 = vmatprep.mubr.bf16.mxu1 %v15537_v10  ;;  %v15561_v10 = vld [vmem:[%s22550_s3 + $0x944] ss:$72 sps:$4 sm:$0xff]  }
 0x68c   :  { %11085 = vmatmul.mubr.bf16.gmra.mrb[24].mxu1 %v15539_v3  ;;  %v15563_v3 = vld [vmem:[%s22550_s3 + $0x940] ss:$72 sps:$4 sm:$0xff]  }
 0x68d   :  { %11092 = vmatprep.mubr.bf16.mxu1 %v15540_v45  ;;  %v15564_v45 = vld [vmem:[%s22550_s3 + $0x9d4] ss:$72 sps:$4 sm:$0xff]  }
 0x694   :  { %11093 = vmatmul.mubr.bf16.gmra.mrb[28].mxu1 %v15542_v62  ;;  %v15566_v62 = vld [vmem:[%s22550_s3 + $0x9d0] ss:$72 sps:$4 sm:$0xff]  }
 0x695   :  { %11100 = vmatprep.mubr.bf16.mxu1 %v15543_v56  ;;  %v15567_v56 = vld [vmem:[%s22550_s3 + $0xa64] ss:$72 sps:$4 sm:$0xff]  }
 0x69c   :  { %11101 = vmatmul.mubr.bf16.gmra.mrb[32].mxu1 %v15545_v33  ;;  %v15569_v33 = vld [vmem:[%s22550_s3 + $0xa60] ss:$72 sps:$4 sm:$0xff]  }
 0x69d   :  { %11108 = vmatprep.mubr.bf16.mxu1 %v15546_v9  ;;  %v15570_v9 = vld [vmem:[%s22550_s3 + $0xaf4] ss:$72 sps:$4 sm:$0xff]  }
 0x6a4   :  { %11109 = vmatmul.mubr.bf16.gmra.mrb[36].mxu1 %v15548_v12  ;;  %v15572_v12 = vld [vmem:[%s22550_s3 + $0xaf0] ss:$72 sps:$4 sm:$0xff]  }
 0x6a5   :  { %11116 = vmatprep.mubr.bf16.mxu1 %v15549_v0  ;;  %v15573_v0 = vld [vmem:[%s22550_s3 + $0xb84] ss:$72 sps:$4 sm:$0xff]  }
 0x6ac   :  { %11117 = vmatmul.mubr.bf16.gmra.mrb[40].mxu1 %v15551_v21  ;;  %v15575_v21 = vld [vmem:[%s22550_s3 + $0xb80] ss:$72 sps:$4 sm:$0xff]  }
 0x6ad   :  { %11124 = vmatprep.mubr.bf16.mxu1 %v15552_v54  ;;  %v15576_v54 = vld [vmem:[%s22550_s3 + $0xc14] ss:$72 sps:$4 sm:$0xff]  }
 0x6b4   :  { %11125 = vmatmul.mubr.bf16.gmra.mrb[44].mxu1 %v15554_v2  ;;  %v15578_v2 = vld [vmem:[%s22550_s3 + $0xc10] ss:$72 sps:$4 sm:$0xff]  }
 0x6b5   :  { %11132 = vmatprep.mubr.bf16.mxu1 %v15555_v34  ;;  %v15579_v34 = vld [vmem:[%s22550_s3 + $0xca4] ss:$72 sps:$4 sm:$0xff]  }
 0x6bc   :  { %11133 = vmatmul.mubr.bf16.gmra.mrb[48].mxu1 %v15557_v16  ;;  %v15581_v16 = vld [vmem:[%s22550_s3 + $0xca0] ss:$72 sps:$4 sm:$0xff]  }
 0x6bd   :  { %11140 = vmatprep.mubr.bf16.mxu1 %v15558_v50  ;;  %v15582_v50 = vld [vmem:[%s22550_s3 + $0xd34] ss:$72 sps:$4 sm:$0xff]  }
 0x6c4   :  { %11141 = vmatmul.mubr.bf16.gmra.mrb[52].mxu1 %v15560_v48  ;;  %v15584_v48 = vld [vmem:[%s22550_s3 + $0xd30] ss:$72 sps:$4 sm:$0xff]  }
 0x6c5   :  { %11148 = vmatprep.mubr.bf16.mxu1 %v15561_v10 }
 0x6cc   :  { %11149 = vmatmul.mubr.bf16.gmra.mrb[56].mxu1 %v15563_v3 }
 0x6cd   :  { %11156 = vmatprep.mubr.bf16.mxu1 %v15564_v45 }
 0x6d4   :  { %11157 = vmatmul.mubr.bf16.gmra.mrb[60].mxu1 %v15566_v62 }
 0x6d5   :  { %11164 = vmatprep.mubr.bf16.mxu1 %v15567_v56 }
 0x6dc   :  { %11165 = vmatmul.mubr.bf16.gmra.mrb[64].mxu1 %v15569_v33 }
 0x6dd   :  { %11172 = vmatprep.mubr.bf16.mxu1 %v15570_v9 }
 0x6e4   :  { %11173 = vmatmul.mubr.bf16.gmra.mrb[68].mxu1 %v15572_v12 }
 0x6e5   :  { %11180 = vmatprep.mubr.bf16.mxu1 %v15573_v0 }
 0x6ec   :  { %11181 = vmatmul.mubr.bf16.gmra.mrb[72].mxu1 %v15575_v21  ;;  %v21384_v21 = vpop.permute.xlu0 %12225 }
 0x6ed   :  { %11188 = vmatprep.mubr.bf16.mxu1 %v15576_v54 }
 0x6f4   :  { %11189 = vmatmul.mubr.bf16.gmra.mrb[76].mxu1 %v15578_v2 }
 0x6f5   :  { %11196 = vmatprep.mubr.bf16.mxu1 %v15579_v34  ;;  %v21389_v34 = vpop.permute.xlu1 %12230 }
 0x6fc   :  { %11197 = vmatmul.mubr.bf16.gmra.mrb[80].mxu1 %v15581_v16 }
 0x6fd   :  { %11204 = vmatprep.mubr.bf16.mxu1 %v15582_v50 }
 0x704   :  { %11205 = vmatmul.mubr.bf16.gmra.mrb[84].mxu1 %v15584_v48  ;;  %v21396_v48 = vpop.permute.xlu0 %12235 }
 0x71f   :  { %v11022_v10 = vpop.f32.mrb[88].mxu1 }
 0x720   :  { %v21375_v3 = vadd.f32 %v11022_v10, %v21189_v27  ;;  %v11024_v45 = vpop.f32.mrb[89].mxu1 }
 0x721   :  { %v11025_v62 = vpop.f32.mrb[90].mxu1 }
 0x722   :  { %v21378_v56 = vadd.f32 %v11025_v62, %v21191_v28  ;;  %v11027_v33 = vpop.f32.mrb[91].mxu1  ;;  %v11214_v9 = vsel %vm11213_vm2, %v21375_v3, 0.0 }
 0x723   :  { %11215 = vadd.xlane.f32.xlu0 %v11214_v9 }
 0x724   :  { %v11217_v12 = vsel %vm11213_vm2, %v21378_v56, 0.0 }
 0x725   :  { %11218 = vadd.xlane.f32.xlu1 %v11217_v12 }
 0x727   :  { %v11030_v0 = vpop.f32.mrb[92].mxu1 }
 0x728   :  { %v21387_v27 = vadd.f32 %v11030_v0, %v21199_v22  ;;  %v11032_v54 = vpop.f32.mrb[93].mxu1  ;;  %v21400_v22 = vpop.permute.xlu1 %12240 }
 0x729   :  { %v11033_v2 = vpop.f32.mrb[94].mxu1  ;;  %22839 = vst [vmem:[#allocation35_spill] sm:$0xff] %v21400_v22  ;;  %v21410_v54 = vpop.permute.xlu0 %12245 }
 0x72a   :  { %v21392_v28 = vadd.f32 %v11033_v2, %v21201_v5  ;;  %v11035_v16 = vpop.f32.mrb[95].mxu1  ;;  %v11220_v50 = vsel %vm11213_vm2, %v21387_v27, 0.0  ;;  %22840 = vst [vmem:[#allocation67_spill] sm:$0xff] %v21410_v54 }
 0x72b   :  { %11221 = vadd.xlane.f32.xlu0 %v11220_v50 }
 0x72c   :  { %v11223_v10 = vsel %vm11213_vm2, %v21392_v28, 0.0  ;;  %v21414_v16 = vpop.permute.xlu1 %12250 }
 0x72d   :  { %22841 = vst [vmem:[#allocation36_spill] sm:$0xff] %v21414_v16 }
 0x72f   :  { %v11038_v45 = vpop.f32.mrb[0].mxu1  ;;  %11224 = vadd.xlane.f32.xlu0 %v11223_v10 }
 0x730   :  { %v21403_v62 = vadd.f32 %v11038_v45, %v20838_v47  ;;  %v11040_v33 = vpop.f32.mrb[1].mxu1  ;;  %v21419_v45 = vpop.permute.xlu0 %12255 }
 0x731   :  { %v11041_v5 = vpop.f32.mrb[2].mxu1  ;;  %22842 = vst [vmem:[#allocation38_spill] sm:$0xff] %v21419_v45 }
 0x732   :  { %v21406_v9 = vadd.f32 %v11041_v5, %v20840_v59  ;;  %v11043_v12 = vpop.f32.mrb[3].mxu1  ;;  %v11226_v0 = vsel %vm11213_vm2, %v21403_v62, 0.0 }
 0x733   :  { %11227 = vadd.xlane.f32.xlu1 %v11226_v0  ;;  %v21426_v0 = vpop.permute.xlu1 %12260 }
 0x734   :  { %v11229_v2 = vsel %vm11213_vm2, %v21406_v9, 0.0  ;;  %22843 = vst [vmem:[#allocation37_spill] sm:$0xff] %v21426_v0 }
 0x735   :  { %11230 = vadd.xlane.f32.xlu0 %v11229_v2 }
 0x737   :  { %v11046_v47 = vpop.f32.mrb[4].mxu1 }
 0x738   :  { %v21417_v50 = vadd.f32 %v11046_v47, %v20848_v43  ;;  %v11048_v10 = vpop.f32.mrb[5].mxu1  ;;  %v21430_v47 = vpop.permute.xlu0 %12265 }
 0x739   :  { %v11049_v59 = vpop.f32.mrb[6].mxu1  ;;  %22844 = vst [vmem:[#allocation39_spill] sm:$0xff] %v21430_v47 }
 0x73a   :  { %v21422_v33 = vadd.f32 %v11049_v59, %v20850_v26  ;;  %v11051_v5 = vpop.f32.mrb[7].mxu1  ;;  %v11232_v12 = vsel %vm11213_vm2, %v21417_v50, 0.0  ;;  %v21435_v59 = vpop.permute.xlu1 %12270 }
 0x73b   :  { %11233 = vadd.xlane.f32.xlu1 %v11232_v12  ;;  %22845 = vst [vmem:[#allocation40_spill] sm:$0xff] %v21435_v59 }
 0x73c   :  { %v11235_v2 = vsel %vm11213_vm2, %v21422_v33, 0.0  ;;  %v21444_v47 = vpop.permute.xlu0 %12275 }
 0x73d   :  { %11236 = vadd.xlane.f32.xlu0 %v11235_v2  ;;  %22846 = vst [vmem:[#allocation42_spill] sm:$0xff] %v21444_v47 }
 0x73f   :  { %v11054_v43 = vpop.f32.mrb[8].mxu1 }
 0x740   :  { %v21433_v10 = vadd.f32 %v11054_v43, %v20858_v41  ;;  %v11056_v16 = vpop.f32.mrb[9].mxu1  ;;  %v21446_v43 = vpop.permute.xlu1 %12280 }
 0x741   :  { %v11057_v26 = vpop.f32.mrb[10].mxu1  ;;  %22847 = vst [vmem:[#allocation41_spill] sm:$0xff] %v21446_v43  ;;  %v21456_v45 = vpop.permute.xlu0 %12285 }
 0x742   :  { %v21438_v5 = vadd.f32 %v11057_v26, %v20860_v4  ;;  %v11059_v12 = vpop.f32.mrb[11].mxu1  ;;  %v11238_v0 = vsel %vm11213_vm2, %v21433_v10, 0.0  ;;  %22848 = vst [vmem:[#allocation43_spill] sm:$0xff] %v21456_v45 }
 0x743   :  { %11239 = vadd.xlane.f32.xlu1 %v11238_v0 }
 0x744   :  { %v11241_v2 = vsel %vm11213_vm2, %v21438_v5, 0.0  ;;  %v21460_v43 = vpop.permute.xlu1 %12290 }
 0x745   :  { %11242 = vadd.xlane.f32.xlu0 %v11241_v2  ;;  %22849 = vst [vmem:[#allocation44_spill] sm:$0xff] %v21460_v43 }
 0x747   :  { %v11062_v41 = vpop.f32.mrb[12].mxu1 }
 0x748   :  { %v21449_v16 = vadd.f32 %v11062_v41, %v20868_v25  ;;  %v11064_v59 = vpop.f32.mrb[13].mxu1  ;;  %v21472_v47 = vpop.permute.xlu1 %12300 }
 0x749   :  { %v11065_v4 = vpop.f32.mrb[14].mxu1  ;;  %22851 = vst [vmem:[#allocation63_spill] sm:$0xff] %v21472_v47 }
 0x74a   :  { %v21452_v26 = vadd.f32 %v11065_v4, %v20870_v13  ;;  %v11067_v12 = vpop.f32.mrb[15].mxu1  ;;  %v11244_v0 = vsel %vm11213_vm2, %v21449_v16, 0.0  ;;  %v21465_v4 = vpop.permute.xlu0 %12295 }
 0x74b   :  { %11245 = vadd.xlane.f32.xlu1 %v11244_v0  ;;  %22850 = vst [vmem:[#allocation46_spill] sm:$0xff] %v21465_v4 }
 0x74c   :  { %v11247_v2 = vsel %vm11213_vm2, %v21452_v26, 0.0 }
 0x74d   :  { %11248 = vadd.xlane.f32.xlu0 %v11247_v2 }
 0x74f   :  { %v11070_v25 = vpop.f32.mrb[16].mxu1 }
 0x750   :  { %v21463_v59 = vadd.f32 %v11070_v25, %v20884_v20  ;;  %v11072_v41 = vpop.f32.mrb[17].mxu1  ;;  %v21476_v25 = vpop.permute.xlu0 %12305 }
 0x751   :  { %v11073_v13 = vpop.f32.mrb[18].mxu1  ;;  %22852 = vst [vmem:[#allocation64_spill] sm:$0xff] %v21476_v25 }
 0x752   :  { %v21468_v12 = vadd.f32 %v11073_v13, %v20890_v18  ;;  %v11075_v0 = vpop.f32.mrb[19].mxu1  ;;  %v11250_v45 = vsel %vm11213_vm2, %v21463_v59, 0.0  ;;  %v21481_v13 = vpop.permute.xlu1 %12310 }
 0x753   :  { %11251 = vadd.xlane.f32.xlu1 %v11250_v45  ;;  %22853 = vst [vmem:[#allocation12_spill] sm:$0xff] %v21481_v13 }
 0x754   :  { %v11253_v2 = vsel %vm11213_vm2, %v21468_v12, 0.0  ;;  %v21490_v25 = vpop.permute.xlu0 %12315 }
 0x755   :  { %11254 = vadd.xlane.f32.xlu0 %v11253_v2  ;;  %22854 = vst [vmem:[#allocation13_spill] sm:$0xff] %v21490_v25 }
 0x757   :  { %v11078_v20 = vpop.f32.mrb[20].mxu1 }
 0x758   :  { %v21479_v41 = vadd.f32 %v11078_v20, %v20910_v44  ;;  %v11080_v43 = vpop.f32.mrb[21].mxu1  ;;  %v21492_v20 = vpop.permute.xlu1 %12320 }
 0x759   :  { %v11081_v18 = vpop.f32.mrb[22].mxu1  ;;  %22855 = vst [vmem:[#allocation14_spill] sm:$0xff] %v21492_v20  ;;  %v21502_v4 = vpop.permute.xlu0 %12325 }
 0x75a   :  { %v21484_v0 = vadd.f32 %v11081_v18, %v20917_v35  ;;  %v11083_v45 = vpop.f32.mrb[23].mxu1  ;;  %v11256_v47 = vsel %vm11213_vm2, %v21479_v41, 0.0  ;;  %22856 = vst [vmem:[#allocation16_spill] sm:$0xff] %v21502_v4 }
 0x75b   :  { %11257 = vadd.xlane.f32.xlu1 %v11256_v47 }
 0x75c   :  { %v11259_v2 = vsel %vm11213_vm2, %v21484_v0, 0.0  ;;  %v21506_v20 = vpop.permute.xlu1 %12330 }
 0x75d   :  { %11260 = vadd.xlane.f32.xlu0 %v11259_v2  ;;  %22857 = vst [vmem:[#allocation15_spill] sm:$0xff] %v21506_v20 }
 0x75f   :  { %v11086_v44 = vpop.f32.mrb[24].mxu1 }
 0x760   :  { %v21495_v43 = vadd.f32 %v11086_v44, %v20938_v8  ;;  %v11088_v13 = vpop.f32.mrb[25].mxu1  ;;  %v21518_v25 = vpop.permute.xlu1 %12340 }
 0x761   :  { %v11089_v35 = vpop.f32.mrb[26].mxu1  ;;  %22859 = vst [vmem:[#allocation18_spill] sm:$0xff] %v21518_v25 }
 0x762   :  { %v21498_v18 = vadd.f32 %v11089_v35, %v20945_v55  ;;  %v11091_v45 = vpop.f32.mrb[27].mxu1  ;;  %v11262_v47 = vsel %vm11213_vm2, %v21495_v43, 0.0  ;;  %v21511_v35 = vpop.permute.xlu0 %12335 }
 0x763   :  { %11263 = vadd.xlane.f32.xlu1 %v11262_v47  ;;  %22858 = vst [vmem:[#allocation17_spill] sm:$0xff] %v21511_v35 }
 0x764   :  { %v11265_v2 = vsel %vm11213_vm2, %v21498_v18, 0.0 }
 0x765   :  { %11266 = vadd.xlane.f32.xlu0 %v11265_v2 }
 0x767   :  { %v11094_v8 = vpop.f32.mrb[28].mxu1 }
 0x768   :  { %v21509_v13 = vadd.f32 %v11094_v8, %v20966_v1  ;;  %v11096_v44 = vpop.f32.mrb[29].mxu1  ;;  %v21522_v8 = vpop.permute.xlu0 %12345 }
 0x769   :  { %v11097_v55 = vpop.f32.mrb[30].mxu1  ;;  %22860 = vst [vmem:[#allocation20_spill] sm:$0xff] %v21522_v8 }
 0x76a   :  { %v21514_v45 = vadd.f32 %v11097_v55, %v20973_v38  ;;  %v11099_v47 = vpop.f32.mrb[31].mxu1  ;;  %v11268_v4 = vsel %vm11213_vm2, %v21509_v13, 0.0  ;;  %v21527_v55 = vpop.permute.xlu1 %12350 }
 0x76b   :  { %11269 = vadd.xlane.f32.xlu1 %v11268_v4  ;;  %22861 = vst [vmem:[#allocation19_spill] sm:$0xff] %v21527_v55 }
 0x76c   :  { %v11271_v2 = vsel %vm11213_vm2, %v21514_v45, 0.0  ;;  %v21536_v8 = vpop.permute.xlu0 %12355 }
 0x76d   :  { %11272 = vadd.xlane.f32.xlu0 %v11271_v2  ;;  %22862 = vst [vmem:[#allocation21_spill] sm:$0xff] %v21536_v8 }
 0x76f   :  { %v11102_v1 = vpop.f32.mrb[32].mxu1 }
 0x770   :  { %v21525_v44 = vadd.f32 %v11102_v1, %v20994_v23  ;;  %v11104_v20 = vpop.f32.mrb[33].mxu1  ;;  %v21538_v1 = vpop.permute.xlu1 %12360 }
 0x771   :  { %v11105_v38 = vpop.f32.mrb[34].mxu1  ;;  %22863 = vst [vmem:[#allocation23_spill] sm:$0xff] %v21538_v1  ;;  %v21548_v35 = vpop.permute.xlu0 %12365 }
 0x772   :  { %v21530_v47 = vadd.f32 %v11105_v38, %v21001_v63  ;;  %v11107_v4 = vpop.f32.mrb[35].mxu1  ;;  %v11274_v25 = vsel %vm11213_vm2, %v21525_v44, 0.0  ;;  %22864 = vst [vmem:[#allocation3_spill] sm:$0xff] %v21548_v35 }
 0x773   :  { %11275 = vadd.xlane.f32.xlu1 %v11274_v25 }
 0x774   :  { %v11277_v2 = vsel %vm11213_vm2, %v21530_v47, 0.0  ;;  %v21552_v1 = vpop.permute.xlu1 %12370 }
 0x775   :  { %11278 = vadd.xlane.f32.xlu0 %v11277_v2  ;;  %22865 = vst [vmem:[#allocation2_spill] sm:$0xff] %v21552_v1 }
 0x777   :  { %v11110_v23 = vpop.f32.mrb[36].mxu1 }
 0x778   :  { %v21541_v20 = vadd.f32 %v11110_v23, %v21022_v7  ;;  %v11112_v55 = vpop.f32.mrb[37].mxu1  ;;  %v21564_v8 = vpop.permute.xlu1 %12380 }
 0x779   :  { %v11113_v63 = vpop.f32.mrb[38].mxu1  ;;  %22867 = vst [vmem:[#allocation65_spill] sm:$0xff] %v21564_v8 }
 0x77a   :  { %v21544_v38 = vadd.f32 %v11113_v63, %v21028_v49  ;;  %v11115_v4 = vpop.f32.mrb[39].mxu1  ;;  %v11280_v25 = vsel %vm11213_vm2, %v21541_v20, 0.0  ;;  %v21557_v63 = vpop.permute.xlu0 %12375 }
 0x77b   :  { %11281 = vadd.xlane.f32.xlu1 %v11280_v25  ;;  %22866 = vst [vmem:[#allocation4_spill] sm:$0xff] %v21557_v63 }
 0x77c   :  { %v11283_v2 = vsel %vm11213_vm2, %v21544_v38, 0.0 }
 0x77d   :  { %11284 = vadd.xlane.f32.xlu0 %v11283_v2 }
 0x77f   :  { %v11118_v7 = vpop.f32.mrb[40].mxu1 }
 0x780   :  { %v21555_v55 = vadd.f32 %v11118_v7, %v21046_v36  ;;  %v11120_v23 = vpop.f32.mrb[41].mxu1  ;;  %v21568_v7 = vpop.permute.xlu0 %12385 }
 0x781   :  { %v11121_v49 = vpop.f32.mrb[42].mxu1  ;;  %22868 = vst [vmem:[#allocation6_spill] sm:$0xff] %v21568_v7 }
 0x782   :  { %v21560_v4 = vadd.f32 %v11121_v49, %v21052_v32  ;;  %v11123_v25 = vpop.f32.mrb[43].mxu1  ;;  %v11286_v35 = vsel %vm11213_vm2, %v21555_v55, 0.0  ;;  %v21573_v49 = vpop.permute.xlu1 %12390 }
 0x783   :  { %11287 = vadd.xlane.f32.xlu1 %v11286_v35  ;;  %22869 = vst [vmem:[#allocation5_spill] sm:$0xff] %v21573_v49 }
 0x784   :  { %v11289_v2 = vsel %vm11213_vm2, %v21560_v4, 0.0  ;;  %v21582_v7 = vpop.permute.xlu0 %12395 }
 0x785   :  { %11290 = vadd.xlane.f32.xlu0 %v11289_v2  ;;  %22870 = vst [vmem:[#allocation45_spill] sm:$0xff] %v21582_v7 }
 0x787   :  { %v11126_v36 = vpop.f32.mrb[44].mxu1 }
 0x788   :  { %v21571_v23 = vadd.f32 %v11126_v36, %v21070_v37  ;;  %v11128_v1 = vpop.f32.mrb[45].mxu1  ;;  %v21584_v36 = vpop.permute.xlu1 %12400 }
 0x789   :  { %v11129_v32 = vpop.f32.mrb[46].mxu1  ;;  %22871 = vst [vmem:[#allocation7_spill] sm:$0xff] %v21584_v36  ;;  %v21594_v63 = vpop.permute.xlu0 %12405 }
 0x78a   :  { %v21576_v25 = vadd.f32 %v11129_v32, %v21076_v11  ;;  %v11131_v35 = vpop.f32.mrb[47].mxu1  ;;  %v11292_v8 = vsel %vm11213_vm2, %v21571_v23, 0.0  ;;  %22872 = vst [vmem:[#allocation8_spill] sm:$0xff] %v21594_v63 }
 0x78b   :  { %11293 = vadd.xlane.f32.xlu1 %v11292_v8 }
 0x78c   :  { %v11295_v2 = vsel %vm11213_vm2, %v21576_v25, 0.0  ;;  %v21598_v36 = vpop.permute.xlu1 %12410 }
 0x78d   :  { %11296 = vadd.xlane.f32.xlu0 %v11295_v2  ;;  %22873 = vst [vmem:[#allocation69_spill] sm:$0xff] %v21598_v36 }
 0x78f   :  { %v11134_v37 = vpop.f32.mrb[48].mxu1 }
 0x790   :  { %v21587_v1 = vadd.f32 %v11134_v37, %v21088_v61  ;;  %v11136_v49 = vpop.f32.mrb[49].mxu1  ;;  %v21610_v7 = vpop.permute.xlu1 %12420 }
 0x791   :  { %v11137_v11 = vpop.f32.mrb[50].mxu1  ;;  %22875 = vst [vmem:[#allocation70_spill] sm:$0xff] %v21610_v7 }
 0x792   :  { %v21590_v32 = vadd.f32 %v11137_v11, %v21091_v17  ;;  %v11139_v35 = vpop.f32.mrb[51].mxu1  ;;  %v11298_v8 = vsel %vm11213_vm2, %v21587_v1, 0.0  ;;  %v21603_v11 = vpop.permute.xlu0 %12415 }
 0x793   :  { %11299 = vadd.xlane.f32.xlu1 %v11298_v8  ;;  %22874 = vst [vmem:[#allocation68_spill] sm:$0xff] %v21603_v11 }
 0x794   :  { %v11301_v2 = vsel %vm11213_vm2, %v21590_v32, 0.0 }
 0x795   :  { %11302 = vadd.xlane.f32.xlu0 %v11301_v2 }
 0x797   :  { %v11142_v61 = vpop.f32.mrb[52].mxu1 }
 0x798   :  { %v21601_v49 = vadd.f32 %v11142_v61, %v21099_v40  ;;  %v11144_v37 = vpop.f32.mrb[53].mxu1  ;;  %v21614_v61 = vpop.permute.xlu0 %12425 }
 0x799   :  { %v11145_v17 = vpop.f32.mrb[54].mxu1  ;;  %22876 = vst [vmem:[#allocation9_spill] sm:$0xff] %v21614_v61 }
 0x79a   :  { %v21606_v35 = vadd.f32 %v11145_v17, %v21101_v31  ;;  %v11147_v8 = vpop.f32.mrb[55].mxu1  ;;  %v11304_v63 = vsel %vm11213_vm2, %v21601_v49, 0.0  ;;  %v21619_v17 = vpop.permute.xlu1 %12430 }
 0x79b   :  { %11305 = vadd.xlane.f32.xlu1 %v11304_v63  ;;  %22877 = vst [vmem:[#allocation10_spill] sm:$0xff] %v21619_v17 }
 0x79c   :  { %v11307_v2 = vsel %vm11213_vm2, %v21606_v35, 0.0  ;;  %v21628_v61 = vpop.permute.xlu0 %12435 }
 0x79d   :  { %11308 = vadd.xlane.f32.xlu0 %v11307_v2  ;;  %22878 = vst [vmem:[#allocation24_spill] sm:$0xff] %v21628_v61 }
 0x79f   :  { %v11150_v40 = vpop.f32.mrb[56].mxu1 }
 0x7a0   :  { %v21617_v37 = vadd.f32 %v11150_v40, %v21109_v57  ;;  %v11152_v36 = vpop.f32.mrb[57].mxu1  ;;  %v21630_v40 = vpop.permute.xlu1 %12440 }
 0x7a1   :  { %v11153_v31 = vpop.f32.mrb[58].mxu1  ;;  %22879 = vst [vmem:[#allocation25_spill] sm:$0xff] %v21630_v40  ;;  %v21640_v11 = vpop.permute.xlu0 %12445 }
 0x7a2   :  { %v21622_v8 = vadd.f32 %v11153_v31, %v21111_v19  ;;  %v11155_v63 = vpop.f32.mrb[59].mxu1  ;;  %v11310_v7 = vsel %vm11213_vm2, %v21617_v37, 0.0  ;;  %22880 = vst [vmem:[#allocation11_spill] sm:$0xff] %v21640_v11 }
 0x7a3   :  { %11311 = vadd.xlane.f32.xlu1 %v11310_v7 }
 0x7a4   :  { %v11313_v2 = vsel %vm11213_vm2, %v21622_v8, 0.0  ;;  %v21644_v40 = vpop.permute.xlu1 %12450 }
 0x7a5   :  { %11314 = vadd.xlane.f32.xlu0 %v11313_v2  ;;  %22881 = vst [vmem:[#allocation47_spill] sm:$0xff] %v21644_v40 }
 0x7a7   :  { %v11158_v57 = vpop.f32.mrb[60].mxu1 }
 0x7a8   :  { %v21633_v36 = vadd.f32 %v11158_v57, %v21119_v53  ;;  %v11160_v17 = vpop.f32.mrb[61].mxu1 }
 0x7a9   :  { %v11161_v19 = vpop.f32.mrb[62].mxu1 }
 0x7aa   :  { %v21636_v31 = vadd.f32 %v11161_v19, %v21121_v24  ;;  %v11163_v63 = vpop.f32.mrb[63].mxu1  ;;  %v11316_v7 = vsel %vm11213_vm2, %v21633_v36, 0.0 }
 0x7ab   :  { %11317 = vadd.xlane.f32.xlu1 %v11316_v7 }
 0x7ac   :  { %v11319_v2 = vsel %vm11213_vm2, %v21636_v31, 0.0 }
 0x7ad   :  { %11320 = vadd.xlane.f32.xlu0 %v11319_v2 }
 0x7af   :  { %v11166_v53 = vpop.f32.mrb[64].mxu1 }
 0x7b0   :  { %v21647_v17 = vadd.f32 %v11166_v53, %v21129_v58  ;;  %v11168_v57 = vpop.f32.mrb[65].mxu1  ;;  %v11216_v24 = vpop.xlane.xlu0 %11215 }
 0x7b1   :  { %v11359_v19 = vmul.f32 0.020408163, %v11216_v24  ;;  %v11169_v63 = vpop.f32.mrb[66].mxu1 }
 0x7b2   :  { %v21650_v61 = vadd.f32 %v11169_v63, %v21131_v42  ;;  %v11171_v7 = vpop.f32.mrb[67].mxu1  ;;  %v11219_v22 = vpop.xlane.xlu1 %11218  ;;  %v11322_v11 = vsel %vm11213_vm2, %v21647_v17, 0.0 }
 0x7b3   :  { %v21655_v2 = vsub.f32 %v21375_v3, %v11359_v19  ;;  %v11360_v40 = vmul.f32 0.020408163, %v11219_v22  ;;  %11323 = vadd.xlane.f32.xlu1 %v11322_v11 }
 0x7b4   :  { %v11325_v58 = vsel %vm11213_vm2, %v21650_v61, 0.0 }
 0x7b5   :  { %v21660_v53 = vsub.f32 %v21378_v56, %v11360_v40  ;;  %11326 = vadd.xlane.f32.xlu0 %v11325_v58  ;;  %v11455_v42 = vmul.f32 %v21655_v2, %v21655_v2 }
 0x7b7   :  { %v11174_v57 = vpop.f32.mrb[68].mxu1  ;;  %v11503_v24 = vsel %vm11213_vm2, %v11455_v42, 0.0  ;;  %v11456_v63 = vmul.f32 %v21660_v53, %v21660_v53 }
 0x7b8   :  { %v21668_v3 = vadd.f32 %v11174_v57, %v21139_v15  ;;  %v11176_v22 = vpop.f32.mrb[69].mxu1  ;;  %11504 = vadd.xlane.f32.xlu1 %v11503_v24  ;;  %v11222_v11 = vpop.xlane.xlu0 %11221 }
 0x7b9   :  { %v11361_v19 = vmul.f32 0.020408163, %v11222_v11  ;;  %v11177_v7 = vpop.f32.mrb[70].mxu1  ;;  %v11506_v56 = vsel %vm11213_vm2, %v11456_v63, 0.0 }
 0x7ba   :  { %v21672_v40 = vadd.f32 %v11177_v7, %v21141_v52  ;;  %v11179_v58 = vpop.f32.mrb[71].mxu1  ;;  %11507 = vadd.xlane.f32.xlu0 %v11506_v56  ;;  %v11328_v42 = vsel %vm11213_vm2, %v21668_v3, 0.0 }
 0x7bb   :  { %v21677_v54 = vsub.f32 %v21387_v27, %v11361_v19 }
 0x7bc   :  { %11329 = vadd.xlane.f32.xlu1 %v11328_v42  ;;  %v11225_v15 = vpop.xlane.xlu0 %11224  ;;  %v11331_v57 = vsel %vm11213_vm2, %v21672_v40, 0.0 }
 0x7bd   :  { %v11362_v24 = vmul.f32 0.020408163, %v11225_v15  ;;  %v11457_v63 = vmul.f32 %v21677_v54, %v21677_v54 }
 0x7be   :  { %11332 = vadd.xlane.f32.xlu0 %v11331_v57 }
 0x7bf   :  { %v21684_v52 = vsub.f32 %v21392_v28, %v11362_v24  ;;  %v11182_v22 = vpop.f32.mrb[72].mxu1  ;;  %v11509_v11 = vsel %vm11213_vm2, %v11457_v63, 0.0 }
 0x7c0   :  { %v21688_v7 = vadd.f32 %v11182_v22, %v21149_v60  ;;  %v11184_v27 = vpop.f32.mrb[73].mxu1  ;;  %11510 = vadd.xlane.f32.xlu1 %v11509_v11  ;;  %v11228_v19 = vpop.xlane.xlu1 %11227 }
 0x7c1   :  { %22882 = vst [vmem:[#allocation48_spill] sm:$0xff] %v21684_v52  ;;  %v11363_v56 = vmul.f32 0.020408163, %v11228_v19  ;;  %v11185_v58 = vpop.f32.mrb[74].mxu1  ;;  %v11458_v42 = vmul.f32 %v21684_v52, %v21684_v52 }
 0x7c2   :  { %v21693_v15 = vadd.f32 %v11185_v58, %v21151_v46  ;;  %v11187_v57 = vpop.f32.mrb[75].mxu1  ;;  %v11231_v28 = vpop.xlane.xlu0 %11230  ;;  %v11334_v24 = vsel %vm11213_vm2, %v21688_v7, 0.0 }
 0x7c3   :  { %v21698_v63 = vsub.f32 %v21403_v62, %v11363_v56  ;;  %v11364_v60 = vmul.f32 0.020408163, %v11231_v28  ;;  %v11512_v22 = vsel %vm11213_vm2, %v11458_v42, 0.0 }
 0x7c4   :  { %11335 = vadd.xlane.f32.xlu1 %v11334_v24  ;;  %11513 = vadd.xlane.f32.xlu0 %v11512_v22  ;;  %v11337_v19 = vsel %vm11213_vm2, %v21693_v15, 0.0 }
 0x7c5   :  { %v21702_v11 = vsub.f32 %v21406_v9, %v11364_v60  ;;  %v11459_v46 = vmul.f32 %v21698_v63, %v21698_v63 }
 0x7c7   :  { %22883 = vst [vmem:[#allocation49_spill] sm:$0xff] %v21702_v11  ;;  %v11190_v27 = vpop.f32.mrb[76].mxu1  ;;  %v11515_v58 = vsel %vm11213_vm2, %v11459_v46, 0.0  ;;  %v11460_v62 = vmul.f32 %v21702_v11, %v21702_v11 }
 0x7c8   :  { %v21712_v56 = vadd.f32 %v11190_v27, %v21159_v51  ;;  %v11192_v42 = vpop.f32.mrb[77].mxu1  ;;  %11338 = vadd.xlane.f32.xlu0 %v11337_v19  ;;  %11516 = vadd.xlane.f32.xlu1 %v11515_v58  ;;  %v11234_v9 = vpop.xlane.xlu1 %11233 }
 0x7c9   :  { %v11365_v57 = vmul.f32 0.020408163, %v11234_v9  ;;  %v11193_v28 = vpop.f32.mrb[78].mxu1  ;;  %v11518_v51 = vsel %vm11213_vm2, %v11460_v62, 0.0 }
 0x7ca   :  { %v21715_v24 = vadd.f32 %v11193_v28, %v21161_v14  ;;  %v11195_v60 = vpop.f32.mrb[79].mxu1  ;;  %v11237_v22 = vpop.xlane.xlu0 %11236  ;;  %v11340_v46 = vsel %vm11213_vm2, %v21712_v56, 0.0 }
 0x7cb   :  { %v21720_v52 = vsub.f32 %v21417_v50, %v11365_v57  ;;  %v11366_v11 = vmul.f32 0.020408163, %v11237_v22 }
 0x7cc   :  { %11519 = vadd.xlane.f32.xlu0 %v11518_v51  ;;  %11341 = vadd.xlane.f32.xlu1 %v11340_v46  ;;  %v11343_v58 = vsel %vm11213_vm2, %v21715_v24, 0.0 }
 0x7cd   :  { %v21724_v27 = vsub.f32 %v21422_v33, %v11366_v11  ;;  %v11461_v14 = vmul.f32 %v21720_v52, %v21720_v52 }
 0x7cf   :  { %22884 = vst [vmem:[#allocation50_spill] sm:$0xff] %v21724_v27  ;;  %v11198_v19 = vpop.f32.mrb[80].mxu1  ;;  %v11521_v42 = vsel %vm11213_vm2, %v11461_v14, 0.0  ;;  %v11462_v50 = vmul.f32 %v21724_v27, %v21724_v27 }
 0x7d0   :  { %v21734_v9 = vadd.f32 %v11198_v19, %v21169_v39  ;;  %v11200_v62 = vpop.f32.mrb[81].mxu1  ;;  %11344 = vadd.xlane.f32.xlu0 %v11343_v58  ;;  %11522 = vadd.xlane.f32.xlu1 %v11521_v42  ;;  %v11240_v33 = vpop.xlane.xlu1 %11239 }
 0x7d1   :  { %v11367_v11 = vmul.f32 0.020408163, %v11240_v33  ;;  %v11201_v57 = vpop.f32.mrb[82].mxu1  ;;  %v11524_v39 = vsel %vm11213_vm2, %v11462_v50, 0.0 }
 0x7d2   :  { %v21737_v28 = vadd.f32 %v11201_v57, %v21171_v6  ;;  %v11203_v60 = vpop.f32.mrb[83].mxu1  ;;  %v11243_v22 = vpop.xlane.xlu0 %11242  ;;  %v11346_v46 = vsel %vm11213_vm2, %v21734_v9, 0.0 }
 0x7d3   :  { %v21742_v51 = vsub.f32 %v21433_v10, %v11367_v11  ;;  %v11368_v14 = vmul.f32 0.020408163, %v11243_v22 }
 0x7d4   :  { %11525 = vadd.xlane.f32.xlu0 %v11524_v39  ;;  %11347 = vadd.xlane.f32.xlu1 %v11346_v46  ;;  %v11349_v42 = vsel %vm11213_vm2, %v21737_v28, 0.0 }
 0x7d5   :  { %v21746_v19 = vsub.f32 %v21438_v5, %v11368_v14  ;;  %v11463_v6 = vmul.f32 %v21742_v51, %v21742_v51 }
 0x7d7   :  { %22885 = vst [vmem:[#allocation51_spill] sm:$0xff] %v21746_v19  ;;  %v11206_v58 = vpop.f32.mrb[84].mxu1  ;;  %v11527_v62 = vsel %vm11213_vm2, %v11463_v6, 0.0  ;;  %v11464_v10 = vmul.f32 %v21746_v19, %v21746_v19 }
 0x7d8   :  { %v21756_v33 = vadd.f32 %v11206_v58, %v21179_v30  ;;  %v11208_v50 = vpop.f32.mrb[85].mxu1  ;;  %11350 = vadd.xlane.f32.xlu0 %v11349_v42  ;;  %11528 = vadd.xlane.f32.xlu1 %v11527_v62  ;;  %v11246_v5 = vpop.xlane.xlu1 %11245 }
 0x7d9   :  { %v11369_v11 = vmul.f32 0.020408163, %v11246_v5  ;;  %v11209_v57 = vpop.f32.mrb[86].mxu1  ;;  %v11530_v30 = vsel %vm11213_vm2, %v11464_v10, 0.0 }
 0x7da   :  { %v21759_v60 = vadd.f32 %v11209_v57, %v21181_v29  ;;  %v11211_v22 = vpop.f32.mrb[87].mxu1  ;;  %v11249_v46 = vpop.xlane.xlu0 %11248  ;;  %v11352_v14 = vsel %vm11213_vm2, %v21756_v33, 0.0 }
 0x7db   :  { %v21764_v39 = vsub.f32 %v21449_v16, %v11369_v11  ;;  %v11370_v6 = vmul.f32 0.020408163, %v11249_v46 }
 0x7dc   :  { %11531 = vadd.xlane.f32.xlu0 %v11530_v30  ;;  %11353 = vadd.xlane.f32.xlu1 %v11352_v14  ;;  %v11355_v42 = vsel %vm11213_vm2, %v21759_v60, 0.0 }
 0x7dd   :  { %v21768_v58 = vsub.f32 %v21452_v26, %v11370_v6  ;;  %v11465_v29 = vmul.f32 %v21764_v39, %v21764_v39 }
 0x7df   :  { %22886 = vst [vmem:[#allocation52_spill] sm:$0xff] %v21768_v58  ;;  %v11533_v62 = vsel %vm11213_vm2, %v11465_v29, 0.0  ;;  %v11466_v16 = vmul.f32 %v21768_v58, %v21768_v58 }
 0x7e0   :  { %11356 = vadd.xlane.f32.xlu0 %v11355_v42  ;;  %11534 = vadd.xlane.f32.xlu1 %v11533_v62  ;;  %v11252_v50 = vpop.xlane.xlu1 %11251 }
 0x7e1   :  { %v11371_v10 = vmul.f32 0.020408163, %v11252_v50  ;;  %v11536_v57 = vsel %vm11213_vm2, %v11466_v16, 0.0 }
 0x7e2   :  { %v11255_v5 = vpop.xlane.xlu0 %11254 }
 0x7e3   :  { %v21778_v11 = vsub.f32 %v21463_v59, %v11371_v10  ;;  %v11372_v26 = vmul.f32 0.020408163, %v11255_v5 }
 0x7e4   :  { %11537 = vadd.xlane.f32.xlu0 %v11536_v57 }
 0x7e5   :  { %v21782_v22 = vsub.f32 %v21468_v12, %v11372_v26  ;;  %v11467_v46 = vmul.f32 %v21778_v11, %v21778_v11 }
 0x7e7   :  { %22887 = vst [vmem:[#allocation53_spill] sm:$0xff] %v21782_v22  ;;  %v11539_v14 = vsel %vm11213_vm2, %v11467_v46, 0.0  ;;  %v11468_v6 = vmul.f32 %v21782_v22, %v21782_v22 }
 0x7e8   :  { %11540 = vadd.xlane.f32.xlu1 %v11539_v14  ;;  %v11258_v30 = vpop.xlane.xlu1 %11257 }
 0x7e9   :  { %v11373_v29 = vmul.f32 0.020408163, %v11258_v30  ;;  %v11542_v59 = vsel %vm11213_vm2, %v11468_v6, 0.0 }
 0x7ea   :  { %v11261_v42 = vpop.xlane.xlu0 %11260  ;;  %11543 = vadd.xlane.f32.xlu0 %v11542_v59 }
 0x7eb   :  { %v21791_v62 = vsub.f32 %v21479_v41, %v11373_v29  ;;  %v11374_v12 = vmul.f32 0.020408163, %v11261_v42 }
 0x7ed   :  { %v21794_v16 = vsub.f32 %v21484_v0, %v11374_v12  ;;  %v11469_v50 = vmul.f32 %v21791_v62, %v21791_v62 }
 0x7ef   :  { %22888 = vst [vmem:[#allocation54_spill] sm:$0xff] %v21794_v16  ;;  %v11545_v10 = vsel %vm11213_vm2, %v11469_v50, 0.0  ;;  %v11470_v5 = vmul.f32 %v21794_v16, %v21794_v16 }
 0x7f0   :  { %11546 = vadd.xlane.f32.xlu1 %v11545_v10  ;;  %v11264_v26 = vpop.xlane.xlu1 %11263 }
 0x7f1   :  { %v11375_v57 = vmul.f32 0.020408163, %v11264_v26  ;;  %v11548_v46 = vsel %vm11213_vm2, %v11470_v5, 0.0 }
 0x7f2   :  { %v11267_v14 = vpop.xlane.xlu0 %11266  ;;  %11549 = vadd.xlane.f32.xlu0 %v11548_v46 }
 0x7f3   :  { %v21803_v41 = vsub.f32 %v21495_v43, %v11375_v57  ;;  %v11376_v0 = vmul.f32 0.020408163, %v11267_v14 }
 0x7f5   :  { %v21806_v6 = vsub.f32 %v21498_v18, %v11376_v0  ;;  %v11471_v30 = vmul.f32 %v21803_v41, %v21803_v41 }
 0x7f7   :  { %22889 = vst [vmem:[#allocation55_spill] sm:$0xff] %v21806_v6  ;;  %v11551_v29 = vsel %vm11213_vm2, %v11471_v30, 0.0  ;;  %v11472_v59 = vmul.f32 %v21806_v6, %v21806_v6 }
 0x7f8   :  { %11552 = vadd.xlane.f32.xlu1 %v11551_v29  ;;  %v11270_v42 = vpop.xlane.xlu1 %11269 }
 0x7f9   :  { %v11377_v12 = vmul.f32 0.020408163, %v11270_v42  ;;  %v11554_v50 = vsel %vm11213_vm2, %v11472_v59, 0.0 }
 0x7fa   :  { %v11273_v10 = vpop.xlane.xlu0 %11272  ;;  %11555 = vadd.xlane.f32.xlu0 %v11554_v50 }
 0x7fb   :  { %v21815_v43 = vsub.f32 %v21509_v13, %v11377_v12  ;;  %v11378_v18 = vmul.f32 0.020408163, %v11273_v10 }
 0x7fd   :  { %v21818_v5 = vsub.f32 %v21514_v45, %v11378_v18  ;;  %v11473_v26 = vmul.f32 %v21815_v43, %v21815_v43 }
 0x7ff   :  { %22890 = vst [vmem:[#allocation56_spill] sm:$0xff] %v21818_v5  ;;  %v11557_v57 = vsel %vm11213_vm2, %v11473_v26, 0.0  ;;  %v11474_v46 = vmul.f32 %v21818_v5, %v21818_v5 }
 0x800   :  { %11558 = vadd.xlane.f32.xlu1 %v11557_v57  ;;  %v11276_v14 = vpop.xlane.xlu1 %11275 }
 0x801   :  { %v11379_v0 = vmul.f32 0.020408163, %v11276_v14  ;;  %v11560_v30 = vsel %vm11213_vm2, %v11474_v46, 0.0 }
 0x802   :  { %v11279_v29 = vpop.xlane.xlu0 %11278  ;;  %11561 = vadd.xlane.f32.xlu0 %v11560_v30 }
 0x803   :  { %v21827_v13 = vsub.f32 %v21525_v44, %v11379_v0  ;;  %v11380_v45 = vmul.f32 0.020408163, %v11279_v29 }
 0x805   :  { %v21830_v59 = vsub.f32 %v21530_v47, %v11380_v45  ;;  %v11475_v42 = vmul.f32 %v21827_v13, %v21827_v13 }
 0x807   :  { %22891 = vst [vmem:[#allocation57_spill] sm:$0xff] %v21830_v59  ;;  %v11563_v12 = vsel %vm11213_vm2, %v11475_v42, 0.0  ;;  %v11476_v50 = vmul.f32 %v21830_v59, %v21830_v59 }
 0x808   :  { %11564 = vadd.xlane.f32.xlu1 %v11563_v12  ;;  %v11282_v10 = vpop.xlane.xlu1 %11281 }
 0x809   :  { %v11381_v18 = vmul.f32 0.020408163, %v11282_v10  ;;  %v11566_v26 = vsel %vm11213_vm2, %v11476_v50, 0.0 }
 0x80a   :  { %v11285_v57 = vpop.xlane.xlu0 %11284  ;;  %11567 = vadd.xlane.f32.xlu0 %v11566_v26 }
 0x80b   :  { %v21839_v44 = vsub.f32 %v21541_v20, %v11381_v18  ;;  %v11382_v47 = vmul.f32 0.020408163, %v11285_v57 }
 0x80d   :  { %v21842_v46 = vsub.f32 %v21544_v38, %v11382_v47  ;;  %v11477_v14 = vmul.f32 %v21839_v44, %v21839_v44 }
 0x80f   :  { %22892 = vst [vmem:[#allocation58_spill] sm:$0xff] %v21842_v46  ;;  %v11569_v0 = vsel %vm11213_vm2, %v11477_v14, 0.0  ;;  %v11478_v30 = vmul.f32 %v21842_v46, %v21842_v46 }
 0x810   :  { %11570 = vadd.xlane.f32.xlu1 %v11569_v0  ;;  %v11288_v29 = vpop.xlane.xlu1 %11287 }
 0x811   :  { %v11383_v45 = vmul.f32 0.020408163, %v11288_v29  ;;  %v11572_v42 = vsel %vm11213_vm2, %v11478_v30, 0.0 }
 0x812   :  { %v11291_v12 = vpop.xlane.xlu0 %11290  ;;  %11573 = vadd.xlane.f32.xlu0 %v11572_v42 }
 0x813   :  { %v21851_v20 = vsub.f32 %v21555_v55, %v11383_v45  ;;  %v11384_v38 = vmul.f32 0.020408163, %v11291_v12 }
 0x815   :  { %22893 = vst [vmem:[#allocation59_spill] sm:$0xff] %v21851_v20  ;;  %v21854_v50 = vsub.f32 %v21560_v4, %v11384_v38  ;;  %v11479_v10 = vmul.f32 %v21851_v20, %v21851_v20 }
 0x817   :  { %22894 = vst [vmem:[#allocation60_spill] sm:$0xff] %v21854_v50  ;;  %v11575_v18 = vsel %vm11213_vm2, %v11479_v10, 0.0  ;;  %v11480_v26 = vmul.f32 %v21854_v50, %v21854_v50 }
 0x818   :  { %11576 = vadd.xlane.f32.xlu1 %v11575_v18  ;;  %v11294_v57 = vpop.xlane.xlu1 %11293 }
 0x819   :  { %v11385_v47 = vmul.f32 0.020408163, %v11294_v57  ;;  %v11578_v14 = vsel %vm11213_vm2, %v11480_v26, 0.0 }
 0x81a   :  { %v11297_v0 = vpop.xlane.xlu0 %11296  ;;  %11579 = vadd.xlane.f32.xlu0 %v11578_v14 }
 0x81b   :  { %v21863_v55 = vsub.f32 %v21571_v23, %v11385_v47  ;;  %v11386_v4 = vmul.f32 0.020408163, %v11297_v0 }
 0x81d   :  { %22895 = vst [vmem:[#allocation61_spill] sm:$0xff] %v21863_v55  ;;  %v21866_v30 = vsub.f32 %v21576_v25, %v11386_v4  ;;  %v11481_v29 = vmul.f32 %v21863_v55, %v21863_v55 }
 0x81f   :  { %22896 = vst [vmem:[#allocation62_spill] sm:$0xff] %v21866_v30  ;;  %v11581_v45 = vsel %vm11213_vm2, %v11481_v29, 0.0  ;;  %v11482_v42 = vmul.f32 %v21866_v30, %v21866_v30 }
 0x820   :  { %11582 = vadd.xlane.f32.xlu1 %v11581_v45  ;;  %v11300_v12 = vpop.xlane.xlu1 %11299 }
 0x821   :  { %v11387_v38 = vmul.f32 0.020408163, %v11300_v12  ;;  %v11584_v10 = vsel %vm11213_vm2, %v11482_v42, 0.0 }
 0x822   :  { %v11303_v18 = vpop.xlane.xlu0 %11302  ;;  %11585 = vadd.xlane.f32.xlu0 %v11584_v10 }
 0x823   :  { %v21875_v23 = vsub.f32 %v21587_v1, %v11387_v38  ;;  %v11388_v25 = vmul.f32 0.020408163, %v11303_v18 }
 0x825   :  { %22897 = vst [vmem:[#allocation26_spill] sm:$0xff] %v21875_v23  ;;  %v21878_v26 = vsub.f32 %v21590_v32, %v11388_v25  ;;  %v11483_v57 = vmul.f32 %v21875_v23, %v21875_v23 }
 0x827   :  { %22898 = vst [vmem:[#allocation28_spill] sm:$0xff] %v21878_v26  ;;  %v11587_v47 = vsel %vm11213_vm2, %v11483_v57, 0.0  ;;  %v11484_v14 = vmul.f32 %v21878_v26, %v21878_v26 }
 0x828   :  { %11588 = vadd.xlane.f32.xlu1 %v11587_v47  ;;  %v11306_v0 = vpop.xlane.xlu1 %11305 }
 0x829   :  { %v11389_v4 = vmul.f32 0.020408163, %v11306_v0  ;;  %v11590_v29 = vsel %vm11213_vm2, %v11484_v14, 0.0 }
 0x82a   :  { %v11309_v45 = vpop.xlane.xlu0 %11308  ;;  %11591 = vadd.xlane.f32.xlu0 %v11590_v29 }
 0x82b   :  { %v21887_v1 = vsub.f32 %v21601_v49, %v11389_v4  ;;  %v11390_v32 = vmul.f32 0.020408163, %v11309_v45 }
 0x82d   :  { %22899 = vst [vmem:[#allocation27_spill] sm:$0xff] %v21887_v1  ;;  %v21890_v42 = vsub.f32 %v21606_v35, %v11390_v32  ;;  %v11485_v12 = vmul.f32 %v21887_v1, %v21887_v1 }
 0x82f   :  { %22900 = vst [vmem:[#allocation30_spill] sm:$0xff] %v21890_v42  ;;  %v11593_v38 = vsel %vm11213_vm2, %v11485_v12, 0.0  ;;  %v11486_v10 = vmul.f32 %v21890_v42, %v21890_v42 }
 0x830   :  { %11594 = vadd.xlane.f32.xlu1 %v11593_v38  ;;  %v11312_v18 = vpop.xlane.xlu1 %11311 }
 0x831   :  { %v11391_v25 = vmul.f32 0.020408163, %v11312_v18  ;;  %v11596_v57 = vsel %vm11213_vm2, %v11486_v10, 0.0 }
 0x832   :  { %v11315_v47 = vpop.xlane.xlu0 %11314  ;;  %11597 = vadd.xlane.f32.xlu0 %v11596_v57 }
 0x833   :  { %v21899_v49 = vsub.f32 %v21617_v37, %v11391_v25  ;;  %v11392_v35 = vmul.f32 0.020408163, %v11315_v47 }
 0x835   :  { %22901 = vst [vmem:[#allocation29_spill] sm:$0xff] %v21899_v49  ;;  %v21902_v14 = vsub.f32 %v21622_v8, %v11392_v35  ;;  %v11487_v0 = vmul.f32 %v21899_v49, %v21899_v49 }
 0x837   :  { %22902 = vst [vmem:[#allocation32_spill] sm:$0xff] %v21902_v14  ;;  %v11599_v4 = vsel %vm11213_vm2, %v11487_v0, 0.0  ;;  %v11488_v29 = vmul.f32 %v21902_v14, %v21902_v14 }
 0x838   :  { %11600 = vadd.xlane.f32.xlu1 %v11599_v4  ;;  %v11318_v45 = vpop.xlane.xlu1 %11317 }
 0x839   :  { %v11393_v32 = vmul.f32 0.020408163, %v11318_v45  ;;  %v11602_v12 = vsel %vm11213_vm2, %v11488_v29, 0.0 }
 0x83a   :  { %v11321_v38 = vpop.xlane.xlu0 %11320  ;;  %11603 = vadd.xlane.f32.xlu0 %v11602_v12 }
 0x83b   :  { %v21911_v37 = vsub.f32 %v21633_v36, %v11393_v32  ;;  %v11394_v8 = vmul.f32 0.020408163, %v11321_v38 }
 0x83d   :  { %22903 = vst [vmem:[#allocation31_spill] sm:$0xff] %v21911_v37  ;;  %v21914_v10 = vsub.f32 %v21636_v31, %v11394_v8  ;;  %v11489_v18 = vmul.f32 %v21911_v37, %v21911_v37 }
 0x83f   :  { %22904 = vst [vmem:[#allocation33_spill] sm:$0xff] %v21914_v10  ;;  %v11605_v25 = vsel %vm11213_vm2, %v11489_v18, 0.0  ;;  %v11490_v57 = vmul.f32 %v21914_v10, %v21914_v10 }
 0x840   :  { %11606 = vadd.xlane.f32.xlu1 %v11605_v25  ;;  %v11324_v47 = vpop.xlane.xlu1 %11323 }
 0x841   :  { %v11395_v35 = vmul.f32 0.020408163, %v11324_v47  ;;  %v11608_v0 = vsel %vm11213_vm2, %v11490_v57, 0.0 }
 0x842   :  { %v11327_v4 = vpop.xlane.xlu0 %11326  ;;  %11609 = vadd.xlane.f32.xlu0 %v11608_v0 }
 0x843   :  { %v21923_v36 = vsub.f32 %v21647_v17, %v11395_v35  ;;  %v11396_v31 = vmul.f32 0.020408163, %v11327_v4 }
 0x845   :  { %22905 = vst [vmem:[#allocation22_spill] sm:$0xff] %v21923_v36  ;;  %v21926_v29 = vsub.f32 %v21650_v61, %v11396_v31  ;;  %v11505_v45 = vpop.xlane.xlu1 %11504  ;;  %v11491_v32 = vmul.f32 %v21923_v36, %v21923_v36  ;;  %v11797_v36 = vld [vmem:[%s22552_s4 + $0x30] sm:$0xff] }
 0x846   :  { %v11647_v57 = vmul.f32 0.020408163, %v11505_v45 }
 0x847   :  { %22906 = vst [vmem:[#allocation66_spill] sm:$0xff] %v21926_v29  ;;  %v11508_v12 = vpop.xlane.xlu0 %11507  ;;  %v11611_v38 = vsel %vm11213_vm2, %v11491_v32, 0.0  ;;  %v11492_v8 = vmul.f32 %v21926_v29, %v21926_v29 }
 0x848   :  { %11612 = vadd.xlane.f32.xlu1 %v11611_v38  ;;  %v11695_v31 = vadd.f32 0.001, %v11647_v57  ;;  %v11792_v57 = vld [vmem:[%s22552_s4 + $0x8] sm:$0xff] }
 0x849   :  { %v11330_v18 = vpop.xlane.xlu1 %11329  ;;  %v11614_v25 = vsel %vm11213_vm2, %v11492_v8, 0.0  ;;  %v11648_v8 = vmul.f32 0.020408163, %v11508_v12 }
 0x84a   :  { %v11397_v17 = vmul.f32 0.020408163, %v11330_v18  ;;  %11615 = vadd.xlane.f32.xlu0 %v11614_v25  ;;  %16737 = vrsqrt.f32 %v11695_v31 }
 0x84b   :  { %v11333_v47 = vpop.xlane.xlu0 %11332 }
 0x84c   :  { %v21935_v61 = vsub.f32 %v21668_v3, %v11397_v17  ;;  %v11398_v35 = vmul.f32 0.020408163, %v11333_v47  ;;  %v11696_v3 = vadd.f32 0.001, %v11648_v8 }
 0x84e   :  { %22907 = vst [vmem:[#allocation34_spill] sm:$0xff] %v21935_v61  ;;  %v21938_v0 = vsub.f32 %v21672_v40, %v11398_v35  ;;  %v11493_v4 = vmul.f32 %v21935_v61, %v21935_v61  ;;  %16739 = vrsqrt.f32 %v11696_v3  ;;  %v11791_v40 = vld [vmem:[%s22552_s4] sm:$0xff]  ;;  %v11511_v35 = vpop.xlane.xlu1 %11510 }
 0x850   :  { %22908 = vst [vmem:[#allocation71_spill] sm:$0xff] %v21938_v0  ;;  %v11617_v32 = vsel %vm11213_vm2, %v11493_v4, 0.0  ;;  %v11494_v38 = vmul.f32 %v21938_v0, %v21938_v0 }
 0x851   :  { %11618 = vadd.xlane.f32.xlu1 %v11617_v32  ;;  %v11514_v12 = vpop.xlane.xlu0 %11513 }
 0x852   :  { %v11620_v45 = vsel %vm11213_vm2, %v11494_v38, 0.0  ;;  %v11336_v31 = vpop.xlane.xlu1 %11335 }
 0x853   :  { %11621 = vadd.xlane.f32.xlu0 %v11620_v45  ;;  %v11399_v38 = vmul.f32 0.020408163, %v11336_v31 }
 0x854   :  { %v16738_v18 = vpop.eup %16737 }
 0x855   :  { %v11839_v25 = vmul.f32 %v16738_v18, %v11791_v40  ;;  %v11339_v4 = vpop.xlane.xlu0 %11338  ;;  %v21955_v3 = vsub.f32 %v21688_v7, %v11399_v38 }
 0x856   :  { %v11400_v8 = vmul.f32 0.020408163, %v11339_v4 }
 0x857   :  { %22909 = vst [vmem:[#allocation72_spill] sm:$0xff] %v21955_v3 }
 0x858   :  { %v16740_v17 = vpop.eup %16739  ;;  %v21958_v18 = vsub.f32 %v21693_v15, %v11400_v8 }
 0x859   :  { %v11840_v47 = vmul.f32 %v16740_v17, %v11792_v57  ;;  %v21952_v32 = vpop.xlane.xlu0 %11519  ;;  %v11495_v17 = vmul.f32 %v21955_v3, %v21955_v3  ;;  %v11517_v57 = vpop.xlane.xlu1 %11516 }
 0x85a   :  { %22910 = vst [vmem:[#allocation73_spill] sm:$0xff] %v21958_v18  ;;  %v11496_v31 = vmul.f32 %v21958_v18, %v21958_v18  ;;  %v11651_v38 = vmul.f32 0.020408163, %v11517_v57 }
 0x85b   :  { %v11623_v0 = vsel %vm11213_vm2, %v11495_v17, 0.0 }
 0x85c   :  { %v11626_v7 = vsel %vm11213_vm2, %v11496_v31, 0.0 }
 0x85d   :  { %v11345_v45 = vpop.xlane.xlu0 %11344 }
 0x85e   :  { %v11402_v40 = vmul.f32 0.020408163, %v11345_v45  ;;  %v11699_v45 = vadd.f32 0.001, %v11651_v38 }
 0x862   :  { %11889 = vperm.xlu1 %14784, %v11839_v25   ;;  %v11649_v25 = vmul.f32 0.020408163, %v11511_v35  ;;  %v11342_v35 = vpop.xlane.xlu1 %11341 }
 0x864   :  { %v11697_v4 = vadd.f32 0.001, %v11649_v25  ;;  %v11793_v25 = vld [vmem:[%s22552_s4 + $0x10] sm:$0xff] }
 0x866   :  { %16741 = vrsqrt.f32 %v11697_v4 }
 0x867   :  { %16743 = vrsqrt.f32 %v11699_v45 }
 0x869   :  { %11894 = vperm.xlu0 %14785, %v11840_v47   ;;  %v21963_v47 = vsub.f32 %v21715_v24, %v11402_v40  ;;  %v11523_v24 = vpop.xlane.xlu1 %11522 }
 0x86b   :  { %22911 = vst [vmem:[#allocation74_spill] sm:$0xff] %v21963_v47  ;;  %v11498_v15 = vmul.f32 %v21963_v47, %v21963_v47 }
 0x86d   :  { %v11632_v8 = vsel %vm11213_vm2, %v11498_v15, 0.0  ;;  %v21977_v17 = vpop.xlane.xlu1 %11347  ;;  %v11795_v15 = vld [vmem:[%s22552_s4 + $0x20] sm:$0xff] }
 0x86e   :  { %v11403_v1 = vmul.f32 0.020408163, %v21977_v17  ;;  %v11652_v17 = vmul.f32 0.020408163, %v21952_v32  ;;  %v11796_v32 = vld [vmem:[%s22552_s4 + $0x28] sm:$0xff] }
 0x870   :  { %v16742_v40 = vpop.eup %16741 }
 0x871   :  { %v11841_v31 = vmul.f32 %v16742_v40, %v11793_v25  ;;  %v16744_v57 = vpop.eup %16743  ;;  %v11401_v25 = vmul.f32 0.020408163, %v11342_v35 }
 0x872   :  { %v11843_v47 = vmul.f32 %v16744_v57, %v11795_v15 }
 0x873   :  { %v21999_v14 = vsub.f32 %v21712_v56, %v11401_v25 }
 0x875   :  { %22912 = vst [vmem:[#allocation75_spill] sm:$0xff] %v21999_v14  ;;  %v11497_v30 = vmul.f32 %v21999_v14, %v21999_v14  ;;  %v11653_v14 = vmul.f32 0.020408163, %v11523_v24 }
 0x877   :  { %v11629_v56 = vsel %vm11213_vm2, %v11497_v30, 0.0 }
 0x886   :  { %11624 = vadd.xlane.f32.xlu1 %v11623_v0  ;;  %v21975_v0 = vpop.xlane.xlu0 %11525 }
 0x888   :  { %11627 = vadd.xlane.f32.xlu0 %v11626_v7  ;;  %v21979_v7 = vpop.xlane.xlu1 %11528 }
 0x88a   :  { %v11351_v4 = vpop.xlane.xlu0 %11350 }
 0x88b   :  { %v11404_v26 = vmul.f32 0.020408163, %v11351_v4 }
 0x88c   :  { %11633 = vadd.xlane.f32.xlu0 %v11632_v8  ;;  %v21986_v8 = vpop.xlane.xlu1 %11353 }
 0x88d   :  { %v22010_v35 = vsub.f32 %v21737_v28, %v11404_v26 }
 0x88e   :  { %v21984_v38 = vpop.xlane.xlu0 %11531 }
 0x88f   :  { %22913 = vst [vmem:[#allocation76_spill] sm:$0xff] %v22010_v35 }
 0x890   :  { %v21988_v18 = vpop.xlane.xlu1 %11534 }
 0x892   :  { %v11357_v45 = vpop.xlane.xlu0 %11356 }
 0x893   :  { %v11406_v55 = vmul.f32 0.020408163, %v11357_v45 }
 0x894   :  { %v21990_v29 = vpop.xlane.xlu1 %11540 }
 0x896   :  { %v21992_v40 = vpop.xlane.xlu0 %11537 }
 0x897   :  { %11899 = vperm.xlu1 %14784, %v11841_v31  }
 0x898   :  { %v21994_v31 = vpop.xlane.xlu1 %11546 }
 0x89a   :  { %v21996_v10 = vpop.xlane.xlu0 %11543 }
 0x89c   :  { %v22001_v42 = vpop.xlane.xlu1 %11552 }
 0x89e   :  { %v22003_v57 = vpop.xlane.xlu0 %11549 }
 0x8a0   :  { %v22005_v15 = vpop.xlane.xlu1 %11558 }
 0x8a2   :  { %11909 = vperm.xlu0 %14785, %v11843_v47   ;;  %v11650_v47 = vmul.f32 0.020408163, %v11514_v12  ;;  %v22012_v50 = vpop.xlane.xlu0 %11555  ;;  %v11500_v12 = vmul.f32 %v22010_v35, %v22010_v35 }
 0x8a4   :  { %v11698_v46 = vadd.f32 0.001, %v11650_v47  ;;  %v22014_v59 = vpop.xlane.xlu1 %11564  ;;  %v11638_v28 = vsel %vm11213_vm2, %v11500_v12, 0.0  ;;  %v11701_v47 = vadd.f32 0.001, %v11653_v14 }
 0x8a6   :  { %v22017_v4 = vpop.xlane.xlu0 %11561  ;;  %16745 = vrsqrt.f32 %v11698_v46  ;;  %v11794_v46 = vld [vmem:[%s22552_s4 + $0x18] sm:$0xff] }
 0x8a7   :  { %16747 = vrsqrt.f32 %v11701_v47 }
 0x8a8   :  { %v22021_v25 = vpop.xlane.xlu1 %11570 }
 0x8aa   :  { %v22023_v5 = vpop.xlane.xlu0 %11567 }
 0x8ac   :  { %v22026_v26 = vpop.xlane.xlu1 %11576 }
 0x8ae   :  { %v22028_v3 = vpop.xlane.xlu0 %11573 }
 0x8b0   :  { %v22030_v30 = vpop.xlane.xlu1 %11582 }
 0x8b2   :  { %v22035_v35 = vpop.xlane.xlu0 %11579 }
 0x8b5   :  { %v22037_v24 = vpop.xlane.xlu1 %11588 }
 0x8b6   :  { %v22039_v12 = vpop.xlane.xlu0 %11585 }
 0x8ba   :  { %v22043_v14 = vpop.xlane.xlu0 %11591 }
 0x8bb   :  { %11630 = vadd.xlane.f32.xlu1 %v11629_v56  ;;  %v16746_v56 = vpop.eup %16745 }
 0x8bc   :  { %v11842_v6 = vmul.f32 %v16746_v56, %v11794_v46  ;;  %v16748_v61 = vpop.eup %16747 }
 0x8bd   :  { %v11845_v22 = vmul.f32 %v16748_v61, %v11797_v36 }
 0x8bf   :  { %v22050_v47 = vpop.xlane.xlu0 %11597 }
 0x8c1   :  { %11639 = vadd.xlane.f32.xlu0 %v11638_v28  ;;  %v22041_v28 = vpop.xlane.xlu1 %11594 }
 0x8c5   :  { %v22045_v16 = vpop.xlane.xlu1 %11600 }
 0x8c7   :  { %v22054_v56 = vpop.xlane.xlu0 %11603 }
 0x8cc   :  { %11904 = vperm.xlu1 %14784, %v11842_v6  }
 0x8cd   :  { %v22052_v37 = vpop.xlane.xlu1 %11606 }
 0x8cf   :  { %v22058_v46 = vpop.xlane.xlu0 %11609 }
 0x8d5   :  { %v22056_v6 = vpop.xlane.xlu1 %11612 }
 0x8d7   :  { %11919 = vperm.xlu0 %14785, %v11845_v22   ;;  %v22062_v49 = vpop.xlane.xlu0 %11615  ;;  %v22070_v22 = vsub.f32 %v21734_v9, %v11403_v1 }
 0x8de   :  { %v22060_v58 = vpop.xlane.xlu1 %11618 }
 0x8e0   :  { %v22066_v23 = vpop.xlane.xlu0 %11621 }
 0x8e2   :  { %v11890_v19 = vpop.permute.xlu1 %11889 }
 0x8e3   :  { %v12127_v27 = vmul.f32 %v11890_v19, %v21655_v2  ;;  %v11499_v19 = vmul.f32 %v22070_v22, %v22070_v22 }
 0x8e5   :  { %v12463_v36 = vadd.f32 %v21384_v21, %v12127_v27  ;;  %v22082_v21 = vsub.f32 %v21759_v60, %v11406_v55  ;;  %v11700_v27 = vadd.f32 0.001, %v11652_v17  ;;  %v11635_v9 = vsel %vm11213_vm2, %v11499_v19, 0.0 }
 0x8e6   :  { %v11657_v55 = vmul.f32 0.020408163, %v21988_v18  ;;  %v11663_v19 = vmul.f32 0.020408163, %v22001_v42  ;;  %v11667_v42 = vmul.f32 0.020408163, %v22014_v59 }
 0x8e7   :  { %12511 = vst.msk [vmem:[%s22553_s6] sm:$0xff] %vm11213_vm2, %v12463_v36  ;;  %16749 = vrsqrt.f32 %v11700_v27  ;;  %v11659_v36 = vmul.f32 0.020408163, %v21990_v29  ;;  %v11799_v27 = vld [vmem:[%s22552_s4 + $0x40] sm:$0xff] }
 0x8e8   :  { %v11895_v61 = vpop.permute.xlu0 %11894  ;;  %v11705_v45 = vadd.f32 0.001, %v11657_v55 }
 0x8e9   :  { %v12128_v20 = vmul.f32 %v11895_v61, %v21660_v53  ;;  %v11502_v53 = vmul.f32 %v22082_v21, %v22082_v21  ;;  %v11707_v17 = vadd.f32 0.001, %v11659_v36 }
 0x8eb   :  { %v12464_v2 = vadd.f32 %v21389_v34, %v12128_v20  ;;  %v11655_v34 = vmul.f32 0.020408163, %v21979_v7  ;;  %v11644_v20 = vsel %vm11213_vm2, %v11502_v53, 0.0  ;;  %v11661_v7 = vmul.f32 0.020408163, %v21994_v31  ;;  %v11801_v31 = vld [vmem:[%s22552_s4 + $0x50] sm:$0xff] }
 0x8ec   :  { %v11665_v53 = vmul.f32 0.020408163, %v22005_v15  ;;  %v11715_v15 = vadd.f32 0.001, %v11667_v42  ;;  %v11809_v42 = vld [vmem:[%s22552_s4 + $0x90] sm:$0xff] }
 0x8ed   :  { %12512 = vst.msk [vmem:[%s22553_s6 + $0x8] sm:$0xff] %vm11213_vm2, %v12464_v2  ;;  %v11703_v60 = vadd.f32 0.001, %v11655_v34  ;;  %v11709_v2 = vadd.f32 0.001, %v11661_v7 }
 0x8ee   :  { %v11671_v7 = vmul.f32 0.020408163, %v22026_v26 }
 0x8ef   :  { %16751 = vrsqrt.f32 %v11703_v60 }
 0x8f0   :  { %11636 = vadd.xlane.f32.xlu1 %v11635_v9  ;;  %16753 = vrsqrt.f32 %v11705_v45  ;;  %v11711_v9 = vadd.f32 0.001, %v11663_v19 }
 0x8f1   :  { %v16750_v1 = vpop.eup %16749  ;;  %16755 = vrsqrt.f32 %v11707_v17  ;;  %v11805_v17 = vld [vmem:[%s22552_s4 + $0x70] sm:$0xff] }
 0x8f2   :  { %v11844_v61 = vmul.f32 %v16750_v1, %v11796_v32  ;;  %16757 = vrsqrt.f32 %v11709_v2  ;;  %v11803_v1 = vld [vmem:[%s22552_s4 + $0x60] sm:$0xff]  ;;  %v11669_v32 = vmul.f32 0.020408163, %v22021_v25 }
 0x8f3   :  { %16759 = vrsqrt.f32 %v11711_v9  ;;  %v11807_v25 = vld [vmem:[%s22552_s4 + $0x80] sm:$0xff]  ;;  %v11405_v9 = vmul.f32 0.020408163, %v21986_v8  ;;  %v11675_v8 = vmul.f32 0.020408163, %v22037_v24 }
 0x8f4   :  { %v11717_v59 = vadd.f32 0.001, %v11669_v32 }
 0x8f5   :  { %v11723_v32 = vadd.f32 0.001, %v11675_v8  ;;  %v11817_v8 = vld [vmem:[%s22552_s4 + $0xd0] sm:$0xff] }
 0x8f6   :  { %11645 = vadd.xlane.f32.xlu0 %v11644_v20  ;;  %v11713_v20 = vadd.f32 0.001, %v11665_v53 }
 0x8f8   :  { %16761 = vrsqrt.f32 %v11713_v20 }
 0x8f9   :  { %v16752_v18 = vpop.eup %16751  ;;  %16763 = vrsqrt.f32 %v11715_v15 }
 0x8fa   :  { %v11847_v29 = vmul.f32 %v16752_v18, %v11799_v27  ;;  %v16754_v34 = vpop.eup %16753  ;;  %16765 = vrsqrt.f32 %v11717_v59 }
 0x8fb   :  { %v11849_v60 = vmul.f32 %v16754_v34, %v11801_v31  ;;  %v16756_v55 = vpop.eup %16755  ;;  %v11673_v34 = vmul.f32 0.020408163, %v22030_v30 }
 0x8fc   :  { %v11851_v45 = vmul.f32 %v16756_v55, %v11803_v1  ;;  %v16758_v36 = vpop.eup %16757  ;;  %v11654_v1 = vmul.f32 0.020408163, %v21975_v0  ;;  %v11656_v0 = vmul.f32 0.020408163, %v21984_v38 }
 0x8fd   :  { %v11853_v2 = vmul.f32 %v16758_v36, %v11805_v17  ;;  %v16760_v19 = vpop.eup %16759 }
 0x8fe   :  { %v11855_v31 = vmul.f32 %v16760_v19, %v11807_v25  ;;  %v22914_v19 = vld [vmem:[#allocation67_spill] sm:$0xff] }
 0x901   :  { %11914 = vperm.xlu1 %14784, %v11844_v61  }
 0x902   :  { %v16762_v20 = vpop.eup %16761 }
 0x903   :  { %v11857_v30 = vmul.f32 %v16762_v20, %v11809_v42  ;;  %v16764_v55 = vpop.eup %16763 }
 0x904   :  { %v16766_v59 = vpop.eup %16765 }
 0x90c   :  { %11929 = vperm.xlu0 %14785, %v11847_v29   ;;  %v11719_v29 = vadd.f32 0.001, %v11671_v7  ;;  %v11702_v7 = vadd.f32 0.001, %v11654_v1 }
 0x90e   :  { %16767 = vrsqrt.f32 %v11719_v29  ;;  %v11658_v29 = vmul.f32 0.020408163, %v21992_v40 }
 0x910   :  { %11939 = vperm.xlu0 %14785, %v11849_v60   ;;  %v22131_v60 = vsub.f32 %v21756_v33, %v11405_v9  ;;  %v11811_v33 = vld [vmem:[%s22552_s4 + $0xa0] sm:$0xff]  ;;  %v11706_v42 = vadd.f32 0.001, %v11658_v29 }
 0x911   :  { %v11859_v17 = vmul.f32 %v16764_v55, %v11811_v33 }
 0x912   :  { %v11501_v15 = vmul.f32 %v22131_v60, %v22131_v60 }
 0x913   :  { %v22112_v61 = vpop.xlane.xlu1 %11624 }
 0x914   :  { %11949 = vperm.xlu0 %14785, %v11851_v45   ;;  %v11677_v45 = vmul.f32 0.020408163, %v22041_v28  ;;  %v11641_v25 = vsel %vm11213_vm2, %v11501_v15, 0.0  ;;  %v11679_v28 = vmul.f32 0.020408163, %v22045_v16  ;;  %v11819_v15 = vld [vmem:[%s22552_s4 + $0xe0] sm:$0xff] }
 0x915   :  { %v22118_v18 = vpop.xlane.xlu0 %11627  ;;  %v11681_v16 = vmul.f32 0.020408163, %v22052_v37  ;;  %v11662_v37 = vmul.f32 0.020408163, %v22003_v57  ;;  %v11664_v57 = vmul.f32 0.020408163, %v22012_v50 }
 0x916   :  { %v11725_v9 = vadd.f32 0.001, %v11677_v45  ;;  %v11685_v45 = vmul.f32 0.020408163, %v22060_v58  ;;  %v11687_v58 = vmul.f32 0.020408163, %v22112_v61 }
 0x917   :  { %v11900_v27 = vpop.permute.xlu1 %11899  ;;  %v11729_v40 = vadd.f32 0.001, %v11681_v16  ;;  %v11712_v50 = vadd.f32 0.001, %v11664_v57  ;;  %v11825_v16 = vld [vmem:[%s22552_s4 + $0x110] sm:$0xff] }
 0x918   :  { %v12129_v53 = vmul.f32 %v11900_v27, %v21677_v54  ;;  %11959 = vperm.xlu0 %14785, %v11853_v2   ;;  %v11721_v54 = vadd.f32 0.001, %v11673_v34  ;;  %v11813_v2 = vld [vmem:[%s22552_s4 + $0xb0] sm:$0xff]  ;;  %v16768_v38 = vpop.eup %16767  ;;  %v11815_v34 = vld [vmem:[%s22552_s4 + $0xc0] sm:$0xff]  ;;  %v11735_v61 = vadd.f32 0.001, %v11687_v58 }
 0x91a   :  { %v12465_v26 = vadd.f32 %v21396_v48, %v12129_v53  ;;  %v22138_v48 = vpop.xlane.xlu0 %11633  ;;  %16769 = vrsqrt.f32 %v11721_v54  ;;  %v11704_v53 = vadd.f32 0.001, %v11656_v0  ;;  %v11660_v54 = vmul.f32 0.020408163, %v21996_v10 }
 0x91b   :  { %16771 = vrsqrt.f32 %v11723_v32 }
 0x91c   :  { %12513 = vst.msk [vmem:[%s22553_s6 + $0x10] sm:$0xff] %vm11213_vm2, %v12465_v26  ;;  %11969 = vperm.xlu0 %14785, %v11855_v31   ;;  %16773 = vrsqrt.f32 %v11702_v7  ;;  %v11727_v26 = vadd.f32 0.001, %v11679_v28  ;;  %v11863_v31 = vmul.f32 %v16768_v38, %v11815_v34  ;;  %v11708_v33 = vadd.f32 0.001, %v11660_v54  ;;  %v11823_v28 = vld [vmem:[%s22552_s4 + $0x100] sm:$0xff] }
 0x91d   :  { %16775 = vrsqrt.f32 %v11725_v9  ;;  %v11666_v9 = vmul.f32 0.020408163, %v22017_v4  ;;  %v11668_v4 = vmul.f32 0.020408163, %v22023_v5  ;;  %v11827_v5 = vld [vmem:[%s22552_s4 + $0x120] sm:$0xff] }
 0x91e   :  { %16777 = vrsqrt.f32 %v11704_v53  ;;  %v11802_v53 = vld [vmem:[%s22552_s4 + $0x58] sm:$0xff] }
 0x91f   :  { %16779 = vrsqrt.f32 %v11727_v26  ;;  %v11714_v26 = vadd.f32 0.001, %v11666_v9 }
 0x920   :  { %11979 = vperm.xlu0 %14785, %v11857_v30   ;;  %v11683_v30 = vmul.f32 0.020408163, %v22056_v6  ;;  %16781 = vrsqrt.f32 %v11706_v42  ;;  %v11798_v6 = vld [vmem:[%s22552_s4 + $0x38] sm:$0xff]  ;;  %v11804_v42 = vld [vmem:[%s22552_s4 + $0x68] sm:$0xff] }
 0x921   :  { %v11910_v36 = vpop.permute.xlu0 %11909  ;;  %16783 = vrsqrt.f32 %v11729_v40  ;;  %v11716_v40 = vadd.f32 0.001, %v11668_v4 }
 0x922   :  { %v12131_v24 = vmul.f32 %v11910_v36, %v21698_v63  ;;  %v11861_v63 = vmul.f32 %v16766_v59, %v11813_v2  ;;  %v11731_v32 = vadd.f32 0.001, %v11683_v30  ;;  %16785 = vrsqrt.f32 %v11708_v33  ;;  %v11821_v59 = vld [vmem:[%s22552_s4 + $0xf0] sm:$0xff]  ;;  %v11806_v33 = vld [vmem:[%s22552_s4 + $0x78] sm:$0xff] }
 0x923   :  { %v11733_v2 = vadd.f32 0.001, %v11685_v45  ;;  %v11670_v30 = vmul.f32 0.020408163, %v22028_v3  ;;  %v11829_v3 = vld [vmem:[%s22552_s4 + $0x130] sm:$0xff] }
 0x924   :  { %v12467_v27 = vadd.f32 %v22914_v19, %v12131_v24  ;;  %11989 = vperm.xlu0 %14785, %v11859_v17   ;;  %v16770_v20 = vpop.eup %16769  ;;  %v11710_v17 = vadd.f32 0.001, %v11662_v37  ;;  %16787 = vrsqrt.f32 %v11731_v32  ;;  %v11800_v19 = vld [vmem:[%s22552_s4 + $0x48] sm:$0xff]  ;;  %v11672_v32 = vmul.f32 0.020408163, %v22035_v35  ;;  %v11831_v35 = vld [vmem:[%s22552_s4 + $0x140] sm:$0xff] }
 0x925   :  { %11642 = vadd.xlane.f32.xlu1 %v11641_v25  ;;  %v11865_v55 = vmul.f32 %v16770_v20, %v11817_v8  ;;  %v16772_v1 = vpop.eup %16771 }
 0x926   :  { %12515 = vst.msk [vmem:[%s22553_s6 + $0x20] sm:$0xff] %vm11213_vm2, %v12467_v27  ;;  %v16774_v10 = vpop.eup %16773  ;;  %v11867_v36 = vmul.f32 %v16772_v1, %v11819_v15  ;;  %16789 = vrsqrt.f32 %v11710_v17  ;;  %v11720_v57 = vadd.f32 0.001, %v11672_v32  ;;  %v22917_v32 = vld [vmem:[#allocation38_spill] sm:$0xff] }
 0x927   :  { %v16776_v24 = vpop.eup %16775  ;;  %v11846_v7 = vmul.f32 %v16774_v10, %v11798_v6  ;;  %16791 = vrsqrt.f32 %v11733_v2  ;;  %v11718_v10 = vadd.f32 0.001, %v11670_v30  ;;  %v11833_v30 = vld [vmem:[%s22552_s4 + $0x150] sm:$0xff] }
 0x928   :  { %11999 = vperm.xlu0 %14785, %v11861_v63   ;;  %v16778_v0 = vpop.eup %16777  ;;  %v11869_v27 = vmul.f32 %v16776_v24, %v11821_v59  ;;  %16793 = vrsqrt.f32 %v11712_v50  ;;  %v11674_v59 = vmul.f32 0.020408163, %v22039_v12  ;;  %v11676_v50 = vmul.f32 0.020408163, %v22043_v14 }
 0x929   :  { %v16780_v25 = vpop.eup %16779  ;;  %v11848_v63 = vmul.f32 %v16778_v0, %v11800_v19  ;;  %16795 = vrsqrt.f32 %v11735_v61  ;;  %v11810_v19 = vld [vmem:[%s22552_s4 + $0x98] sm:$0xff] }
 0x92a   :  { %v16782_v38 = vpop.eup %16781  ;;  %v11871_v29 = vmul.f32 %v16780_v25, %v11823_v28  ;;  %16797 = vrsqrt.f32 %v11714_v26  ;;  %v11722_v25 = vadd.f32 0.001, %v11674_v59  ;;  %v22916_v26 = vld [vmem:[#allocation35_spill] sm:$0xff] }
 0x92b   :  { %v16784_v34 = vpop.eup %16783  ;;  %16799 = vrsqrt.f32 %v11716_v40  ;;  %v11816_v40 = vld [vmem:[%s22552_s4 + $0xc8] sm:$0xff] }
 0x92c   :  { %12009 = vperm.xlu0 %14785, %v11863_v31   ;;  %v11850_v31 = vmul.f32 %v16782_v38, %v11802_v53  ;;  %v16786_v20 = vpop.eup %16785  ;;  %v11873_v54 = vmul.f32 %v16784_v34, %v11825_v16  ;;  %16801 = vrsqrt.f32 %v11718_v10  ;;  %v22915_v38 = vld [vmem:[#allocation48_spill] sm:$0xff]  ;;  %v11812_v53 = vld [vmem:[%s22552_s4 + $0xa8] sm:$0xff]  ;;  %v11678_v34 = vmul.f32 0.020408163, %v22050_v47 }
 0x92d   :  { %16803 = vrsqrt.f32 %v11720_v57  ;;  %v11686_v57 = vmul.f32 0.020408163, %v22066_v23 }
 0x92e   :  { %v16788_v8 = vpop.eup %16787 }
 0x92f   :  { %v11875_v37 = vmul.f32 %v16788_v8, %v11827_v5 }
 0x930   :  { %12019 = vperm.xlu0 %14785, %v11865_v55   ;;  %v11852_v55 = vmul.f32 %v16786_v20, %v11804_v42  ;;  %v16790_v1 = vpop.eup %16789  ;;  %v11726_v42 = vadd.f32 0.001, %v11678_v34 }
 0x931   :  { %v16792_v15 = vpop.eup %16791  ;;  %v11854_v45 = vmul.f32 %v16790_v1, %v11806_v33  ;;  %v11682_v33 = vmul.f32 0.020408163, %v22058_v46 }
 0x932   :  { %v16794_v6 = vpop.eup %16793  ;;  %v11877_v24 = vmul.f32 %v16792_v15, %v11829_v3 }
 0x933   :  { %v16796_v17 = vpop.eup %16795 }
 0x934   :  { %12029 = vperm.xlu0 %14785, %v11867_v36   ;;  %v11808_v36 = vld [vmem:[%s22552_s4 + $0x88] sm:$0xff]  ;;  %v16798_v2 = vpop.eup %16797 }
 0x935   :  { %v11856_v0 = vmul.f32 %v16794_v6, %v11808_v36  ;;  %v11858_v28 = vmul.f32 %v16798_v2, %v11810_v19  ;;  %v11730_v6 = vadd.f32 0.001, %v11682_v33  ;;  %v11684_v36 = vmul.f32 0.020408163, %v22062_v49  ;;  %v11822_v49 = vld [vmem:[%s22552_s4 + $0xf8] sm:$0xff]  ;;  %v11824_v19 = vld [vmem:[%s22552_s4 + $0x108] sm:$0xff] }
 0x936   :  { %11924 = vperm.xlu1 %14784, %v11846_v7  }
 0x938   :  { %12039 = vperm.xlu0 %14785, %v11869_v27   ;;  %v11879_v27 = vmul.f32 %v16796_v17, %v11831_v35  ;;  %v11732_v17 = vadd.f32 0.001, %v11684_v36 }
 0x93a   :  { %11934 = vperm.xlu1 %14784, %v11848_v63   ;;  %v16800_v63 = vpop.eup %16799 }
 0x93b   :  { %v11860_v14 = vmul.f32 %v16800_v63, %v11812_v53  ;;  %v16802_v16 = vpop.eup %16801 }
 0x93c   :  { %12049 = vperm.xlu0 %14785, %v11871_v29   ;;  %v11724_v29 = vadd.f32 0.001, %v11676_v50  ;;  %v16804_v8 = vpop.eup %16803 }
 0x93e   :  { %11944 = vperm.xlu1 %14784, %v11850_v31   ;;  %v11814_v31 = vld [vmem:[%s22552_s4 + $0xb8] sm:$0xff] }
 0x93f   :  { %v11862_v47 = vmul.f32 %v16802_v16, %v11814_v31  ;;  %v11834_v31 = vld [vmem:[%s22552_s4 + $0x158] sm:$0xff] }
 0x940   :  { %12059 = vperm.xlu0 %14785, %v11873_v54   ;;  %v11680_v54 = vmul.f32 0.020408163, %v22054_v56  ;;  %v11864_v56 = vmul.f32 %v16804_v8, %v11816_v40 }
 0x942   :  { %11954 = vperm.xlu1 %14784, %v11852_v55   ;;  %v11728_v1 = vadd.f32 0.001, %v11680_v54 }
 0x944   :  { %12069 = vperm.xlu0 %14785, %v11875_v37  }
 0x946   :  { %11964 = vperm.xlu1 %14784, %v11854_v45   ;;  %v11818_v45 = vld [vmem:[%s22552_s4 + $0xd8] sm:$0xff] }
 0x948   :  { %12079 = vperm.xlu0 %14785, %v11877_v24   ;;  %v11631_v7 = vpop.xlane.xlu1 %11630  ;;  %v11820_v24 = vld [vmem:[%s22552_s4 + $0xe8] sm:$0xff] }
 0x949   :  { %v11689_v58 = vmul.f32 0.020408163, %v11631_v7  ;;  %v11734_v7 = vadd.f32 0.001, %v11686_v57  ;;  %v11838_v57 = vld [vmem:[%s22552_s4 + $0x178] sm:$0xff] }
 0x94a   :  { %11974 = vperm.xlu1 %14784, %v11856_v0   ;;  %v11688_v0 = vmul.f32 0.020408163, %v22118_v18 }
 0x94b   :  { %v11737_v12 = vadd.f32 0.001, %v11689_v58 }
 0x94c   :  { %12089 = vperm.xlu0 %14785, %v11879_v27   ;;  %v11905_v9 = vpop.permute.xlu1 %11904  ;;  %v11736_v23 = vadd.f32 0.001, %v11688_v0  ;;  %v11690_v27 = vmul.f32 0.020408163, %v22138_v48 }
 0x94d   :  { %16805 = vrsqrt.f32 %v11737_v12  ;;  %v12130_v61 = vmul.f32 %v11905_v9, %v22915_v38  ;;  %v11826_v12 = vld [vmem:[%s22552_s4 + $0x118] sm:$0xff]  ;;  %v11828_v38 = vld [vmem:[%s22552_s4 + $0x128] sm:$0xff] }
 0x94e   :  { %11984 = vperm.xlu1 %14784, %v11858_v28   ;;  %16807 = vrsqrt.f32 %v11722_v25  ;;  %v11640_v20 = vpop.xlane.xlu0 %11639  ;;  %v11738_v18 = vadd.f32 0.001, %v11690_v27  ;;  %v22923_v27 = vld [vmem:[#allocation46_spill] sm:$0xff] }
 0x94f   :  { %v12466_v4 = vadd.f32 %v22916_v26, %v12130_v61  ;;  %16809 = vrsqrt.f32 %v11724_v29  ;;  %v11692_v9 = vmul.f32 0.020408163, %v11640_v20  ;;  %v11830_v29 = vld [vmem:[%s22552_s4 + $0x138] sm:$0xff] }
 0x950   :  { %16811 = vrsqrt.f32 %v11726_v42 }
 0x951   :  { %12514 = vst.msk [vmem:[%s22553_s6 + $0x18] sm:$0xff] %vm11213_vm2, %v12466_v4  ;;  %16813 = vrsqrt.f32 %v11728_v1  ;;  %v11740_v61 = vadd.f32 0.001, %v11692_v9  ;;  %v11832_v4 = vld [vmem:[%s22552_s4 + $0x148] sm:$0xff] }
 0x952   :  { %11994 = vperm.xlu1 %14784, %v11860_v14   ;;  %16815 = vrsqrt.f32 %v11730_v6 }
 0x953   :  { %16817 = vrsqrt.f32 %v11732_v17 }
 0x954   :  { %16819 = vrsqrt.f32 %v11734_v7 }
 0x955   :  { %16821 = vrsqrt.f32 %v11736_v23 }
 0x956   :  { %v11920_v5 = vpop.permute.xlu0 %11919  ;;  %12004 = vperm.xlu1 %14784, %v11862_v47   ;;  %16823 = vrsqrt.f32 %v11738_v18  ;;  %v11836_v47 = vld [vmem:[%s22552_s4 + $0x168] sm:$0xff] }
 0x957   :  { %v16806_v55 = vpop.eup %16805  ;;  %v12133_v37 = vmul.f32 %v11920_v5, %v21720_v52  ;;  %16825 = vrsqrt.f32 %v11740_v61  ;;  %v22926_v61 = vld [vmem:[#allocation16_spill] sm:$0xff] }
 0x958   :  { %v11881_v15 = vmul.f32 %v16806_v55, %v11833_v30  ;;  %v16808_v10 = vpop.eup %16807  ;;  %v22918_v55 = vld [vmem:[#allocation49_spill] sm:$0xff] }
 0x959   :  { %v12469_v3 = vadd.f32 %v22917_v32, %v12133_v37  ;;  %v11866_v52 = vmul.f32 %v16808_v10, %v11818_v45  ;;  %v16810_v46 = vpop.eup %16809  ;;  %v22919_v37 = vld [vmem:[#allocation36_spill] sm:$0xff]  ;;  %v11835_v32 = vld [vmem:[%s22552_s4 + $0x160] sm:$0xff] }
 0x95a   :  { %12014 = vperm.xlu1 %14784, %v11864_v56   ;;  %12099 = vperm.xlu0 %14785, %v11881_v15   ;;  %v11868_v59 = vmul.f32 %v16810_v46, %v11820_v24  ;;  %v16812_v35 = vpop.eup %16811 }
 0x95b   :  { %12517 = vst.msk [vmem:[%s22553_s6 + $0x30] sm:$0xff] %vm11213_vm2, %v12469_v3  ;;  %v11870_v2 = vmul.f32 %v16812_v35, %v11822_v49  ;;  %v16814_v58 = vpop.eup %16813  ;;  %v22921_v35 = vld [vmem:[#allocation42_spill] sm:$0xff] }
 0x95c   :  { %v11872_v25 = vmul.f32 %v16814_v58, %v11824_v19  ;;  %v16816_v50 = vpop.eup %16815 }
 0x95d   :  { %v11874_v28 = vmul.f32 %v16816_v50, %v11826_v12  ;;  %v16818_v63 = vpop.eup %16817  ;;  %v22924_v12 = vld [vmem:[#allocation64_spill] sm:$0xff] }
 0x95e   :  { %12024 = vperm.xlu1 %14784, %v11866_v52   ;;  %v11876_v48 = vmul.f32 %v16818_v63, %v11828_v38  ;;  %v16820_v53 = vpop.eup %16819  ;;  %v22920_v52 = vld [vmem:[#allocation39_spill] sm:$0xff] }
 0x95f   :  { %v11878_v34 = vmul.f32 %v16820_v53, %v11830_v29  ;;  %v16822_v26 = vpop.eup %16821  ;;  %v22927_v29 = vld [vmem:[#allocation17_spill] sm:$0xff] }
 0x960   :  { %v11880_v14 = vmul.f32 %v16822_v26, %v11832_v4  ;;  %v16824_v16 = vpop.eup %16823  ;;  %v22928_v4 = vld [vmem:[#allocation59_spill] sm:$0xff] }
 0x961   :  { %v11882_v20 = vmul.f32 %v16824_v16, %v11834_v31  ;;  %v16826_v42 = vpop.eup %16825 }
 0x962   :  { %12034 = vperm.xlu1 %14784, %v11868_v59   ;;  %v11884_v30 = vmul.f32 %v16826_v42, %v11836_v47  ;;  %v22931_v42 = vld [vmem:[#allocation21_spill] sm:$0xff] }
 0x966   :  { %12044 = vperm.xlu1 %14784, %v11870_v2   ;;  %v22922_v2 = vld [vmem:[#allocation43_spill] sm:$0xff] }
 0x96a   :  { %12054 = vperm.xlu1 %14784, %v11872_v25  }
 0x96e   :  { %12064 = vperm.xlu1 %14784, %v11874_v28   ;;  %v22925_v28 = vld [vmem:[#allocation13_spill] sm:$0xff] }
 0x972   :  { %12074 = vperm.xlu1 %14784, %v11876_v48  }
 0x976   :  { %12084 = vperm.xlu1 %14784, %v11878_v34  }
 0x97a   :  { %12094 = vperm.xlu1 %14784, %v11880_v14   ;;  %v22929_v14 = vld [vmem:[#allocation20_spill] sm:$0xff] }
 0x97d   :  { %v11637_v54 = vpop.xlane.xlu1 %11636 }
 0x97e   :  { %v11691_v8 = vmul.f32 0.020408163, %v11637_v54  ;;  %12104 = vperm.xlu1 %14784, %v11882_v20   ;;  %v22930_v20 = vld [vmem:[#allocation61_spill] sm:$0xff] }
 0x980   :  { %v11739_v40 = vadd.f32 0.001, %v11691_v8 }
 0x981   :  { %v11915_v5 = vpop.permute.xlu1 %11914 }
 0x982   :  { %16827 = vrsqrt.f32 %v11739_v40  ;;  %v12132_v1 = vmul.f32 %v11915_v5, %v22918_v55  ;;  %12114 = vperm.xlu1 %14784, %v11884_v30   ;;  %v22932_v30 = vld [vmem:[#allocation26_spill] sm:$0xff] }
 0x983   :  { %v11646_v33 = vpop.xlane.xlu0 %11645 }
 0x984   :  { %v12468_v56 = vadd.f32 %v22919_v37, %v12132_v1  ;;  %v11694_v15 = vmul.f32 0.020408163, %v11646_v33  ;;  %v22933_v1 = vld [vmem:[#allocation3_spill] sm:$0xff] }
 0x986   :  { %12516 = vst.msk [vmem:[%s22553_s6 + $0x28] sm:$0xff] %vm11213_vm2, %v12468_v56  ;;  %v11742_v10 = vadd.f32 0.001, %v11694_v15  ;;  %v22934_v56 = vld [vmem:[#allocation50_spill] sm:$0xff] }
 0x988   :  { %16829 = vrsqrt.f32 %v11742_v10 }
 0x98b   :  { %v11930_v3 = vpop.permute.xlu0 %11929 }
 0x98c   :  { %v16828_v45 = vpop.eup %16827  ;;  %v12135_v6 = vmul.f32 %v11930_v3, %v21742_v51 }
 0x98d   :  { %v11883_v36 = vmul.f32 %v16828_v45, %v11835_v32  ;;  %v22935_v32 = vld [vmem:[#allocation27_spill] sm:$0xff]  ;;  %v22936_v45 = vld [vmem:[#allocation37_spill] sm:$0xff] }
 0x98e   :  { %v12471_v46 = vadd.f32 %v22920_v52, %v12135_v6 }
 0x98f   :  { %v11940_v24 = vpop.permute.xlu0 %11939  ;;  %12109 = vperm.xlu0 %14785, %v11883_v36   ;;  %v22937_v36 = vld [vmem:[#allocation4_spill] sm:$0xff] }
 0x990   :  { %12519 = vst.msk [vmem:[%s22553_s6 + $0x40] sm:$0xff] %vm11213_vm2, %v12471_v46  ;;  %v12137_v17 = vmul.f32 %v11940_v24, %v21764_v39  ;;  %v12222_v39 = vld [vmem:[%s22551_s5 + $0x178] sm:$0xff]  ;;  %v22938_v24 = vld [vmem:[#allocation51_spill] sm:$0xff] }
 0x992   :  { %v16830_v59 = vpop.eup %16829  ;;  %v12473_v49 = vadd.f32 %v22921_v35, %v12137_v17 }
 0x993   :  { %v11950_v51 = vpop.permute.xlu0 %11949  ;;  %v11886_v7 = vmul.f32 %v16830_v59, %v11838_v57  ;;  %v22939_v59 = vld [vmem:[#allocation29_spill] sm:$0xff] }
 0x994   :  { %12521 = vst.msk [vmem:[%s22553_s6 + $0x50] sm:$0xff] %vm11213_vm2, %v12473_v49  ;;  %v12139_v0 = vmul.f32 %v11950_v51, %v21778_v11  ;;  %v22940_v49 = vld [vmem:[#allocation40_spill] sm:$0xff] }
 0x995   :  { %12124 = vperm.xlu1 %14784, %v11886_v7   ;;  %v22941_v7 = vld [vmem:[#allocation6_spill] sm:$0xff] }
 0x996   :  { %v12475_v58 = vadd.f32 %v22922_v2, %v12139_v0 }
 0x997   :  { %v11960_v19 = vpop.permute.xlu0 %11959 }
 0x998   :  { %12523 = vst.msk [vmem:[%s22553_s6 + $0x60] sm:$0xff] %vm11213_vm2, %v12475_v58  ;;  %v12141_v23 = vmul.f32 %v11960_v19, %v21791_v62  ;;  %v22942_v58 = vld [vmem:[#allocation52_spill] sm:$0xff] }
 0x999   :  { %12460 = vperm.xlu1 %14784, %v12222_v39  }
 0x99a   :  { %v12477_v25 = vadd.f32 %v22923_v27, %v12141_v23  ;;  %v11837_v23 = vld [vmem:[%s22552_s4 + $0x170] sm:$0xff]  ;;  %v22943_v27 = vld [vmem:[#allocation31_spill] sm:$0xff] }
 0x99b   :  { %v11970_v50 = vpop.permute.xlu0 %11969 }
 0x99c   :  { %12525 = vst.msk [vmem:[%s22553_s6 + $0x70] sm:$0xff] %vm11213_vm2, %v12477_v25  ;;  %v12143_v11 = vmul.f32 %v11970_v50, %v21803_v41 }
 0x99e   :  { %v12479_v18 = vadd.f32 %v22924_v12, %v12143_v11  ;;  %v22944_v11 = vld [vmem:[#allocation41_spill] sm:$0xff] }
 0x99f   :  { %v11980_v9 = vpop.permute.xlu0 %11979 }
 0x9a0   :  { %12527 = vst.msk [vmem:[%s22553_s6 + $0x80] sm:$0xff] %vm11213_vm2, %v12479_v18  ;;  %v12145_v62 = vmul.f32 %v11980_v9, %v21815_v43  ;;  %v22945_v18 = vld [vmem:[#allocation45_spill] sm:$0xff] }
 0x9a2   :  { %v12481_v63 = vadd.f32 %v22925_v28, %v12145_v62 }
 0x9a3   :  { %v11990_v38 = vpop.permute.xlu0 %11989 }
 0x9a4   :  { %12529 = vst.msk [vmem:[%s22553_s6 + $0x90] sm:$0xff] %vm11213_vm2, %v12481_v63  ;;  %v12147_v41 = vmul.f32 %v11990_v38, %v21827_v13  ;;  %v22946_v63 = vld [vmem:[#allocation53_spill] sm:$0xff] }
 0x9a6   :  { %v12483_v48 = vadd.f32 %v22926_v61, %v12147_v41  ;;  %v22947_v61 = vld [vmem:[#allocation22_spill] sm:$0xff] }
 0x9a7   :  { %v12000_v53 = vpop.permute.xlu0 %11999 }
 0x9a8   :  { %12531 = vst.msk [vmem:[%s22553_s6 + $0xa0] sm:$0xff] %vm11213_vm2, %v12483_v48  ;;  %v12149_v43 = vmul.f32 %v12000_v53, %v21839_v44  ;;  %v22948_v53 = vld [vmem:[#allocation44_spill] sm:$0xff] }
 0x9aa   :  { %v12485_v34 = vadd.f32 %v22927_v29, %v12149_v43  ;;  %v12221_v29 = vld [vmem:[%s22551_s5 + $0x170] sm:$0xff] }
 0x9ab   :  { %v12010_v26 = vpop.permute.xlu0 %12009 }
 0x9ac   :  { %12533 = vst.msk [vmem:[%s22553_s6 + $0xb0] sm:$0xff] %vm11213_vm2, %v12485_v34  ;;  %v12151_v13 = vmul.f32 %v12010_v26, %v22928_v4  ;;  %v22949_v34 = vld [vmem:[#allocation8_spill] sm:$0xff] }
 0x9ae   :  { %v12487_v16 = vadd.f32 %v22929_v14, %v12151_v13  ;;  %v22950_v13 = vld [vmem:[#allocation54_spill] sm:$0xff] }
 0x9af   :  { %v12020_v31 = vpop.permute.xlu0 %12019 }
 0x9b0   :  { %12535 = vst.msk [vmem:[%s22553_s6 + $0xc0] sm:$0xff] %vm11213_vm2, %v12487_v16  ;;  %v12153_v44 = vmul.f32 %v12020_v31, %v22930_v20  ;;  %v22951_v31 = vld [vmem:[#allocation34_spill] sm:$0xff] }
 0x9b2   :  { %v12489_v54 = vadd.f32 %v22931_v42, %v12153_v44  ;;  %v11643_v47 = vpop.xlane.xlu1 %11642  ;;  %v22952_v44 = vld [vmem:[#allocation63_spill] sm:$0xff] }
 0x9b3   :  { %v11693_v8 = vmul.f32 0.020408163, %v11643_v47  ;;  %v12030_v40 = vpop.permute.xlu0 %12029 }
 0x9b4   :  { %12537 = vst.msk [vmem:[%s22553_s6 + $0xd0] sm:$0xff] %vm11213_vm2, %v12489_v54  ;;  %v12155_v5 = vmul.f32 %v12030_v40, %v22932_v30  ;;  %v22953_v54 = vld [vmem:[#allocation68_spill] sm:$0xff]  ;;  %v22954_v40 = vld [vmem:[#allocation55_spill] sm:$0xff] }
 0x9b5   :  { %v11741_v55 = vadd.f32 0.001, %v11693_v8 }
 0x9b6   :  { %v12491_v33 = vadd.f32 %v22933_v1, %v12155_v5  ;;  %v11925_v37 = vpop.permute.xlu1 %11924 }
 0x9b7   :  { %16831 = vrsqrt.f32 %v11741_v55  ;;  %v12134_v15 = vmul.f32 %v11925_v37, %v22934_v56  ;;  %v12040_v10 = vpop.permute.xlu0 %12039  ;;  %v22955_v55 = vld [vmem:[#allocation72_spill] sm:$0xff]  ;;  %v22957_v56 = vld [vmem:[#allocation9_spill] sm:$0xff] }
 0x9b8   :  { %12539 = vst.msk [vmem:[%s22553_s6 + $0xe0] sm:$0xff] %vm11213_vm2, %v12491_v33  ;;  %v12157_v3 = vmul.f32 %v12040_v10, %v22935_v32  ;;  %v22956_v33 = vld [vmem:[#allocation12_spill] sm:$0xff] }
 0x9b9   :  { %v12470_v6 = vadd.f32 %v22936_v45, %v12134_v15  ;;  %v22958_v32 = vld [vmem:[#allocation56_spill] sm:$0xff]  ;;  %v22959_v45 = vld [vmem:[#allocation14_spill] sm:$0xff] }
 0x9ba   :  { %v12493_v52 = vadd.f32 %v22937_v36, %v12157_v3  ;;  %v11935_v46 = vpop.permute.xlu1 %11934 }
 0x9bb   :  { %12518 = vst.msk [vmem:[%s22553_s6 + $0x38] sm:$0xff] %vm11213_vm2, %v12470_v6  ;;  %v12136_v17 = vmul.f32 %v11935_v46, %v22938_v24  ;;  %v12050_v57 = vpop.permute.xlu0 %12049  ;;  %v22961_v24 = vld [vmem:[#allocation15_spill] sm:$0xff] }
 0x9bc   :  { %12541 = vst.msk [vmem:[%s22553_s6 + $0xf0] sm:$0xff] %vm11213_vm2, %v12493_v52  ;;  %v12159_v35 = vmul.f32 %v12050_v57, %v22939_v59  ;;  %v22960_v52 = vld [vmem:[#allocation57_spill] sm:$0xff]  ;;  %v22962_v59 = vld [vmem:[#allocation58_spill] sm:$0xff] }
 0x9bd   :  { %v12472_v51 = vadd.f32 %v22940_v49, %v12136_v17  ;;  %v22963_v49 = vld [vmem:[#allocation18_spill] sm:$0xff] }
 0x9be   :  { %v12495_v0 = vadd.f32 %v22941_v7, %v12159_v35  ;;  %v11945_v2 = vpop.permute.xlu1 %11944 }
 0x9bf   :  { %12520 = vst.msk [vmem:[%s22553_s6 + $0x48] sm:$0xff] %vm11213_vm2, %v12472_v51  ;;  %v12138_v39 = vmul.f32 %v11945_v2, %v22942_v58  ;;  %v12060_v19 = vpop.permute.xlu0 %12059 }
 0x9c0   :  { %12543 = vst.msk [vmem:[%s22553_s6 + $0x100] sm:$0xff] %vm11213_vm2, %v12495_v0  ;;  %v12161_v25 = vmul.f32 %v12060_v19, %v22943_v27  ;;  %v22964_v0 = vld [vmem:[#allocation75_spill] sm:$0xff] }
 0x9c1   :  { %v16832_v50 = vpop.eup %16831  ;;  %v12474_v12 = vadd.f32 %v22944_v11, %v12138_v39  ;;  %v22965_v39 = vld [vmem:[#allocation60_spill] sm:$0xff] }
 0x9c2   :  { %v12497_v9 = vadd.f32 %v22945_v18, %v12161_v25  ;;  %v11955_v62 = vpop.permute.xlu1 %11954  ;;  %v11885_v28 = vmul.f32 %v16832_v50, %v11837_v23  ;;  %v22966_v23 = vld [vmem:[#allocation24_spill] sm:$0xff]  ;;  %v22967_v25 = vld [vmem:[#allocation19_spill] sm:$0xff] }
 0x9c3   :  { %12522 = vst.msk [vmem:[%s22553_s6 + $0x58] sm:$0xff] %vm11213_vm2, %v12474_v12  ;;  %v12140_v38 = vmul.f32 %v11955_v62, %v22946_v63  ;;  %v12070_v41 = vpop.permute.xlu0 %12069  ;;  %v22968_v12 = vld [vmem:[#allocation62_spill] sm:$0xff]  ;;  %v22970_v63 = vld [vmem:[#allocation28_spill] sm:$0xff] }
 0x9c4   :  { %12545 = vst.msk [vmem:[%s22553_s6 + $0x110] sm:$0xff] %vm11213_vm2, %v12497_v9  ;;  %v12163_v48 = vmul.f32 %v12070_v41, %v22947_v61  ;;  %12119 = vperm.xlu0 %14785, %v11885_v28   ;;  %v22969_v9 = vld [vmem:[#allocation23_spill] sm:$0xff]  ;;  %v22971_v41 = vld [vmem:[#allocation2_spill] sm:$0xff] }
 0x9c5   :  { %v12476_v43 = vadd.f32 %v22948_v53, %v12140_v38  ;;  %v22972_v53 = vld [vmem:[#allocation30_spill] sm:$0xff] }
 0x9c6   :  { %v12499_v26 = vadd.f32 %v22949_v34, %v12163_v48  ;;  %v11965_v4 = vpop.permute.xlu1 %11964 }
 0x9c7   :  { %12524 = vst.msk [vmem:[%s22553_s6 + $0x68] sm:$0xff] %vm11213_vm2, %v12476_v43  ;;  %v12142_v14 = vmul.f32 %v11965_v4, %v22950_v13  ;;  %v12080_v16 = vpop.permute.xlu0 %12079  ;;  %v22974_v4 = vld [vmem:[#allocation32_spill] sm:$0xff] }
 0x9c8   :  { %12547 = vst.msk [vmem:[%s22553_s6 + $0x120] sm:$0xff] %vm11213_vm2, %v12499_v26  ;;  %v12165_v20 = vmul.f32 %v12080_v16, %v22951_v31  ;;  %12455 = vperm.xlu0 %14785, %v12221_v29   ;;  %v22973_v29 = vld [vmem:[#allocation65_spill] sm:$0xff] }
 0x9c9   :  { %v12478_v42 = vadd.f32 %v22952_v44, %v12142_v14  ;;  %v22975_v14 = vld [vmem:[#allocation5_spill] sm:$0xff] }
 0x9ca   :  { %v12501_v47 = vadd.f32 %v22953_v54, %v12165_v20  ;;  %v11975_v8 = vpop.permute.xlu1 %11974  ;;  %v22976_v20 = vld [vmem:[#allocation33_spill] sm:$0xff] }
 0x9cb   :  { %12526 = vst.msk [vmem:[%s22553_s6 + $0x78] sm:$0xff] %vm11213_vm2, %v12478_v42  ;;  %v12144_v30 = vmul.f32 %v11975_v8, %v22954_v40  ;;  %v12090_v5 = vpop.permute.xlu0 %12089  ;;  %v22977_v42 = vld [vmem:[#allocation7_spill] sm:$0xff]  ;;  %v22978_v8 = vld [vmem:[#allocation66_spill] sm:$0xff] }
 0x9cc   :  { %12549 = vst.msk [vmem:[%s22553_s6 + $0x130] sm:$0xff] %vm11213_vm2, %v12501_v47  ;;  %v12167_v1 = vmul.f32 %v12090_v5, %v22955_v55 }
 0x9cd   :  { %v12480_v37 = vadd.f32 %v22956_v33, %v12144_v30  ;;  %v22979_v30 = vld [vmem:[#allocation69_spill] sm:$0xff] }
 0x9ce   :  { %v12503_v15 = vadd.f32 %v22957_v56, %v12167_v1  ;;  %v11985_v10 = vpop.permute.xlu1 %11984  ;;  %v22980_v1 = vld [vmem:[#allocation71_spill] sm:$0xff] }
 0x9cf   :  { %12528 = vst.msk [vmem:[%s22553_s6 + $0x88] sm:$0xff] %vm11213_vm2, %v12480_v37  ;;  %v12146_v3 = vmul.f32 %v11985_v10, %v22958_v32  ;;  %v22981_v37 = vld [vmem:[#allocation70_spill] sm:$0xff]  ;;  %v22982_v10 = vld [vmem:[#allocation73_spill] sm:$0xff] }
 0x9d0   :  { %12551 = vst.msk [vmem:[%s22553_s6 + $0x140] sm:$0xff] %vm11213_vm2, %v12503_v15 }
 0x9d1   :  { %v12482_v6 = vadd.f32 %v22959_v45, %v12146_v3  ;;  %v22983_v3 = vld [vmem:[#allocation10_spill] sm:$0xff] }
 0x9d2   :  { %v11995_v36 = vpop.permute.xlu1 %11994 }
 0x9d3   :  { %12530 = vst.msk [vmem:[%s22553_s6 + $0x98] sm:$0xff] %vm11213_vm2, %v12482_v6  ;;  %v12148_v46 = vmul.f32 %v11995_v36, %v22960_v52  ;;  %v22984_v36 = vld [vmem:[#allocation74_spill] sm:$0xff] }
 0x9d5   :  { %v12484_v17 = vadd.f32 %v22961_v24, %v12148_v46  ;;  %v22985_v46 = vld [vmem:[#allocation25_spill] sm:$0xff] }
 0x9d6   :  { %v12005_v57 = vpop.permute.xlu1 %12004 }
 0x9d7   :  { %12532 = vst.msk [vmem:[%s22553_s6 + $0xa8] sm:$0xff] %vm11213_vm2, %v12484_v17  ;;  %v12150_v35 = vmul.f32 %v12005_v57, %v22962_v59  ;;  %v22986_v57 = vld [vmem:[#allocation76_spill] sm:$0xff] }
 0x9d9   :  { %v12486_v51 = vadd.f32 %v22963_v49, %v12150_v35  ;;  %v12100_v7 = vpop.permute.xlu0 %12099  ;;  %v22987_v35 = vld [vmem:[#allocation47_spill] sm:$0xff] }
 0x9da   :  { %v12169_v2 = vmul.f32 %v12100_v7, %v22964_v0  ;;  %v12015_v58 = vpop.permute.xlu1 %12014  ;;  %v22988_v0 = vld [vmem:[#allocation11_spill] sm:$0xff] }
 0x9db   :  { %12534 = vst.msk [vmem:[%s22553_s6 + $0xb8] sm:$0xff] %vm11213_vm2, %v12486_v51  ;;  %v12152_v19 = vmul.f32 %v12015_v58, %v22965_v39 }
 0x9dc   :  { %v12505_v27 = vadd.f32 %v22966_v23, %v12169_v2 }
 0x9dd   :  { %v12488_v50 = vadd.f32 %v22967_v25, %v12152_v19 }
 0x9de   :  { %12553 = vst.msk [vmem:[%s22553_s6 + $0x150] sm:$0xff] %vm11213_vm2, %v12505_v27  ;;  %v12025_v11 = vpop.permute.xlu1 %12024 }
 0x9df   :  { %12536 = vst.msk [vmem:[%s22553_s6 + $0xc8] sm:$0xff] %vm11213_vm2, %v12488_v50  ;;  %v12154_v18 = vmul.f32 %v12025_v11, %v22968_v12 }
 0x9e1   :  { %v12490_v62 = vadd.f32 %v22969_v9, %v12154_v18 }
 0x9e2   :  { %v12035_v28 = vpop.permute.xlu1 %12034 }
 0x9e3   :  { %12538 = vst.msk [vmem:[%s22553_s6 + $0xd8] sm:$0xff] %vm11213_vm2, %v12490_v62  ;;  %v12156_v38 = vmul.f32 %v12035_v28, %v22970_v63 }
 0x9e5   :  { %v12492_v61 = vadd.f32 %v22971_v41, %v12156_v38 }
 0x9e6   :  { %v12045_v48 = vpop.permute.xlu1 %12044 }
 0x9e7   :  { %12540 = vst.msk [vmem:[%s22553_s6 + $0xe8] sm:$0xff] %vm11213_vm2, %v12492_v61  ;;  %v12158_v43 = vmul.f32 %v12045_v48, %v22972_v53 }
 0x9e9   :  { %v12494_v34 = vadd.f32 %v22973_v29, %v12158_v43 }
 0x9ea   :  { %v12055_v26 = vpop.permute.xlu1 %12054 }
 0x9eb   :  { %12542 = vst.msk [vmem:[%s22553_s6 + $0xf8] sm:$0xff] %vm11213_vm2, %v12494_v34  ;;  %v12160_v13 = vmul.f32 %v12055_v26, %v22974_v4 }
 0x9ed   :  { %v12496_v16 = vadd.f32 %v22975_v14, %v12160_v13 }
 0x9ee   :  { %v12065_v31 = vpop.permute.xlu1 %12064 }
 0x9ef   :  { %12544 = vst.msk [vmem:[%s22553_s6 + $0x108] sm:$0xff] %vm11213_vm2, %v12496_v16  ;;  %v12162_v44 = vmul.f32 %v12065_v31, %v22976_v20 }
 0x9f1   :  { %v12498_v54 = vadd.f32 %v22977_v42, %v12162_v44 }
 0x9f2   :  { %v12075_v47 = vpop.permute.xlu1 %12074 }
 0x9f3   :  { %12546 = vst.msk [vmem:[%s22553_s6 + $0x118] sm:$0xff] %vm11213_vm2, %v12498_v54  ;;  %v12164_v40 = vmul.f32 %v12075_v47, %v22978_v8 }
 0x9f5   :  { %v12500_v5 = vadd.f32 %v22979_v30, %v12164_v40 }
 0x9f6   :  { %v12085_v55 = vpop.permute.xlu1 %12084 }
 0x9f7   :  { %12548 = vst.msk [vmem:[%s22553_s6 + $0x128] sm:$0xff] %vm11213_vm2, %v12500_v5  ;;  %v12166_v33 = vmul.f32 %v12085_v55, %v22980_v1 }
 0x9f9   :  { %v12502_v56 = vadd.f32 %v22981_v37, %v12166_v33 }
 0x9fa   :  { %v12095_v15 = vpop.permute.xlu1 %12094 }
 0x9fb   :  { %12550 = vst.msk [vmem:[%s22553_s6 + $0x138] sm:$0xff] %vm11213_vm2, %v12502_v56  ;;  %v12168_v32 = vmul.f32 %v12095_v15, %v22982_v10 }
 0x9fd   :  { %v12504_v45 = vadd.f32 %v22983_v3, %v12168_v32 }
 0x9fe   :  { %v12105_v6 = vpop.permute.xlu1 %12104 }
 0x9ff   :  { %12552 = vst.msk [vmem:[%s22553_s6 + $0x148] sm:$0xff] %vm11213_vm2, %v12504_v45  ;;  %v12170_v52 = vmul.f32 %v12105_v6, %v22984_v36 }
 0xa01   :  { %v12506_v24 = vadd.f32 %v22985_v46, %v12170_v52 }
 0xa02   :  { %v12115_v17 = vpop.permute.xlu1 %12114 }
 0xa03   :  { %12554 = vst.msk [vmem:[%s22553_s6 + $0x158] sm:$0xff] %vm11213_vm2, %v12506_v24  ;;  %v12172_v59 = vmul.f32 %v12115_v17, %v22986_v57 }
 0xa05   :  { %v12508_v49 = vadd.f32 %v22987_v35, %v12172_v59 }
 0xa07   :  { %12556 = vst.msk [vmem:[%s22553_s6 + $0x168] sm:$0xff] %vm11213_vm2, %v12508_v49 }
 0xa0e   :  { %v12110_v51 = vpop.permute.xlu0 %12109 }
 0xa0f   :  { %v12171_v7 = vmul.f32 %v12110_v51, %v22070_v22 }
 0xa11   :  { %v12507_v2 = vadd.f32 %v22988_v0, %v12171_v7 }
 0xa13   :  { %12555 = vst.msk [vmem:[%s22553_s6 + $0x160] sm:$0xff] %vm11213_vm2, %v12507_v2 }
 0xa14   :  { %v12125_v58 = vpop.permute.xlu1 %12124 }
 0xa15   :  { %v12174_v39 = vmul.f32 %v12125_v58, %v22082_v21 }
 0xa18   :  { %v12461_v19 = vpop.permute.xlu1 %12460 }
 0xa19   :  { %v12510_v23 = vadd.f32 %v12461_v19, %v12174_v39 }
 0xa1b   :  { %12558 = vst.msk [vmem:[%s22553_s6 + $0x178] sm:$0xff] %vm11213_vm2, %v12510_v23 }
 0xa43   :  { %v12120_v27 = vpop.permute.xlu0 %12119 }
 0xa44   :  { %v12173_v22 = vmul.f32 %v12120_v27, %v22131_v60 }
 0xa47   :  { %v12456_v25 = vpop.permute.xlu0 %12455 }
 0xa48   :  { %v12509_v50 = vadd.f32 %v12456_v25, %v12173_v22 }
 0xa4a   :  { %12557 = vst.msk [vmem:[%s22553_s6 + $0x170] sm:$0xff] %vm11213_vm2, %v12509_v50 }

</bundles_post_ra>
